<compile_context>
chip_gen: v5e
topology: v5e:2x2
jax: 0.10.0
libtpu: 0.0.40
codegen_flags: <defaults>
</compile_context>

<pallas_src>
import functools

import jax
import jax.numpy as jnp
from jax.experimental import pallas as pl
from jax.experimental.pallas import tpu as pltpu


# ---------------------------------------------------------------------------
# Pallas kernels
# ---------------------------------------------------------------------------
def _conv3x3_kernel(taps, m_out, relu, x_ref, w_ref, b_ref, o_ref):
    """3x3 SAME conv + bias (+ReLU) over one flattened, halo-padded image.

    x_ref : (1, Mext, Cin)  f32   flattened padded image (one batch element)
    w_ref : (9, Cin, Cout)  bf16  taps in (di, dj) row-major order
    b_ref : (1, Cout)       f32
    o_ref : (1, Mout, Cout) f32
    """
    cout = w_ref.shape[-1]
    acc = jnp.zeros((m_out, cout), jnp.float32)
    for t, start in enumerate(taps):
        a = x_ref[0, pl.ds(start, m_out), :].astype(jnp.bfloat16)
        acc = acc + jnp.dot(a, w_ref[t], preferred_element_type=jnp.float32)
    acc = acc + b_ref[...]
    if relu:
        acc = jnp.maximum(acc, 0.0)
    o_ref[0] = acc.astype(o_ref.dtype)


def _level_kernel(taps, m_out, x_ref, wh_ref, bh_ref, wo_ref, bo_ref, o_ref):
    """Fused per-pyramid-level detectors: hidden 3x3 conv + ReLU + all 1x1 heads.

    The hidden convs of both detectors on this level are concatenated along Cout;
    every sibling 1x1 head is laid out block-diagonally in wo_ref so a single
    lane-wider matmul produces all head outputs in one write (no intermediate HBM
    round trip for the hidden activations).
    """
    ch = wh_ref.shape[-1]
    acc = jnp.zeros((m_out, ch), jnp.float32)
    for t, start in enumerate(taps):
        a = x_ref[0, pl.ds(start, m_out), :].astype(jnp.bfloat16)
        acc = acc + jnp.dot(a, wh_ref[t], preferred_element_type=jnp.float32)
    hidden = jnp.maximum(acc + bh_ref[...], 0.0).astype(jnp.bfloat16)
    out = jnp.dot(hidden, wo_ref[...], preferred_element_type=jnp.float32) + bo_ref[...]
    o_ref[0] = out.astype(o_ref.dtype)


# ---------------------------------------------------------------------------
# Wrappers around pallas_call
# ---------------------------------------------------------------------------
def _halo_flatten(x_nhwc):
    """Zero-pad H by (2,2), W by (1,1) and flatten the spatial dims to rows.

    Output row r of the conv (covering spatial rows 0..H-1 and padded columns
    0..W+1) reads input flat row taps[t] + r for tap t, with all 9 slices
    statically in-bounds.
    """
    B, H, W, C = x_nhwc.shape
    wp = W + 2
    xp = jnp.pad(x_nhwc, ((0, 0), (2, 2), (1, 1), (0, 0)))
    x_flat = xp.reshape(B, (H + 4) * wp, C)
    base = 2 * wp
    taps = tuple(base + (di - 1) * wp + (dj - 1) for di in range(3) for dj in range(3))
    return x_flat, wp, H * wp, taps


def conv3x3_relu(x_nhwc, w, b):
    """3x3 SAME conv + bias + ReLU.  x: (B,H,W,Cin); w: (3,3,Cin,Cout); b: (Cout,)."""
    B, H, W, Cin = x_nhwc.shape
    Cout = w.shape[-1]
    x_flat, wp, m_out, taps = _halo_flatten(x_nhwc)
    m_ext = x_flat.shape[1]
    wf = w.reshape(9, Cin, Cout).astype(jnp.bfloat16)
    bf = b.reshape(1, Cout).astype(jnp.float32)
    out_flat = pl.pallas_call(
        functools.partial(_conv3x3_kernel, taps, m_out, True),
        out_shape=jax.ShapeDtypeStruct((B, m_out, Cout), jnp.float32),
        grid=(B,),
        in_specs=[
            pl.BlockSpec((1, m_ext, Cin), lambda i: (i, 0, 0)),
            pl.BlockSpec((9, Cin, Cout), lambda i: (0, 0, 0)),
            pl.BlockSpec((1, Cout), lambda i: (0, 0)),
        ],
        out_specs=pl.BlockSpec((1, m_out, Cout), lambda i: (i, 0, 0)),
        compiler_params=pltpu.CompilerParams(dimension_semantics=("parallel",)),
    )(x_flat, wf, bf)
    # Drop the left/right halo columns: (B, H*Wp, Cout) -> (B, H, W, Cout).
    return out_flat.reshape(B, H, wp, Cout)[:, :, 1:W + 1, :]


def fused_level_heads(feat_nhwc, w_hidden, b_hidden, w_heads, b_heads, splits):
    """One pallas_call per pyramid level: fused hidden 3x3 convs + all 1x1 heads."""
    B, H, W, Cin = feat_nhwc.shape
    Ch = w_hidden.shape[-1]
    Nf = w_heads.shape[-1]
    x_flat, wp, m_out, taps = _halo_flatten(feat_nhwc)
    m_ext = x_flat.shape[1]
    wh = w_hidden.reshape(9, Cin, Ch).astype(jnp.bfloat16)
    bh = b_hidden.reshape(1, Ch).astype(jnp.float32)
    wo = w_heads.astype(jnp.bfloat16)
    bo = b_heads.reshape(1, Nf).astype(jnp.float32)
    out_flat = pl.pallas_call(
        functools.partial(_level_kernel, taps, m_out),
        out_shape=jax.ShapeDtypeStruct((B, m_out, Nf), jnp.float32),
        grid=(B,),
        in_specs=[
            pl.BlockSpec((1, m_ext, Cin), lambda i: (i, 0, 0)),
            pl.BlockSpec((9, Cin, Ch), lambda i: (0, 0, 0)),
            pl.BlockSpec((1, Ch), lambda i: (0, 0)),
            pl.BlockSpec((Ch, Nf), lambda i: (0, 0)),
            pl.BlockSpec((1, Nf), lambda i: (0, 0)),
        ],
        out_specs=pl.BlockSpec((1, m_out, Nf), lambda i: (i, 0, 0)),
        compiler_params=pltpu.CompilerParams(dimension_semantics=("parallel",)),
    )(x_flat, wh, bh, wo, bo)
    out = out_flat.reshape(B, H, wp, Nf)[:, :, 1:W + 1, :]
    pieces, off = [], 0
    for n in splits:
        pieces.append(out[..., off:off + n])
        off += n
    return pieces


# ---------------------------------------------------------------------------
# Parameters: deterministic init (Kaiming-normal fan_out / relu, zero bias)
# ---------------------------------------------------------------------------
def init_conv(key, kh, kw, cin, cout):
    std = (2.0 / (kh * kw * cout)) ** 0.5
    w = std * jax.random.normal(key, (kh, kw, cin, cout), dtype=jnp.float32)
    b = jnp.zeros((cout,), dtype=jnp.float32)
    return w, b


def build_params(key, cfg):
    C_img = cfg["in_channels"]
    C = cfg["backbone"]["out_channels"]
    keys = iter(jax.random.split(key, 64))
    p = {}

    # Backbone: stem + 3 downsample stages producing p2..p5
    p["bb_stem"] = init_conv(next(keys), 3, 3, C_img, C)
    p["bb_p3"] = init_conv(next(keys), 3, 3, C, C)
    p["bb_p4"] = init_conv(next(keys), 3, 3, C, C)
    p["bb_p5"] = init_conv(next(keys), 3, 3, C, C)

    # SystemDetector (on p5)
    hs = cfg["system_detector"]["hidden_channels"]
    na_s = len(cfg["system_detector"]["prior_aspect_ratio"])
    p["sys_hidden"] = init_conv(next(keys), 3, 3, C, hs)
    p["sys_cls"] = init_conv(next(keys), 1, 1, hs, na_s)
    p["sys_reg"] = init_conv(next(keys), 1, 1, hs, na_s * 4)

    # StaffDetector (on p4)
    hf = cfg["staff_detector"]["hidden_channels"]
    na_f = len(cfg["staff_detector"]["prior_aspect_ratio"])
    p["stf_hidden"] = init_conv(next(keys), 3, 3, C, hf)
    p["stf_cls"] = init_conv(next(keys), 1, 1, hf, na_f)
    p["stf_reg"] = init_conv(next(keys), 1, 1, hf, na_f * 4)

    # StafflineDetector (on p3)
    hl = cfg["staffline_detector"]["hidden_channels"]
    groups = cfg["staffline_detector"]["groups"]
    p["sl_hidden"] = init_conv(next(keys), 3, 3, C, hl)
    p["sl_heat"] = init_conv(next(keys), 1, 1, hl, groups)
    p["sl_off"] = init_conv(next(keys), 1, 1, hl, 2 * groups)

    # MusicElementDetector: one head per scale (macro->p5, mid->p4, micro->p3)
    he = cfg["element_detector"]["hidden_channels"]
    p["elem"] = {}
    for scale in ("macro", "mid", "micro"):
        n_anchors = len(cfg["element_detector"]["anchors_config"][scale])
        n_classes = len(cfg["element_detector"]["class_groups"][scale]) + 1
        p["elem"][scale] = {
            "hidden": init_conv(next(keys), 3, 3, C, he),
            "cls": init_conv(next(keys), 1, 1, he, n_anchors * n_classes),
            "box": init_conv(next(keys), 1, 1, he, n_anchors * 4),
        }
    return p


def _fuse_level_params(branches):
    """branches: [((hid_w, hid_b), [(head_w, head_b), ...]), ...] on one feature map.

    Concatenates the hidden 3x3 convs along Cout and lays the 1x1 head weights out
    block-diagonally so one (Ch_total, N_total) matmul computes every head.
    Returns ((w_hidden, b_hidden, w_heads, b_heads), per-head channel splits).
    """
    hid_ws = [hw for (hw, _), _ in branches]
    hid_bs = [hb for (_, hb), _ in branches]
    w_hidden = jnp.concatenate(hid_ws, axis=-1)
    b_hidden = jnp.concatenate(hid_bs, axis=0)
    ch_total = sum(hw.shape[-1] for hw in hid_ws)

    cols, biases, splits = [], [], []
    row = 0
    for (hw, _), heads in branches:
        ch = hw.shape[-1]
        for w, b in heads:
            wm = w.reshape(ch, -1)                        # (1,1,Ch,N) -> (Ch, N)
            blk = jnp.zeros((ch_total, wm.shape[-1]), wm.dtype)
            cols.append(blk.at[row:row + ch, :].set(wm))
            biases.append(b)
            splits.append(int(wm.shape[-1]))
        row += ch
    w_heads = jnp.concatenate(cols, axis=1)
    b_heads = jnp.concatenate(biases, axis=0)
    return (w_hidden, b_hidden, w_heads, b_heads), tuple(splits)


def fuse_params(p):
    """Build the per-level fused weight tensors (done once, outside the forward)."""
    arrays, splits = {}, {}
    arrays["backbone"] = {k: p[k] for k in ("bb_stem", "bb_p3", "bb_p4", "bb_p5")}
    arrays["p5"], splits["p5"] = _fuse_level_params([
        (p["sys_hidden"], [p["sys_cls"], p["sys_reg"]]),
        (p["elem"]["macro"]["hidden"], [p["elem"]["macro"]["cls"], p["elem"]["macro"]["box"]]),
    ])
    arrays["p4"], splits["p4"] = _fuse_level_params([
        (p["stf_hidden"], [p["stf_cls"], p["stf_reg"]]),
        (p["elem"]["mid"]["hidden"], [p["elem"]["mid"]["cls"], p["elem"]["mid"]["box"]]),
    ])
    arrays["p3"], splits["p3"] = _fuse_level_params([
        (p["sl_hidden"], [p["sl_heat"], p["sl_off"]]),
        (p["elem"]["micro"]["hidden"], [p["elem"]["micro"]["cls"], p["elem"]["micro"]["box"]]),
    ])
    return arrays, splits


# ---------------------------------------------------------------------------
# Forward pass (matches the training-time raw-output path of the nn.Module)
# ---------------------------------------------------------------------------
def hierarchical_omr_forward(images_nchw, fused, splits):
    # NCHW -> NHWC (channels last = lane dim) for the TPU kernels.
    x = jnp.transpose(images_nchw, (0, 2, 3, 1)).astype(jnp.float32)
    bb = fused["backbone"]

    # Backbone: stem + 3 downsampled stages (synthetic FPN-like pyramid).  The 2x
    # downsample is an XLA strided slice that fuses with the next conv's halo pad.
    p2 = conv3x3_relu(x, *bb["bb_stem"])
    p3 = conv3x3_relu(p2[:, ::2, ::2, :], *bb["bb_p3"])
    p4 = conv3x3_relu(p3[:, ::2, ::2, :], *bb["bb_p4"])
    p5 = conv3x3_relu(p4[:, ::2, ::2, :], *bb["bb_p5"])
    feats = {"p2": p2, "p3": p3, "p4": p4, "p5": p5}

    def to_nchw(a):
        # NCHW only at the API boundary, to match the PyTorch module's layout.
        return jnp.transpose(a, (0, 3, 1, 2))

    # p5: SystemDetector + element detector "macro" head (one fused kernel).
    sys_cls, sys_reg, mac_cls, mac_box = fused_level_heads(p5, *fused["p5"], splits["p5"])
    # p4: StaffDetector + element detector "mid" head.
    stf_cls, stf_reg, mid_cls, mid_box = fused_level_heads(p4, *fused["p4"], splits["p4"])
    # p3: StafflineDetector + element detector "micro" head.
    sl_heat, sl_off, mic_cls, mic_box = fused_level_heads(p3, *fused["p3"], splits["p3"])

    outputs = {
        "system_cls": to_nchw(sys_cls),
        "system_reg": to_nchw(sys_reg),
        "staff_cls": to_nchw(stf_cls),
        "staff_reg": to_nchw(stf_reg),
        "staffline_heatmaps": to_nchw(sl_heat),
        "staffline_offsets": to_nchw(sl_off),
        "element_results": {
            "macro": (to_nchw(mac_cls), to_nchw(mac_box)),
            "mid": (to_nchw(mid_cls), to_nchw(mid_box)),
            "micro": (to_nchw(mic_cls), to_nchw(mic_box)),
        },
    }
    # TODO(synk): inference-only decode (anchors, sigmoid/softmax thresholding, NMS,
    # RelationshipModule on gathered detections) omitted: data-dependent
    # variable-length control flow with no static Pallas equivalent.
    return outputs, feats


# ---------------------------------------------------------------------------
if __name__ == "__main__":
    config = {
        "in_channels": 4,
        "backbone": {"name": "tiny", "pretrained": False, "out_channels": 8},
        "system_detector": {"hidden_channels": 8, "prior_aspect_ratio": [0.5, 1.0, 2.0]},
        "staff_detector": {"hidden_channels": 8, "prior_aspect_ratio": [2.0, 4.0]},
        "staffline_detector": {"hidden_channels": 8, "groups": 5},
        "element_detector": {
            "hidden_channels": 8,
            "class_groups": {"macro": [1, 2], "mid": [3, 4, 5], "micro": [6, 7]},
            "anchors_config": {"macro": [1.0, 2.0], "mid": [1.0, 2.0, 0.5], "micro": [1.0]},
        },
        "relationship": {"node_feat_dim": 8, "edge_feat_dim": 16,
                         "hidden_dim": 16, "num_iterations": 2},
    }

    key = jax.random.PRNGKey(0)
    k_params, k_data = jax.random.split(key)
    params = build_params(k_params, config)
    fused_arrays, head_splits = fuse_params(params)

    # Small, deterministic example input: [B, C, H, W] = [2, 4, 16, 16]
    images = jax.random.normal(k_data, (2, 4, 16, 16), dtype=jnp.float32)

    fwd = jax.jit(functools.partial(hierarchical_omr_forward, splits=head_splits))
    outputs, feats = fwd(images, fused_arrays)
    jax.block_until_ready(jax.tree_util.tree_leaves(outputs))

    # Light sanity checks on shapes (NCHW, matching the PyTorch module semantics)
    assert outputs["system_cls"].shape == (2, 3, 2, 2)
    assert outputs["system_reg"].shape == (2, 12, 2, 2)
    assert outputs["staff_cls"].shape == (2, 2, 4, 4)
    assert outputs["staff_reg"].shape == (2, 8, 4, 4)
    assert outputs["staffline_heatmaps"].shape == (2, 5, 8, 8)
    assert outputs["staffline_offsets"].shape == (2, 10, 8, 8)
    assert outputs["element_results"]["macro"][0].shape == (2, 6, 2, 2)
    assert outputs["element_results"]["macro"][1].shape == (2, 8, 2, 2)
    assert outputs["element_results"]["mid"][0].shape == (2, 12, 4, 4)
    assert outputs["element_results"]["mid"][1].shape == (2, 12, 4, 4)
    assert outputs["element_results"]["micro"][0].shape == (2, 3, 8, 8)
    assert outputs["element_results"]["micro"][1].shape == (2, 4, 8, 8)
    assert feats["p2"].shape == (2, 16, 16, 8)

    print("KERNEL_OK")
</pallas_src>

<mosaic_0001>
module attributes {stable_mosaic.version = 11 : i64} {
  func.func @_conv3x3_kernel(%arg0: i32, %arg1: memref<1x360x4xf32, #tpu.memory_space<vmem>>, %arg2: memref<9x4x8xbf16, #tpu.memory_space<vmem>>, %arg3: memref<1x8xf32, #tpu.memory_space<vmem>>, %arg4: memref<1x288x8xf32, #tpu.memory_space<vmem>>) attributes {dimension_semantics = [#tpu.dimension_semantics<parallel>], iteration_bounds = array<i64: 2>, scalar_prefetch = 0 : i64, scratch_operands = 0 : i64, tpu.core_type = #tpu.core_type<tc>, window_params = [{transform_indices = @transform_0, window_bounds = array<i64: 1, 360, 4>}, {pipeline_mode = #tpu.pipeline_mode<synchronous>, transform_indices = @transform_1, window_bounds = array<i64: 9, 4, 8>}, {pipeline_mode = #tpu.pipeline_mode<synchronous>, transform_indices = @transform_2, window_bounds = array<i64: 1, 8>}, {transform_indices = @transform_3, window_bounds = array<i64: 1, 288, 8>}]} {
    %cst = arith.constant 0.000000e+00 : f32
    %0 = vector.broadcast %cst : f32 to vector<288x8xf32>
    %c0 = arith.constant 0 : index
    %c17 = arith.constant 17 : index
    %c0_0 = arith.constant 0 : index
    %1 = vector.load %arg1[%c0, %c17, %c0_0] : memref<1x360x4xf32, #tpu.memory_space<vmem>>, vector<1x288x4xf32>
    %2 = vector.shape_cast %1 : vector<1x288x4xf32> to vector<288x4xf32>
    %3 = arith.truncf %2 : vector<288x4xf32> to vector<288x4xbf16>
    %c0_1 = arith.constant 0 : index
    %c0_2 = arith.constant 0 : index
    %c0_3 = arith.constant 0 : index
    %4 = vector.load %arg2[%c0_1, %c0_2, %c0_3] : memref<9x4x8xbf16, #tpu.memory_space<vmem>>, vector<1x4x8xbf16>
    %5 = vector.shape_cast %4 : vector<1x4x8xbf16> to vector<4x8xbf16>
    %cst_4 = arith.constant dense<0.000000e+00> : vector<288x8xf32>
    %6 = tpu.matmul %3, %5, %cst_4 {dimension_numbers = #tpu.dot_dimension_numbers<[1], [0], [0], [1], [0, 0, 1, 1], [], []>} : vector<288x4xbf16>, vector<4x8xbf16>, vector<288x8xf32> -> vector<288x8xf32>
    %7 = arith.addf %0, %6 : vector<288x8xf32>
    %c0_5 = arith.constant 0 : index
    %c18 = arith.constant 18 : index
    %c0_6 = arith.constant 0 : index
    %8 = vector.load %arg1[%c0_5, %c18, %c0_6] : memref<1x360x4xf32, #tpu.memory_space<vmem>>, vector<1x288x4xf32>
    %9 = vector.shape_cast %8 : vector<1x288x4xf32> to vector<288x4xf32>
    %10 = arith.truncf %9 : vector<288x4xf32> to vector<288x4xbf16>
    %c1 = arith.constant 1 : index
    %c0_7 = arith.constant 0 : index
    %c0_8 = arith.constant 0 : index
    %11 = vector.load %arg2[%c1, %c0_7, %c0_8] : memref<9x4x8xbf16, #tpu.memory_space<vmem>>, vector<1x4x8xbf16>
    %12 = vector.shape_cast %11 : vector<1x4x8xbf16> to vector<4x8xbf16>
    %cst_9 = arith.constant dense<0.000000e+00> : vector<288x8xf32>
    %13 = tpu.matmul %10, %12, %cst_9 {dimension_numbers = #tpu.dot_dimension_numbers<[1], [0], [0], [1], [0, 0, 1, 1], [], []>} : vector<288x4xbf16>, vector<4x8xbf16>, vector<288x8xf32> -> vector<288x8xf32>
    %14 = arith.addf %7, %13 : vector<288x8xf32>
    %c0_10 = arith.constant 0 : index
    %c19 = arith.constant 19 : index
    %c0_11 = arith.constant 0 : index
    %15 = vector.load %arg1[%c0_10, %c19, %c0_11] : memref<1x360x4xf32, #tpu.memory_space<vmem>>, vector<1x288x4xf32>
    %16 = vector.shape_cast %15 : vector<1x288x4xf32> to vector<288x4xf32>
    %17 = arith.truncf %16 : vector<288x4xf32> to vector<288x4xbf16>
    %c2 = arith.constant 2 : index
    %c0_12 = arith.constant 0 : index
    %c0_13 = arith.constant 0 : index
    %18 = vector.load %arg2[%c2, %c0_12, %c0_13] : memref<9x4x8xbf16, #tpu.memory_space<vmem>>, vector<1x4x8xbf16>
    %19 = vector.shape_cast %18 : vector<1x4x8xbf16> to vector<4x8xbf16>
    %cst_14 = arith.constant dense<0.000000e+00> : vector<288x8xf32>
    %20 = tpu.matmul %17, %19, %cst_14 {dimension_numbers = #tpu.dot_dimension_numbers<[1], [0], [0], [1], [0, 0, 1, 1], [], []>} : vector<288x4xbf16>, vector<4x8xbf16>, vector<288x8xf32> -> vector<288x8xf32>
    %21 = arith.addf %14, %20 : vector<288x8xf32>
    %c0_15 = arith.constant 0 : index
    %c35 = arith.constant 35 : index
    %c0_16 = arith.constant 0 : index
    %22 = vector.load %arg1[%c0_15, %c35, %c0_16] : memref<1x360x4xf32, #tpu.memory_space<vmem>>, vector<1x288x4xf32>
    %23 = vector.shape_cast %22 : vector<1x288x4xf32> to vector<288x4xf32>
    %24 = arith.truncf %23 : vector<288x4xf32> to vector<288x4xbf16>
    %c3 = arith.constant 3 : index
    %c0_17 = arith.constant 0 : index
    %c0_18 = arith.constant 0 : index
    %25 = vector.load %arg2[%c3, %c0_17, %c0_18] : memref<9x4x8xbf16, #tpu.memory_space<vmem>>, vector<1x4x8xbf16>
    %26 = vector.shape_cast %25 : vector<1x4x8xbf16> to vector<4x8xbf16>
    %cst_19 = arith.constant dense<0.000000e+00> : vector<288x8xf32>
    %27 = tpu.matmul %24, %26, %cst_19 {dimension_numbers = #tpu.dot_dimension_numbers<[1], [0], [0], [1], [0, 0, 1, 1], [], []>} : vector<288x4xbf16>, vector<4x8xbf16>, vector<288x8xf32> -> vector<288x8xf32>
    %28 = arith.addf %21, %27 : vector<288x8xf32>
    %c0_20 = arith.constant 0 : index
    %c36 = arith.constant 36 : index
    %c0_21 = arith.constant 0 : index
    %29 = vector.load %arg1[%c0_20, %c36, %c0_21] : memref<1x360x4xf32, #tpu.memory_space<vmem>>, vector<1x288x4xf32>
    %30 = vector.shape_cast %29 : vector<1x288x4xf32> to vector<288x4xf32>
    %31 = arith.truncf %30 : vector<288x4xf32> to vector<288x4xbf16>
    %c4 = arith.constant 4 : index
    %c0_22 = arith.constant 0 : index
    %c0_23 = arith.constant 0 : index
    %32 = vector.load %arg2[%c4, %c0_22, %c0_23] : memref<9x4x8xbf16, #tpu.memory_space<vmem>>, vector<1x4x8xbf16>
    %33 = vector.shape_cast %32 : vector<1x4x8xbf16> to vector<4x8xbf16>
    %cst_24 = arith.constant dense<0.000000e+00> : vector<288x8xf32>
    %34 = tpu.matmul %31, %33, %cst_24 {dimension_numbers = #tpu.dot_dimension_numbers<[1], [0], [0], [1], [0, 0, 1, 1], [], []>} : vector<288x4xbf16>, vector<4x8xbf16>, vector<288x8xf32> -> vector<288x8xf32>
    %35 = arith.addf %28, %34 : vector<288x8xf32>
    %c0_25 = arith.constant 0 : index
    %c37 = arith.constant 37 : index
    %c0_26 = arith.constant 0 : index
    %36 = vector.load %arg1[%c0_25, %c37, %c0_26] : memref<1x360x4xf32, #tpu.memory_space<vmem>>, vector<1x288x4xf32>
    %37 = vector.shape_cast %36 : vector<1x288x4xf32> to vector<288x4xf32>
    %38 = arith.truncf %37 : vector<288x4xf32> to vector<288x4xbf16>
    %c5 = arith.constant 5 : index
    %c0_27 = arith.constant 0 : index
    %c0_28 = arith.constant 0 : index
    %39 = vector.load %arg2[%c5, %c0_27, %c0_28] : memref<9x4x8xbf16, #tpu.memory_space<vmem>>, vector<1x4x8xbf16>
    %40 = vector.shape_cast %39 : vector<1x4x8xbf16> to vector<4x8xbf16>
    %cst_29 = arith.constant dense<0.000000e+00> : vector<288x8xf32>
    %41 = tpu.matmul %38, %40, %cst_29 {dimension_numbers = #tpu.dot_dimension_numbers<[1], [0], [0], [1], [0, 0, 1, 1], [], []>} : vector<288x4xbf16>, vector<4x8xbf16>, vector<288x8xf32> -> vector<288x8xf32>
    %42 = arith.addf %35, %41 : vector<288x8xf32>
    %c0_30 = arith.constant 0 : index
    %c53 = arith.constant 53 : index
    %c0_31 = arith.constant 0 : index
    %43 = vector.load %arg1[%c0_30, %c53, %c0_31] : memref<1x360x4xf32, #tpu.memory_space<vmem>>, vector<1x288x4xf32>
    %44 = vector.shape_cast %43 : vector<1x288x4xf32> to vector<288x4xf32>
    %45 = arith.truncf %44 : vector<288x4xf32> to vector<288x4xbf16>
    %c6 = arith.constant 6 : index
    %c0_32 = arith.constant 0 : index
    %c0_33 = arith.constant 0 : index
    %46 = vector.load %arg2[%c6, %c0_32, %c0_33] : memref<9x4x8xbf16, #tpu.memory_space<vmem>>, vector<1x4x8xbf16>
    %47 = vector.shape_cast %46 : vector<1x4x8xbf16> to vector<4x8xbf16>
    %cst_34 = arith.constant dense<0.000000e+00> : vector<288x8xf32>
    %48 = tpu.matmul %45, %47, %cst_34 {dimension_numbers = #tpu.dot_dimension_numbers<[1], [0], [0], [1], [0, 0, 1, 1], [], []>} : vector<288x4xbf16>, vector<4x8xbf16>, vector<288x8xf32> -> vector<288x8xf32>
    %49 = arith.addf %42, %48 : vector<288x8xf32>
    %c0_35 = arith.constant 0 : index
    %c54 = arith.constant 54 : index
    %c0_36 = arith.constant 0 : index
    %50 = vector.load %arg1[%c0_35, %c54, %c0_36] : memref<1x360x4xf32, #tpu.memory_space<vmem>>, vector<1x288x4xf32>
    %51 = vector.shape_cast %50 : vector<1x288x4xf32> to vector<288x4xf32>
    %52 = arith.truncf %51 : vector<288x4xf32> to vector<288x4xbf16>
    %c7 = arith.constant 7 : index
    %c0_37 = arith.constant 0 : index
    %c0_38 = arith.constant 0 : index
    %53 = vector.load %arg2[%c7, %c0_37, %c0_38] : memref<9x4x8xbf16, #tpu.memory_space<vmem>>, vector<1x4x8xbf16>
    %54 = vector.shape_cast %53 : vector<1x4x8xbf16> to vector<4x8xbf16>
    %cst_39 = arith.constant dense<0.000000e+00> : vector<288x8xf32>
    %55 = tpu.matmul %52, %54, %cst_39 {dimension_numbers = #tpu.dot_dimension_numbers<[1], [0], [0], [1], [0, 0, 1, 1], [], []>} : vector<288x4xbf16>, vector<4x8xbf16>, vector<288x8xf32> -> vector<288x8xf32>
    %56 = arith.addf %49, %55 : vector<288x8xf32>
    %c0_40 = arith.constant 0 : index
    %c55 = arith.constant 55 : index
    %c0_41 = arith.constant 0 : index
    %57 = vector.load %arg1[%c0_40, %c55, %c0_41] : memref<1x360x4xf32, #tpu.memory_space<vmem>>, vector<1x288x4xf32>
    %58 = vector.shape_cast %57 : vector<1x288x4xf32> to vector<288x4xf32>
    %59 = arith.truncf %58 : vector<288x4xf32> to vector<288x4xbf16>
    %c8 = arith.constant 8 : index
    %c0_42 = arith.constant 0 : index
    %c0_43 = arith.constant 0 : index
    %60 = vector.load %arg2[%c8, %c0_42, %c0_43] : memref<9x4x8xbf16, #tpu.memory_space<vmem>>, vector<1x4x8xbf16>
    %61 = vector.shape_cast %60 : vector<1x4x8xbf16> to vector<4x8xbf16>
    %cst_44 = arith.constant dense<0.000000e+00> : vector<288x8xf32>
    %62 = tpu.matmul %59, %61, %cst_44 {dimension_numbers = #tpu.dot_dimension_numbers<[1], [0], [0], [1], [0, 0, 1, 1], [], []>} : vector<288x4xbf16>, vector<4x8xbf16>, vector<288x8xf32> -> vector<288x8xf32>
    %63 = arith.addf %56, %62 : vector<288x8xf32>
    %c0_45 = arith.constant 0 : index
    %c0_46 = arith.constant 0 : index
    %64 = vector.load %arg3[%c0_45, %c0_46] : memref<1x8xf32, #tpu.memory_space<vmem>>, vector<1x8xf32>
    %65 = vector.broadcast %64 : vector<1x8xf32> to vector<288x8xf32>
    %66 = arith.addf %63, %65 : vector<288x8xf32>
    %cst_47 = arith.constant 0.000000e+00 : f32
    %67 = vector.broadcast %cst_47 : f32 to vector<288x8xf32>
    %68 = arith.maximumf %66, %67 : vector<288x8xf32>
    %c0_48 = arith.constant 0 : index
    %c0_49 = arith.constant 0 : index
    %c0_50 = arith.constant 0 : index
    %69 = vector.load %arg4[%c0_48, %c0_49, %c0_50] : memref<1x288x8xf32, #tpu.memory_space<vmem>>, vector<1x288x8xf32>
    %70 = vector.shape_cast %69 : vector<1x288x8xf32> to vector<288x8xf32>
    %71 = vector.shape_cast %68 : vector<288x8xf32> to vector<1x288x8xf32>
    tpu.vector_store %arg4[%c0_48, %c0_49, %c0_50], %71 {strides = array<i32>} : memref<1x288x8xf32, #tpu.memory_space<vmem>>, vector<1x288x8xf32>,
    return
  }
  func.func @transform_0(%arg0: i32) -> (i32, i32, i32) {
    %c0_i32 = arith.constant 0 : i32
    %c0_i32_0 = arith.constant 0 : i32
    %c0_i32_1 = arith.constant 0 : i32
    return %arg0, %c0_i32, %c0_i32_0 : i32, i32, i32
  }
  func.func @transform_1(%arg0: i32) -> (i32, i32, i32) {
    %c0_i32 = arith.constant 0 : i32
    %c0_i32_0 = arith.constant 0 : i32
    %c0_i32_1 = arith.constant 0 : i32
    %c0_i32_2 = arith.constant 0 : i32
    return %c0_i32, %c0_i32_0, %c0_i32_1 : i32, i32, i32
  }
  func.func @transform_2(%arg0: i32) -> (i32, i32) {
    %c0_i32 = arith.constant 0 : i32
    %c0_i32_0 = arith.constant 0 : i32
    %c0_i32_1 = arith.constant 0 : i32
    return %c0_i32, %c0_i32_0 : i32, i32
  }
  func.func @transform_3(%arg0: i32) -> (i32, i32, i32) {
    %c0_i32 = arith.constant 0 : i32
    %c0_i32_0 = arith.constant 0 : i32
    %c0_i32_1 = arith.constant 0 : i32
    return %arg0, %c0_i32, %c0_i32_0 : i32, i32, i32
  }
}

module attributes {stable_mosaic.version = 11 : i64} {
  func.func @_conv3x3_kernel(%arg0: i32, %arg1: memref<1x120x8xf32, #tpu.memory_space<vmem>>, %arg2: memref<9x8x8xbf16, #tpu.memory_space<vmem>>, %arg3: memref<1x8xf32, #tpu.memory_space<vmem>>, %arg4: memref<1x80x8xf32, #tpu.memory_space<vmem>>) attributes {dimension_semantics = [#tpu.dimension_semantics<parallel>], iteration_bounds = array<i64: 2>, scalar_prefetch = 0 : i64, scratch_operands = 0 : i64, tpu.core_type = #tpu.core_type<tc>, window_params = [{transform_indices = @transform_0, window_bounds = array<i64: 1, 120, 8>}, {pipeline_mode = #tpu.pipeline_mode<synchronous>, transform_indices = @transform_1, window_bounds = array<i64: 9, 8, 8>}, {pipeline_mode = #tpu.pipeline_mode<synchronous>, transform_indices = @transform_2, window_bounds = array<i64: 1, 8>}, {transform_indices = @transform_3, window_bounds = array<i64: 1, 80, 8>}]} {
    %cst = arith.constant 0.000000e+00 : f32
    %0 = vector.broadcast %cst : f32 to vector<80x8xf32>
    %c0 = arith.constant 0 : index
    %c9 = arith.constant 9 : index
    %c0_0 = arith.constant 0 : index
    %1 = vector.load %arg1[%c0, %c9, %c0_0] : memref<1x120x8xf32, #tpu.memory_space<vmem>>, vector<1x80x8xf32>
    %2 = vector.shape_cast %1 : vector<1x80x8xf32> to vector<80x8xf32>
    %3 = arith.truncf %2 : vector<80x8xf32> to vector<80x8xbf16>
    %c0_1 = arith.constant 0 : index
    %c0_2 = arith.constant 0 : index
    %c0_3 = arith.constant 0 : index
    %4 = vector.load %arg2[%c0_1, %c0_2, %c0_3] : memref<9x8x8xbf16, #tpu.memory_space<vmem>>, vector<1x8x8xbf16>
    %5 = vector.shape_cast %4 : vector<1x8x8xbf16> to vector<8x8xbf16>
    %cst_4 = arith.constant dense<0.000000e+00> : vector<80x8xf32>
    %6 = tpu.matmul %3, %5, %cst_4 {dimension_numbers = #tpu.dot_dimension_numbers<[1], [0], [0], [1], [0, 0, 1, 1], [], []>} : vector<80x8xbf16>, vector<8x8xbf16>, vector<80x8xf32> -> vector<80x8xf32>
    %7 = arith.addf %0, %6 : vector<80x8xf32>
    %c0_5 = arith.constant 0 : index
    %c10 = arith.constant 10 : index
    %c0_6 = arith.constant 0 : index
    %8 = vector.load %arg1[%c0_5, %c10, %c0_6] : memref<1x120x8xf32, #tpu.memory_space<vmem>>, vector<1x80x8xf32>
    %9 = vector.shape_cast %8 : vector<1x80x8xf32> to vector<80x8xf32>
    %10 = arith.truncf %9 : vector<80x8xf32> to vector<80x8xbf16>
    %c1 = arith.constant 1 : index
    %c0_7 = arith.constant 0 : index
    %c0_8 = arith.constant 0 : index
    %11 = vector.load %arg2[%c1, %c0_7, %c0_8] : memref<9x8x8xbf16, #tpu.memory_space<vmem>>, vector<1x8x8xbf16>
    %12 = vector.shape_cast %11 : vector<1x8x8xbf16> to vector<8x8xbf16>
    %cst_9 = arith.constant dense<0.000000e+00> : vector<80x8xf32>
    %13 = tpu.matmul %10, %12, %cst_9 {dimension_numbers = #tpu.dot_dimension_numbers<[1], [0], [0], [1], [0, 0, 1, 1], [], []>} : vector<80x8xbf16>, vector<8x8xbf16>, vector<80x8xf32> -> vector<80x8xf32>
    %14 = arith.addf %7, %13 : vector<80x8xf32>
    %c0_10 = arith.constant 0 : index
    %c11 = arith.constant 11 : index
    %c0_11 = arith.constant 0 : index
    %15 = vector.load %arg1[%c0_10, %c11, %c0_11] : memref<1x120x8xf32, #tpu.memory_space<vmem>>, vector<1x80x8xf32>
    %16 = vector.shape_cast %15 : vector<1x80x8xf32> to vector<80x8xf32>
    %17 = arith.truncf %16 : vector<80x8xf32> to vector<80x8xbf16>
    %c2 = arith.constant 2 : index
    %c0_12 = arith.constant 0 : index
    %c0_13 = arith.constant 0 : index
    %18 = vector.load %arg2[%c2, %c0_12, %c0_13] : memref<9x8x8xbf16, #tpu.memory_space<vmem>>, vector<1x8x8xbf16>
    %19 = vector.shape_cast %18 : vector<1x8x8xbf16> to vector<8x8xbf16>
    %cst_14 = arith.constant dense<0.000000e+00> : vector<80x8xf32>
    %20 = tpu.matmul %17, %19, %cst_14 {dimension_numbers = #tpu.dot_dimension_numbers<[1], [0], [0], [1], [0, 0, 1, 1], [], []>} : vector<80x8xbf16>, vector<8x8xbf16>, vector<80x8xf32> -> vector<80x8xf32>
    %21 = arith.addf %14, %20 : vector<80x8xf32>
    %c0_15 = arith.constant 0 : index
    %c19 = arith.constant 19 : index
    %c0_16 = arith.constant 0 : index
    %22 = vector.load %arg1[%c0_15, %c19, %c0_16] : memref<1x120x8xf32, #tpu.memory_space<vmem>>, vector<1x80x8xf32>
    %23 = vector.shape_cast %22 : vector<1x80x8xf32> to vector<80x8xf32>
    %24 = arith.truncf %23 : vector<80x8xf32> to vector<80x8xbf16>
    %c3 = arith.constant 3 : index
    %c0_17 = arith.constant 0 : index
    %c0_18 = arith.constant 0 : index
    %25 = vector.load %arg2[%c3, %c0_17, %c0_18] : memref<9x8x8xbf16, #tpu.memory_space<vmem>>, vector<1x8x8xbf16>
    %26 = vector.shape_cast %25 : vector<1x8x8xbf16> to vector<8x8xbf16>
    %cst_19 = arith.constant dense<0.000000e+00> : vector<80x8xf32>
    %27 = tpu.matmul %24, %26, %cst_19 {dimension_numbers = #tpu.dot_dimension_numbers<[1], [0], [0], [1], [0, 0, 1, 1], [], []>} : vector<80x8xbf16>, vector<8x8xbf16>, vector<80x8xf32> -> vector<80x8xf32>
    %28 = arith.addf %21, %27 : vector<80x8xf32>
    %c0_20 = arith.constant 0 : index
    %c20 = arith.constant 20 : index
    %c0_21 = arith.constant 0 : index
    %29 = vector.load %arg1[%c0_20, %c20, %c0_21] : memref<1x120x8xf32, #tpu.memory_space<vmem>>, vector<1x80x8xf32>
    %30 = vector.shape_cast %29 : vector<1x80x8xf32> to vector<80x8xf32>
    %31 = arith.truncf %30 : vector<80x8xf32> to vector<80x8xbf16>
    %c4 = arith.constant 4 : index
    %c0_22 = arith.constant 0 : index
    %c0_23 = arith.constant 0 : index
    %32 = vector.load %arg2[%c4, %c0_22, %c0_23] : memref<9x8x8xbf16, #tpu.memory_space<vmem>>, vector<1x8x8xbf16>
    %33 = vector.shape_cast %32 : vector<1x8x8xbf16> to vector<8x8xbf16>
    %cst_24 = arith.constant dense<0.000000e+00> : vector<80x8xf32>
    %34 = tpu.matmul %31, %33, %cst_24 {dimension_numbers = #tpu.dot_dimension_numbers<[1], [0], [0], [1], [0, 0, 1, 1], [], []>} : vector<80x8xbf16>, vector<8x8xbf16>, vector<80x8xf32> -> vector<80x8xf32>
    %35 = arith.addf %28, %34 : vector<80x8xf32>
    %c0_25 = arith.constant 0 : index
    %c21 = arith.constant 21 : index
    %c0_26 = arith.constant 0 : index
    %36 = vector.load %arg1[%c0_25, %c21, %c0_26] : memref<1x120x8xf32, #tpu.memory_space<vmem>>, vector<1x80x8xf32>
    %37 = vector.shape_cast %36 : vector<1x80x8xf32> to vector<80x8xf32>
    %38 = arith.truncf %37 : vector<80x8xf32> to vector<80x8xbf16>
    %c5 = arith.constant 5 : index
    %c0_27 = arith.constant 0 : index
    %c0_28 = arith.constant 0 : index
    %39 = vector.load %arg2[%c5, %c0_27, %c0_28] : memref<9x8x8xbf16, #tpu.memory_space<vmem>>, vector<1x8x8xbf16>
    %40 = vector.shape_cast %39 : vector<1x8x8xbf16> to vector<8x8xbf16>
    %cst_29 = arith.constant dense<0.000000e+00> : vector<80x8xf32>
    %41 = tpu.matmul %38, %40, %cst_29 {dimension_numbers = #tpu.dot_dimension_numbers<[1], [0], [0], [1], [0, 0, 1, 1], [], []>} : vector<80x8xbf16>, vector<8x8xbf16>, vector<80x8xf32> -> vector<80x8xf32>
    %42 = arith.addf %35, %41 : vector<80x8xf32>
    %c0_30 = arith.constant 0 : index
    %c29 = arith.constant 29 : index
    %c0_31 = arith.constant 0 : index
    %43 = vector.load %arg1[%c0_30, %c29, %c0_31] : memref<1x120x8xf32, #tpu.memory_space<vmem>>, vector<1x80x8xf32>
    %44 = vector.shape_cast %43 : vector<1x80x8xf32> to vector<80x8xf32>
    %45 = arith.truncf %44 : vector<80x8xf32> to vector<80x8xbf16>
    %c6 = arith.constant 6 : index
    %c0_32 = arith.constant 0 : index
    %c0_33 = arith.constant 0 : index
    %46 = vector.load %arg2[%c6, %c0_32, %c0_33] : memref<9x8x8xbf16, #tpu.memory_space<vmem>>, vector<1x8x8xbf16>
    %47 = vector.shape_cast %46 : vector<1x8x8xbf16> to vector<8x8xbf16>
    %cst_34 = arith.constant dense<0.000000e+00> : vector<80x8xf32>
    %48 = tpu.matmul %45, %47, %cst_34 {dimension_numbers = #tpu.dot_dimension_numbers<[1], [0], [0], [1], [0, 0, 1, 1], [], []>} : vector<80x8xbf16>, vector<8x8xbf16>, vector<80x8xf32> -> vector<80x8xf32>
    %49 = arith.addf %42, %48 : vector<80x8xf32>
    %c0_35 = arith.constant 0 : index
    %c30 = arith.constant 30 : index
    %c0_36 = arith.constant 0 : index
    %50 = vector.load %arg1[%c0_35, %c30, %c0_36] : memref<1x120x8xf32, #tpu.memory_space<vmem>>, vector<1x80x8xf32>
    %51 = vector.shape_cast %50 : vector<1x80x8xf32> to vector<80x8xf32>
    %52 = arith.truncf %51 : vector<80x8xf32> to vector<80x8xbf16>
    %c7 = arith.constant 7 : index
    %c0_37 = arith.constant 0 : index
    %c0_38 = arith.constant 0 : index
    %53 = vector.load %arg2[%c7, %c0_37, %c0_38] : memref<9x8x8xbf16, #tpu.memory_space<vmem>>, vector<1x8x8xbf16>
    %54 = vector.shape_cast %53 : vector<1x8x8xbf16> to vector<8x8xbf16>
    %cst_39 = arith.constant dense<0.000000e+00> : vector<80x8xf32>
    %55 = tpu.matmul %52, %54, %cst_39 {dimension_numbers = #tpu.dot_dimension_numbers<[1], [0], [0], [1], [0, 0, 1, 1], [], []>} : vector<80x8xbf16>, vector<8x8xbf16>, vector<80x8xf32> -> vector<80x8xf32>
    %56 = arith.addf %49, %55 : vector<80x8xf32>
    %c0_40 = arith.constant 0 : index
    %c31 = arith.constant 31 : index
    %c0_41 = arith.constant 0 : index
    %57 = vector.load %arg1[%c0_40, %c31, %c0_41] : memref<1x120x8xf32, #tpu.memory_space<vmem>>, vector<1x80x8xf32>
    %58 = vector.shape_cast %57 : vector<1x80x8xf32> to vector<80x8xf32>
    %59 = arith.truncf %58 : vector<80x8xf32> to vector<80x8xbf16>
    %c8 = arith.constant 8 : index
    %c0_42 = arith.constant 0 : index
    %c0_43 = arith.constant 0 : index
    %60 = vector.load %arg2[%c8, %c0_42, %c0_43] : memref<9x8x8xbf16, #tpu.memory_space<vmem>>, vector<1x8x8xbf16>
    %61 = vector.shape_cast %60 : vector<1x8x8xbf16> to vector<8x8xbf16>
    %cst_44 = arith.constant dense<0.000000e+00> : vector<80x8xf32>
    %62 = tpu.matmul %59, %61, %cst_44 {dimension_numbers = #tpu.dot_dimension_numbers<[1], [0], [0], [1], [0, 0, 1, 1], [], []>} : vector<80x8xbf16>, vector<8x8xbf16>, vector<80x8xf32> -> vector<80x8xf32>
    %63 = arith.addf %56, %62 : vector<80x8xf32>
    %c0_45 = arith.constant 0 : index
    %c0_46 = arith.constant 0 : index
    %64 = vector.load %arg3[%c0_45, %c0_46] : memref<1x8xf32, #tpu.memory_space<vmem>>, vector<1x8xf32>
    %65 = vector.broadcast %64 : vector<1x8xf32> to vector<80x8xf32>
    %66 = arith.addf %63, %65 : vector<80x8xf32>
    %cst_47 = arith.constant 0.000000e+00 : f32
    %67 = vector.broadcast %cst_47 : f32 to vector<80x8xf32>
    %68 = arith.maximumf %66, %67 : vector<80x8xf32>
    %c0_48 = arith.constant 0 : index
    %c0_49 = arith.constant 0 : index
    %c0_50 = arith.constant 0 : index
    %69 = vector.load %arg4[%c0_48, %c0_49, %c0_50] : memref<1x80x8xf32, #tpu.memory_space<vmem>>, vector<1x80x8xf32>
    %70 = vector.shape_cast %69 : vector<1x80x8xf32> to vector<80x8xf32>
    %71 = vector.shape_cast %68 : vector<80x8xf32> to vector<1x80x8xf32>
    tpu.vector_store %arg4[%c0_48, %c0_49, %c0_50], %71 {strides = array<i32>} : memref<1x80x8xf32, #tpu.memory_space<vmem>>, vector<1x80x8xf32>,
    return
  }
  func.func @transform_0(%arg0: i32) -> (i32, i32, i32) {
    %c0_i32 = arith.constant 0 : i32
    %c0_i32_0 = arith.constant 0 : i32
    %c0_i32_1 = arith.constant 0 : i32
    return %arg0, %c0_i32, %c0_i32_0 : i32, i32, i32
  }
  func.func @transform_1(%arg0: i32) -> (i32, i32, i32) {
    %c0_i32 = arith.constant 0 : i32
    %c0_i32_0 = arith.constant 0 : i32
    %c0_i32_1 = arith.constant 0 : i32
    %c0_i32_2 = arith.constant 0 : i32
    return %c0_i32, %c0_i32_0, %c0_i32_1 : i32, i32, i32
  }
  func.func @transform_2(%arg0: i32) -> (i32, i32) {
    %c0_i32 = arith.constant 0 : i32
    %c0_i32_0 = arith.constant 0 : i32
    %c0_i32_1 = arith.constant 0 : i32
    return %c0_i32, %c0_i32_0 : i32, i32
  }
  func.func @transform_3(%arg0: i32) -> (i32, i32, i32) {
    %c0_i32 = arith.constant 0 : i32
    %c0_i32_0 = arith.constant 0 : i32
    %c0_i32_1 = arith.constant 0 : i32
    return %arg0, %c0_i32, %c0_i32_0 : i32, i32, i32
  }
}

module attributes {stable_mosaic.version = 11 : i64} {
  func.func @_conv3x3_kernel(%arg0: i32, %arg1: memref<1x48x8xf32, #tpu.memory_space<vmem>>, %arg2: memref<9x8x8xbf16, #tpu.memory_space<vmem>>, %arg3: memref<1x8xf32, #tpu.memory_space<vmem>>, %arg4: memref<1x24x8xf32, #tpu.memory_space<vmem>>) attributes {dimension_semantics = [#tpu.dimension_semantics<parallel>], iteration_bounds = array<i64: 2>, scalar_prefetch = 0 : i64, scratch_operands = 0 : i64, tpu.core_type = #tpu.core_type<tc>, window_params = [{transform_indices = @transform_0, window_bounds = array<i64: 1, 48, 8>}, {pipeline_mode = #tpu.pipeline_mode<synchronous>, transform_indices = @transform_1, window_bounds = array<i64: 9, 8, 8>}, {pipeline_mode = #tpu.pipeline_mode<synchronous>, transform_indices = @transform_2, window_bounds = array<i64: 1, 8>}, {transform_indices = @transform_3, window_bounds = array<i64: 1, 24, 8>}]} {
    %cst = arith.constant 0.000000e+00 : f32
    %0 = vector.broadcast %cst : f32 to vector<24x8xf32>
    %c0 = arith.constant 0 : index
    %c5 = arith.constant 5 : index
    %c0_0 = arith.constant 0 : index
    %1 = vector.load %arg1[%c0, %c5, %c0_0] : memref<1x48x8xf32, #tpu.memory_space<vmem>>, vector<1x24x8xf32>
    %2 = vector.shape_cast %1 : vector<1x24x8xf32> to vector<24x8xf32>
    %3 = arith.truncf %2 : vector<24x8xf32> to vector<24x8xbf16>
    %c0_1 = arith.constant 0 : index
    %c0_2 = arith.constant 0 : index
    %c0_3 = arith.constant 0 : index
    %4 = vector.load %arg2[%c0_1, %c0_2, %c0_3] : memref<9x8x8xbf16, #tpu.memory_space<vmem>>, vector<1x8x8xbf16>
    %5 = vector.shape_cast %4 : vector<1x8x8xbf16> to vector<8x8xbf16>
    %cst_4 = arith.constant dense<0.000000e+00> : vector<24x8xf32>
    %6 = tpu.matmul %3, %5, %cst_4 {dimension_numbers = #tpu.dot_dimension_numbers<[1], [0], [0], [1], [0, 0, 1, 1], [], []>} : vector<24x8xbf16>, vector<8x8xbf16>, vector<24x8xf32> -> vector<24x8xf32>
    %7 = arith.addf %0, %6 : vector<24x8xf32>
    %c0_5 = arith.constant 0 : index
    %c6 = arith.constant 6 : index
    %c0_6 = arith.constant 0 : index
    %8 = vector.load %arg1[%c0_5, %c6, %c0_6] : memref<1x48x8xf32, #tpu.memory_space<vmem>>, vector<1x24x8xf32>
    %9 = vector.shape_cast %8 : vector<1x24x8xf32> to vector<24x8xf32>
    %10 = arith.truncf %9 : vector<24x8xf32> to vector<24x8xbf16>
    %c1 = arith.constant 1 : index
    %c0_7 = arith.constant 0 : index
    %c0_8 = arith.constant 0 : index
    %11 = vector.load %arg2[%c1, %c0_7, %c0_8] : memref<9x8x8xbf16, #tpu.memory_space<vmem>>, vector<1x8x8xbf16>
    %12 = vector.shape_cast %11 : vector<1x8x8xbf16> to vector<8x8xbf16>
    %cst_9 = arith.constant dense<0.000000e+00> : vector<24x8xf32>
    %13 = tpu.matmul %10, %12, %cst_9 {dimension_numbers = #tpu.dot_dimension_numbers<[1], [0], [0], [1], [0, 0, 1, 1], [], []>} : vector<24x8xbf16>, vector<8x8xbf16>, vector<24x8xf32> -> vector<24x8xf32>
    %14 = arith.addf %7, %13 : vector<24x8xf32>
    %c0_10 = arith.constant 0 : index
    %c7 = arith.constant 7 : index
    %c0_11 = arith.constant 0 : index
    %15 = vector.load %arg1[%c0_10, %c7, %c0_11] : memref<1x48x8xf32, #tpu.memory_space<vmem>>, vector<1x24x8xf32>
    %16 = vector.shape_cast %15 : vector<1x24x8xf32> to vector<24x8xf32>
    %17 = arith.truncf %16 : vector<24x8xf32> to vector<24x8xbf16>
    %c2 = arith.constant 2 : index
    %c0_12 = arith.constant 0 : index
    %c0_13 = arith.constant 0 : index
    %18 = vector.load %arg2[%c2, %c0_12, %c0_13] : memref<9x8x8xbf16, #tpu.memory_space<vmem>>, vector<1x8x8xbf16>
    %19 = vector.shape_cast %18 : vector<1x8x8xbf16> to vector<8x8xbf16>
    %cst_14 = arith.constant dense<0.000000e+00> : vector<24x8xf32>
    %20 = tpu.matmul %17, %19, %cst_14 {dimension_numbers = #tpu.dot_dimension_numbers<[1], [0], [0], [1], [0, 0, 1, 1], [], []>} : vector<24x8xbf16>, vector<8x8xbf16>, vector<24x8xf32> -> vector<24x8xf32>
    %21 = arith.addf %14, %20 : vector<24x8xf32>
    %c0_15 = arith.constant 0 : index
    %c11 = arith.constant 11 : index
    %c0_16 = arith.constant 0 : index
    %22 = vector.load %arg1[%c0_15, %c11, %c0_16] : memref<1x48x8xf32, #tpu.memory_space<vmem>>, vector<1x24x8xf32>
    %23 = vector.shape_cast %22 : vector<1x24x8xf32> to vector<24x8xf32>
    %24 = arith.truncf %23 : vector<24x8xf32> to vector<24x8xbf16>
    %c3 = arith.constant 3 : index
    %c0_17 = arith.constant 0 : index
    %c0_18 = arith.constant 0 : index
    %25 = vector.load %arg2[%c3, %c0_17, %c0_18] : memref<9x8x8xbf16, #tpu.memory_space<vmem>>, vector<1x8x8xbf16>
    %26 = vector.shape_cast %25 : vector<1x8x8xbf16> to vector<8x8xbf16>
    %cst_19 = arith.constant dense<0.000000e+00> : vector<24x8xf32>
    %27 = tpu.matmul %24, %26, %cst_19 {dimension_numbers = #tpu.dot_dimension_numbers<[1], [0], [0], [1], [0, 0, 1, 1], [], []>} : vector<24x8xbf16>, vector<8x8xbf16>, vector<24x8xf32> -> vector<24x8xf32>
    %28 = arith.addf %21, %27 : vector<24x8xf32>
    %c0_20 = arith.constant 0 : index
    %c12 = arith.constant 12 : index
    %c0_21 = arith.constant 0 : index
    %29 = vector.load %arg1[%c0_20, %c12, %c0_21] : memref<1x48x8xf32, #tpu.memory_space<vmem>>, vector<1x24x8xf32>
    %30 = vector.shape_cast %29 : vector<1x24x8xf32> to vector<24x8xf32>
    %31 = arith.truncf %30 : vector<24x8xf32> to vector<24x8xbf16>
    %c4 = arith.constant 4 : index
    %c0_22 = arith.constant 0 : index
    %c0_23 = arith.constant 0 : index
    %32 = vector.load %arg2[%c4, %c0_22, %c0_23] : memref<9x8x8xbf16, #tpu.memory_space<vmem>>, vector<1x8x8xbf16>
    %33 = vector.shape_cast %32 : vector<1x8x8xbf16> to vector<8x8xbf16>
    %cst_24 = arith.constant dense<0.000000e+00> : vector<24x8xf32>
    %34 = tpu.matmul %31, %33, %cst_24 {dimension_numbers = #tpu.dot_dimension_numbers<[1], [0], [0], [1], [0, 0, 1, 1], [], []>} : vector<24x8xbf16>, vector<8x8xbf16>, vector<24x8xf32> -> vector<24x8xf32>
    %35 = arith.addf %28, %34 : vector<24x8xf32>
    %c0_25 = arith.constant 0 : index
    %c13 = arith.constant 13 : index
    %c0_26 = arith.constant 0 : index
    %36 = vector.load %arg1[%c0_25, %c13, %c0_26] : memref<1x48x8xf32, #tpu.memory_space<vmem>>, vector<1x24x8xf32>
    %37 = vector.shape_cast %36 : vector<1x24x8xf32> to vector<24x8xf32>
    %38 = arith.truncf %37 : vector<24x8xf32> to vector<24x8xbf16>
    %c5_27 = arith.constant 5 : index
    %c0_28 = arith.constant 0 : index
    %c0_29 = arith.constant 0 : index
    %39 = vector.load %arg2[%c5_27, %c0_28, %c0_29] : memref<9x8x8xbf16, #tpu.memory_space<vmem>>, vector<1x8x8xbf16>
    %40 = vector.shape_cast %39 : vector<1x8x8xbf16> to vector<8x8xbf16>
    %cst_30 = arith.constant dense<0.000000e+00> : vector<24x8xf32>
    %41 = tpu.matmul %38, %40, %cst_30 {dimension_numbers = #tpu.dot_dimension_numbers<[1], [0], [0], [1], [0, 0, 1, 1], [], []>} : vector<24x8xbf16>, vector<8x8xbf16>, vector<24x8xf32> -> vector<24x8xf32>
    %42 = arith.addf %35, %41 : vector<24x8xf32>
    %c0_31 = arith.constant 0 : index
    %c17 = arith.constant 17 : index
    %c0_32 = arith.constant 0 : index
    %43 = vector.load %arg1[%c0_31, %c17, %c0_32] : memref<1x48x8xf32, #tpu.memory_space<vmem>>, vector<1x24x8xf32>
    %44 = vector.shape_cast %43 : vector<1x24x8xf32> to vector<24x8xf32>
    %45 = arith.truncf %44 : vector<24x8xf32> to vector<24x8xbf16>
    %c6_33 = arith.constant 6 : index
    %c0_34 = arith.constant 0 : index
    %c0_35 = arith.constant 0 : index
    %46 = vector.load %arg2[%c6_33, %c0_34, %c0_35] : memref<9x8x8xbf16, #tpu.memory_space<vmem>>, vector<1x8x8xbf16>
    %47 = vector.shape_cast %46 : vector<1x8x8xbf16> to vector<8x8xbf16>
    %cst_36 = arith.constant dense<0.000000e+00> : vector<24x8xf32>
    %48 = tpu.matmul %45, %47, %cst_36 {dimension_numbers = #tpu.dot_dimension_numbers<[1], [0], [0], [1], [0, 0, 1, 1], [], []>} : vector<24x8xbf16>, vector<8x8xbf16>, vector<24x8xf32> -> vector<24x8xf32>
    %49 = arith.addf %42, %48 : vector<24x8xf32>
    %c0_37 = arith.constant 0 : index
    %c18 = arith.constant 18 : index
    %c0_38 = arith.constant 0 : index
    %50 = vector.load %arg1[%c0_37, %c18, %c0_38] : memref<1x48x8xf32, #tpu.memory_space<vmem>>, vector<1x24x8xf32>
    %51 = vector.shape_cast %50 : vector<1x24x8xf32> to vector<24x8xf32>
    %52 = arith.truncf %51 : vector<24x8xf32> to vector<24x8xbf16>
    %c7_39 = arith.constant 7 : index
    %c0_40 = arith.constant 0 : index
    %c0_41 = arith.constant 0 : index
    %53 = vector.load %arg2[%c7_39, %c0_40, %c0_41] : memref<9x8x8xbf16, #tpu.memory_space<vmem>>, vector<1x8x8xbf16>
    %54 = vector.shape_cast %53 : vector<1x8x8xbf16> to vector<8x8xbf16>
    %cst_42 = arith.constant dense<0.000000e+00> : vector<24x8xf32>
    %55 = tpu.matmul %52, %54, %cst_42 {dimension_numbers = #tpu.dot_dimension_numbers<[1], [0], [0], [1], [0, 0, 1, 1], [], []>} : vector<24x8xbf16>, vector<8x8xbf16>, vector<24x8xf32> -> vector<24x8xf32>
    %56 = arith.addf %49, %55 : vector<24x8xf32>
    %c0_43 = arith.constant 0 : index
    %c19 = arith.constant 19 : index
    %c0_44 = arith.constant 0 : index
    %57 = vector.load %arg1[%c0_43, %c19, %c0_44] : memref<1x48x8xf32, #tpu.memory_space<vmem>>, vector<1x24x8xf32>
    %58 = vector.shape_cast %57 : vector<1x24x8xf32> to vector<24x8xf32>
    %59 = arith.truncf %58 : vector<24x8xf32> to vector<24x8xbf16>
    %c8 = arith.constant 8 : index
    %c0_45 = arith.constant 0 : index
    %c0_46 = arith.constant 0 : index
    %60 = vector.load %arg2[%c8, %c0_45, %c0_46] : memref<9x8x8xbf16, #tpu.memory_space<vmem>>, vector<1x8x8xbf16>
    %61 = vector.shape_cast %60 : vector<1x8x8xbf16> to vector<8x8xbf16>
    %cst_47 = arith.constant dense<0.000000e+00> : vector<24x8xf32>
    %62 = tpu.matmul %59, %61, %cst_47 {dimension_numbers = #tpu.dot_dimension_numbers<[1], [0], [0], [1], [0, 0, 1, 1], [], []>} : vector<24x8xbf16>, vector<8x8xbf16>, vector<24x8xf32> -> vector<24x8xf32>
    %63 = arith.addf %56, %62 : vector<24x8xf32>
    %c0_48 = arith.constant 0 : index
    %c0_49 = arith.constant 0 : index
    %64 = vector.load %arg3[%c0_48, %c0_49] : memref<1x8xf32, #tpu.memory_space<vmem>>, vector<1x8xf32>
    %65 = vector.broadcast %64 : vector<1x8xf32> to vector<24x8xf32>
    %66 = arith.addf %63, %65 : vector<24x8xf32>
    %cst_50 = arith.constant 0.000000e+00 : f32
    %67 = vector.broadcast %cst_50 : f32 to vector<24x8xf32>
    %68 = arith.maximumf %66, %67 : vector<24x8xf32>
    %c0_51 = arith.constant 0 : index
    %c0_52 = arith.constant 0 : index
    %c0_53 = arith.constant 0 : index
    %69 = vector.load %arg4[%c0_51, %c0_52, %c0_53] : memref<1x24x8xf32, #tpu.memory_space<vmem>>, vector<1x24x8xf32>
    %70 = vector.shape_cast %69 : vector<1x24x8xf32> to vector<24x8xf32>
    %71 = vector.shape_cast %68 : vector<24x8xf32> to vector<1x24x8xf32>
    tpu.vector_store %arg4[%c0_51, %c0_52, %c0_53], %71 {strides = array<i32>} : memref<1x24x8xf32, #tpu.memory_space<vmem>>, vector<1x24x8xf32>,
    return
  }
  func.func @transform_0(%arg0: i32) -> (i32, i32, i32) {
    %c0_i32 = arith.constant 0 : i32
    %c0_i32_0 = arith.constant 0 : i32
    %c0_i32_1 = arith.constant 0 : i32
    return %arg0, %c0_i32, %c0_i32_0 : i32, i32, i32
  }
  func.func @transform_1(%arg0: i32) -> (i32, i32, i32) {
    %c0_i32 = arith.constant 0 : i32
    %c0_i32_0 = arith.constant 0 : i32
    %c0_i32_1 = arith.constant 0 : i32
    %c0_i32_2 = arith.constant 0 : i32
    return %c0_i32, %c0_i32_0, %c0_i32_1 : i32, i32, i32
  }
  func.func @transform_2(%arg0: i32) -> (i32, i32) {
    %c0_i32 = arith.constant 0 : i32
    %c0_i32_0 = arith.constant 0 : i32
    %c0_i32_1 = arith.constant 0 : i32
    return %c0_i32, %c0_i32_0 : i32, i32
  }
  func.func @transform_3(%arg0: i32) -> (i32, i32, i32) {
    %c0_i32 = arith.constant 0 : i32
    %c0_i32_0 = arith.constant 0 : i32
    %c0_i32_1 = arith.constant 0 : i32
    return %arg0, %c0_i32, %c0_i32_0 : i32, i32, i32
  }
}

module attributes {stable_mosaic.version = 11 : i64} {
  func.func @_conv3x3_kernel(%arg0: i32, %arg1: memref<1x24x8xf32, #tpu.memory_space<vmem>>, %arg2: memref<9x8x8xbf16, #tpu.memory_space<vmem>>, %arg3: memref<1x8xf32, #tpu.memory_space<vmem>>, %arg4: memref<1x8x8xf32, #tpu.memory_space<vmem>>) attributes {dimension_semantics = [#tpu.dimension_semantics<parallel>], iteration_bounds = array<i64: 2>, scalar_prefetch = 0 : i64, scratch_operands = 0 : i64, tpu.core_type = #tpu.core_type<tc>, window_params = [{transform_indices = @transform_0, window_bounds = array<i64: 1, 24, 8>}, {pipeline_mode = #tpu.pipeline_mode<synchronous>, transform_indices = @transform_1, window_bounds = array<i64: 9, 8, 8>}, {pipeline_mode = #tpu.pipeline_mode<synchronous>, transform_indices = @transform_2, window_bounds = array<i64: 1, 8>}, {transform_indices = @transform_3, window_bounds = array<i64: 1, 8, 8>}]} {
    %cst = arith.constant 0.000000e+00 : f32
    %0 = vector.broadcast %cst : f32 to vector<8x8xf32>
    %c0 = arith.constant 0 : index
    %c3 = arith.constant 3 : index
    %c0_0 = arith.constant 0 : index
    %1 = vector.load %arg1[%c0, %c3, %c0_0] : memref<1x24x8xf32, #tpu.memory_space<vmem>>, vector<1x8x8xf32>
    %2 = vector.shape_cast %1 : vector<1x8x8xf32> to vector<8x8xf32>
    %3 = arith.truncf %2 : vector<8x8xf32> to vector<8x8xbf16>
    %c0_1 = arith.constant 0 : index
    %c0_2 = arith.constant 0 : index
    %c0_3 = arith.constant 0 : index
    %4 = vector.load %arg2[%c0_1, %c0_2, %c0_3] : memref<9x8x8xbf16, #tpu.memory_space<vmem>>, vector<1x8x8xbf16>
    %5 = vector.shape_cast %4 : vector<1x8x8xbf16> to vector<8x8xbf16>
    %cst_4 = arith.constant dense<0.000000e+00> : vector<8x8xf32>
    %6 = tpu.matmul %3, %5, %cst_4 {dimension_numbers = #tpu.dot_dimension_numbers<[1], [0], [0], [1], [0, 0, 1, 1], [], []>} : vector<8x8xbf16>, vector<8x8xbf16>, vector<8x8xf32> -> vector<8x8xf32>
    %7 = arith.addf %0, %6 : vector<8x8xf32>
    %c0_5 = arith.constant 0 : index
    %c4 = arith.constant 4 : index
    %c0_6 = arith.constant 0 : index
    %8 = vector.load %arg1[%c0_5, %c4, %c0_6] : memref<1x24x8xf32, #tpu.memory_space<vmem>>, vector<1x8x8xf32>
    %9 = vector.shape_cast %8 : vector<1x8x8xf32> to vector<8x8xf32>
    %10 = arith.truncf %9 : vector<8x8xf32> to vector<8x8xbf16>
    %c1 = arith.constant 1 : index
    %c0_7 = arith.constant 0 : index
    %c0_8 = arith.constant 0 : index
    %11 = vector.load %arg2[%c1, %c0_7, %c0_8] : memref<9x8x8xbf16, #tpu.memory_space<vmem>>, vector<1x8x8xbf16>
    %12 = vector.shape_cast %11 : vector<1x8x8xbf16> to vector<8x8xbf16>
    %cst_9 = arith.constant dense<0.000000e+00> : vector<8x8xf32>
    %13 = tpu.matmul %10, %12, %cst_9 {dimension_numbers = #tpu.dot_dimension_numbers<[1], [0], [0], [1], [0, 0, 1, 1], [], []>} : vector<8x8xbf16>, vector<8x8xbf16>, vector<8x8xf32> -> vector<8x8xf32>
    %14 = arith.addf %7, %13 : vector<8x8xf32>
    %c0_10 = arith.constant 0 : index
    %c5 = arith.constant 5 : index
    %c0_11 = arith.constant 0 : index
    %15 = vector.load %arg1[%c0_10, %c5, %c0_11] : memref<1x24x8xf32, #tpu.memory_space<vmem>>, vector<1x8x8xf32>
    %16 = vector.shape_cast %15 : vector<1x8x8xf32> to vector<8x8xf32>
    %17 = arith.truncf %16 : vector<8x8xf32> to vector<8x8xbf16>
    %c2 = arith.constant 2 : index
    %c0_12 = arith.constant 0 : index
    %c0_13 = arith.constant 0 : index
    %18 = vector.load %arg2[%c2, %c0_12, %c0_13] : memref<9x8x8xbf16, #tpu.memory_space<vmem>>, vector<1x8x8xbf16>
    %19 = vector.shape_cast %18 : vector<1x8x8xbf16> to vector<8x8xbf16>
    %cst_14 = arith.constant dense<0.000000e+00> : vector<8x8xf32>
    %20 = tpu.matmul %17, %19, %cst_14 {dimension_numbers = #tpu.dot_dimension_numbers<[1], [0], [0], [1], [0, 0, 1, 1], [], []>} : vector<8x8xbf16>, vector<8x8xbf16>, vector<8x8xf32> -> vector<8x8xf32>
    %21 = arith.addf %14, %20 : vector<8x8xf32>
    %c0_15 = arith.constant 0 : index
    %c7 = arith.constant 7 : index
    %c0_16 = arith.constant 0 : index
    %22 = vector.load %arg1[%c0_15, %c7, %c0_16] : memref<1x24x8xf32, #tpu.memory_space<vmem>>, vector<1x8x8xf32>
    %23 = vector.shape_cast %22 : vector<1x8x8xf32> to vector<8x8xf32>
    %24 = arith.truncf %23 : vector<8x8xf32> to vector<8x8xbf16>
    %c3_17 = arith.constant 3 : index
    %c0_18 = arith.constant 0 : index
    %c0_19 = arith.constant 0 : index
    %25 = vector.load %arg2[%c3_17, %c0_18, %c0_19] : memref<9x8x8xbf16, #tpu.memory_space<vmem>>, vector<1x8x8xbf16>
    %26 = vector.shape_cast %25 : vector<1x8x8xbf16> to vector<8x8xbf16>
    %cst_20 = arith.constant dense<0.000000e+00> : vector<8x8xf32>
    %27 = tpu.matmul %24, %26, %cst_20 {dimension_numbers = #tpu.dot_dimension_numbers<[1], [0], [0], [1], [0, 0, 1, 1], [], []>} : vector<8x8xbf16>, vector<8x8xbf16>, vector<8x8xf32> -> vector<8x8xf32>
    %28 = arith.addf %21, %27 : vector<8x8xf32>
    %c0_21 = arith.constant 0 : index
    %c8 = arith.constant 8 : index
    %c0_22 = arith.constant 0 : index
    %29 = vector.load %arg1[%c0_21, %c8, %c0_22] : memref<1x24x8xf32, #tpu.memory_space<vmem>>, vector<1x8x8xf32>
    %30 = vector.shape_cast %29 : vector<1x8x8xf32> to vector<8x8xf32>
    %31 = arith.truncf %30 : vector<8x8xf32> to vector<8x8xbf16>
    %c4_23 = arith.constant 4 : index
    %c0_24 = arith.constant 0 : index
    %c0_25 = arith.constant 0 : index
    %32 = vector.load %arg2[%c4_23, %c0_24, %c0_25] : memref<9x8x8xbf16, #tpu.memory_space<vmem>>, vector<1x8x8xbf16>
    %33 = vector.shape_cast %32 : vector<1x8x8xbf16> to vector<8x8xbf16>
    %cst_26 = arith.constant dense<0.000000e+00> : vector<8x8xf32>
    %34 = tpu.matmul %31, %33, %cst_26 {dimension_numbers = #tpu.dot_dimension_numbers<[1], [0], [0], [1], [0, 0, 1, 1], [], []>} : vector<8x8xbf16>, vector<8x8xbf16>, vector<8x8xf32> -> vector<8x8xf32>
    %35 = arith.addf %28, %34 : vector<8x8xf32>
    %c0_27 = arith.constant 0 : index
    %c9 = arith.constant 9 : index
    %c0_28 = arith.constant 0 : index
    %36 = vector.load %arg1[%c0_27, %c9, %c0_28] : memref<1x24x8xf32, #tpu.memory_space<vmem>>, vector<1x8x8xf32>
    %37 = vector.shape_cast %36 : vector<1x8x8xf32> to vector<8x8xf32>
    %38 = arith.truncf %37 : vector<8x8xf32> to vector<8x8xbf16>
    %c5_29 = arith.constant 5 : index
    %c0_30 = arith.constant 0 : index
    %c0_31 = arith.constant 0 : index
    %39 = vector.load %arg2[%c5_29, %c0_30, %c0_31] : memref<9x8x8xbf16, #tpu.memory_space<vmem>>, vector<1x8x8xbf16>
    %40 = vector.shape_cast %39 : vector<1x8x8xbf16> to vector<8x8xbf16>
    %cst_32 = arith.constant dense<0.000000e+00> : vector<8x8xf32>
    %41 = tpu.matmul %38, %40, %cst_32 {dimension_numbers = #tpu.dot_dimension_numbers<[1], [0], [0], [1], [0, 0, 1, 1], [], []>} : vector<8x8xbf16>, vector<8x8xbf16>, vector<8x8xf32> -> vector<8x8xf32>
    %42 = arith.addf %35, %41 : vector<8x8xf32>
    %c0_33 = arith.constant 0 : index
    %c11 = arith.constant 11 : index
    %c0_34 = arith.constant 0 : index
    %43 = vector.load %arg1[%c0_33, %c11, %c0_34] : memref<1x24x8xf32, #tpu.memory_space<vmem>>, vector<1x8x8xf32>
    %44 = vector.shape_cast %43 : vector<1x8x8xf32> to vector<8x8xf32>
    %45 = arith.truncf %44 : vector<8x8xf32> to vector<8x8xbf16>
    %c6 = arith.constant 6 : index
    %c0_35 = arith.constant 0 : index
    %c0_36 = arith.constant 0 : index
    %46 = vector.load %arg2[%c6, %c0_35, %c0_36] : memref<9x8x8xbf16, #tpu.memory_space<vmem>>, vector<1x8x8xbf16>
    %47 = vector.shape_cast %46 : vector<1x8x8xbf16> to vector<8x8xbf16>
    %cst_37 = arith.constant dense<0.000000e+00> : vector<8x8xf32>
    %48 = tpu.matmul %45, %47, %cst_37 {dimension_numbers = #tpu.dot_dimension_numbers<[1], [0], [0], [1], [0, 0, 1, 1], [], []>} : vector<8x8xbf16>, vector<8x8xbf16>, vector<8x8xf32> -> vector<8x8xf32>
    %49 = arith.addf %42, %48 : vector<8x8xf32>
    %c0_38 = arith.constant 0 : index
    %c12 = arith.constant 12 : index
    %c0_39 = arith.constant 0 : index
    %50 = vector.load %arg1[%c0_38, %c12, %c0_39] : memref<1x24x8xf32, #tpu.memory_space<vmem>>, vector<1x8x8xf32>
    %51 = vector.shape_cast %50 : vector<1x8x8xf32> to vector<8x8xf32>
    %52 = arith.truncf %51 : vector<8x8xf32> to vector<8x8xbf16>
    %c7_40 = arith.constant 7 : index
    %c0_41 = arith.constant 0 : index
    %c0_42 = arith.constant 0 : index
    %53 = vector.load %arg2[%c7_40, %c0_41, %c0_42] : memref<9x8x8xbf16, #tpu.memory_space<vmem>>, vector<1x8x8xbf16>
    %54 = vector.shape_cast %53 : vector<1x8x8xbf16> to vector<8x8xbf16>
    %cst_43 = arith.constant dense<0.000000e+00> : vector<8x8xf32>
    %55 = tpu.matmul %52, %54, %cst_43 {dimension_numbers = #tpu.dot_dimension_numbers<[1], [0], [0], [1], [0, 0, 1, 1], [], []>} : vector<8x8xbf16>, vector<8x8xbf16>, vector<8x8xf32> -> vector<8x8xf32>
    %56 = arith.addf %49, %55 : vector<8x8xf32>
    %c0_44 = arith.constant 0 : index
    %c13 = arith.constant 13 : index
    %c0_45 = arith.constant 0 : index
    %57 = vector.load %arg1[%c0_44, %c13, %c0_45] : memref<1x24x8xf32, #tpu.memory_space<vmem>>, vector<1x8x8xf32>
    %58 = vector.shape_cast %57 : vector<1x8x8xf32> to vector<8x8xf32>
    %59 = arith.truncf %58 : vector<8x8xf32> to vector<8x8xbf16>
    %c8_46 = arith.constant 8 : index
    %c0_47 = arith.constant 0 : index
    %c0_48 = arith.constant 0 : index
    %60 = vector.load %arg2[%c8_46, %c0_47, %c0_48] : memref<9x8x8xbf16, #tpu.memory_space<vmem>>, vector<1x8x8xbf16>
    %61 = vector.shape_cast %60 : vector<1x8x8xbf16> to vector<8x8xbf16>
    %cst_49 = arith.constant dense<0.000000e+00> : vector<8x8xf32>
    %62 = tpu.matmul %59, %61, %cst_49 {dimension_numbers = #tpu.dot_dimension_numbers<[1], [0], [0], [1], [0, 0, 1, 1], [], []>} : vector<8x8xbf16>, vector<8x8xbf16>, vector<8x8xf32> -> vector<8x8xf32>
    %63 = arith.addf %56, %62 : vector<8x8xf32>
    %c0_50 = arith.constant 0 : index
    %c0_51 = arith.constant 0 : index
    %64 = vector.load %arg3[%c0_50, %c0_51] : memref<1x8xf32, #tpu.memory_space<vmem>>, vector<1x8xf32>
    %65 = vector.broadcast %64 : vector<1x8xf32> to vector<8x8xf32>
    %66 = arith.addf %63, %65 : vector<8x8xf32>
    %cst_52 = arith.constant 0.000000e+00 : f32
    %67 = vector.broadcast %cst_52 : f32 to vector<8x8xf32>
    %68 = arith.maximumf %66, %67 : vector<8x8xf32>
    %c0_53 = arith.constant 0 : index
    %c0_54 = arith.constant 0 : index
    %c0_55 = arith.constant 0 : index
    %69 = vector.load %arg4[%c0_53, %c0_54, %c0_55] : memref<1x8x8xf32, #tpu.memory_space<vmem>>, vector<1x8x8xf32>
    %70 = vector.shape_cast %69 : vector<1x8x8xf32> to vector<8x8xf32>
    %71 = vector.shape_cast %68 : vector<8x8xf32> to vector<1x8x8xf32>
    tpu.vector_store %arg4[%c0_53, %c0_54, %c0_55], %71 {strides = array<i32>} : memref<1x8x8xf32, #tpu.memory_space<vmem>>, vector<1x8x8xf32>,
    return
  }
  func.func @transform_0(%arg0: i32) -> (i32, i32, i32) {
    %c0_i32 = arith.constant 0 : i32
    %c0_i32_0 = arith.constant 0 : i32
    %c0_i32_1 = arith.constant 0 : i32
    return %arg0, %c0_i32, %c0_i32_0 : i32, i32, i32
  }
  func.func @transform_1(%arg0: i32) -> (i32, i32, i32) {
    %c0_i32 = arith.constant 0 : i32
    %c0_i32_0 = arith.constant 0 : i32
    %c0_i32_1 = arith.constant 0 : i32
    %c0_i32_2 = arith.constant 0 : i32
    return %c0_i32, %c0_i32_0, %c0_i32_1 : i32, i32, i32
  }
  func.func @transform_2(%arg0: i32) -> (i32, i32) {
    %c0_i32 = arith.constant 0 : i32
    %c0_i32_0 = arith.constant 0 : i32
    %c0_i32_1 = arith.constant 0 : i32
    return %c0_i32, %c0_i32_0 : i32, i32
  }
  func.func @transform_3(%arg0: i32) -> (i32, i32, i32) {
    %c0_i32 = arith.constant 0 : i32
    %c0_i32_0 = arith.constant 0 : i32
    %c0_i32_1 = arith.constant 0 : i32
    return %arg0, %c0_i32, %c0_i32_0 : i32, i32, i32
  }
}

module attributes {stable_mosaic.version = 11 : i64} {
  func.func @_level_kernel(%arg0: i32, %arg1: memref<1x24x8xf32, #tpu.memory_space<vmem>>, %arg2: memref<9x8x16xbf16, #tpu.memory_space<vmem>>, %arg3: memref<1x16xf32, #tpu.memory_space<vmem>>, %arg4: memref<16x29xbf16, #tpu.memory_space<vmem>>, %arg5: memref<1x29xf32, #tpu.memory_space<vmem>>, %arg6: memref<1x8x29xf32, #tpu.memory_space<vmem>>) attributes {dimension_semantics = [#tpu.dimension_semantics<parallel>], iteration_bounds = array<i64: 2>, scalar_prefetch = 0 : i64, scratch_operands = 0 : i64, tpu.core_type = #tpu.core_type<tc>, window_params = [{transform_indices = @transform_0, window_bounds = array<i64: 1, 24, 8>}, {pipeline_mode = #tpu.pipeline_mode<synchronous>, transform_indices = @transform_1, window_bounds = array<i64: 9, 8, 16>}, {pipeline_mode = #tpu.pipeline_mode<synchronous>, transform_indices = @transform_2, window_bounds = array<i64: 1, 16>}, {pipeline_mode = #tpu.pipeline_mode<synchronous>, transform_indices = @transform_3, window_bounds = array<i64: 16, 29>}, {pipeline_mode = #tpu.pipeline_mode<synchronous>, transform_indices = @transform_4, window_bounds = array<i64: 1, 29>}, {transform_indices = @transform_5, window_bounds = array<i64: 1, 8, 29>}]} {
    %cst = arith.constant 0.000000e+00 : f32
    %0 = vector.broadcast %cst : f32 to vector<8x16xf32>
    %c0 = arith.constant 0 : index
    %c3 = arith.constant 3 : index
    %c0_0 = arith.constant 0 : index
    %1 = vector.load %arg1[%c0, %c3, %c0_0] : memref<1x24x8xf32, #tpu.memory_space<vmem>>, vector<1x8x8xf32>
    %2 = vector.shape_cast %1 : vector<1x8x8xf32> to vector<8x8xf32>
    %3 = arith.truncf %2 : vector<8x8xf32> to vector<8x8xbf16>
    %c0_1 = arith.constant 0 : index
    %c0_2 = arith.constant 0 : index
    %c0_3 = arith.constant 0 : index
    %4 = vector.load %arg2[%c0_1, %c0_2, %c0_3] : memref<9x8x16xbf16, #tpu.memory_space<vmem>>, vector<1x8x16xbf16>
    %5 = vector.shape_cast %4 : vector<1x8x16xbf16> to vector<8x16xbf16>
    %cst_4 = arith.constant dense<0.000000e+00> : vector<8x16xf32>
    %6 = tpu.matmul %3, %5, %cst_4 {dimension_numbers = #tpu.dot_dimension_numbers<[1], [0], [0], [1], [0, 0, 1, 1], [], []>} : vector<8x8xbf16>, vector<8x16xbf16>, vector<8x16xf32> -> vector<8x16xf32>
    %7 = arith.addf %0, %6 : vector<8x16xf32>
    %c0_5 = arith.constant 0 : index
    %c4 = arith.constant 4 : index
    %c0_6 = arith.constant 0 : index
    %8 = vector.load %arg1[%c0_5, %c4, %c0_6] : memref<1x24x8xf32, #tpu.memory_space<vmem>>, vector<1x8x8xf32>
    %9 = vector.shape_cast %8 : vector<1x8x8xf32> to vector<8x8xf32>
    %10 = arith.truncf %9 : vector<8x8xf32> to vector<8x8xbf16>
    %c1 = arith.constant 1 : index
    %c0_7 = arith.constant 0 : index
    %c0_8 = arith.constant 0 : index
    %11 = vector.load %arg2[%c1, %c0_7, %c0_8] : memref<9x8x16xbf16, #tpu.memory_space<vmem>>, vector<1x8x16xbf16>
    %12 = vector.shape_cast %11 : vector<1x8x16xbf16> to vector<8x16xbf16>
    %cst_9 = arith.constant dense<0.000000e+00> : vector<8x16xf32>
    %13 = tpu.matmul %10, %12, %cst_9 {dimension_numbers = #tpu.dot_dimension_numbers<[1], [0], [0], [1], [0, 0, 1, 1], [], []>} : vector<8x8xbf16>, vector<8x16xbf16>, vector<8x16xf32> -> vector<8x16xf32>
    %14 = arith.addf %7, %13 : vector<8x16xf32>
    %c0_10 = arith.constant 0 : index
    %c5 = arith.constant 5 : index
    %c0_11 = arith.constant 0 : index
    %15 = vector.load %arg1[%c0_10, %c5, %c0_11] : memref<1x24x8xf32, #tpu.memory_space<vmem>>, vector<1x8x8xf32>
    %16 = vector.shape_cast %15 : vector<1x8x8xf32> to vector<8x8xf32>
    %17 = arith.truncf %16 : vector<8x8xf32> to vector<8x8xbf16>
    %c2 = arith.constant 2 : index
    %c0_12 = arith.constant 0 : index
    %c0_13 = arith.constant 0 : index
    %18 = vector.load %arg2[%c2, %c0_12, %c0_13] : memref<9x8x16xbf16, #tpu.memory_space<vmem>>, vector<1x8x16xbf16>
    %19 = vector.shape_cast %18 : vector<1x8x16xbf16> to vector<8x16xbf16>
    %cst_14 = arith.constant dense<0.000000e+00> : vector<8x16xf32>
    %20 = tpu.matmul %17, %19, %cst_14 {dimension_numbers = #tpu.dot_dimension_numbers<[1], [0], [0], [1], [0, 0, 1, 1], [], []>} : vector<8x8xbf16>, vector<8x16xbf16>, vector<8x16xf32> -> vector<8x16xf32>
    %21 = arith.addf %14, %20 : vector<8x16xf32>
    %c0_15 = arith.constant 0 : index
    %c7 = arith.constant 7 : index
    %c0_16 = arith.constant 0 : index
    %22 = vector.load %arg1[%c0_15, %c7, %c0_16] : memref<1x24x8xf32, #tpu.memory_space<vmem>>, vector<1x8x8xf32>
    %23 = vector.shape_cast %22 : vector<1x8x8xf32> to vector<8x8xf32>
    %24 = arith.truncf %23 : vector<8x8xf32> to vector<8x8xbf16>
    %c3_17 = arith.constant 3 : index
    %c0_18 = arith.constant 0 : index
    %c0_19 = arith.constant 0 : index
    %25 = vector.load %arg2[%c3_17, %c0_18, %c0_19] : memref<9x8x16xbf16, #tpu.memory_space<vmem>>, vector<1x8x16xbf16>
    %26 = vector.shape_cast %25 : vector<1x8x16xbf16> to vector<8x16xbf16>
    %cst_20 = arith.constant dense<0.000000e+00> : vector<8x16xf32>
    %27 = tpu.matmul %24, %26, %cst_20 {dimension_numbers = #tpu.dot_dimension_numbers<[1], [0], [0], [1], [0, 0, 1, 1], [], []>} : vector<8x8xbf16>, vector<8x16xbf16>, vector<8x16xf32> -> vector<8x16xf32>
    %28 = arith.addf %21, %27 : vector<8x16xf32>
    %c0_21 = arith.constant 0 : index
    %c8 = arith.constant 8 : index
    %c0_22 = arith.constant 0 : index
    %29 = vector.load %arg1[%c0_21, %c8, %c0_22] : memref<1x24x8xf32, #tpu.memory_space<vmem>>, vector<1x8x8xf32>
    %30 = vector.shape_cast %29 : vector<1x8x8xf32> to vector<8x8xf32>
    %31 = arith.truncf %30 : vector<8x8xf32> to vector<8x8xbf16>
    %c4_23 = arith.constant 4 : index
    %c0_24 = arith.constant 0 : index
    %c0_25 = arith.constant 0 : index
    %32 = vector.load %arg2[%c4_23, %c0_24, %c0_25] : memref<9x8x16xbf16, #tpu.memory_space<vmem>>, vector<1x8x16xbf16>
    %33 = vector.shape_cast %32 : vector<1x8x16xbf16> to vector<8x16xbf16>
    %cst_26 = arith.constant dense<0.000000e+00> : vector<8x16xf32>
    %34 = tpu.matmul %31, %33, %cst_26 {dimension_numbers = #tpu.dot_dimension_numbers<[1], [0], [0], [1], [0, 0, 1, 1], [], []>} : vector<8x8xbf16>, vector<8x16xbf16>, vector<8x16xf32> -> vector<8x16xf32>
    %35 = arith.addf %28, %34 : vector<8x16xf32>
    %c0_27 = arith.constant 0 : index
    %c9 = arith.constant 9 : index
    %c0_28 = arith.constant 0 : index
    %36 = vector.load %arg1[%c0_27, %c9, %c0_28] : memref<1x24x8xf32, #tpu.memory_space<vmem>>, vector<1x8x8xf32>
    %37 = vector.shape_cast %36 : vector<1x8x8xf32> to vector<8x8xf32>
    %38 = arith.truncf %37 : vector<8x8xf32> to vector<8x8xbf16>
    %c5_29 = arith.constant 5 : index
    %c0_30 = arith.constant 0 : index
    %c0_31 = arith.constant 0 : index
    %39 = vector.load %arg2[%c5_29, %c0_30, %c0_31] : memref<9x8x16xbf16, #tpu.memory_space<vmem>>, vector<1x8x16xbf16>
    %40 = vector.shape_cast %39 : vector<1x8x16xbf16> to vector<8x16xbf16>
    %cst_32 = arith.constant dense<0.000000e+00> : vector<8x16xf32>
    %41 = tpu.matmul %38, %40, %cst_32 {dimension_numbers = #tpu.dot_dimension_numbers<[1], [0], [0], [1], [0, 0, 1, 1], [], []>} : vector<8x8xbf16>, vector<8x16xbf16>, vector<8x16xf32> -> vector<8x16xf32>
    %42 = arith.addf %35, %41 : vector<8x16xf32>
    %c0_33 = arith.constant 0 : index
    %c11 = arith.constant 11 : index
    %c0_34 = arith.constant 0 : index
    %43 = vector.load %arg1[%c0_33, %c11, %c0_34] : memref<1x24x8xf32, #tpu.memory_space<vmem>>, vector<1x8x8xf32>
    %44 = vector.shape_cast %43 : vector<1x8x8xf32> to vector<8x8xf32>
    %45 = arith.truncf %44 : vector<8x8xf32> to vector<8x8xbf16>
    %c6 = arith.constant 6 : index
    %c0_35 = arith.constant 0 : index
    %c0_36 = arith.constant 0 : index
    %46 = vector.load %arg2[%c6, %c0_35, %c0_36] : memref<9x8x16xbf16, #tpu.memory_space<vmem>>, vector<1x8x16xbf16>
    %47 = vector.shape_cast %46 : vector<1x8x16xbf16> to vector<8x16xbf16>
    %cst_37 = arith.constant dense<0.000000e+00> : vector<8x16xf32>
    %48 = tpu.matmul %45, %47, %cst_37 {dimension_numbers = #tpu.dot_dimension_numbers<[1], [0], [0], [1], [0, 0, 1, 1], [], []>} : vector<8x8xbf16>, vector<8x16xbf16>, vector<8x16xf32> -> vector<8x16xf32>
    %49 = arith.addf %42, %48 : vector<8x16xf32>
    %c0_38 = arith.constant 0 : index
    %c12 = arith.constant 12 : index
    %c0_39 = arith.constant 0 : index
    %50 = vector.load %arg1[%c0_38, %c12, %c0_39] : memref<1x24x8xf32, #tpu.memory_space<vmem>>, vector<1x8x8xf32>
    %51 = vector.shape_cast %50 : vector<1x8x8xf32> to vector<8x8xf32>
    %52 = arith.truncf %51 : vector<8x8xf32> to vector<8x8xbf16>
    %c7_40 = arith.constant 7 : index
    %c0_41 = arith.constant 0 : index
    %c0_42 = arith.constant 0 : index
    %53 = vector.load %arg2[%c7_40, %c0_41, %c0_42] : memref<9x8x16xbf16, #tpu.memory_space<vmem>>, vector<1x8x16xbf16>
    %54 = vector.shape_cast %53 : vector<1x8x16xbf16> to vector<8x16xbf16>
    %cst_43 = arith.constant dense<0.000000e+00> : vector<8x16xf32>
    %55 = tpu.matmul %52, %54, %cst_43 {dimension_numbers = #tpu.dot_dimension_numbers<[1], [0], [0], [1], [0, 0, 1, 1], [], []>} : vector<8x8xbf16>, vector<8x16xbf16>, vector<8x16xf32> -> vector<8x16xf32>
    %56 = arith.addf %49, %55 : vector<8x16xf32>
    %c0_44 = arith.constant 0 : index
    %c13 = arith.constant 13 : index
    %c0_45 = arith.constant 0 : index
    %57 = vector.load %arg1[%c0_44, %c13, %c0_45] : memref<1x24x8xf32, #tpu.memory_space<vmem>>, vector<1x8x8xf32>
    %58 = vector.shape_cast %57 : vector<1x8x8xf32> to vector<8x8xf32>
    %59 = arith.truncf %58 : vector<8x8xf32> to vector<8x8xbf16>
    %c8_46 = arith.constant 8 : index
    %c0_47 = arith.constant 0 : index
    %c0_48 = arith.constant 0 : index
    %60 = vector.load %arg2[%c8_46, %c0_47, %c0_48] : memref<9x8x16xbf16, #tpu.memory_space<vmem>>, vector<1x8x16xbf16>
    %61 = vector.shape_cast %60 : vector<1x8x16xbf16> to vector<8x16xbf16>
    %cst_49 = arith.constant dense<0.000000e+00> : vector<8x16xf32>
    %62 = tpu.matmul %59, %61, %cst_49 {dimension_numbers = #tpu.dot_dimension_numbers<[1], [0], [0], [1], [0, 0, 1, 1], [], []>} : vector<8x8xbf16>, vector<8x16xbf16>, vector<8x16xf32> -> vector<8x16xf32>
    %63 = arith.addf %56, %62 : vector<8x16xf32>
    %c0_50 = arith.constant 0 : index
    %c0_51 = arith.constant 0 : index
    %64 = vector.load %arg3[%c0_50, %c0_51] : memref<1x16xf32, #tpu.memory_space<vmem>>, vector<1x16xf32>
    %65 = vector.broadcast %64 : vector<1x16xf32> to vector<8x16xf32>
    %66 = arith.addf %63, %65 : vector<8x16xf32>
    %cst_52 = arith.constant 0.000000e+00 : f32
    %67 = vector.broadcast %cst_52 : f32 to vector<8x16xf32>
    %68 = arith.maximumf %66, %67 : vector<8x16xf32>
    %69 = arith.truncf %68 : vector<8x16xf32> to vector<8x16xbf16>
    %c0_53 = arith.constant 0 : index
    %c0_54 = arith.constant 0 : index
    %70 = vector.load %arg4[%c0_53, %c0_54] : memref<16x29xbf16, #tpu.memory_space<vmem>>, vector<16x29xbf16>
    %cst_55 = arith.constant dense<0.000000e+00> : vector<8x29xf32>
    %71 = tpu.matmul %69, %70, %cst_55 {dimension_numbers = #tpu.dot_dimension_numbers<[1], [0], [0], [1], [0, 0, 1, 1], [], []>} : vector<8x16xbf16>, vector<16x29xbf16>, vector<8x29xf32> -> vector<8x29xf32>
    %c0_56 = arith.constant 0 : index
    %c0_57 = arith.constant 0 : index
    %72 = vector.load %arg5[%c0_56, %c0_57] : memref<1x29xf32, #tpu.memory_space<vmem>>, vector<1x29xf32>
    %73 = vector.broadcast %72 : vector<1x29xf32> to vector<8x29xf32>
    %74 = arith.addf %71, %73 : vector<8x29xf32>
    %c0_58 = arith.constant 0 : index
    %c0_59 = arith.constant 0 : index
    %c0_60 = arith.constant 0 : index
    %75 = vector.load %arg6[%c0_58, %c0_59, %c0_60] : memref<1x8x29xf32, #tpu.memory_space<vmem>>, vector<1x8x29xf32>
    %76 = vector.shape_cast %75 : vector<1x8x29xf32> to vector<8x29xf32>
    %77 = vector.shape_cast %74 : vector<8x29xf32> to vector<1x8x29xf32>
    tpu.vector_store %arg6[%c0_58, %c0_59, %c0_60], %77 {strides = array<i32>} : memref<1x8x29xf32, #tpu.memory_space<vmem>>, vector<1x8x29xf32>,
    return
  }
  func.func @transform_0(%arg0: i32) -> (i32, i32, i32) {
    %c0_i32 = arith.constant 0 : i32
    %c0_i32_0 = arith.constant 0 : i32
    %c0_i32_1 = arith.constant 0 : i32
    return %arg0, %c0_i32, %c0_i32_0 : i32, i32, i32
  }
  func.func @transform_1(%arg0: i32) -> (i32, i32, i32) {
    %c0_i32 = arith.constant 0 : i32
    %c0_i32_0 = arith.constant 0 : i32
    %c0_i32_1 = arith.constant 0 : i32
    %c0_i32_2 = arith.constant 0 : i32
    return %c0_i32, %c0_i32_0, %c0_i32_1 : i32, i32, i32
  }
  func.func @transform_2(%arg0: i32) -> (i32, i32) {
    %c0_i32 = arith.constant 0 : i32
    %c0_i32_0 = arith.constant 0 : i32
    %c0_i32_1 = arith.constant 0 : i32
    return %c0_i32, %c0_i32_0 : i32, i32
  }
  func.func @transform_3(%arg0: i32) -> (i32, i32) {
    %c0_i32 = arith.constant 0 : i32
    %c0_i32_0 = arith.constant 0 : i32
    %c0_i32_1 = arith.constant 0 : i32
    return %c0_i32, %c0_i32_0 : i32, i32
  }
  func.func @transform_4(%arg0: i32) -> (i32, i32) {
    %c0_i32 = arith.constant 0 : i32
    %c0_i32_0 = arith.constant 0 : i32
    %c0_i32_1 = arith.constant 0 : i32
    return %c0_i32, %c0_i32_0 : i32, i32
  }
  func.func @transform_5(%arg0: i32) -> (i32, i32, i32) {
    %c0_i32 = arith.constant 0 : i32
    %c0_i32_0 = arith.constant 0 : i32
    %c0_i32_1 = arith.constant 0 : i32
    return %arg0, %c0_i32, %c0_i32_0 : i32, i32, i32
  }
}

module attributes {stable_mosaic.version = 11 : i64} {
  func.func @_level_kernel(%arg0: i32, %arg1: memref<1x48x8xf32, #tpu.memory_space<vmem>>, %arg2: memref<9x8x16xbf16, #tpu.memory_space<vmem>>, %arg3: memref<1x16xf32, #tpu.memory_space<vmem>>, %arg4: memref<16x34xbf16, #tpu.memory_space<vmem>>, %arg5: memref<1x34xf32, #tpu.memory_space<vmem>>, %arg6: memref<1x24x34xf32, #tpu.memory_space<vmem>>) attributes {dimension_semantics = [#tpu.dimension_semantics<parallel>], iteration_bounds = array<i64: 2>, scalar_prefetch = 0 : i64, scratch_operands = 0 : i64, tpu.core_type = #tpu.core_type<tc>, window_params = [{transform_indices = @transform_0, window_bounds = array<i64: 1, 48, 8>}, {pipeline_mode = #tpu.pipeline_mode<synchronous>, transform_indices = @transform_1, window_bounds = array<i64: 9, 8, 16>}, {pipeline_mode = #tpu.pipeline_mode<synchronous>, transform_indices = @transform_2, window_bounds = array<i64: 1, 16>}, {pipeline_mode = #tpu.pipeline_mode<synchronous>, transform_indices = @transform_3, window_bounds = array<i64: 16, 34>}, {pipeline_mode = #tpu.pipeline_mode<synchronous>, transform_indices = @transform_4, window_bounds = array<i64: 1, 34>}, {transform_indices = @transform_5, window_bounds = array<i64: 1, 24, 34>}]} {
    %cst = arith.constant 0.000000e+00 : f32
    %0 = vector.broadcast %cst : f32 to vector<24x16xf32>
    %c0 = arith.constant 0 : index
    %c5 = arith.constant 5 : index
    %c0_0 = arith.constant 0 : index
    %1 = vector.load %arg1[%c0, %c5, %c0_0] : memref<1x48x8xf32, #tpu.memory_space<vmem>>, vector<1x24x8xf32>
    %2 = vector.shape_cast %1 : vector<1x24x8xf32> to vector<24x8xf32>
    %3 = arith.truncf %2 : vector<24x8xf32> to vector<24x8xbf16>
    %c0_1 = arith.constant 0 : index
    %c0_2 = arith.constant 0 : index
    %c0_3 = arith.constant 0 : index
    %4 = vector.load %arg2[%c0_1, %c0_2, %c0_3] : memref<9x8x16xbf16, #tpu.memory_space<vmem>>, vector<1x8x16xbf16>
    %5 = vector.shape_cast %4 : vector<1x8x16xbf16> to vector<8x16xbf16>
    %cst_4 = arith.constant dense<0.000000e+00> : vector<24x16xf32>
    %6 = tpu.matmul %3, %5, %cst_4 {dimension_numbers = #tpu.dot_dimension_numbers<[1], [0], [0], [1], [0, 0, 1, 1], [], []>} : vector<24x8xbf16>, vector<8x16xbf16>, vector<24x16xf32> -> vector<24x16xf32>
    %7 = arith.addf %0, %6 : vector<24x16xf32>
    %c0_5 = arith.constant 0 : index
    %c6 = arith.constant 6 : index
    %c0_6 = arith.constant 0 : index
    %8 = vector.load %arg1[%c0_5, %c6, %c0_6] : memref<1x48x8xf32, #tpu.memory_space<vmem>>, vector<1x24x8xf32>
    %9 = vector.shape_cast %8 : vector<1x24x8xf32> to vector<24x8xf32>
    %10 = arith.truncf %9 : vector<24x8xf32> to vector<24x8xbf16>
    %c1 = arith.constant 1 : index
    %c0_7 = arith.constant 0 : index
    %c0_8 = arith.constant 0 : index
    %11 = vector.load %arg2[%c1, %c0_7, %c0_8] : memref<9x8x16xbf16, #tpu.memory_space<vmem>>, vector<1x8x16xbf16>
    %12 = vector.shape_cast %11 : vector<1x8x16xbf16> to vector<8x16xbf16>
    %cst_9 = arith.constant dense<0.000000e+00> : vector<24x16xf32>
    %13 = tpu.matmul %10, %12, %cst_9 {dimension_numbers = #tpu.dot_dimension_numbers<[1], [0], [0], [1], [0, 0, 1, 1], [], []>} : vector<24x8xbf16>, vector<8x16xbf16>, vector<24x16xf32> -> vector<24x16xf32>
    %14 = arith.addf %7, %13 : vector<24x16xf32>
    %c0_10 = arith.constant 0 : index
    %c7 = arith.constant 7 : index
    %c0_11 = arith.constant 0 : index
    %15 = vector.load %arg1[%c0_10, %c7, %c0_11] : memref<1x48x8xf32, #tpu.memory_space<vmem>>, vector<1x24x8xf32>
    %16 = vector.shape_cast %15 : vector<1x24x8xf32> to vector<24x8xf32>
    %17 = arith.truncf %16 : vector<24x8xf32> to vector<24x8xbf16>
    %c2 = arith.constant 2 : index
    %c0_12 = arith.constant 0 : index
    %c0_13 = arith.constant 0 : index
    %18 = vector.load %arg2[%c2, %c0_12, %c0_13] : memref<9x8x16xbf16, #tpu.memory_space<vmem>>, vector<1x8x16xbf16>
    %19 = vector.shape_cast %18 : vector<1x8x16xbf16> to vector<8x16xbf16>
    %cst_14 = arith.constant dense<0.000000e+00> : vector<24x16xf32>
    %20 = tpu.matmul %17, %19, %cst_14 {dimension_numbers = #tpu.dot_dimension_numbers<[1], [0], [0], [1], [0, 0, 1, 1], [], []>} : vector<24x8xbf16>, vector<8x16xbf16>, vector<24x16xf32> -> vector<24x16xf32>
    %21 = arith.addf %14, %20 : vector<24x16xf32>
    %c0_15 = arith.constant 0 : index
    %c11 = arith.constant 11 : index
    %c0_16 = arith.constant 0 : index
    %22 = vector.load %arg1[%c0_15, %c11, %c0_16] : memref<1x48x8xf32, #tpu.memory_space<vmem>>, vector<1x24x8xf32>
    %23 = vector.shape_cast %22 : vector<1x24x8xf32> to vector<24x8xf32>
    %24 = arith.truncf %23 : vector<24x8xf32> to vector<24x8xbf16>
    %c3 = arith.constant 3 : index
    %c0_17 = arith.constant 0 : index
    %c0_18 = arith.constant 0 : index
    %25 = vector.load %arg2[%c3, %c0_17, %c0_18] : memref<9x8x16xbf16, #tpu.memory_space<vmem>>, vector<1x8x16xbf16>
    %26 = vector.shape_cast %25 : vector<1x8x16xbf16> to vector<8x16xbf16>
    %cst_19 = arith.constant dense<0.000000e+00> : vector<24x16xf32>
    %27 = tpu.matmul %24, %26, %cst_19 {dimension_numbers = #tpu.dot_dimension_numbers<[1], [0], [0], [1], [0, 0, 1, 1], [], []>} : vector<24x8xbf16>, vector<8x16xbf16>, vector<24x16xf32> -> vector<24x16xf32>
    %28 = arith.addf %21, %27 : vector<24x16xf32>
    %c0_20 = arith.constant 0 : index
    %c12 = arith.constant 12 : index
    %c0_21 = arith.constant 0 : index
    %29 = vector.load %arg1[%c0_20, %c12, %c0_21] : memref<1x48x8xf32, #tpu.memory_space<vmem>>, vector<1x24x8xf32>
    %30 = vector.shape_cast %29 : vector<1x24x8xf32> to vector<24x8xf32>
    %31 = arith.truncf %30 : vector<24x8xf32> to vector<24x8xbf16>
    %c4 = arith.constant 4 : index
    %c0_22 = arith.constant 0 : index
    %c0_23 = arith.constant 0 : index
    %32 = vector.load %arg2[%c4, %c0_22, %c0_23] : memref<9x8x16xbf16, #tpu.memory_space<vmem>>, vector<1x8x16xbf16>
    %33 = vector.shape_cast %32 : vector<1x8x16xbf16> to vector<8x16xbf16>
    %cst_24 = arith.constant dense<0.000000e+00> : vector<24x16xf32>
    %34 = tpu.matmul %31, %33, %cst_24 {dimension_numbers = #tpu.dot_dimension_numbers<[1], [0], [0], [1], [0, 0, 1, 1], [], []>} : vector<24x8xbf16>, vector<8x16xbf16>, vector<24x16xf32> -> vector<24x16xf32>
    %35 = arith.addf %28, %34 : vector<24x16xf32>
    %c0_25 = arith.constant 0 : index
    %c13 = arith.constant 13 : index
    %c0_26 = arith.constant 0 : index
    %36 = vector.load %arg1[%c0_25, %c13, %c0_26] : memref<1x48x8xf32, #tpu.memory_space<vmem>>, vector<1x24x8xf32>
    %37 = vector.shape_cast %36 : vector<1x24x8xf32> to vector<24x8xf32>
    %38 = arith.truncf %37 : vector<24x8xf32> to vector<24x8xbf16>
    %c5_27 = arith.constant 5 : index
    %c0_28 = arith.constant 0 : index
    %c0_29 = arith.constant 0 : index
    %39 = vector.load %arg2[%c5_27, %c0_28, %c0_29] : memref<9x8x16xbf16, #tpu.memory_space<vmem>>, vector<1x8x16xbf16>
    %40 = vector.shape_cast %39 : vector<1x8x16xbf16> to vector<8x16xbf16>
    %cst_30 = arith.constant dense<0.000000e+00> : vector<24x16xf32>
    %41 = tpu.matmul %38, %40, %cst_30 {dimension_numbers = #tpu.dot_dimension_numbers<[1], [0], [0], [1], [0, 0, 1, 1], [], []>} : vector<24x8xbf16>, vector<8x16xbf16>, vector<24x16xf32> -> vector<24x16xf32>
    %42 = arith.addf %35, %41 : vector<24x16xf32>
    %c0_31 = arith.constant 0 : index
    %c17 = arith.constant 17 : index
    %c0_32 = arith.constant 0 : index
    %43 = vector.load %arg1[%c0_31, %c17, %c0_32] : memref<1x48x8xf32, #tpu.memory_space<vmem>>, vector<1x24x8xf32>
    %44 = vector.shape_cast %43 : vector<1x24x8xf32> to vector<24x8xf32>
    %45 = arith.truncf %44 : vector<24x8xf32> to vector<24x8xbf16>
    %c6_33 = arith.constant 6 : index
    %c0_34 = arith.constant 0 : index
    %c0_35 = arith.constant 0 : index
    %46 = vector.load %arg2[%c6_33, %c0_34, %c0_35] : memref<9x8x16xbf16, #tpu.memory_space<vmem>>, vector<1x8x16xbf16>
    %47 = vector.shape_cast %46 : vector<1x8x16xbf16> to vector<8x16xbf16>
    %cst_36 = arith.constant dense<0.000000e+00> : vector<24x16xf32>
    %48 = tpu.matmul %45, %47, %cst_36 {dimension_numbers = #tpu.dot_dimension_numbers<[1], [0], [0], [1], [0, 0, 1, 1], [], []>} : vector<24x8xbf16>, vector<8x16xbf16>, vector<24x16xf32> -> vector<24x16xf32>
    %49 = arith.addf %42, %48 : vector<24x16xf32>
    %c0_37 = arith.constant 0 : index
    %c18 = arith.constant 18 : index
    %c0_38 = arith.constant 0 : index
    %50 = vector.load %arg1[%c0_37, %c18, %c0_38] : memref<1x48x8xf32, #tpu.memory_space<vmem>>, vector<1x24x8xf32>
    %51 = vector.shape_cast %50 : vector<1x24x8xf32> to vector<24x8xf32>
    %52 = arith.truncf %51 : vector<24x8xf32> to vector<24x8xbf16>
    %c7_39 = arith.constant 7 : index
    %c0_40 = arith.constant 0 : index
    %c0_41 = arith.constant 0 : index
    %53 = vector.load %arg2[%c7_39, %c0_40, %c0_41] : memref<9x8x16xbf16, #tpu.memory_space<vmem>>, vector<1x8x16xbf16>
    %54 = vector.shape_cast %53 : vector<1x8x16xbf16> to vector<8x16xbf16>
    %cst_42 = arith.constant dense<0.000000e+00> : vector<24x16xf32>
    %55 = tpu.matmul %52, %54, %cst_42 {dimension_numbers = #tpu.dot_dimension_numbers<[1], [0], [0], [1], [0, 0, 1, 1], [], []>} : vector<24x8xbf16>, vector<8x16xbf16>, vector<24x16xf32> -> vector<24x16xf32>
    %56 = arith.addf %49, %55 : vector<24x16xf32>
    %c0_43 = arith.constant 0 : index
    %c19 = arith.constant 19 : index
    %c0_44 = arith.constant 0 : index
    %57 = vector.load %arg1[%c0_43, %c19, %c0_44] : memref<1x48x8xf32, #tpu.memory_space<vmem>>, vector<1x24x8xf32>
    %58 = vector.shape_cast %57 : vector<1x24x8xf32> to vector<24x8xf32>
    %59 = arith.truncf %58 : vector<24x8xf32> to vector<24x8xbf16>
    %c8 = arith.constant 8 : index
    %c0_45 = arith.constant 0 : index
    %c0_46 = arith.constant 0 : index
    %60 = vector.load %arg2[%c8, %c0_45, %c0_46] : memref<9x8x16xbf16, #tpu.memory_space<vmem>>, vector<1x8x16xbf16>
    %61 = vector.shape_cast %60 : vector<1x8x16xbf16> to vector<8x16xbf16>
    %cst_47 = arith.constant dense<0.000000e+00> : vector<24x16xf32>
    %62 = tpu.matmul %59, %61, %cst_47 {dimension_numbers = #tpu.dot_dimension_numbers<[1], [0], [0], [1], [0, 0, 1, 1], [], []>} : vector<24x8xbf16>, vector<8x16xbf16>, vector<24x16xf32> -> vector<24x16xf32>
    %63 = arith.addf %56, %62 : vector<24x16xf32>
    %c0_48 = arith.constant 0 : index
    %c0_49 = arith.constant 0 : index
    %64 = vector.load %arg3[%c0_48, %c0_49] : memref<1x16xf32, #tpu.memory_space<vmem>>, vector<1x16xf32>
    %65 = vector.broadcast %64 : vector<1x16xf32> to vector<24x16xf32>
    %66 = arith.addf %63, %65 : vector<24x16xf32>
    %cst_50 = arith.constant 0.000000e+00 : f32
    %67 = vector.broadcast %cst_50 : f32 to vector<24x16xf32>
    %68 = arith.maximumf %66, %67 : vector<24x16xf32>
    %69 = arith.truncf %68 : vector<24x16xf32> to vector<24x16xbf16>
    %c0_51 = arith.constant 0 : index
    %c0_52 = arith.constant 0 : index
    %70 = vector.load %arg4[%c0_51, %c0_52] : memref<16x34xbf16, #tpu.memory_space<vmem>>, vector<16x34xbf16>
    %cst_53 = arith.constant dense<0.000000e+00> : vector<24x34xf32>
    %71 = tpu.matmul %69, %70, %cst_53 {dimension_numbers = #tpu.dot_dimension_numbers<[1], [0], [0], [1], [0, 0, 1, 1], [], []>} : vector<24x16xbf16>, vector<16x34xbf16>, vector<24x34xf32> -> vector<24x34xf32>
    %c0_54 = arith.constant 0 : index
    %c0_55 = arith.constant 0 : index
    %72 = vector.load %arg5[%c0_54, %c0_55] : memref<1x34xf32, #tpu.memory_space<vmem>>, vector<1x34xf32>
    %73 = vector.broadcast %72 : vector<1x34xf32> to vector<24x34xf32>
    %74 = arith.addf %71, %73 : vector<24x34xf32>
    %c0_56 = arith.constant 0 : index
    %c0_57 = arith.constant 0 : index
    %c0_58 = arith.constant 0 : index
    %75 = vector.load %arg6[%c0_56, %c0_57, %c0_58] : memref<1x24x34xf32, #tpu.memory_space<vmem>>, vector<1x24x34xf32>
    %76 = vector.shape_cast %75 : vector<1x24x34xf32> to vector<24x34xf32>
    %77 = vector.shape_cast %74 : vector<24x34xf32> to vector<1x24x34xf32>
    tpu.vector_store %arg6[%c0_56, %c0_57, %c0_58], %77 {strides = array<i32>} : memref<1x24x34xf32, #tpu.memory_space<vmem>>, vector<1x24x34xf32>,
    return
  }
  func.func @transform_0(%arg0: i32) -> (i32, i32, i32) {
    %c0_i32 = arith.constant 0 : i32
    %c0_i32_0 = arith.constant 0 : i32
    %c0_i32_1 = arith.constant 0 : i32
    return %arg0, %c0_i32, %c0_i32_0 : i32, i32, i32
  }
  func.func @transform_1(%arg0: i32) -> (i32, i32, i32) {
    %c0_i32 = arith.constant 0 : i32
    %c0_i32_0 = arith.constant 0 : i32
    %c0_i32_1 = arith.constant 0 : i32
    %c0_i32_2 = arith.constant 0 : i32
    return %c0_i32, %c0_i32_0, %c0_i32_1 : i32, i32, i32
  }
  func.func @transform_2(%arg0: i32) -> (i32, i32) {
    %c0_i32 = arith.constant 0 : i32
    %c0_i32_0 = arith.constant 0 : i32
    %c0_i32_1 = arith.constant 0 : i32
    return %c0_i32, %c0_i32_0 : i32, i32
  }
  func.func @transform_3(%arg0: i32) -> (i32, i32) {
    %c0_i32 = arith.constant 0 : i32
    %c0_i32_0 = arith.constant 0 : i32
    %c0_i32_1 = arith.constant 0 : i32
    return %c0_i32, %c0_i32_0 : i32, i32
  }
  func.func @transform_4(%arg0: i32) -> (i32, i32) {
    %c0_i32 = arith.constant 0 : i32
    %c0_i32_0 = arith.constant 0 : i32
    %c0_i32_1 = arith.constant 0 : i32
    return %c0_i32, %c0_i32_0 : i32, i32
  }
  func.func @transform_5(%arg0: i32) -> (i32, i32, i32) {
    %c0_i32 = arith.constant 0 : i32
    %c0_i32_0 = arith.constant 0 : i32
    %c0_i32_1 = arith.constant 0 : i32
    return %arg0, %c0_i32, %c0_i32_0 : i32, i32, i32
  }
}

module attributes {stable_mosaic.version = 11 : i64} {
  func.func @_level_kernel(%arg0: i32, %arg1: memref<1x120x8xf32, #tpu.memory_space<vmem>>, %arg2: memref<9x8x16xbf16, #tpu.memory_space<vmem>>, %arg3: memref<1x16xf32, #tpu.memory_space<vmem>>, %arg4: memref<16x22xbf16, #tpu.memory_space<vmem>>, %arg5: memref<1x22xf32, #tpu.memory_space<vmem>>, %arg6: memref<1x80x22xf32, #tpu.memory_space<vmem>>) attributes {dimension_semantics = [#tpu.dimension_semantics<parallel>], iteration_bounds = array<i64: 2>, scalar_prefetch = 0 : i64, scratch_operands = 0 : i64, tpu.core_type = #tpu.core_type<tc>, window_params = [{transform_indices = @transform_0, window_bounds = array<i64: 1, 120, 8>}, {pipeline_mode = #tpu.pipeline_mode<synchronous>, transform_indices = @transform_1, window_bounds = array<i64: 9, 8, 16>}, {pipeline_mode = #tpu.pipeline_mode<synchronous>, transform_indices = @transform_2, window_bounds = array<i64: 1, 16>}, {pipeline_mode = #tpu.pipeline_mode<synchronous>, transform_indices = @transform_3, window_bounds = array<i64: 16, 22>}, {pipeline_mode = #tpu.pipeline_mode<synchronous>, transform_indices = @transform_4, window_bounds = array<i64: 1, 22>}, {transform_indices = @transform_5, window_bounds = array<i64: 1, 80, 22>}]} {
    %cst = arith.constant 0.000000e+00 : f32
    %0 = vector.broadcast %cst : f32 to vector<80x16xf32>
    %c0 = arith.constant 0 : index
    %c9 = arith.constant 9 : index
    %c0_0 = arith.constant 0 : index
    %1 = vector.load %arg1[%c0, %c9, %c0_0] : memref<1x120x8xf32, #tpu.memory_space<vmem>>, vector<1x80x8xf32>
    %2 = vector.shape_cast %1 : vector<1x80x8xf32> to vector<80x8xf32>
    %3 = arith.truncf %2 : vector<80x8xf32> to vector<80x8xbf16>
    %c0_1 = arith.constant 0 : index
    %c0_2 = arith.constant 0 : index
    %c0_3 = arith.constant 0 : index
    %4 = vector.load %arg2[%c0_1, %c0_2, %c0_3] : memref<9x8x16xbf16, #tpu.memory_space<vmem>>, vector<1x8x16xbf16>
    %5 = vector.shape_cast %4 : vector<1x8x16xbf16> to vector<8x16xbf16>
    %cst_4 = arith.constant dense<0.000000e+00> : vector<80x16xf32>
    %6 = tpu.matmul %3, %5, %cst_4 {dimension_numbers = #tpu.dot_dimension_numbers<[1], [0], [0], [1], [0, 0, 1, 1], [], []>} : vector<80x8xbf16>, vector<8x16xbf16>, vector<80x16xf32> -> vector<80x16xf32>
    %7 = arith.addf %0, %6 : vector<80x16xf32>
    %c0_5 = arith.constant 0 : index
    %c10 = arith.constant 10 : index
    %c0_6 = arith.constant 0 : index
    %8 = vector.load %arg1[%c0_5, %c10, %c0_6] : memref<1x120x8xf32, #tpu.memory_space<vmem>>, vector<1x80x8xf32>
    %9 = vector.shape_cast %8 : vector<1x80x8xf32> to vector<80x8xf32>
    %10 = arith.truncf %9 : vector<80x8xf32> to vector<80x8xbf16>
    %c1 = arith.constant 1 : index
    %c0_7 = arith.constant 0 : index
    %c0_8 = arith.constant 0 : index
    %11 = vector.load %arg2[%c1, %c0_7, %c0_8] : memref<9x8x16xbf16, #tpu.memory_space<vmem>>, vector<1x8x16xbf16>
    %12 = vector.shape_cast %11 : vector<1x8x16xbf16> to vector<8x16xbf16>
    %cst_9 = arith.constant dense<0.000000e+00> : vector<80x16xf32>
    %13 = tpu.matmul %10, %12, %cst_9 {dimension_numbers = #tpu.dot_dimension_numbers<[1], [0], [0], [1], [0, 0, 1, 1], [], []>} : vector<80x8xbf16>, vector<8x16xbf16>, vector<80x16xf32> -> vector<80x16xf32>
    %14 = arith.addf %7, %13 : vector<80x16xf32>
    %c0_10 = arith.constant 0 : index
    %c11 = arith.constant 11 : index
    %c0_11 = arith.constant 0 : index
    %15 = vector.load %arg1[%c0_10, %c11, %c0_11] : memref<1x120x8xf32, #tpu.memory_space<vmem>>, vector<1x80x8xf32>
    %16 = vector.shape_cast %15 : vector<1x80x8xf32> to vector<80x8xf32>
    %17 = arith.truncf %16 : vector<80x8xf32> to vector<80x8xbf16>
    %c2 = arith.constant 2 : index
    %c0_12 = arith.constant 0 : index
    %c0_13 = arith.constant 0 : index
    %18 = vector.load %arg2[%c2, %c0_12, %c0_13] : memref<9x8x16xbf16, #tpu.memory_space<vmem>>, vector<1x8x16xbf16>
    %19 = vector.shape_cast %18 : vector<1x8x16xbf16> to vector<8x16xbf16>
    %cst_14 = arith.constant dense<0.000000e+00> : vector<80x16xf32>
    %20 = tpu.matmul %17, %19, %cst_14 {dimension_numbers = #tpu.dot_dimension_numbers<[1], [0], [0], [1], [0, 0, 1, 1], [], []>} : vector<80x8xbf16>, vector<8x16xbf16>, vector<80x16xf32> -> vector<80x16xf32>
    %21 = arith.addf %14, %20 : vector<80x16xf32>
    %c0_15 = arith.constant 0 : index
    %c19 = arith.constant 19 : index
    %c0_16 = arith.constant 0 : index
    %22 = vector.load %arg1[%c0_15, %c19, %c0_16] : memref<1x120x8xf32, #tpu.memory_space<vmem>>, vector<1x80x8xf32>
    %23 = vector.shape_cast %22 : vector<1x80x8xf32> to vector<80x8xf32>
    %24 = arith.truncf %23 : vector<80x8xf32> to vector<80x8xbf16>
    %c3 = arith.constant 3 : index
    %c0_17 = arith.constant 0 : index
    %c0_18 = arith.constant 0 : index
    %25 = vector.load %arg2[%c3, %c0_17, %c0_18] : memref<9x8x16xbf16, #tpu.memory_space<vmem>>, vector<1x8x16xbf16>
    %26 = vector.shape_cast %25 : vector<1x8x16xbf16> to vector<8x16xbf16>
    %cst_19 = arith.constant dense<0.000000e+00> : vector<80x16xf32>
    %27 = tpu.matmul %24, %26, %cst_19 {dimension_numbers = #tpu.dot_dimension_numbers<[1], [0], [0], [1], [0, 0, 1, 1], [], []>} : vector<80x8xbf16>, vector<8x16xbf16>, vector<80x16xf32> -> vector<80x16xf32>
    %28 = arith.addf %21, %27 : vector<80x16xf32>
    %c0_20 = arith.constant 0 : index
    %c20 = arith.constant 20 : index
    %c0_21 = arith.constant 0 : index
    %29 = vector.load %arg1[%c0_20, %c20, %c0_21] : memref<1x120x8xf32, #tpu.memory_space<vmem>>, vector<1x80x8xf32>
    %30 = vector.shape_cast %29 : vector<1x80x8xf32> to vector<80x8xf32>
    %31 = arith.truncf %30 : vector<80x8xf32> to vector<80x8xbf16>
    %c4 = arith.constant 4 : index
    %c0_22 = arith.constant 0 : index
    %c0_23 = arith.constant 0 : index
    %32 = vector.load %arg2[%c4, %c0_22, %c0_23] : memref<9x8x16xbf16, #tpu.memory_space<vmem>>, vector<1x8x16xbf16>
    %33 = vector.shape_cast %32 : vector<1x8x16xbf16> to vector<8x16xbf16>
    %cst_24 = arith.constant dense<0.000000e+00> : vector<80x16xf32>
    %34 = tpu.matmul %31, %33, %cst_24 {dimension_numbers = #tpu.dot_dimension_numbers<[1], [0], [0], [1], [0, 0, 1, 1], [], []>} : vector<80x8xbf16>, vector<8x16xbf16>, vector<80x16xf32> -> vector<80x16xf32>
    %35 = arith.addf %28, %34 : vector<80x16xf32>
    %c0_25 = arith.constant 0 : index
    %c21 = arith.constant 21 : index
    %c0_26 = arith.constant 0 : index
    %36 = vector.load %arg1[%c0_25, %c21, %c0_26] : memref<1x120x8xf32, #tpu.memory_space<vmem>>, vector<1x80x8xf32>
    %37 = vector.shape_cast %36 : vector<1x80x8xf32> to vector<80x8xf32>
    %38 = arith.truncf %37 : vector<80x8xf32> to vector<80x8xbf16>
    %c5 = arith.constant 5 : index
    %c0_27 = arith.constant 0 : index
    %c0_28 = arith.constant 0 : index
    %39 = vector.load %arg2[%c5, %c0_27, %c0_28] : memref<9x8x16xbf16, #tpu.memory_space<vmem>>, vector<1x8x16xbf16>
    %40 = vector.shape_cast %39 : vector<1x8x16xbf16> to vector<8x16xbf16>
    %cst_29 = arith.constant dense<0.000000e+00> : vector<80x16xf32>
    %41 = tpu.matmul %38, %40, %cst_29 {dimension_numbers = #tpu.dot_dimension_numbers<[1], [0], [0], [1], [0, 0, 1, 1], [], []>} : vector<80x8xbf16>, vector<8x16xbf16>, vector<80x16xf32> -> vector<80x16xf32>
    %42 = arith.addf %35, %41 : vector<80x16xf32>
    %c0_30 = arith.constant 0 : index
    %c29 = arith.constant 29 : index
    %c0_31 = arith.constant 0 : index
    %43 = vector.load %arg1[%c0_30, %c29, %c0_31] : memref<1x120x8xf32, #tpu.memory_space<vmem>>, vector<1x80x8xf32>
    %44 = vector.shape_cast %43 : vector<1x80x8xf32> to vector<80x8xf32>
    %45 = arith.truncf %44 : vector<80x8xf32> to vector<80x8xbf16>
    %c6 = arith.constant 6 : index
    %c0_32 = arith.constant 0 : index
    %c0_33 = arith.constant 0 : index
    %46 = vector.load %arg2[%c6, %c0_32, %c0_33] : memref<9x8x16xbf16, #tpu.memory_space<vmem>>, vector<1x8x16xbf16>
    %47 = vector.shape_cast %46 : vector<1x8x16xbf16> to vector<8x16xbf16>
    %cst_34 = arith.constant dense<0.000000e+00> : vector<80x16xf32>
    %48 = tpu.matmul %45, %47, %cst_34 {dimension_numbers = #tpu.dot_dimension_numbers<[1], [0], [0], [1], [0, 0, 1, 1], [], []>} : vector<80x8xbf16>, vector<8x16xbf16>, vector<80x16xf32> -> vector<80x16xf32>
    %49 = arith.addf %42, %48 : vector<80x16xf32>
    %c0_35 = arith.constant 0 : index
    %c30 = arith.constant 30 : index
    %c0_36 = arith.constant 0 : index
    %50 = vector.load %arg1[%c0_35, %c30, %c0_36] : memref<1x120x8xf32, #tpu.memory_space<vmem>>, vector<1x80x8xf32>
    %51 = vector.shape_cast %50 : vector<1x80x8xf32> to vector<80x8xf32>
    %52 = arith.truncf %51 : vector<80x8xf32> to vector<80x8xbf16>
    %c7 = arith.constant 7 : index
    %c0_37 = arith.constant 0 : index
    %c0_38 = arith.constant 0 : index
    %53 = vector.load %arg2[%c7, %c0_37, %c0_38] : memref<9x8x16xbf16, #tpu.memory_space<vmem>>, vector<1x8x16xbf16>
    %54 = vector.shape_cast %53 : vector<1x8x16xbf16> to vector<8x16xbf16>
    %cst_39 = arith.constant dense<0.000000e+00> : vector<80x16xf32>
    %55 = tpu.matmul %52, %54, %cst_39 {dimension_numbers = #tpu.dot_dimension_numbers<[1], [0], [0], [1], [0, 0, 1, 1], [], []>} : vector<80x8xbf16>, vector<8x16xbf16>, vector<80x16xf32> -> vector<80x16xf32>
    %56 = arith.addf %49, %55 : vector<80x16xf32>
    %c0_40 = arith.constant 0 : index
    %c31 = arith.constant 31 : index
    %c0_41 = arith.constant 0 : index
    %57 = vector.load %arg1[%c0_40, %c31, %c0_41] : memref<1x120x8xf32, #tpu.memory_space<vmem>>, vector<1x80x8xf32>
    %58 = vector.shape_cast %57 : vector<1x80x8xf32> to vector<80x8xf32>
    %59 = arith.truncf %58 : vector<80x8xf32> to vector<80x8xbf16>
    %c8 = arith.constant 8 : index
    %c0_42 = arith.constant 0 : index
    %c0_43 = arith.constant 0 : index
    %60 = vector.load %arg2[%c8, %c0_42, %c0_43] : memref<9x8x16xbf16, #tpu.memory_space<vmem>>, vector<1x8x16xbf16>
    %61 = vector.shape_cast %60 : vector<1x8x16xbf16> to vector<8x16xbf16>
    %cst_44 = arith.constant dense<0.000000e+00> : vector<80x16xf32>
    %62 = tpu.matmul %59, %61, %cst_44 {dimension_numbers = #tpu.dot_dimension_numbers<[1], [0], [0], [1], [0, 0, 1, 1], [], []>} : vector<80x8xbf16>, vector<8x16xbf16>, vector<80x16xf32> -> vector<80x16xf32>
    %63 = arith.addf %56, %62 : vector<80x16xf32>
    %c0_45 = arith.constant 0 : index
    %c0_46 = arith.constant 0 : index
    %64 = vector.load %arg3[%c0_45, %c0_46] : memref<1x16xf32, #tpu.memory_space<vmem>>, vector<1x16xf32>
    %65 = vector.broadcast %64 : vector<1x16xf32> to vector<80x16xf32>
    %66 = arith.addf %63, %65 : vector<80x16xf32>
    %cst_47 = arith.constant 0.000000e+00 : f32
    %67 = vector.broadcast %cst_47 : f32 to vector<80x16xf32>
    %68 = arith.maximumf %66, %67 : vector<80x16xf32>
    %69 = arith.truncf %68 : vector<80x16xf32> to vector<80x16xbf16>
    %c0_48 = arith.constant 0 : index
    %c0_49 = arith.constant 0 : index
    %70 = vector.load %arg4[%c0_48, %c0_49] : memref<16x22xbf16, #tpu.memory_space<vmem>>, vector<16x22xbf16>
    %cst_50 = arith.constant dense<0.000000e+00> : vector<80x22xf32>
    %71 = tpu.matmul %69, %70, %cst_50 {dimension_numbers = #tpu.dot_dimension_numbers<[1], [0], [0], [1], [0, 0, 1, 1], [], []>} : vector<80x16xbf16>, vector<16x22xbf16>, vector<80x22xf32> -> vector<80x22xf32>
    %c0_51 = arith.constant 0 : index
    %c0_52 = arith.constant 0 : index
    %72 = vector.load %arg5[%c0_51, %c0_52] : memref<1x22xf32, #tpu.memory_space<vmem>>, vector<1x22xf32>
    %73 = vector.broadcast %72 : vector<1x22xf32> to vector<80x22xf32>
    %74 = arith.addf %71, %73 : vector<80x22xf32>
    %c0_53 = arith.constant 0 : index
    %c0_54 = arith.constant 0 : index
    %c0_55 = arith.constant 0 : index
    %75 = vector.load %arg6[%c0_53, %c0_54, %c0_55] : memref<1x80x22xf32, #tpu.memory_space<vmem>>, vector<1x80x22xf32>
    %76 = vector.shape_cast %75 : vector<1x80x22xf32> to vector<80x22xf32>
    %77 = vector.shape_cast %74 : vector<80x22xf32> to vector<1x80x22xf32>
    tpu.vector_store %arg6[%c0_53, %c0_54, %c0_55], %77 {strides = array<i32>} : memref<1x80x22xf32, #tpu.memory_space<vmem>>, vector<1x80x22xf32>,
    return
  }
  func.func @transform_0(%arg0: i32) -> (i32, i32, i32) {
    %c0_i32 = arith.constant 0 : i32
    %c0_i32_0 = arith.constant 0 : i32
    %c0_i32_1 = arith.constant 0 : i32
    return %arg0, %c0_i32, %c0_i32_0 : i32, i32, i32
  }
  func.func @transform_1(%arg0: i32) -> (i32, i32, i32) {
    %c0_i32 = arith.constant 0 : i32
    %c0_i32_0 = arith.constant 0 : i32
    %c0_i32_1 = arith.constant 0 : i32
    %c0_i32_2 = arith.constant 0 : i32
    return %c0_i32, %c0_i32_0, %c0_i32_1 : i32, i32, i32
  }
  func.func @transform_2(%arg0: i32) -> (i32, i32) {
    %c0_i32 = arith.constant 0 : i32
    %c0_i32_0 = arith.constant 0 : i32
    %c0_i32_1 = arith.constant 0 : i32
    return %c0_i32, %c0_i32_0 : i32, i32
  }
  func.func @transform_3(%arg0: i32) -> (i32, i32) {
    %c0_i32 = arith.constant 0 : i32
    %c0_i32_0 = arith.constant 0 : i32
    %c0_i32_1 = arith.constant 0 : i32
    return %c0_i32, %c0_i32_0 : i32, i32
  }
  func.func @transform_4(%arg0: i32) -> (i32, i32) {
    %c0_i32 = arith.constant 0 : i32
    %c0_i32_0 = arith.constant 0 : i32
    %c0_i32_1 = arith.constant 0 : i32
    return %c0_i32, %c0_i32_0 : i32, i32
  }
  func.func @transform_5(%arg0: i32) -> (i32, i32, i32) {
    %c0_i32 = arith.constant 0 : i32
    %c0_i32_0 = arith.constant 0 : i32
    %c0_i32_1 = arith.constant 0 : i32
    return %arg0, %c0_i32, %c0_i32_0 : i32, i32, i32
  }
}

</mosaic_0001>

<bundles_post_ra>
// kernel: hierarchical_omr_forward.8
= control target key start
LH: loop header
LB: loop body
LE: loop exit
PB: predicated region body
PF: predicated region fallthrough
CT: control target
= control target key end

     0   :  { %s1057_s12 = smov 0   ;;  %s1306_s0 = inlined_call_operand.vmem [shape: f32[2,120,8], index: 0, kind: input, shape index: {}]   ;;  %s1307_s1 = inlined_call_operand.vmem [shape: bf16[9,8,8], index: 1, kind: input, shape index: {}]   ;;  %s1308_s2 = inlined_call_operand.vmem [shape: f32[1,8], index: 2, kind: input, shape index: {}]   ;;  %s1309_s3 = inlined_call_operand.vmem [shape: f32[2,80,8], index: 3, kind: output, shape index: {}]  }
   0x1 LB: > { %s953_s13 = sadd.s32 4294967295, %s1035_s12   ;;  %p957_p0 = scmp.ge.s32.totalorder %s1035_s12, 1  ;;  %s1035_s12 = sphi %s1057_s12, %s13_s12  }
   0x2   : > { %p137_p1 = scmp.lt.s32.totalorder %s1035_s12, 3 }
   0x4   : > { %p138_p2 = pnand %p957_p0, %p137_p1 }
   0x5   : > { %p161_p3 = scmp.lt.s32.totalorder (!%p138_p2), %s953_s13, 1 }
   0x6   : > { %141 = sbr.rel (%p138_p2) target bundleno = 347 (0x15b), region = 32 }
   0xb   : > { %v960_v0 = vld [vmem:[%s1307_s1 + $0x4] sm:$0xf]  ;;  %vm221_vm0 = vcmask 1043456   ;;  %v971_v2 = vld [vmem:[%s1307_s1 + $0x8] sm:$0xf]  ;;  %s1311_s13 = smov (!%p161_p3, %s953_s13), 1 }
   0xc   : > { %v223_v1 = vsel %vm221_vm0, %v960_v0, 0  ;;  %v187_v3 = vld [vmem:[%s1307_s1] sm:$0xf]  ;;  %v344_v4 = vsel %vm221_vm0, %v971_v2, 0  ;;  %v977_v6 = vld [vmem:[%s1307_s1 + $0xc] sm:$0xf] }
   0xd   : > { %1015 = vmatpush.bf16.msra.mxu1 %v223_v1  ;;  %1016 = vmatpush.bf16.msra.mxu2 %v223_v1  ;;  %v275_v5 = vsel %vm221_vm0, %v187_v3, 0  ;;  %v423_v7 = vsel %vm221_vm0, %v977_v6, 0  ;;  %v983_v8 = vld [vmem:[%s1307_s1 + $0x10] sm:$0xf]  ;;  %s1018_s24 = smul.u32 120, %s1311_s13  ;;  %vm205_vm1 = vcmask 64512  }
   0xe   : > { %1017 = vmatpush.bf16.msra.mxu3 %v223_v1  ;;  %232 = vmatpush.bf16.msra.mxu0 %v223_v1  ;;  %v502_v9 = vsel %vm221_vm0, %v983_v8, 0  ;;  %v995_v22 = vld [vmem:[%s1307_s1 + $0x18] sm:$0xf]  ;;  %v1001_v24 = vld [vmem:[%s1307_s1 + $0x1c] sm:$0xf]  ;;  %s1019_s11 = smul.u32 80, %s1311_s13 }
   0xf   : > { %s1091_s27 = scalar_lea.vmem %s1306_s0, %s1018_s24  ;;  %v660_v23 = vsel %vm221_vm0, %v995_v22, 0  ;;  %v739_v25 = vsel %vm221_vm0, %v1001_v24, 0  ;;  %v989_v26 = vld [vmem:[%s1307_s1 + $0x14] sm:$0xf]  ;;  %v1007_v28 = vld [vmem:[%s1307_s1 + $0x20] sm:$0xf] }
  0x10   : > { %v190_v10 = vld [vmem:[%s1091_s27 + $0x1a] sm:$0xff]  ;;  %v191_v11 = vld [vmem:[%s1091_s27 + $0x22] sm:$0xff]  ;;  %v192_v12 = vld [vmem:[%s1091_s27 + $0x2a] sm:$0xff]  ;;  %v581_v27 = vsel %vm221_vm0, %v989_v26, 0  ;;  %v818_v29 = vsel %vm221_vm0, %v1007_v28, 0  ;;  %s1264_s16 = scalar_lea.vmem %s1309_s3, %s1019_s11 }
  0x11   : > { %353 = vmatpush.bf16.msrb.mxu2 %v344_v4  ;;  %284 = vmatpush.bf16.msrb.mxu1 %v275_v5  ;;  %v199_v13 = vpack.c.bf16 %v191_v11, %v190_v10  ;;  %v193_v14 = vld [vmem:[%s1091_s27 + $0x32] sm:$0xff]  ;;  %v196_v15 = vld [vmem:[%s1091_s27 + $0x4a] sm:$0xff]  ;;  %v194_v30 = vld [vmem:[%s1091_s27 + $0x3a] sm:$0xff] }
  0x12   : > { %432 = vmatpush.bf16.msrb.mxu3 %v423_v7  ;;  %511 = vmatpush.bf16.msrb.mxu0 %v502_v9  ;;  %v197_v16 = vld [vmem:[%s1091_s27 + $0x52] sm:$0xff]  ;;  %v200_v17 = vpack.c.bf16 %v193_v14, %v192_v12  ;;  %v188_v19 = vld [vmem:[%s1091_s27 + $0xa] sm:$0xff]  ;;  %v195_v33 = vld [vmem:[%s1091_s27 + $0x42] sm:$0xff] }
  0x13   : > { %v202_v18 = vpack.c.bf16 %v197_v16, %v196_v15  ;;  %962 = vmatmul.msk.bf16.vlgmr.msra.gmra.mxu1 %vm205_vm1, %v199_v13  ;;  %v189_v20 = vld [vmem:[%s1091_s27 + $0x12] sm:$0xff]  ;;  %v172_v31 = vld [vmem:[%s1091_s27 + $0x9] sm:$0xff]  ;;  %v391_v35 = vld [vmem:[%s1091_s27 + $0x1b] sm:$0xff]  ;;  %v201_v39 = vpack.c.bf16 %v195_v33, %v194_v30 }
  0x14   : > { %963 = vmatmul.msk.bf16.vlgmr.msra.gmra.mxu2 %vm205_vm1, %v200_v17  ;;  %v198_v21 = vpack.c.bf16 %v189_v20, %v188_v19  ;;  %v173_v32 = vld [vmem:[%s1091_s27 + $0x11] sm:$0xff]  ;;  %v470_v38 = vld [vmem:[%s1091_s27 + $0x1c] sm:$0xff]  ;;  %v471_v48 = vld [vmem:[%s1091_s27 + $0x24] sm:$0xff] }
  0x15   : > { %965 = vmatmul.msk.bf16.vlgmr.msra.gmra.mxu3 %vm205_vm1, %v202_v18  ;;  %669 = vmatpush.bf16.msra.mxu2 %v660_v23  ;;  %v390_v34 = vld [vmem:[%s1091_s27 + $0x13] sm:$0xff]  ;;  %v182_v36 = vpack.c.bf16 %v173_v32, %v172_v31  ;;  %v175_v43 = vld [vmem:[%s1091_s27 + $0x21] sm:$0xff]  ;;  %v311_v44 = vld [vmem:[%s1091_s27 + $0xb] sm:$0xff] }
  0x16   : > { %961 = vmatmul.msk.bf16.vlgmr.msra.gmra.mxu0 %vm205_vm1, %v198_v21  ;;  %748 = vmatpush.bf16.msra.mxu3 %v739_v25  ;;  %v469_v37 = vld [vmem:[%s1091_s27 + $0x14] sm:$0xff]  ;;  %v400_v40 = vpack.c.bf16 %v391_v35, %v390_v34  ;;  %v392_v45 = vld [vmem:[%s1091_s27 + $0x23] sm:$0xff]  ;;  %v393_v46 = vld [vmem:[%s1091_s27 + $0x2b] sm:$0xff]  ;;  %v321_v50 = vpack.c.bf16 %v390_v34, %v311_v44 }
  0x17   : > { %590 = vmatpush.bf16.msra.mxu1 %v581_v27  ;;  %827 = vmatpush.bf16.msra.mxu0 %v818_v29  ;;  %v479_v41 = vpack.c.bf16 %v470_v38, %v469_v37  ;;  %v174_v42 = vld [vmem:[%s1091_s27 + $0x19] sm:$0xff]  ;;  %v472_v49 = vld [vmem:[%s1091_s27 + $0x2c] sm:$0xff]  ;;  %v401_v51 = vpack.c.bf16 %v393_v46, %v392_v45  ;;  %v322_v60 = vpack.c.bf16 %v392_v45, %v391_v35  ;;  %v179_v0 = vld [vmem:[%s1091_s27 + $0x41] sm:$0xff] }
  0x18   : > { %v183_v47 = vpack.c.bf16 %v175_v43, %v174_v42  ;;  %v480_v52 = vpack.c.bf16 %v472_v49, %v471_v48  ;;  %v176_v53 = vld [vmem:[%s1091_s27 + $0x29] sm:$0xff]  ;;  %v177_v54 = vld [vmem:[%s1091_s27 + $0x31] sm:$0xff]  ;;  %v395_v56 = vld [vmem:[%s1091_s27 + $0x3b] sm:$0xff] }
  0x19   : > { %v394_v55 = vld [vmem:[%s1091_s27 + $0x33] sm:$0xff]  ;;  %v184_v57 = vpack.c.bf16 %v177_v54, %v176_v53  ;;  %v474_v59 = vld [vmem:[%s1091_s27 + $0x3c] sm:$0xff]  ;;  %v397_v2 = vld [vmem:[%s1091_s27 + $0x4b] sm:$0xff] }
  0x1a   : > { %v473_v58 = vld [vmem:[%s1091_s27 + $0x34] sm:$0xff]  ;;  %v402_v61 = vpack.c.bf16 %v395_v56, %v394_v55  ;;  %v396_v1 = vld [vmem:[%s1091_s27 + $0x43] sm:$0xff]  ;;  %v476_v5 = vld [vmem:[%s1091_s27 + $0x4c] sm:$0xff]  ;;  %v323_v6 = vpack.c.bf16 %v394_v55, %v393_v46 }
  0x1b   : > { %v481_v62 = vpack.c.bf16 %v474_v59, %v473_v58  ;;  %v178_v63 = vld [vmem:[%s1091_s27 + $0x39] sm:$0xff]  ;;  %v475_v4 = vld [vmem:[%s1091_s27 + $0x44] sm:$0xff]  ;;  %v403_v7 = vpack.c.bf16 %v397_v2, %v396_v1  ;;  %v181_v10 = vld [vmem:[%s1091_s27 + $0x51] sm:$0xff]  ;;  %v324_v16 = vpack.c.bf16 %v396_v1, %v395_v56 }
  0x1c   : > { %v185_v3 = vpack.c.bf16 %v179_v0, %v178_v63  ;;  %v482_v8 = vpack.c.bf16 %v476_v5, %v475_v4  ;;  %v180_v9 = vld [vmem:[%s1091_s27 + $0x49] sm:$0xff]  ;;  %v398_v11 = vld [vmem:[%s1091_s27 + $0x53] sm:$0xff]  ;;  %v399_v12 = vld [vmem:[%s1091_s27 + $0x5b] sm:$0xff] }
  0x1d   : > { %v186_v13 = vpack.c.bf16 %v181_v10, %v180_v9  ;;  %v477_v14 = vld [vmem:[%s1091_s27 + $0x54] sm:$0xff]  ;;  %v478_v15 = vld [vmem:[%s1091_s27 + $0x5c] sm:$0xff]  ;;  %v404_v17 = vpack.c.bf16 %v399_v12, %v398_v11  ;;  %v707_v22 = vld [vmem:[%s1091_s27 + $0x26] sm:$0xff]  ;;  %v325_v26 = vpack.c.bf16 %v398_v11, %v397_v2 }
  0x1e   : > { %v483_v18 = vpack.c.bf16 %v478_v15, %v477_v14  ;;  %v548_v19 = vld [vmem:[%s1091_s27 + $0x15] sm:$0xff]  ;;  %v549_v20 = vld [vmem:[%s1091_s27 + $0x1d] sm:$0xff]  ;;  %v786_v25 = vld [vmem:[%s1091_s27 + $0x27] sm:$0xff] }
  0x1f   : > { %v706_v21 = vld [vmem:[%s1091_s27 + $0x1e] sm:$0xff]  ;;  %v558_v23 = vpack.c.bf16 %v549_v20, %v548_v19  ;;  %v551_v30 = vld [vmem:[%s1091_s27 + $0x2d] sm:$0xff]  ;;  %v709_v32 = vld [vmem:[%s1091_s27 + $0x36] sm:$0xff] }
  0x20   : > { %v785_v24 = vld [vmem:[%s1091_s27 + $0x1f] sm:$0xff]  ;;  %v716_v27 = vpack.c.bf16 %v707_v22, %v706_v21  ;;  %v708_v31 = vld [vmem:[%s1091_s27 + $0x2e] sm:$0xff]  ;;  %v788_v35 = vld [vmem:[%s1091_s27 + $0x37] sm:$0xff] }
  0x21   : > { %v795_v28 = vpack.c.bf16 %v786_v25, %v785_v24  ;;  %v550_v29 = vld [vmem:[%s1091_s27 + $0x25] sm:$0xff]  ;;  %v787_v34 = vld [vmem:[%s1091_s27 + $0x2f] sm:$0xff]  ;;  %v717_v37 = vpack.c.bf16 %v709_v32, %v708_v31  ;;  %v792_v63 = vld [vmem:[%s1091_s27 + $0x57] sm:$0xff] }
  0x22   : > { %v559_v33 = vpack.c.bf16 %v551_v30, %v550_v29  ;;  %v796_v38 = vpack.c.bf16 %v788_v35, %v787_v34  ;;  %v711_v42 = vld [vmem:[%s1091_s27 + $0x46] sm:$0xff]  ;;  %v713_v58 = vld [vmem:[%s1091_s27 + $0x56] sm:$0xff] }
  0x23   : > { %966 = vmatmul.msk.bf16.vlgmr.msrb.gmra.mxu1 %vm205_vm1, %v182_v36  ;;  %v637_v36 = vpack.c.bf16 %v550_v29, %v549_v20  ;;  %v789_v44 = vld [vmem:[%s1091_s27 + $0x3f] sm:$0xff]  ;;  %v790_v45 = vld [vmem:[%s1091_s27 + $0x47] sm:$0xff]  ;;  %v556_v11 = vld [vmem:[%s1091_s27 + $0x55] sm:$0xff] }
  0x24   : > { %964 = vmatmul.msk.bf16.gmra.mxu2 %vm205_vm1, %v201_v39  ;;  %v552_v39 = vld [vmem:[%s1091_s27 + $0x35] sm:$0xff]  ;;  %v797_v49 = vpack.c.bf16 %v790_v45, %v789_v44  ;;  %v554_v55 = vld [vmem:[%s1091_s27 + $0x45] sm:$0xff]  ;;  %v555_v56 = vld [vmem:[%s1091_s27 + $0x4d] sm:$0xff] }
  0x25   : > { %978 = vmatmul.msk.bf16.vlgmr.msrb.gmra.mxu3 %vm205_vm1, %v400_v40  ;;  %v553_v40 = vld [vmem:[%s1091_s27 + $0x3d] sm:$0xff]  ;;  %v715_v14 = vld [vmem:[%s1091_s27 + $0x66] sm:$0xff]  ;;  %v640_v21 = vpack.c.bf16 %v556_v11, %v555_v56 }
  0x26   : > { %984 = vmatmul.msk.bf16.vlgmr.msrb.gmra.mxu0 %vm205_vm1, %v479_v41  ;;  %v710_v41 = vld [vmem:[%s1091_s27 + $0x3e] sm:$0xff]  ;;  %v560_v43 = vpack.c.bf16 %v553_v40, %v552_v39  ;;  %v639_v1 = vpack.c.bf16 %v554_v55, %v553_v40  ;;  %v794_v19 = vld [vmem:[%s1091_s27 + $0x67] sm:$0xff] }
  0x27   : > { %v718_v48 = vpack.c.bf16 %v711_v42, %v710_v41  ;;  %v557_v12 = vld [vmem:[%s1091_s27 + $0x5d] sm:$0xff]  ;;  %v636_v34 = vld [vmem:[%s1091_s27 + $0x65] sm:$0xff] }
  0x33   : > { %967 = vmatmul.msk.bf16.gmra.mxu1 %vm205_vm1, %v183_v47  ;;  %v638_v47 = vpack.c.bf16 %v552_v39, %v551_v30  ;;  %v641_v39 = vpack.c.bf16 %v636_v34, %v557_v12 }
  0x34   : > { %972 = vmatmul.msk.bf16.vlgmr.msrb.gmra.mxu2 %vm205_vm1, %v321_v50 }
  0x35   : > { %979 = vmatmul.msk.bf16.gmra.mxu3 %vm205_vm1, %v401_v51 }
  0x36   : > { %985 = vmatmul.msk.bf16.gmra.mxu0 %vm205_vm1, %v480_v52 }
  0x43   : > { %968 = vmatmul.msk.bf16.gmra.mxu1 %vm205_vm1, %v184_v57  ;;  %v712_v57 = vld [vmem:[%s1091_s27 + $0x4e] sm:$0xff] }
  0x44   : > { %973 = vmatmul.msk.bf16.gmra.mxu2 %vm205_vm1, %v322_v60  ;;  %v561_v60 = vpack.c.bf16 %v555_v56, %v554_v55  ;;  %v719_v2 = vpack.c.bf16 %v713_v58, %v712_v57 }
  0x45   : > { %980 = vmatmul.msk.bf16.gmra.mxu3 %vm205_vm1, %v402_v61 }
  0x46   : > { %986 = vmatmul.msk.bf16.gmra.mxu0 %vm205_vm1, %v481_v62  ;;  %v791_v62 = vld [vmem:[%s1091_s27 + $0x4f] sm:$0xff] }
  0x47   : > { %v798_v4 = vpack.c.bf16 %v792_v63, %v791_v62 }
  0x53   : > { %969 = vmatmul.msk.bf16.gmra.mxu1 %vm205_vm1, %v185_v3 }
  0x54   : > { %974 = vmatmul.msk.bf16.gmra.mxu2 %vm205_vm1, %v323_v6 }
  0x55   : > { %981 = vmatmul.msk.bf16.gmra.mxu3 %vm205_vm1, %v403_v7 }
  0x56   : > { %987 = vmatmul.msk.bf16.gmra.mxu0 %vm205_vm1, %v482_v8 }
  0x63   : > { %970 = vmatmul.msk.bf16.gmra.mxu1 %vm205_vm1, %v186_v13  ;;  %v714_v13 = vld [vmem:[%s1091_s27 + $0x5e] sm:$0xff] }
  0x64   : > { %975 = vmatmul.msk.bf16.gmra.mxu2 %vm205_vm1, %v324_v16  ;;  %v562_v16 = vpack.c.bf16 %v557_v12, %v556_v11  ;;  %v720_v22 = vpack.c.bf16 %v715_v14, %v714_v13 }
  0x65   : > { %982 = vmatmul.msk.bf16.gmra.mxu3 %vm205_vm1, %v404_v17 }
  0x66   : > { %988 = vmatmul.msk.bf16.gmra.mxu0 %vm205_vm1, %v483_v18  ;;  %v793_v18 = vld [vmem:[%s1091_s27 + $0x5f] sm:$0xff] }
  0x67   : > { %v799_v24 = vpack.c.bf16 %v794_v19, %v793_v18 }
  0x73   : > { %990 = vmatmul.msk.bf16.vlgmr.msra.gmra.mxu1 %vm205_vm1, %v558_v23 }
  0x74   : > { %976 = vmatmul.msk.bf16.gmra.mxu2 %vm205_vm1, %v325_v26 }
  0x75   : > { %1002 = vmatmul.msk.bf16.vlgmr.msra.gmra.mxu3 %vm205_vm1, %v716_v27 }
  0x76   : > { %1008 = vmatmul.msk.bf16.vlgmr.msra.gmra.mxu0 %vm205_vm1, %v795_v28 }
  0x83   : > { %991 = vmatmul.msk.bf16.gmra.mxu1 %vm205_vm1, %v559_v33 }
  0x84   : > { %996 = vmatmul.msk.bf16.vlgmr.msra.gmra.mxu2 %vm205_vm1, %v637_v36 }
  0x85   : > { %1003 = vmatmul.msk.bf16.gmra.mxu3 %vm205_vm1, %v717_v37 }
  0x86   : > { %1009 = vmatmul.msk.bf16.gmra.mxu0 %vm205_vm1, %v796_v38 }
  0x90   : > { %v239_v46 = vpop.f32.mrf.mxu1 }
  0x93   : > { %992 = vmatmul.msk.bf16.gmra.mxu1 %vm205_vm1, %v560_v43  ;;  %v234_v50 = vpop.f32.mrf.mxu0 }
  0x94   : > { %997 = vmatmul.msk.bf16.gmra.mxu2 %vm205_vm1, %v638_v47 }
  0x95   : > { %1004 = vmatmul.msk.bf16.gmra.mxu3 %vm205_vm1, %v718_v48 }
  0x96   : > { %1010 = vmatmul.msk.bf16.gmra.mxu0 %vm205_vm1, %v797_v49 }
  0x97   : > { %v244_v51 = vpop.f32.mrf.mxu2 }
  0x98   : > { %v1204_v52 = vpop.f32.mrf.mxu3  ;;  %v241_v53 = vpop.f32.mrf.mxu1 }
  0x9b   : > { %v236_v54 = vpop.f32.mrf.mxu0 }
  0x9f   : > { %v246_v59 = vpop.f32.mrf.mxu2 }
  0xa0   : > { %v1210_v61 = vpop.f32.mrf.mxu3  ;;  %v286_v0 = vpop.f32.mrf.mxu1 }
  0xa1   : > { %v287_v3 = vadd.f32 %v286_v0, %v234_v50 }
  0xa3   : > { %993 = vmatmul.msk.bf16.gmra.mxu1 %vm205_vm1, %v561_v60  ;;  %v513_v5 = vpop.f32.mrf.mxu0 }
  0xa4   : > { %998 = vmatmul.msk.bf16.gmra.mxu2 %vm205_vm1, %v639_v1 }
  0xa5   : > { %1005 = vmatmul.msk.bf16.gmra.mxu3 %vm205_vm1, %v719_v2 }
  0xa6   : > { %1011 = vmatmul.msk.bf16.gmra.mxu0 %vm205_vm1, %v798_v4 }
  0xa7   : > { %v249_v6 = vpop.f32.mrf.mxu2 }
  0xa8   : > { %v434_v7 = vpop.f32.mrf.mxu3  ;;  %v288_v8 = vpop.f32.mrf.mxu1 }
  0xa9   : > { %v289_v9 = vadd.f32 %v288_v8, %v236_v54 }
  0xab   : > { %v515_v10 = vpop.f32.mrf.mxu0 }
  0xaf   : > { %v251_v15 = vpop.f32.mrf.mxu2 }
  0xb0   : > { %v436_v17 = vpop.f32.mrf.mxu3  ;;  %v291_v20 = vpop.f32.mrf.mxu1 }
  0xb1   : > { %v292_v23 = vadd.f32 %v291_v20, %v239_v46 }
  0xb3   : > { %994 = vmatmul.msk.bf16.gmra.mxu1 %vm205_vm1, %v562_v16  ;;  %v518_v25 = vpop.f32.mrf.mxu0 }
  0xb4   : > { %999 = vmatmul.msk.bf16.gmra.mxu2 %vm205_vm1, %v640_v21 }
  0xb5   : > { %1006 = vmatmul.msk.bf16.gmra.mxu3 %vm205_vm1, %v720_v22 }
  0xb6   : > { %1012 = vmatmul.msk.bf16.gmra.mxu0 %vm205_vm1, %v799_v24 }
  0xb7   : > { %v355_v26 = vpop.f32.mrf.mxu2 }
  0xb8   : > { %v439_v27 = vpop.f32.mrf.mxu3  ;;  %v380_v28 = vadd.f32 %v355_v26, %v287_v3  ;;  %v293_v29 = vpop.f32.mrf.mxu1 }
  0xb9   : > { %v294_v30 = vadd.f32 %v293_v29, %v241_v53 }
  0xba   : > { %v459_v31 = vadd.f32 %v434_v7, %v380_v28 }
  0xbb   : > { %v520_v32 = vpop.f32.mrf.mxu0 }
  0xbc   : > { %v1228_v33 = vadd.f32 %v513_v5, %v459_v31 }
  0xbf   : > { %v357_v35 = vpop.f32.mrf.mxu2 }
  0xc0   : > { %v441_v36 = vpop.f32.mrf.mxu3  ;;  %v381_v37 = vadd.f32 %v357_v35, %v289_v9  ;;  %v296_v38 = vpop.f32.mrf.mxu1 }
  0xc1   : > { %v297_v40 = vadd.f32 %v296_v38, %v244_v51 }
  0xc2   : > { %v460_v41 = vadd.f32 %v436_v17, %v381_v37 }
  0xc3   : > { %v523_v42 = vpop.f32.mrf.mxu0 }
  0xc4   : > { %1000 = vmatmul.msk.bf16.gmra.mxu2 %vm205_vm1, %v641_v39  ;;  %v1232_v43 = vadd.f32 %v515_v10, %v460_v41 }
  0xc7   : > { %v360_v44 = vpop.f32.mrf.mxu2 }
  0xc8   : > { %v444_v45 = vpop.f32.mrf.mxu3  ;;  %v382_v46 = vadd.f32 %v360_v44, %v292_v23  ;;  %v298_v47 = vpop.f32.mrf.mxu1 }
  0xc9   : > { %v299_v48 = vadd.f32 %v298_v47, %v246_v59  ;;  %v1256_v47 = vld [vmem:[%s1308_s2] ss:$0 sm:$0xff] }
  0xca   : > { %v461_v49 = vadd.f32 %v439_v27, %v382_v46 }
  0xcb   : > { %v525_v50 = vpop.f32.mrf.mxu0 }
  0xcc   : > { %v1234_v53 = vadd.f32 %v518_v25, %v461_v49 }
  0xcf   : > { %v362_v54 = vpop.f32.mrf.mxu2 }
  0xd0   : > { %v446_v55 = vpop.f32.mrf.mxu3  ;;  %v383_v56 = vadd.f32 %v362_v54, %v294_v30  ;;  %v301_v57 = vpop.f32.mrf.mxu1 }
  0xd1   : > { %v302_v51 = vadd.f32 %v301_v57, %v249_v6 }
  0xd2   : > { %v462_v58 = vadd.f32 %v441_v36, %v383_v56 }
  0xd3   : > { %v528_v60 = vpop.f32.mrf.mxu0 }
  0xd4   : > { %v1236_v62 = vadd.f32 %v520_v32, %v462_v58 }
  0xd7   : > { %v365_v63 = vpop.f32.mrf.mxu2 }
  0xd8   : > { %v449_v0 = vpop.f32.mrf.mxu3  ;;  %v384_v1 = vadd.f32 %v365_v63, %v297_v40  ;;  %v303_v2 = vpop.f32.mrf.mxu1 }
  0xd9   : > { %v304_v3 = vadd.f32 %v303_v2, %v251_v15 }
  0xda   : > { %v463_v4 = vadd.f32 %v444_v45, %v384_v1 }
  0xdb   : > { %v530_v59 = vpop.f32.mrf.mxu0 }
  0xdc   : > { %v1238_v5 = vadd.f32 %v523_v42, %v463_v4 }
  0xdf   : > { %v367_v7 = vpop.f32.mrf.mxu2 }
  0xe0   : > { %v451_v8 = vpop.f32.mrf.mxu3  ;;  %v385_v9 = vadd.f32 %v367_v7, %v299_v48  ;;  %v306_v10 = vpop.f32.mrf.mxu1 }
  0xe1   : > { %v307_v26 = vadd.f32 %v306_v10, %v1204_v52 }
  0xe2   : > { %v464_v11 = vadd.f32 %v446_v55, %v385_v9 }
  0xe3   : > { %v533_v12 = vpop.f32.mrf.mxu0 }
  0xe4   : > { %v1240_v6 = vadd.f32 %v525_v50, %v464_v11 }
  0xe7   : > { %v370_v13 = vpop.f32.mrf.mxu2 }
  0xe8   : > { %v454_v14 = vpop.f32.mrf.mxu3  ;;  %v386_v16 = vadd.f32 %v370_v13, %v302_v51  ;;  %v308_v17 = vpop.f32.mrf.mxu1 }
  0xe9   : > { %v309_v35 = vadd.f32 %v308_v17, %v1210_v61 }
  0xea   : > { %v465_v18 = vadd.f32 %v449_v0, %v386_v16 }
  0xeb   : > { %v535_v15 = vpop.f32.mrf.mxu0 }
  0xec   : > { %v1242_v19 = vadd.f32 %v528_v60, %v465_v18 }
  0xef   : > { %v372_v20 = vpop.f32.mrf.mxu2 }
  0xf0   : > { %v456_v21 = vpop.f32.mrf.mxu3  ;;  %v387_v22 = vadd.f32 %v372_v20, %v304_v3  ;;  %v592_v23 = vpop.f32.mrf.mxu1 }
  0xf1   : > { %v617_v52 = vadd.f32 %v592_v23, %v1228_v33 }
  0xf2   : > { %v466_v24 = vadd.f32 %v451_v8, %v387_v22 }
  0xf3   : > { %v829_v30 = vpop.f32.mrf.mxu0 }
  0xf4   : > { %v1244_v25 = vadd.f32 %v530_v59, %v466_v24 }
  0xf7   : > { %v375_v27 = vpop.f32.mrf.mxu2 }
  0xf8   : > { %v750_v28 = vpop.f32.mrf.mxu3  ;;  %v388_v29 = vadd.f32 %v375_v27, %v307_v26  ;;  %v594_v32 = vpop.f32.mrf.mxu1 }
  0xf9   : > { %v618_v50 = vadd.f32 %v594_v32, %v1232_v43 }
  0xfa   : > { %v467_v31 = vadd.f32 %v454_v14, %v388_v29 }
  0xfb   : > { %v831_v40 = vpop.f32.mrf.mxu0 }
  0xfc   : > { %v1247_v34 = vadd.f32 %v533_v12, %v467_v31 }
  0xff   : > { %v377_v36 = vpop.f32.mrf.mxu2 }
 0x100   : > { %v389_v37 = vadd.f32 %v377_v36, %v309_v35  ;;  %v752_v38 = vpop.f32.mrf.mxu3  ;;  %v597_v42 = vpop.f32.mrf.mxu1 }
 0x101   : > { %v619_v43 = vadd.f32 %v597_v42, %v1234_v53 }
 0x102   : > { %v468_v39 = vadd.f32 %v456_v21, %v389_v37 }
 0x103   : > { %v834_v49 = vpop.f32.mrf.mxu0 }
 0x104   : > { %v1250_v41 = vadd.f32 %v535_v15, %v468_v39 }
 0x107   : > { %v671_v44 = vpop.f32.mrf.mxu2 }
 0x108   : > { %v696_v45 = vadd.f32 %v671_v44, %v617_v52  ;;  %v755_v61 = vpop.f32.mrf.mxu3  ;;  %v599_v33 = vpop.f32.mrf.mxu1 }
 0x109   : > { %v620_v8 = vadd.f32 %v599_v33, %v1236_v62 }
 0x10a   : > { %v775_v46 = vadd.f32 %v750_v28, %v696_v45 }
 0x10b   : > { %v836_v1 = vpop.f32.mrf.mxu0 }
 0x10c   : > { %v854_v48 = vadd.f32 %v829_v30, %v775_v46 }
 0x10e   : > { %v868_v54 = vadd.f32 %v1256_v47, %v854_v48 }
 0x10f   : > { %v673_v55 = vpop.f32.mrf.mxu2 }
 0x110   : > { %v878_v56 = vmax.f32 %v868_v54, 0.0  ;;  %v697_v57 = vadd.f32 %v673_v55, %v618_v50  ;;  %v757_v60 = vpop.f32.mrf.mxu3  ;;  %v602_v4 = vpop.f32.mrf.mxu1 }
 0x111   : > { %v621_v18 = vadd.f32 %v602_v4, %v1238_v5 }
 0x112   : > { %888 = vst.msk [vmem:[%s1264_s16] sm:$0xff] %vm205_vm1, %v878_v56  ;;  %v776_v51 = vadd.f32 %v752_v38, %v697_v57 }
 0x113   : > { %v839_v13 = vpop.f32.mrf.mxu0 }
 0x114   : > { %v855_v58 = vadd.f32 %v831_v40, %v776_v51 }
 0x116   : > { %v869_v63 = vadd.f32 %v1256_v47, %v855_v58 }
 0x117   : > { %v676_v0 = vpop.f32.mrf.mxu2 }
 0x118   : > { %v879_v2 = vmax.f32 %v869_v63, 0.0  ;;  %v698_v3 = vadd.f32 %v676_v0, %v619_v43  ;;  %v760_v11 = vpop.f32.mrf.mxu3  ;;  %v604_v16 = vpop.f32.mrf.mxu1 }
 0x119   : > { %v622_v28 = vadd.f32 %v604_v16, %v1240_v6 }
 0x11a   : > { %889 = vst.msk [vmem:[%s1264_s16 + $0x8] sm:$0xff] %vm205_vm1, %v879_v2  ;;  %v777_v59 = vadd.f32 %v755_v61, %v698_v3 }
 0x11b   : > { %v841_v24 = vpop.f32.mrf.mxu0 }
 0x11c   : > { %v856_v7 = vadd.f32 %v834_v49, %v777_v59 }
 0x11e   : > { %v870_v9 = vadd.f32 %v1256_v47, %v856_v7 }
 0x11f   : > { %v678_v10 = vpop.f32.mrf.mxu2 }
 0x120   : > { %v880_v53 = vmax.f32 %v870_v9, 0.0  ;;  %v699_v12 = vadd.f32 %v678_v10, %v620_v8  ;;  %v762_v22 = vpop.f32.mrf.mxu3  ;;  %v607_v27 = vpop.f32.mrf.mxu1 }
 0x121   : > { %v623_v38 = vadd.f32 %v607_v27, %v1242_v19 }
 0x122   : > { %890 = vst.msk [vmem:[%s1264_s16 + $0x10] sm:$0xff] %vm205_vm1, %v880_v53  ;;  %v778_v14 = vadd.f32 %v757_v60, %v699_v12 }
 0x123   : > { %v844_v37 = vpop.f32.mrf.mxu0 }
 0x124   : > { %v857_v17 = vadd.f32 %v836_v1, %v778_v14 }
 0x126   : > { %v871_v15 = vadd.f32 %v1256_v47, %v857_v17 }
 0x127   : > { %v681_v20 = vpop.f32.mrf.mxu2 }
 0x128   : > { %v881_v62 = vmax.f32 %v871_v15, 0.0  ;;  %v700_v21 = vadd.f32 %v681_v20, %v621_v18  ;;  %v765_v35 = vpop.f32.mrf.mxu3  ;;  %v609_v40 = vpop.f32.mrf.mxu1 }
 0x129   : > { %v624_v61 = vadd.f32 %v609_v40, %v1244_v25 }
 0x12a   : > { %891 = vst.msk [vmem:[%s1264_s16 + $0x18] sm:$0xff] %vm205_vm1, %v881_v62  ;;  %v779_v23 = vadd.f32 %v760_v11, %v700_v21 }
 0x12b   : > { %v846_v49 = vpop.f32.mrf.mxu0 }
 0x12c   : > { %v858_v26 = vadd.f32 %v839_v13, %v779_v23 }
 0x12e   : > { %v872_v29 = vadd.f32 %v1256_v47, %v858_v26 }
 0x12f   : > { %v683_v30 = vpop.f32.mrf.mxu2 }
 0x130   : > { %v882_v5 = vmax.f32 %v872_v29, 0.0  ;;  %v701_v31 = vadd.f32 %v683_v30, %v622_v28  ;;  %v767_v46 = vpop.f32.mrf.mxu3  ;;  %v612_v33 = vpop.f32.mrf.mxu1 }
 0x131   : > { %v625_v57 = vadd.f32 %v612_v33, %v1247_v34 }
 0x132   : > { %892 = vst.msk [vmem:[%s1264_s16 + $0x20] sm:$0xff] %vm205_vm1, %v882_v5  ;;  %v780_v32 = vadd.f32 %v762_v22, %v701_v31 }
 0x133   : > { %v849_v63 = vpop.f32.mrf.mxu0 }
 0x134   : > { %v859_v36 = vadd.f32 %v841_v24, %v780_v32 }
 0x136   : > { %v873_v39 = vadd.f32 %v1256_v47, %v859_v36 }
 0x137   : > { %v686_v42 = vpop.f32.mrf.mxu2 }
 0x138   : > { %v883_v6 = vmax.f32 %v873_v39, 0.0  ;;  %v702_v52 = vadd.f32 %v686_v42, %v623_v38  ;;  %v770_v58 = vpop.f32.mrf.mxu3  ;;  %v614_v1 = vpop.f32.mrf.mxu1 }
 0x139   : > { %v626_v3 = vadd.f32 %v614_v1, %v1250_v41 }
 0x13a   : > { %893 = vst.msk [vmem:[%s1264_s16 + $0x28] sm:$0xff] %vm205_vm1, %v883_v6  ;;  %v781_v44 = vadd.f32 %v765_v35, %v702_v52 }
 0x13b   : > { %v851_v10 = vpop.f32.mrf.mxu0 }
 0x13c   : > { %v860_v45 = vadd.f32 %v844_v37, %v781_v44 }
 0x13e   : > { %v874_v48 = vadd.f32 %v1256_v47, %v860_v45 }
 0x13f   : > { %v688_v50 = vpop.f32.mrf.mxu2 }
 0x140   : > { %v884_v19 = vmax.f32 %v874_v48, 0.0  ;;  %v703_v54 = vadd.f32 %v688_v50, %v624_v61  ;;  %v772_v8 = vpop.f32.mrf.mxu3 }
 0x142   : > { %894 = vst.msk [vmem:[%s1264_s16 + $0x30] sm:$0xff] %vm205_vm1, %v884_v19  ;;  %v782_v55 = vadd.f32 %v767_v46, %v703_v54 }
 0x144   : > { %v861_v56 = vadd.f32 %v846_v49, %v782_v55 }
 0x146   : > { %v875_v51 = vadd.f32 %v1256_v47, %v861_v56 }
 0x147   : > { %v691_v60 = vpop.f32.mrf.mxu2 }
 0x148   : > { %v885_v25 = vmax.f32 %v875_v51, 0.0  ;;  %v704_v43 = vadd.f32 %v691_v60, %v625_v57 }
 0x14a   : > { %895 = vst.msk [vmem:[%s1264_s16 + $0x38] sm:$0xff] %vm205_vm1, %v885_v25  ;;  %v783_v0 = vadd.f32 %v770_v58, %v704_v43 }
 0x14c   : > { %v862_v2 = vadd.f32 %v849_v63, %v783_v0 }
 0x14e   : > { %v876_v4 = vadd.f32 %v1256_v47, %v862_v2 }
 0x14f   : > { %v693_v59 = vpop.f32.mrf.mxu2 }
 0x150   : > { %v886_v34 = vmax.f32 %v876_v4, 0.0  ;;  %v705_v7 = vadd.f32 %v693_v59, %v626_v3 }
 0x152   : > { %896 = vst.msk [vmem:[%s1264_s16 + $0x40] sm:$0xff] %vm205_vm1, %v886_v34  ;;  %v784_v9 = vadd.f32 %v772_v8, %v705_v7 }
 0x154   : > { %v863_v11 = vadd.f32 %v851_v10, %v784_v9 }
 0x156   : > { %v877_v53 = vadd.f32 %v1256_v47, %v863_v11 }
 0x158   : > { %v887_v12 = vmax.f32 %v877_v53, 0.0 }
 0x15a   : > { %897 = vst.msk [vmem:[%s1264_s16 + $0x48] sm:$0xff] %vm205_vm1, %v887_v12 }
 0x15b PF: > { %s13_s12 = sadd.s32 1, %s1035_s12  }
 0x15c   : > { %p10_p4 = scmp.ge.s32.totalorder %s13_s12, 4  }
 0x15e   :  { %12 = sbr.rel (!%p10_p4) target bundleno = 1 (0x1), region = 70 }

// kernel: hierarchical_omr_forward.10
= control target key start
LH: loop header
LB: loop body
LE: loop exit
PB: predicated region body
PF: predicated region fallthrough
CT: control target
= control target key end

     0   :  { %s509_s12 = smov 0   ;;  %s579_s0 = inlined_call_operand.vmem [shape: f32[2,24,8], index: 0, kind: input, shape index: {}]   ;;  %s580_s1 = inlined_call_operand.vmem [shape: bf16[9,8,8], index: 1, kind: input, shape index: {}]   ;;  %s581_s2 = inlined_call_operand.vmem [shape: f32[1,8], index: 2, kind: input, shape index: {}]   ;;  %s582_s3 = inlined_call_operand.vmem [shape: f32[2,8,8], index: 3, kind: output, shape index: {}]  }
   0x1 LB: > { %s445_s13 = sadd.s32 4294967295, %s487_s12   ;;  %p449_p0 = scmp.ge.s32.totalorder %s487_s12, 1  ;;  %s487_s12 = sphi %s509_s12, %s13_s12  }
   0x2   : > { %p137_p1 = scmp.lt.s32.totalorder %s487_s12, 3 }
   0x4   : > { %p138_p2 = pnand %p449_p0, %p137_p1 }
   0x5   : > { %p160_p3 = scmp.lt.s32.totalorder (!%p138_p2), %s445_s13, 1 }
   0x6   : > { %141 = sbr.rel (%p138_p2) target bundleno = 186 (0xba), region = 32 }
   0xb   : > { %v452_v0 = vld [vmem:[%s580_s1 + $0x4] sm:$0xf]  ;;  %vm181_vm0 = vcmask 1043456   ;;  %v172_v1 = vld [vmem:[%s580_s1] sm:$0xf]  ;;  %s584_s13 = smov (!%p160_p3, %s445_s13), 1 }
   0xc   : > { %v183_v2 = vsel %vm181_vm0, %v452_v0, 0  ;;  %v202_v3 = vsel %vm181_vm0, %v172_v1, 0  ;;  %v455_v4 = vld [vmem:[%s580_s1 + $0x8] sm:$0xf]  ;;  %v457_v5 = vld [vmem:[%s580_s1 + $0xc] sm:$0xf] }
   0xd   : > { %192 = vmatpush.bf16.msra.mxu0 %v183_v2  ;;  %211 = vmatpush.bf16.msra.mxu1 %v202_v3  ;;  %v225_v6 = vsel %vm181_vm0, %v455_v4, 0  ;;  %v249_v7 = vsel %vm181_vm0, %v457_v5, 0  ;;  %v459_v8 = vld [vmem:[%s580_s1 + $0x10] sm:$0xf]  ;;  %v463_v10 = vld [vmem:[%s580_s1 + $0x18] sm:$0xf] }
   0xe   : > { %234 = vmatpush.bf16.msra.mxu2 %v225_v6  ;;  %258 = vmatpush.bf16.msra.mxu3 %v249_v7  ;;  %v273_v9 = vsel %vm181_vm0, %v459_v8, 0  ;;  %v465_v11 = vld [vmem:[%s580_s1 + $0x1c] sm:$0xf]  ;;  %s471_s28 = smul.u32 24, %s584_s13  ;;  %v321_v12 = vsel %vm181_vm0, %v463_v10, 0  ;;  %vm177_vm1 = vcmask 64512  }
   0xf   : > { %v345_v13 = vsel %vm181_vm0, %v465_v11, 0  ;;  %v461_v14 = vld [vmem:[%s580_s1 + $0x14] sm:$0xf]  ;;  %v467_v16 = vld [vmem:[%s580_s1 + $0x20] sm:$0xf]  ;;  %s451_s11 = sshll.u32 %s584_s13, 3 }
  0x10   : > { %v297_v15 = vsel %vm181_vm0, %v461_v14, 0  ;;  %s164_s6 = scalar_lea.vmem %s579_s0, %s471_s28  ;;  %v369_v25 = vsel %vm181_vm0, %v467_v16, 0  ;;  %v480_v59 = vld [vmem:[%s581_s2] ss:$0 sm:$0xff]  ;;  %s168_s16 = scalar_lea.vmem %s582_s3, %s451_s11 }
  0x11   : > { %282 = vmatpush.bf16.msrb.mxu0 %v273_v9  ;;  %306 = vmatpush.bf16.msrb.mxu1 %v297_v15  ;;  %v173_v17 = vld [vmem:[%s164_s6 + $0x4] sm:$0xff]  ;;  %v337_v29 = vld [vmem:[%s164_s6 + $0xc] sm:$0xff] }
  0x12   : > { %330 = vmatpush.bf16.msrb.mxu2 %v321_v12  ;;  %354 = vmatpush.bf16.msrb.mxu3 %v345_v13  ;;  %v170_v18 = vld [vmem:[%s164_s6 + $0x3] sm:$0xff]  ;;  %v174_v20 = vpack.c.bf16 %v173_v17, %v173_v17  ;;  %v313_v28 = vld [vmem:[%s164_s6 + $0xb] sm:$0xff]  ;;  %v338_v33 = vpack.c.bf16 %v337_v29, %v337_v29 }
  0x13   : > { %v217_v19 = vld [vmem:[%s164_s6 + $0x5] sm:$0xff]  ;;  %v171_v21 = vpack.c.bf16 %v170_v18, %v170_v18  ;;  %v314_v32 = vpack.c.bf16 %v313_v28, %v313_v28  ;;  %v361_v34 = vld [vmem:[%s164_s6 + $0xd] sm:$0xff] }
  0x14   : > { %v218_v22 = vpack.c.bf16 %v217_v19, %v217_v19  ;;  %v241_v23 = vld [vmem:[%s164_s6 + $0x7] sm:$0xff]  ;;  %453 = vmatmul.msk.bf16.vlgmr.msra.gmra.mxu0 %vm177_vm1, %v174_v20  ;;  %v362_v35 = vpack.c.bf16 %v361_v34, %v361_v34 }
  0x15   : > { %v242_v24 = vpack.c.bf16 %v241_v23, %v241_v23  ;;  %454 = vmatmul.msk.bf16.vlgmr.msra.gmra.mxu1 %vm177_vm1, %v171_v21  ;;  %378 = vmatpush.bf16.msra.mxu0 %v369_v25  ;;  %v265_v26 = vld [vmem:[%s164_s6 + $0x8] sm:$0xff] }
  0x16   : > { %456 = vmatmul.msk.bf16.vlgmr.msra.gmra.mxu2 %vm177_vm1, %v218_v22  ;;  %v289_v27 = vld [vmem:[%s164_s6 + $0x9] sm:$0xff]  ;;  %v266_v30 = vpack.c.bf16 %v265_v26, %v265_v26 }
  0x17   : > { %458 = vmatmul.msk.bf16.vlgmr.msra.gmra.mxu3 %vm177_vm1, %v242_v24  ;;  %v290_v31 = vpack.c.bf16 %v289_v27, %v289_v27 }
  0x24   : > { %460 = vmatmul.msk.bf16.vlgmr.msrb.gmra.mxu0 %vm177_vm1, %v266_v30 }
  0x25   : > { %462 = vmatmul.msk.bf16.vlgmr.msrb.gmra.mxu1 %vm177_vm1, %v290_v31 }
  0x26   : > { %464 = vmatmul.msk.bf16.vlgmr.msrb.gmra.mxu2 %vm177_vm1, %v314_v32 }
  0x27   : > { %466 = vmatmul.msk.bf16.vlgmr.msrb.gmra.mxu3 %vm177_vm1, %v338_v33 }
  0x34   : > { %468 = vmatmul.msk.bf16.vlgmr.msra.gmra.mxu0 %vm177_vm1, %v362_v35 }
  0x91   : > { %v194_v36 = vpop.f32.mrf.mxu0 }
  0x92   : > { %v213_v37 = vpop.f32.mrf.mxu1 }
  0x93   : > { %v214_v42 = vadd.f32 %v213_v37, %v194_v36 }
  0x99   : > { %v236_v38 = vpop.f32.mrf.mxu2  ;;  %v196_v40 = vpop.f32.mrf.mxu0 }
  0x9a   : > { %v260_v39 = vpop.f32.mrf.mxu3  ;;  %v215_v41 = vpop.f32.mrf.mxu1  ;;  %v240_v43 = vadd.f32 %v236_v38, %v214_v42 }
  0x9c   : > { %v264_v48 = vadd.f32 %v260_v39, %v240_v43 }
  0xa1   : > { %v238_v44 = vpop.f32.mrf.mxu2  ;;  %v284_v46 = vpop.f32.mrf.mxu0 }
  0xa2   : > { %v262_v45 = vpop.f32.mrf.mxu3  ;;  %v308_v47 = vpop.f32.mrf.mxu1  ;;  %v288_v49 = vadd.f32 %v284_v46, %v264_v48 }
  0xa4   : > { %v312_v54 = vadd.f32 %v308_v47, %v288_v49 }
  0xa9   : > { %v332_v50 = vpop.f32.mrf.mxu2  ;;  %v286_v52 = vpop.f32.mrf.mxu0 }
  0xaa   : > { %v356_v51 = vpop.f32.mrf.mxu3  ;;  %v310_v53 = vpop.f32.mrf.mxu1  ;;  %v336_v55 = vadd.f32 %v332_v50, %v312_v54 }
  0xac   : > { %v360_v56 = vadd.f32 %v356_v51, %v336_v55 }
  0xb1   : > { %v334_v57 = vpop.f32.mrf.mxu2  ;;  %v380_v60 = vpop.f32.mrf.mxu0 }
  0xb2   : > { %v358_v58 = vpop.f32.mrf.mxu3  ;;  %v384_v61 = vadd.f32 %v380_v60, %v360_v56 }
  0xb4   : > { %v389_v62 = vadd.f32 %v480_v59, %v384_v61 }
  0xb6   : > { %v390_v63 = vmax.f32 %v389_v62, 0.0 }
  0xb8   : > { %391 = vst.msk [vmem:[%s168_s16] sm:$0xff] %vm177_vm1, %v390_v63 }
  0xb9   : > { %v382_v0 = vpop.f32.mrf.mxu0 }
  0xba PF: > { %s13_s12 = sadd.s32 1, %s487_s12  }
  0xbb   : > { %p10_p4 = scmp.ge.s32.totalorder %s13_s12, 4  }
  0xbd   :  { %12 = sbr.rel (!%p10_p4) target bundleno = 1 (0x1), region = 70 }

// kernel: hierarchical_omr_forward.9
= control target key start
LH: loop header
LB: loop body
LE: loop exit
PB: predicated region body
PF: predicated region fallthrough
CT: control target
= control target key end

     0   :  { %s643_s12 = smov 0   ;;  %s749_s0 = inlined_call_operand.vmem [shape: f32[2,48,8], index: 0, kind: input, shape index: {}]   ;;  %s750_s1 = inlined_call_operand.vmem [shape: bf16[9,8,8], index: 1, kind: input, shape index: {}]   ;;  %s751_s2 = inlined_call_operand.vmem [shape: f32[1,8], index: 2, kind: input, shape index: {}]   ;;  %s752_s3 = inlined_call_operand.vmem [shape: f32[2,24,8], index: 3, kind: output, shape index: {}]  }
   0x1 LB: > { %s568_s13 = sadd.s32 4294967295, %s621_s12   ;;  %p572_p0 = scmp.ge.s32.totalorder %s621_s12, 1  ;;  %s621_s12 = sphi %s643_s12, %s13_s12  }
   0x2   : > { %p137_p1 = scmp.lt.s32.totalorder %s621_s12, 3 }
   0x4   : > { %p138_p2 = pnand %p572_p0, %p137_p1 }
   0x5   : > { %p161_p3 = scmp.lt.s32.totalorder (!%p138_p2), %s568_s13, 1 }
   0x6   : > { %141 = sbr.rel (%p138_p2) target bundleno = 223 (0xdf), region = 32 }
   0xb   : > { %v575_v0 = vld [vmem:[%s750_s1 + $0x4] sm:$0xf]  ;;  %vm192_vm0 = vcmask 1043456   ;;  %v177_v2 = vld [vmem:[%s750_s1] sm:$0xf]  ;;  %s754_s13 = smov (!%p161_p3, %s568_s13), 1 }
   0xc   : > { %v194_v1 = vsel %vm192_vm0, %v575_v0, 0  ;;  %v580_v3 = vld [vmem:[%s750_s1 + $0x8] sm:$0xf]  ;;  %v221_v4 = vsel %vm192_vm0, %v177_v2, 0  ;;  %v583_v6 = vld [vmem:[%s750_s1 + $0xc] sm:$0xf] }
   0xd   : > { %203 = vmatpush.bf16.msra.mxu0 %v194_v1  ;;  %603 = vmatpush.bf16.msra.mxu1 %v194_v1  ;;  %v255_v5 = vsel %vm192_vm0, %v580_v3, 0  ;;  %v292_v7 = vsel %vm192_vm0, %v583_v6, 0  ;;  %v586_v8 = vld [vmem:[%s750_s1 + $0x10] sm:$0xf]  ;;  %v592_v9 = vld [vmem:[%s750_s1 + $0x18] sm:$0xf] }
   0xe   : > { %264 = vmatpush.bf16.msra.mxu2 %v255_v5  ;;  %s604_s26 = smul.u32 48, %s754_s13  ;;  %301 = vmatpush.bf16.msra.mxu3 %v292_v7  ;;  %v329_v10 = vsel %vm192_vm0, %v586_v8, 0  ;;  %v403_v11 = vsel %vm192_vm0, %v592_v9, 0  ;;  %v595_v12 = vld [vmem:[%s750_s1 + $0x1c] sm:$0xf]  ;;  %vm185_vm1 = vcmask 64512  }
   0xf   : > { %v440_v13 = vsel %vm192_vm0, %v595_v12, 0  ;;  %v589_v14 = vld [vmem:[%s750_s1 + $0x14] sm:$0xf]  ;;  %v598_v15 = vld [vmem:[%s750_s1 + $0x20] sm:$0xf]  ;;  %s605_s11 = smul.u32 24, %s754_s13 }
  0x10   : > { %s688_s6 = scalar_lea.vmem %s749_s0, %s604_s26  ;;  %v366_v24 = vsel %vm192_vm0, %v589_v14, 0  ;;  %v477_v27 = vsel %vm192_vm0, %v598_v15, 0 }
  0x11   : > { %230 = vmatpush.bf16.msrb.mxu1 %v221_v4  ;;  %338 = vmatpush.bf16.msrb.mxu0 %v329_v10  ;;  %v178_v16 = vld [vmem:[%s688_s6 + $0x6] sm:$0xff]  ;;  %v179_v17 = vld [vmem:[%s688_s6 + $0xe] sm:$0xff]  ;;  %v180_v18 = vld [vmem:[%s688_s6 + $0x16] sm:$0xff]  ;;  %s170_s16 = scalar_lea.vmem %s752_s3, %s605_s11 }
  0x12   : > { %412 = vmatpush.bf16.msrb.mxu2 %v403_v11  ;;  %449 = vmatpush.bf16.msrb.mxu3 %v440_v13  ;;  %v181_v19 = vpack.c.bf16 %v179_v17, %v178_v16  ;;  %v182_v20 = vpack.c.bf16 %v180_v18, %v180_v18  ;;  %v241_v21 = vld [vmem:[%s688_s6 + $0x7] sm:$0xff]  ;;  %v242_v22 = vld [vmem:[%s688_s6 + $0xf] sm:$0xff]  ;;  %v243_v33 = vld [vmem:[%s688_s6 + $0x17] sm:$0xff] }
  0x13   : > { %v278_v23 = vld [vmem:[%s688_s6 + $0xb] sm:$0xff]  ;;  %v244_v25 = vpack.c.bf16 %v242_v22, %v241_v21  ;;  %v279_v26 = vld [vmem:[%s688_s6 + $0x13] sm:$0xff]  ;;  %v280_v34 = vld [vmem:[%s688_s6 + $0x1b] sm:$0xff]  ;;  %v245_v37 = vpack.c.bf16 %v243_v33, %v243_v33 }
  0x14   : > { %576 = vmatmul.msk.bf16.vlgmr.msra.gmra.mxu0 %vm185_vm1, %v181_v19  ;;  %577 = vmatmul.msk.bf16.vlgmr.msra.gmra.mxu1 %vm185_vm1, %v182_v20  ;;  %v281_v28 = vpack.c.bf16 %v279_v26, %v278_v23  ;;  %v172_v29 = vld [vmem:[%s688_s6 + $0x5] sm:$0xff]  ;;  %v173_v30 = vld [vmem:[%s688_s6 + $0xd] sm:$0xff]  ;;  %v282_v38 = vpack.c.bf16 %v280_v34, %v280_v34  ;;  %v174_v39 = vld [vmem:[%s688_s6 + $0x15] sm:$0xff]  ;;  %v466_v52 = vpack.c.bf16 %v280_v34, %v279_v26 }
  0x15   : > { %581 = vmatmul.msk.bf16.vlgmr.msra.gmra.mxu2 %vm185_vm1, %v244_v25  ;;  %375 = vmatpush.bf16.msra.mxu1 %v366_v24  ;;  %v315_v31 = vld [vmem:[%s688_s6 + $0xc] sm:$0xff]  ;;  %v316_v32 = vld [vmem:[%s688_s6 + $0x14] sm:$0xff]  ;;  %v175_v35 = vpack.c.bf16 %v173_v30, %v172_v29  ;;  %v317_v40 = vld [vmem:[%s688_s6 + $0x1c] sm:$0xff]  ;;  %v176_v45 = vpack.c.bf16 %v174_v39, %v174_v39  ;;  %v355_v51 = vpack.c.bf16 %v174_v39, %v173_v30 }
  0x16   : > { %584 = vmatmul.msk.bf16.vlgmr.msra.gmra.mxu3 %vm185_vm1, %v281_v28  ;;  %486 = vmatpush.bf16.msra.mxu0 %v477_v27  ;;  %v318_v36 = vpack.c.bf16 %v316_v32, %v315_v31  ;;  %v389_v41 = vld [vmem:[%s688_s6 + $0x11] sm:$0xff]  ;;  %v390_v42 = vld [vmem:[%s688_s6 + $0x19] sm:$0xff]  ;;  %v319_v46 = vpack.c.bf16 %v317_v40, %v317_v40  ;;  %v391_v49 = vld [vmem:[%s688_s6 + $0x21] sm:$0xff] }
  0x17   : > { %v426_v43 = vld [vmem:[%s688_s6 + $0x12] sm:$0xff]  ;;  %v427_v44 = vld [vmem:[%s688_s6 + $0x1a] sm:$0xff]  ;;  %v392_v47 = vpack.c.bf16 %v390_v42, %v389_v41  ;;  %v428_v50 = vld [vmem:[%s688_s6 + $0x22] sm:$0xff]  ;;  %v393_v53 = vpack.c.bf16 %v391_v49, %v391_v49 }
  0x18   : > { %v429_v48 = vpack.c.bf16 %v427_v44, %v426_v43  ;;  %v430_v54 = vpack.c.bf16 %v428_v50, %v428_v50  ;;  %v354_v55 = vld [vmem:[%s688_s6 + $0x1d] sm:$0xff] }
  0x19   : > { %v465_v56 = vld [vmem:[%s688_s6 + $0x23] sm:$0xff]  ;;  %v356_v57 = vpack.c.bf16 %v354_v55, %v354_v55  ;;  %v614_v32 = vld [vmem:[%s751_s2] ss:$0 sm:$0xff] }
  0x1a   : > { %v467_v58 = vpack.c.bf16 %v465_v56, %v465_v56 }
  0x24   : > { %578 = vmatmul.msk.bf16.vlgmr.msrb.gmra.mxu1 %vm185_vm1, %v175_v35  ;;  %587 = vmatmul.msk.bf16.vlgmr.msrb.gmra.mxu0 %vm185_vm1, %v318_v36 }
  0x25   : > { %582 = vmatmul.msk.bf16.gmra.mxu2 %vm185_vm1, %v245_v37 }
  0x26   : > { %585 = vmatmul.msk.bf16.gmra.mxu3 %vm185_vm1, %v282_v38 }
  0x34   : > { %579 = vmatmul.msk.bf16.gmra.mxu1 %vm185_vm1, %v176_v45  ;;  %588 = vmatmul.msk.bf16.gmra.mxu0 %vm185_vm1, %v319_v46 }
  0x35   : > { %593 = vmatmul.msk.bf16.vlgmr.msrb.gmra.mxu2 %vm185_vm1, %v392_v47 }
  0x36   : > { %596 = vmatmul.msk.bf16.vlgmr.msrb.gmra.mxu3 %vm185_vm1, %v429_v48 }
  0x44   : > { %590 = vmatmul.msk.bf16.vlgmr.msra.gmra.mxu1 %vm185_vm1, %v355_v51  ;;  %599 = vmatmul.msk.bf16.vlgmr.msra.gmra.mxu0 %vm185_vm1, %v466_v52 }
  0x45   : > { %594 = vmatmul.msk.bf16.gmra.mxu2 %vm185_vm1, %v393_v53 }
  0x46   : > { %597 = vmatmul.msk.bf16.gmra.mxu3 %vm185_vm1, %v430_v54 }
  0x54   : > { %591 = vmatmul.msk.bf16.gmra.mxu1 %vm185_vm1, %v356_v57  ;;  %600 = vmatmul.msk.bf16.gmra.mxu0 %vm185_vm1, %v467_v58 }
  0x91   : > { %v205_v59 = vpop.f32.mrf.mxu0  ;;  %v210_v60 = vpop.f32.mrf.mxu1 }
  0x98   : > { %v266_v61 = vpop.f32.mrf.mxu2 }
  0x99   : > { %v207_v62 = vpop.f32.mrf.mxu0  ;;  %v212_v63 = vpop.f32.mrf.mxu1 }
  0x9a   : > { %v303_v0 = vpop.f32.mrf.mxu3 }
  0xa0   : > { %v268_v1 = vpop.f32.mrf.mxu2 }
  0xa1   : > { %v232_v2 = vpop.f32.mrf.mxu1  ;;  %v340_v3 = vpop.f32.mrf.mxu0 }
  0xa2   : > { %v305_v4 = vpop.f32.mrf.mxu3  ;;  %v233_v13 = vadd.f32 %v232_v2, %v205_v59 }
  0xa4   : > { %v275_v14 = vadd.f32 %v266_v61, %v233_v13 }
  0xa6   : > { %v312_v19 = vadd.f32 %v303_v0, %v275_v14 }
  0xa8   : > { %v271_v5 = vpop.f32.mrf.mxu2  ;;  %v349_v21 = vadd.f32 %v340_v3, %v312_v19 }
  0xa9   : > { %v234_v6 = vpop.f32.mrf.mxu1  ;;  %v342_v7 = vpop.f32.mrf.mxu0 }
  0xaa   : > { %v308_v8 = vpop.f32.mrf.mxu3  ;;  %v235_v20 = vadd.f32 %v234_v6, %v207_v62 }
  0xac   : > { %v276_v22 = vadd.f32 %v268_v1, %v235_v20 }
  0xae   : > { %v313_v28 = vadd.f32 %v305_v4, %v276_v22 }
  0xb0   : > { %v273_v9 = vpop.f32.mrf.mxu2  ;;  %v350_v33 = vadd.f32 %v342_v7, %v313_v28 }
  0xb1   : > { %v237_v10 = vpop.f32.mrf.mxu1  ;;  %v345_v11 = vpop.f32.mrf.mxu0 }
  0xb2   : > { %v310_v12 = vpop.f32.mrf.mxu3  ;;  %v238_v29 = vadd.f32 %v237_v10, %v210_v60 }
  0xb4   : > { %v277_v34 = vadd.f32 %v271_v5, %v238_v29 }
  0xb6   : > { %v314_v42 = vadd.f32 %v308_v8, %v277_v34 }
  0xb8   : > { %v414_v15 = vpop.f32.mrf.mxu2  ;;  %v351_v46 = vadd.f32 %v345_v11, %v314_v42 }
  0xb9   : > { %v239_v16 = vpop.f32.mrf.mxu1  ;;  %v347_v17 = vpop.f32.mrf.mxu0 }
  0xba   : > { %v451_v18 = vpop.f32.mrf.mxu3 }
  0xc0   : > { %v416_v23 = vpop.f32.mrf.mxu2 }
  0xc1   : > { %v377_v24 = vpop.f32.mrf.mxu1  ;;  %v488_v25 = vpop.f32.mrf.mxu0 }
  0xc2   : > { %v386_v26 = vadd.f32 %v377_v24, %v349_v21  ;;  %v453_v27 = vpop.f32.mrf.mxu3 }
  0xc4   : > { %v423_v30 = vadd.f32 %v414_v15, %v386_v26 }
  0xc6   : > { %v460_v31 = vadd.f32 %v451_v18, %v423_v30 }
  0xc8   : > { %v497_v35 = vadd.f32 %v488_v25, %v460_v31  ;;  %v419_v36 = vpop.f32.mrf.mxu2 }
  0xc9   : > { %v379_v37 = vpop.f32.mrf.mxu1  ;;  %v490_v38 = vpop.f32.mrf.mxu0 }
  0xca   : > { %v504_v39 = vadd.f32 %v614_v32, %v497_v35  ;;  %v387_v40 = vadd.f32 %v379_v37, %v350_v33  ;;  %v456_v41 = vpop.f32.mrf.mxu3 }
  0xcc   : > { %v507_v43 = vmax.f32 %v504_v39, 0.0  ;;  %v424_v44 = vadd.f32 %v416_v23, %v387_v40 }
  0xce   : > { %510 = vst.msk [vmem:[%s170_s16] sm:$0xff] %vm185_vm1, %v507_v43  ;;  %v461_v45 = vadd.f32 %v453_v27, %v424_v44 }
  0xd0   : > { %v498_v47 = vadd.f32 %v490_v38, %v461_v45  ;;  %v421_v48 = vpop.f32.mrf.mxu2 }
  0xd1   : > { %v382_v49 = vpop.f32.mrf.mxu1  ;;  %v493_v50 = vpop.f32.mrf.mxu0 }
  0xd2   : > { %v505_v51 = vadd.f32 %v614_v32, %v498_v47  ;;  %v388_v52 = vadd.f32 %v382_v49, %v351_v46  ;;  %v458_v53 = vpop.f32.mrf.mxu3 }
  0xd4   : > { %v508_v54 = vmax.f32 %v505_v51, 0.0  ;;  %v425_v55 = vadd.f32 %v419_v36, %v388_v52 }
  0xd6   : > { %511 = vst.msk [vmem:[%s170_s16 + $0x8] sm:$0xff] %vm185_vm1, %v508_v54  ;;  %v462_v56 = vadd.f32 %v456_v41, %v425_v55 }
  0xd8   : > { %v499_v57 = vadd.f32 %v493_v50, %v462_v56 }
  0xd9   : > { %v384_v58 = vpop.f32.mrf.mxu1  ;;  %v495_v59 = vpop.f32.mrf.mxu0 }
  0xda   : > { %v506_v60 = vadd.f32 %v614_v32, %v499_v57 }
  0xdc   : > { %v509_v61 = vmax.f32 %v506_v60, 0.0 }
  0xde   : > { %512 = vst.msk [vmem:[%s170_s16 + $0x10] sm:$0xff] %vm185_vm1, %v509_v61 }
  0xdf PF: > { %s13_s12 = sadd.s32 1, %s621_s12  }
  0xe0   : > { %p10_p4 = scmp.ge.s32.totalorder %s13_s12, 4  }
  0xe2   :  { %12 = sbr.rel (!%p10_p4) target bundleno = 1 (0x1), region = 70 }

// kernel: hierarchical_omr_forward.7
= control target key start
LH: loop header
LB: loop body
LE: loop exit
PB: predicated region body
PF: predicated region fallthrough
CT: control target
= control target key end

     0   :  { %s2722_s12 = smov 0   ;;  %s3629_s0 = inlined_call_operand.vmem [shape: f32[2,360,4], index: 0, kind: input, shape index: {}]   ;;  %s3630_s1 = inlined_call_operand.vmem [shape: bf16[9,4,8], index: 1, kind: input, shape index: {}]   ;;  %s3631_s2 = inlined_call_operand.vmem [shape: f32[1,8], index: 2, kind: input, shape index: {}]   ;;  %s3632_s3 = inlined_call_operand.vmem [shape: f32[2,288,8], index: 3, kind: output, shape index: {}]  }
   0x1 LB: > { %s2501_s13 = sadd.s32 4294967295, %s2700_s12   ;;  %p2505_p0 = scmp.ge.s32.totalorder %s2700_s12, 1  ;;  %s2700_s12 = sphi %s2722_s12, %s13_s12  }
   0x2   : > { %p137_p1 = scmp.lt.s32.totalorder %s2700_s12, 3 }
   0x4   : > { %p138_p2 = pnand %p2505_p0, %p137_p1 }
   0x5   : > { %p161_p3 = scmp.lt.s32.totalorder (!%p138_p2), %s2501_s13, 1 }
   0x6   : > { %141 = sbr.rel (%p138_p2) target bundleno = 811 (0x32b), region = 32 }
   0xb   : > { %v2508_v0 = vld [vmem:[%s3630_s1 + $0x2] sm:$0x3]  ;;  %vm338_vm0 = vcmask 1041408   ;;  %v2545_v2 = vld [vmem:[%s3630_s1 + $0x4] sm:$0x3]  ;;  %s3634_s13 = smov (!%p161_p3, %s2501_s13), 1 }
   0xc   : > { %v340_v1 = vsel %vm338_vm0, %v2508_v0, 0  ;;  %v226_v3 = vld [vmem:[%s3630_s1] sm:$0x3]  ;;  %v708_v4 = vsel %vm338_vm0, %v2545_v2, 0  ;;  %v2583_v6 = vld [vmem:[%s3630_s1 + $0x8] sm:$0x3] }
   0xd   : > { %2680 = vmatpush.bf16.msra.mxu1 %v340_v1  ;;  %2681 = vmatpush.bf16.msra.mxu2 %v340_v1  ;;  %v496_v5 = vsel %vm338_vm0, %v226_v3, 0  ;;  %v1204_v7 = vsel %vm338_vm0, %v2583_v6, 0  ;;  %s2683_s22 = smul.u32 360, %s3634_s13  ;;  %vm283_vm1 = vcmask 31744   ;;  %v2564_v20 = vld [vmem:[%s3630_s1 + $0x6] sm:$0x3] }
   0xe   : > { %349 = vmatpush.bf16.msra.mxu0 %v340_v1  ;;  %2682 = vmatpush.bf16.msra.mxu3 %v340_v1  ;;  %v956_v21 = vsel %vm338_vm0, %v2564_v20, 0  ;;  %v2621_v58 = vld [vmem:[%s3630_s1 + $0xc] sm:$0x3]  ;;  %v2640_v59 = vld [vmem:[%s3630_s1 + $0xe] sm:$0x3]  ;;  %s2684_s11 = smul.u32 288, %s3634_s13 }
   0xf   : > { %s2752_s25 = scalar_lea.vmem %s3629_s0, %s2683_s22  ;;  %v2602_v60 = vld [vmem:[%s3630_s1 + $0xa] sm:$0x3]  ;;  %v1700_v61 = vsel %vm338_vm0, %v2621_v58, 0  ;;  %v1948_v62 = vsel %vm338_vm0, %v2640_v59, 0  ;;  %v2659_v0 = vld [vmem:[%s3630_s1 + $0x10] sm:$0x3] }
  0x10   : > { %v237_v8 = vld [vmem:[%s2752_s25 + $0x62] sm:$0xff]  ;;  %v238_v9 = vld [vmem:[%s2752_s25 + $0x6a] sm:$0xff]  ;;  %v247_v10 = vld [vmem:[%s2752_s25 + $0xb2] sm:$0xff]  ;;  %v1452_v63 = vsel %vm338_vm0, %v2602_v60, 0  ;;  %v2196_v1 = vsel %vm338_vm0, %v2659_v0, 0  ;;  %s3360_s16 = scalar_lea.vmem %s3632_s3, %s2684_s11  ;;  %vm2409_vm2 = vcmask 64512  }
  0x11   : > { %717 = vmatpush.bf16.msrb.mxu2 %v708_v4  ;;  %505 = vmatpush.bf16.msrb.mxu1 %v496_v5  ;;  %v268_v11 = vpack.c.bf16 %v238_v9, %v237_v8  ;;  %v248_v12 = vld [vmem:[%s2752_s25 + $0xba] sm:$0xff]  ;;  %v227_v13 = vld [vmem:[%s2752_s25 + $0x12] sm:$0xff]  ;;  %v257_v17 = vld [vmem:[%s2752_s25 + $0x102] sm:$0xff] }
  0x12   : > { %1213 = vmatpush.bf16.msrb.mxu0 %v1204_v7  ;;  %v228_v14 = vld [vmem:[%s2752_s25 + $0x1a] sm:$0xff]  ;;  %v273_v15 = vpack.c.bf16 %v248_v12, %v247_v10  ;;  %v258_v18 = vld [vmem:[%s2752_s25 + $0x10a] sm:$0xff]  ;;  %965 = vmatpush.bf16.msrb.mxu3 %v956_v21  ;;  %v239_v22 = vld [vmem:[%s2752_s25 + $0x72] sm:$0xff] }
  0x13   : > { %v263_v16 = vpack.c.bf16 %v228_v14, %v227_v13  ;;  %2514 = vmatmul.msk.bf16.vlgmr.msra.gmra.mxu1 %vm283_vm1, %v268_v11  ;;  %v278_v19 = vpack.c.bf16 %v258_v18, %v257_v17  ;;  %v240_v23 = vld [vmem:[%s2752_s25 + $0x7a] sm:$0xff]  ;;  %v249_v24 = vld [vmem:[%s2752_s25 + $0xc2] sm:$0xff]  ;;  %v250_v25 = vld [vmem:[%s2752_s25 + $0xca] sm:$0xff] }
  0x14   : > { %2519 = vmatmul.msk.bf16.vlgmr.msra.gmra.mxu2 %vm283_vm1, %v273_v15  ;;  %v229_v26 = vld [vmem:[%s2752_s25 + $0x22] sm:$0xff]  ;;  %v230_v27 = vld [vmem:[%s2752_s25 + $0x2a] sm:$0xff]  ;;  %v269_v28 = vpack.c.bf16 %v240_v23, %v239_v22  ;;  %v274_v29 = vpack.c.bf16 %v250_v25, %v249_v24  ;;  %v259_v31 = vld [vmem:[%s2752_s25 + $0x112] sm:$0xff] }
  0x15   : > { %2509 = vmatmul.msk.bf16.vlgmr.msra.gmra.mxu0 %vm283_vm1, %v263_v16  ;;  %2524 = vmatmul.msk.bf16.vlgmr.msra.gmra.mxu3 %vm283_vm1, %v278_v19  ;;  %v264_v30 = vpack.c.bf16 %v230_v27, %v229_v26  ;;  %v260_v32 = vld [vmem:[%s2752_s25 + $0x11a] sm:$0xff]  ;;  %v241_v34 = vld [vmem:[%s2752_s25 + $0x82] sm:$0xff]  ;;  %v242_v35 = vld [vmem:[%s2752_s25 + $0x8a] sm:$0xff] }
  0x16   : > { %v279_v33 = vpack.c.bf16 %v260_v32, %v259_v31  ;;  %v251_v36 = vld [vmem:[%s2752_s25 + $0xd2] sm:$0xff]  ;;  %v252_v37 = vld [vmem:[%s2752_s25 + $0xda] sm:$0xff]  ;;  %v270_v40 = vpack.c.bf16 %v242_v35, %v241_v34  ;;  %v261_v43 = vld [vmem:[%s2752_s25 + $0x122] sm:$0xff]  ;;  %1709 = vmatpush.bf16.msra.mxu2 %v1700_v61  ;;  %1957 = vmatpush.bf16.msra.mxu3 %v1948_v62 }
  0x17   : > { %v231_v38 = vld [vmem:[%s2752_s25 + $0x32] sm:$0xff]  ;;  %v232_v39 = vld [vmem:[%s2752_s25 + $0x3a] sm:$0xff]  ;;  %v275_v41 = vpack.c.bf16 %v252_v37, %v251_v36  ;;  %v262_v44 = vld [vmem:[%s2752_s25 + $0x12a] sm:$0xff]  ;;  %1461 = vmatpush.bf16.msra.mxu1 %v1452_v63  ;;  %2205 = vmatpush.bf16.msra.mxu0 %v2196_v1 }
  0x18   : > { %v265_v42 = vpack.c.bf16 %v232_v39, %v231_v38  ;;  %v280_v45 = vpack.c.bf16 %v262_v44, %v261_v43  ;;  %v243_v46 = vld [vmem:[%s2752_s25 + $0x92] sm:$0xff]  ;;  %v244_v47 = vld [vmem:[%s2752_s25 + $0x9a] sm:$0xff]  ;;  %v253_v48 = vld [vmem:[%s2752_s25 + $0xe2] sm:$0xff] }
  0x19   : > { %v254_v49 = vld [vmem:[%s2752_s25 + $0xea] sm:$0xff]  ;;  %v233_v50 = vld [vmem:[%s2752_s25 + $0x42] sm:$0xff]  ;;  %v271_v52 = vpack.c.bf16 %v244_v47, %v243_v46  ;;  %v255_v4 = vld [vmem:[%s2752_s25 + $0xf2] sm:$0xff] }
  0x1a   : > { %v234_v51 = vld [vmem:[%s2752_s25 + $0x4a] sm:$0xff]  ;;  %v276_v53 = vpack.c.bf16 %v254_v49, %v253_v48  ;;  %v245_v2 = vld [vmem:[%s2752_s25 + $0xa2] sm:$0xff]  ;;  %v256_v5 = vld [vmem:[%s2752_s25 + $0xfa] sm:$0xff] }
  0x1b   : > { %v266_v54 = vpack.c.bf16 %v234_v51, %v233_v50  ;;  %v845_v55 = vld [vmem:[%s2752_s25 + $0x23] sm:$0xff]  ;;  %v846_v56 = vld [vmem:[%s2752_s25 + $0x2b] sm:$0xff]  ;;  %v236_v7 = vld [vmem:[%s2752_s25 + $0x5a] sm:$0xff]  ;;  %v277_v9 = vpack.c.bf16 %v256_v5, %v255_v4 }
  0x1c   : > { %v881_v57 = vpack.c.bf16 %v846_v56, %v845_v55  ;;  %v246_v3 = vld [vmem:[%s2752_s25 + $0xaa] sm:$0xff]  ;;  %v235_v6 = vld [vmem:[%s2752_s25 + $0x52] sm:$0xff]  ;;  %v848_v12 = vld [vmem:[%s2752_s25 + $0x3b] sm:$0xff] }
  0x1d   : > { %v272_v8 = vpack.c.bf16 %v246_v3, %v245_v2  ;;  %v267_v10 = vpack.c.bf16 %v236_v7, %v235_v6  ;;  %v847_v11 = vld [vmem:[%s2752_s25 + $0x33] sm:$0xff]  ;;  %v598_v17 = vld [vmem:[%s2752_s25 + $0x1b] sm:$0xff]  ;;  %v1093_v18 = vld [vmem:[%s2752_s25 + $0x24] sm:$0xff] }
  0x1e   : > { %v882_v13 = vpack.c.bf16 %v848_v12, %v847_v11  ;;  %v172_v14 = vld [vmem:[%s2752_s25 + $0x11] sm:$0xff]  ;;  %v173_v15 = vld [vmem:[%s2752_s25 + $0x19] sm:$0xff]  ;;  %v849_v23 = vld [vmem:[%s2752_s25 + $0x43] sm:$0xff] }
  0x1f   : > { %v597_v16 = vld [vmem:[%s2752_s25 + $0x13] sm:$0xff]  ;;  %v208_v20 = vpack.c.bf16 %v173_v15, %v172_v14  ;;  %v850_v24 = vld [vmem:[%s2752_s25 + $0x4b] sm:$0xff]  ;;  %v174_v26 = vld [vmem:[%s2752_s25 + $0x21] sm:$0xff] }
  0x20   : > { %v1094_v19 = vld [vmem:[%s2752_s25 + $0x2c] sm:$0xff]  ;;  %v633_v21 = vpack.c.bf16 %v598_v17, %v597_v16  ;;  %v883_v25 = vpack.c.bf16 %v850_v24, %v849_v23  ;;  %v177_v36 = vld [vmem:[%s2752_s25 + $0x39] sm:$0xff]  ;;  %v1097_v37 = vld [vmem:[%s2752_s25 + $0x44] sm:$0xff] }
  0x21   : > { %v1129_v22 = vpack.c.bf16 %v1094_v19, %v1093_v18  ;;  %v175_v27 = vld [vmem:[%s2752_s25 + $0x29] sm:$0xff]  ;;  %v851_v32 = vld [vmem:[%s2752_s25 + $0x53] sm:$0xff]  ;;  %v178_v44 = vld [vmem:[%s2752_s25 + $0x41] sm:$0xff] }
  0x22   : > { %v176_v35 = vld [vmem:[%s2752_s25 + $0x31] sm:$0xff]  ;;  %v1100_v47 = vld [vmem:[%s2752_s25 + $0x5c] sm:$0xff]  ;;  %v1101_v61 = vld [vmem:[%s2752_s25 + $0x64] sm:$0xff] }
  0x23   : > { %2515 = vmatmul.msk.bf16.gmra.mxu1 %vm283_vm1, %v269_v28  ;;  %v1095_v28 = vld [vmem:[%s2752_s25 + $0x34] sm:$0xff]  ;;  %v1098_v38 = vld [vmem:[%s2752_s25 + $0x4c] sm:$0xff]  ;;  %v210_v39 = vpack.c.bf16 %v177_v36, %v176_v35  ;;  %v857_v3 = vld [vmem:[%s2752_s25 + $0x83] sm:$0xff] }
  0x24   : > { %2520 = vmatmul.msk.bf16.gmra.mxu2 %vm283_vm1, %v274_v29  ;;  %v1096_v29 = vld [vmem:[%s2752_s25 + $0x3c] sm:$0xff]  ;;  %v1099_v46 = vld [vmem:[%s2752_s25 + $0x54] sm:$0xff]  ;;  %v1102_v62 = vld [vmem:[%s2752_s25 + $0x6c] sm:$0xff] }
  0x25   : > { %2510 = vmatmul.msk.bf16.gmra.mxu0 %vm283_vm1, %v264_v30  ;;  %2525 = vmatmul.msk.bf16.gmra.mxu3 %vm283_vm1, %v279_v33  ;;  %v209_v30 = vpack.c.bf16 %v175_v27, %v174_v26  ;;  %v1130_v31 = vpack.c.bf16 %v1096_v29, %v1095_v28  ;;  %v852_v33 = vld [vmem:[%s2752_s25 + $0x5b] sm:$0xff]  ;;  %v1132_v50 = vpack.c.bf16 %v1100_v47, %v1099_v46  ;;  %v855_v51 = vld [vmem:[%s2752_s25 + $0x73] sm:$0xff]  ;;  %v858_v4 = vld [vmem:[%s2752_s25 + $0x8b] sm:$0xff] }
  0x26   : > { %v884_v34 = vpack.c.bf16 %v852_v33, %v851_v32  ;;  %v180_v59 = vld [vmem:[%s2752_s25 + $0x51] sm:$0xff]  ;;  %v181_v60 = vld [vmem:[%s2752_s25 + $0x59] sm:$0xff]  ;;  %v1133_v2 = vpack.c.bf16 %v1102_v62, %v1101_v61  ;;  %v2906_v7 = vpack.c.bf16 %v858_v4, %v857_v3  ;;  %v182_v12 = vld [vmem:[%s2752_s25 + $0x61] sm:$0xff] }
  0x27   : > { %v212_v0 = vpack.c.bf16 %v181_v60, %v180_v59  ;;  %v1103_v14 = vld [vmem:[%s2752_s25 + $0x74] sm:$0xff]  ;;  %v1104_v15 = vld [vmem:[%s2752_s25 + $0x7c] sm:$0xff]  ;;  %v1106_v32 = vld [vmem:[%s2752_s25 + $0x8c] sm:$0xff] }
  0x28   : > { %v1134_v19 = vpack.c.bf16 %v1104_v15, %v1103_v14  ;;  %v184_v29 = vld [vmem:[%s2752_s25 + $0x71] sm:$0xff]  ;;  %v186_v46 = vld [vmem:[%s2752_s25 + $0x81] sm:$0xff]  ;;  %v187_v47 = vld [vmem:[%s2752_s25 + $0x89] sm:$0xff] }
  0x29   : > { %v863_v60 = vld [vmem:[%s2752_s25 + $0xb3] sm:$0xff]  ;;  %v864_v61 = vld [vmem:[%s2752_s25 + $0xbb] sm:$0xff] }
  0x2a   : > { %v188_v14 = vld [vmem:[%s2752_s25 + $0x91] sm:$0xff]  ;;  %v189_v15 = vld [vmem:[%s2752_s25 + $0x99] sm:$0xff] }
  0x33   : > { %2516 = vmatmul.msk.bf16.gmra.mxu1 %vm283_vm1, %v270_v40  ;;  %v1131_v40 = vpack.c.bf16 %v1098_v38, %v1097_v37  ;;  %v861_v37 = vld [vmem:[%s2752_s25 + $0xa3] sm:$0xff]  ;;  %v862_v38 = vld [vmem:[%s2752_s25 + $0xab] sm:$0xff] }
  0x34   : > { %2521 = vmatmul.msk.bf16.gmra.mxu2 %vm283_vm1, %v275_v41  ;;  %v853_v41 = vld [vmem:[%s2752_s25 + $0x63] sm:$0xff] }
  0x35   : > { %2511 = vmatmul.msk.bf16.gmra.mxu0 %vm283_vm1, %v265_v42  ;;  %2526 = vmatmul.msk.bf16.gmra.mxu3 %vm283_vm1, %v280_v45  ;;  %v854_v42 = vld [vmem:[%s2752_s25 + $0x6b] sm:$0xff] }
  0x36   : > { %v885_v43 = vpack.c.bf16 %v854_v42, %v853_v41  ;;  %v179_v45 = vld [vmem:[%s2752_s25 + $0x49] sm:$0xff]  ;;  %v2964_v41 = vpack.c.bf16 %v862_v38, %v861_v37 }
  0x37   : > { %v211_v48 = vpack.c.bf16 %v179_v45, %v178_v44 }
  0x43   : > { %2517 = vmatmul.msk.bf16.gmra.mxu1 %vm283_vm1, %v271_v52  ;;  %v856_v52 = vld [vmem:[%s2752_s25 + $0x7b] sm:$0xff] }
  0x44   : > { %2522 = vmatmul.msk.bf16.gmra.mxu2 %vm283_vm1, %v276_v53 }
  0x45   : > { %2512 = vmatmul.msk.bf16.gmra.mxu0 %vm283_vm1, %v266_v54  ;;  %2565 = vmatmul.msk.bf16.vlgmr.msrb.gmra.mxu3 %vm283_vm1, %v881_v57  ;;  %v2877_v54 = vpack.c.bf16 %v856_v52, %v855_v51  ;;  %v215_v52 = vpack.c.bf16 %v187_v47, %v186_v46 }
  0x53   : > { %2518 = vmatmul.msk.bf16.gmra.mxu1 %vm283_vm1, %v272_v8 }
  0x54   : > { %2523 = vmatmul.msk.bf16.gmra.mxu2 %vm283_vm1, %v277_v9 }
  0x55   : > { %2513 = vmatmul.msk.bf16.gmra.mxu0 %vm283_vm1, %v267_v10  ;;  %2566 = vmatmul.msk.bf16.gmra.mxu3 %vm283_vm1, %v882_v13 }
  0x63   : > { %2527 = vmatmul.msk.bf16.vlgmr.msrb.gmra.mxu1 %vm283_vm1, %v208_v20  ;;  %v859_v20 = vld [vmem:[%s2752_s25 + $0x93] sm:$0xff] }
  0x64   : > { %2546 = vmatmul.msk.bf16.vlgmr.msrb.gmra.mxu2 %vm283_vm1, %v633_v21  ;;  %v860_v21 = vld [vmem:[%s2752_s25 + $0x9b] sm:$0xff] }
  0x65   : > { %2584 = vmatmul.msk.bf16.vlgmr.msrb.gmra.mxu0 %vm283_vm1, %v1129_v22  ;;  %2567 = vmatmul.msk.bf16.gmra.mxu3 %vm283_vm1, %v883_v25  ;;  %v2935_v24 = vpack.c.bf16 %v860_v21, %v859_v20 }
  0x73   : > { %2528 = vmatmul.msk.bf16.gmra.mxu1 %vm283_vm1, %v209_v30  ;;  %v185_v30 = vld [vmem:[%s2752_s25 + $0x79] sm:$0xff] }
  0x74   : > { %2547 = vmatmul.msk.bf16.gmra.mxu2 %vm283_vm1, %v881_v57 }
  0x75   : > { %2585 = vmatmul.msk.bf16.gmra.mxu0 %vm283_vm1, %v1130_v31  ;;  %2568 = vmatmul.msk.bf16.gmra.mxu3 %vm283_vm1, %v884_v34  ;;  %v1105_v31 = vld [vmem:[%s2752_s25 + $0x84] sm:$0xff] }
  0x76   : > { %v1135_v36 = vpack.c.bf16 %v1106_v32, %v1105_v31  ;;  %v866_v31 = vld [vmem:[%s2752_s25 + $0xcb] sm:$0xff] }
  0x83   : > { %2529 = vmatmul.msk.bf16.gmra.mxu1 %vm283_vm1, %v210_v39 }
  0x84   : > { %2548 = vmatmul.msk.bf16.gmra.mxu2 %vm283_vm1, %v882_v13  ;;  %v183_v13 = vld [vmem:[%s2752_s25 + $0x69] sm:$0xff] }
  0x85   : > { %2586 = vmatmul.msk.bf16.gmra.mxu0 %vm283_vm1, %v1131_v40  ;;  %2569 = vmatmul.msk.bf16.gmra.mxu3 %vm283_vm1, %v885_v43  ;;  %v213_v17 = vpack.c.bf16 %v183_v13, %v182_v12 }
  0x90   : > { %v2870_v49 = vpop.f32.mrf.mxu1 }
  0x92   : > { %v2874_v53 = vpop.f32.mrf.mxu0 }
  0x93   : > { %2530 = vmatmul.msk.bf16.gmra.mxu1 %vm283_vm1, %v211_v48  ;;  %v1107_v48 = vld [vmem:[%s2752_s25 + $0x94] sm:$0xff] }
  0x94   : > { %2549 = vmatmul.msk.bf16.gmra.mxu2 %vm283_vm1, %v883_v25 }
  0x95   : > { %2587 = vmatmul.msk.bf16.gmra.mxu0 %vm283_vm1, %v1132_v50  ;;  %2570 = vmatmul.msk.bf16.gmra.mxu3 %vm283_vm1, %v2877_v54  ;;  %v1108_v50 = vld [vmem:[%s2752_s25 + $0x9c] sm:$0xff] }
  0x96   : > { %v1136_v59 = vpack.c.bf16 %v1108_v50, %v1107_v48 }
  0x97   : > { %v2881_v55 = vpop.f32.mrf.mxu2 }
  0x98   : > { %v2885_v56 = vpop.f32.mrf.mxu1  ;;  %v2889_v58 = vpop.f32.mrf.mxu3 }
  0x9a   : > { %v2887_v57 = vpop.f32.mrf.mxu0 }
  0x9f   : > { %v2895_v63 = vpop.f32.mrf.mxu2 }
  0xa0   : > { %v2897_v1 = vpop.f32.mrf.mxu1  ;;  %v2903_v6 = vpop.f32.mrf.mxu3 }
  0xa2   : > { %v2901_v5 = vpop.f32.mrf.mxu0 }
  0xa3   : > { %2531 = vmatmul.msk.bf16.gmra.mxu1 %vm283_vm1, %v212_v0 }
  0xa4   : > { %2550 = vmatmul.msk.bf16.gmra.mxu2 %vm283_vm1, %v884_v34  ;;  %v214_v34 = vpack.c.bf16 %v185_v30, %v184_v29  ;;  %v865_v30 = vld [vmem:[%s2752_s25 + $0xc3] sm:$0xff] }
  0xa5   : > { %2588 = vmatmul.msk.bf16.gmra.mxu0 %vm283_vm1, %v1133_v2  ;;  %2571 = vmatmul.msk.bf16.gmra.mxu3 %vm283_vm1, %v2906_v7  ;;  %v2990_v2 = vpack.c.bf16 %v864_v61, %v863_v60  ;;  %v191_v60 = vld [vmem:[%s2752_s25 + $0xa9] sm:$0xff] }
  0xa7   : > { %v2910_v8 = vpop.f32.mrf.mxu2 }
  0xa8   : > { %v2914_v9 = vpop.f32.mrf.mxu1  ;;  %v2918_v11 = vpop.f32.mrf.mxu3 }
  0xaa   : > { %v2916_v10 = vpop.f32.mrf.mxu0 }
  0xaf   : > { %v2924_v16 = vpop.f32.mrf.mxu2 }
  0xb0   : > { %v2926_v18 = vpop.f32.mrf.mxu1  ;;  %v2932_v23 = vpop.f32.mrf.mxu3 }
  0xb2   : > { %v2930_v22 = vpop.f32.mrf.mxu0 }
  0xb3   : > { %2532 = vmatmul.msk.bf16.gmra.mxu1 %vm283_vm1, %v213_v17  ;;  %v1109_v17 = vld [vmem:[%s2752_s25 + $0xa4] sm:$0xff] }
  0xb4   : > { %2551 = vmatmul.msk.bf16.gmra.mxu2 %vm283_vm1, %v885_v43 }
  0xb5   : > { %2589 = vmatmul.msk.bf16.gmra.mxu0 %vm283_vm1, %v1134_v19  ;;  %2572 = vmatmul.msk.bf16.gmra.mxu3 %vm283_vm1, %v2935_v24  ;;  %v1110_v19 = vld [vmem:[%s2752_s25 + $0xac] sm:$0xff] }
  0xb6   : > { %v1137_v29 = vpack.c.bf16 %v1110_v19, %v1109_v17 }
  0xb7   : > { %v2939_v25 = vpop.f32.mrf.mxu2 }
  0xb8   : > { %v2943_v26 = vpop.f32.mrf.mxu1  ;;  %v2947_v28 = vpop.f32.mrf.mxu3 }
  0xba   : > { %v2945_v27 = vpop.f32.mrf.mxu0 }
  0xbf   : > { %v2953_v33 = vpop.f32.mrf.mxu2 }
  0xc0   : > { %v2955_v35 = vpop.f32.mrf.mxu1  ;;  %v2961_v40 = vpop.f32.mrf.mxu3 }
  0xc2   : > { %v2959_v39 = vpop.f32.mrf.mxu0 }
  0xc3   : > { %2533 = vmatmul.msk.bf16.gmra.mxu1 %vm283_vm1, %v214_v34 }
  0xc4   : > { %2552 = vmatmul.msk.bf16.gmra.mxu2 %vm283_vm1, %v2877_v54 }
  0xc5   : > { %2590 = vmatmul.msk.bf16.gmra.mxu0 %vm283_vm1, %v1135_v36  ;;  %2573 = vmatmul.msk.bf16.gmra.mxu3 %vm283_vm1, %v2964_v41  ;;  %v3012_v36 = vpack.c.bf16 %v866_v31, %v865_v30  ;;  %v868_v30 = vld [vmem:[%s2752_s25 + $0xdb] sm:$0xff] }
  0xc7   : > { %v2969_v42 = vpop.f32.mrf.mxu2 }
  0xc8   : > { %v2973_v43 = vpop.f32.mrf.mxu1  ;;  %v967_v45 = vpop.f32.mrf.mxu3 }
  0xca   : > { %v2975_v44 = vpop.f32.mrf.mxu0 }
  0xcf   : > { %v2981_v51 = vpop.f32.mrf.mxu2 }
  0xd0   : > { %v2983_v54 = vpop.f32.mrf.mxu1  ;;  %v969_v0 = vpop.f32.mrf.mxu3 }
  0xd2   : > { %v2987_v62 = vpop.f32.mrf.mxu0 }
  0xd3   : > { %2534 = vmatmul.msk.bf16.gmra.mxu1 %vm283_vm1, %v215_v52 }
  0xd4   : > { %2553 = vmatmul.msk.bf16.gmra.mxu2 %vm283_vm1, %v2906_v7  ;;  %v216_v7 = vpack.c.bf16 %v189_v15, %v188_v14  ;;  %v1112_v14 = vld [vmem:[%s2752_s25 + $0xbc] sm:$0xff] }
  0xd5   : > { %2591 = vmatmul.msk.bf16.gmra.mxu0 %vm283_vm1, %v1136_v59  ;;  %2574 = vmatmul.msk.bf16.gmra.mxu3 %vm283_vm1, %v2990_v2  ;;  %v190_v59 = vld [vmem:[%s2752_s25 + $0xa1] sm:$0xff] }
  0xd6   : > { %v217_v17 = vpack.c.bf16 %v191_v60, %v190_v59 }
  0xd7   : > { %v2995_v3 = vpop.f32.mrf.mxu2 }
  0xd8   : > { %v2999_v4 = vpop.f32.mrf.mxu1  ;;  %v972_v13 = vpop.f32.mrf.mxu3 }
  0xda   : > { %v3001_v12 = vpop.f32.mrf.mxu0 }
  0xdf   : > { %v3007_v20 = vpop.f32.mrf.mxu2 }
  0xe0   : > { %v507_v21 = vpop.f32.mrf.mxu1  ;;  %v974_v34 = vpop.f32.mrf.mxu3 }
  0xe1   : > { %v508_v37 = vadd.f32 %v507_v21, %v2874_v53 }
  0xe2   : > { %v1215_v32 = vpop.f32.mrf.mxu0 }
  0xe3   : > { %2535 = vmatmul.msk.bf16.gmra.mxu1 %vm283_vm1, %v216_v7 }
  0xe4   : > { %2554 = vmatmul.msk.bf16.gmra.mxu2 %vm283_vm1, %v2935_v24  ;;  %v1111_v24 = vld [vmem:[%s2752_s25 + $0xb4] sm:$0xff] }
  0xe5   : > { %2592 = vmatmul.msk.bf16.gmra.mxu0 %vm283_vm1, %v1137_v29  ;;  %2575 = vmatmul.msk.bf16.gmra.mxu3 %vm283_vm1, %v3012_v36  ;;  %v1138_v21 = vpack.c.bf16 %v1112_v14, %v1111_v24  ;;  %v867_v29 = vld [vmem:[%s2752_s25 + $0xd3] sm:$0xff] }
  0xe6   : > { %v192_v24 = vld [vmem:[%s2752_s25 + $0xb1] sm:$0xff]  ;;  %v193_v14 = vld [vmem:[%s2752_s25 + $0xb9] sm:$0xff] }
  0xe7   : > { %v719_v38 = vpop.f32.mrf.mxu2 }
  0xe8   : > { %v809_v46 = vadd.f32 %v719_v38, %v508_v37  ;;  %v509_v47 = vpop.f32.mrf.mxu1  ;;  %v977_v52 = vpop.f32.mrf.mxu3 }
  0xe9   : > { %v510_v15 = vadd.f32 %v509_v47, %v2887_v57 }
  0xea   : > { %v1217_v48 = vpop.f32.mrf.mxu0  ;;  %v1057_v50 = vadd.f32 %v967_v45, %v809_v46 }
  0xec   : > { %v3022_v61 = vadd.f32 %v1215_v32, %v1057_v50  ;;  %v3030_v32 = vpack.c.bf16 %v868_v30, %v867_v29  ;;  %v869_v29 = vld [vmem:[%s2752_s25 + $0xe3] sm:$0xff]  ;;  %v870_v30 = vld [vmem:[%s2752_s25 + $0xeb] sm:$0xff] }
  0xef   : > { %v721_v53 = vpop.f32.mrf.mxu2 }
  0xf0   : > { %v810_v19 = vadd.f32 %v721_v53, %v510_v15  ;;  %v512_v7 = vpop.f32.mrf.mxu1  ;;  %v979_v45 = vpop.f32.mrf.mxu3  ;;  %v1113_v15 = vld [vmem:[%s2752_s25 + $0xc4] sm:$0xff] }
  0xf1   : > { %v513_v38 = vadd.f32 %v512_v7, %v2901_v5 }
  0xf2   : > { %v1220_v31 = vpop.f32.mrf.mxu0  ;;  %v1058_v37 = vadd.f32 %v969_v0, %v810_v19 }
  0xf3   : > { %2536 = vmatmul.msk.bf16.gmra.mxu1 %vm283_vm1, %v217_v17  ;;  %v218_v17 = vpack.c.bf16 %v193_v14, %v192_v24 }
  0xf4   : > { %2555 = vmatmul.msk.bf16.gmra.mxu2 %vm283_vm1, %v2964_v41  ;;  %v3035_v57 = vadd.f32 %v1217_v48, %v1058_v37  ;;  %v1114_v48 = vld [vmem:[%s2752_s25 + $0xcc] sm:$0xff] }
  0xf5   : > { %2593 = vmatmul.msk.bf16.gmra.mxu0 %vm283_vm1, %v1138_v21  ;;  %2576 = vmatmul.msk.bf16.gmra.mxu3 %vm283_vm1, %v3030_v32  ;;  %v1139_v21 = vpack.c.bf16 %v1114_v48, %v1113_v15  ;;  %v194_v15 = vld [vmem:[%s2752_s25 + $0xc1] sm:$0xff]  ;;  %v195_v48 = vld [vmem:[%s2752_s25 + $0xc9] sm:$0xff] }
  0xf7   : > { %v724_v46 = vpop.f32.mrf.mxu2 }
  0xf8   : > { %v811_v0 = vadd.f32 %v724_v46, %v513_v38  ;;  %v514_v47 = vpop.f32.mrf.mxu1  ;;  %v982_v60 = vpop.f32.mrf.mxu3 }
  0xf9   : > { %v515_v53 = vadd.f32 %v514_v47, %v2916_v10 }
  0xfa   : > { %v1222_v50 = vpop.f32.mrf.mxu0  ;;  %v1059_v59 = vadd.f32 %v972_v13, %v811_v0 }
  0xfc   : > { %v3042_v41 = vadd.f32 %v1220_v31, %v1059_v59  ;;  %v3050_v31 = vpack.c.bf16 %v870_v30, %v869_v29  ;;  %v871_v29 = vld [vmem:[%s2752_s25 + $0xf3] sm:$0xff]  ;;  %v872_v30 = vld [vmem:[%s2752_s25 + $0xfb] sm:$0xff] }
  0xff   : > { %v726_v5 = vpop.f32.mrf.mxu2 }
 0x100   : > { %v812_v19 = vadd.f32 %v726_v5, %v515_v53  ;;  %v517_v7 = vpop.f32.mrf.mxu1  ;;  %v984_v13 = vpop.f32.mrf.mxu3  ;;  %v1115_v53 = vld [vmem:[%s2752_s25 + $0xd4] sm:$0xff] }
 0x101   : > { %v518_v46 = vadd.f32 %v517_v7, %v2930_v22 }
 0x102   : > { %v1225_v37 = vpop.f32.mrf.mxu0  ;;  %v1060_v38 = vadd.f32 %v974_v34, %v812_v19 }
 0x103   : > { %2537 = vmatmul.msk.bf16.gmra.mxu1 %vm283_vm1, %v218_v17  ;;  %v219_v17 = vpack.c.bf16 %v195_v48, %v194_v15 }
 0x104   : > { %2556 = vmatmul.msk.bf16.gmra.mxu2 %vm283_vm1, %v2990_v2  ;;  %v3055_v10 = vadd.f32 %v1222_v50, %v1060_v38  ;;  %v1116_v50 = vld [vmem:[%s2752_s25 + $0xdc] sm:$0xff] }
 0x105   : > { %2594 = vmatmul.msk.bf16.gmra.mxu0 %vm283_vm1, %v1139_v21  ;;  %2577 = vmatmul.msk.bf16.gmra.mxu3 %vm283_vm1, %v3050_v31  ;;  %v1140_v21 = vpack.c.bf16 %v1116_v50, %v1115_v53  ;;  %v196_v53 = vld [vmem:[%s2752_s25 + $0xd1] sm:$0xff]  ;;  %v197_v50 = vld [vmem:[%s2752_s25 + $0xd9] sm:$0xff] }
 0x107   : > { %v729_v0 = vpop.f32.mrf.mxu2 }
 0x108   : > { %v813_v34 = vadd.f32 %v729_v0, %v518_v46  ;;  %v519_v47 = vpop.f32.mrf.mxu1  ;;  %v987_v14 = vpop.f32.mrf.mxu3 }
 0x109   : > { %v520_v5 = vadd.f32 %v519_v47, %v2945_v27 }
 0x10a   : > { %v1227_v59 = vpop.f32.mrf.mxu0  ;;  %v1061_v24 = vadd.f32 %v977_v52, %v813_v34 }
 0x10c   : > { %v3062_v2 = vadd.f32 %v1225_v37, %v1061_v24  ;;  %v3070_v37 = vpack.c.bf16 %v872_v30, %v871_v29  ;;  %v873_v29 = vld [vmem:[%s2752_s25 + $0x103] sm:$0xff]  ;;  %v874_v30 = vld [vmem:[%s2752_s25 + $0x10b] sm:$0xff] }
 0x10f   : > { %v731_v22 = vpop.f32.mrf.mxu2 }
 0x110   : > { %v814_v19 = vadd.f32 %v731_v22, %v520_v5  ;;  %v522_v7 = vpop.f32.mrf.mxu1  ;;  %v989_v52 = vpop.f32.mrf.mxu3  ;;  %v1117_v5 = vld [vmem:[%s2752_s25 + $0xe4] sm:$0xff] }
 0x111   : > { %v523_v0 = vadd.f32 %v522_v7, %v2959_v39 }
 0x112   : > { %v1230_v38 = vpop.f32.mrf.mxu0  ;;  %v1062_v46 = vadd.f32 %v979_v45, %v814_v19 }
 0x113   : > { %2538 = vmatmul.msk.bf16.gmra.mxu1 %vm283_vm1, %v219_v17  ;;  %v220_v17 = vpack.c.bf16 %v197_v50, %v196_v53 }
 0x114   : > { %2557 = vmatmul.msk.bf16.gmra.mxu2 %vm283_vm1, %v3012_v36  ;;  %v3075_v27 = vadd.f32 %v1227_v59, %v1062_v46  ;;  %v1118_v59 = vld [vmem:[%s2752_s25 + $0xec] sm:$0xff] }
 0x115   : > { %2595 = vmatmul.msk.bf16.gmra.mxu0 %vm283_vm1, %v1140_v21  ;;  %2578 = vmatmul.msk.bf16.gmra.mxu3 %vm283_vm1, %v3070_v37  ;;  %v1141_v21 = vpack.c.bf16 %v1118_v59, %v1117_v5  ;;  %v198_v5 = vld [vmem:[%s2752_s25 + $0xe1] sm:$0xff]  ;;  %v199_v59 = vld [vmem:[%s2752_s25 + $0xe9] sm:$0xff] }
 0x117   : > { %v734_v34 = vpop.f32.mrf.mxu2 }
 0x118   : > { %v815_v45 = vadd.f32 %v734_v34, %v523_v0  ;;  %v524_v47 = vpop.f32.mrf.mxu1  ;;  %v992_v48 = vpop.f32.mrf.mxu3 }
 0x119   : > { %v525_v22 = vadd.f32 %v524_v47, %v2975_v44 }
 0x11a   : > { %v1232_v24 = vpop.f32.mrf.mxu0  ;;  %v1063_v15 = vadd.f32 %v982_v60, %v815_v45 }
 0x11c   : > { %v3082_v36 = vadd.f32 %v1230_v38, %v1063_v15  ;;  %v3090_v38 = vpack.c.bf16 %v874_v30, %v873_v29  ;;  %v875_v29 = vld [vmem:[%s2752_s25 + $0x113] sm:$0xff]  ;;  %v876_v30 = vld [vmem:[%s2752_s25 + $0x11b] sm:$0xff] }
 0x11f   : > { %v736_v39 = vpop.f32.mrf.mxu2 }
 0x120   : > { %v816_v19 = vadd.f32 %v736_v39, %v525_v22  ;;  %v527_v7 = vpop.f32.mrf.mxu1  ;;  %v994_v60 = vpop.f32.mrf.mxu3  ;;  %v1119_v22 = vld [vmem:[%s2752_s25 + $0xf4] sm:$0xff] }
 0x121   : > { %v528_v34 = vadd.f32 %v527_v7, %v2987_v62 }
 0x122   : > { %v1235_v46 = vpop.f32.mrf.mxu0  ;;  %v1064_v0 = vadd.f32 %v984_v13, %v816_v19 }
 0x123   : > { %2539 = vmatmul.msk.bf16.gmra.mxu1 %vm283_vm1, %v220_v17  ;;  %v221_v17 = vpack.c.bf16 %v199_v59, %v198_v5 }
 0x124   : > { %2558 = vmatmul.msk.bf16.gmra.mxu2 %vm283_vm1, %v3030_v32  ;;  %v3095_v44 = vadd.f32 %v1232_v24, %v1064_v0  ;;  %v1120_v24 = vld [vmem:[%s2752_s25 + $0xfc] sm:$0xff] }
 0x125   : > { %2596 = vmatmul.msk.bf16.gmra.mxu0 %vm283_vm1, %v1141_v21  ;;  %2579 = vmatmul.msk.bf16.gmra.mxu3 %vm283_vm1, %v3090_v38  ;;  %v1142_v21 = vpack.c.bf16 %v1120_v24, %v1119_v22  ;;  %v200_v22 = vld [vmem:[%s2752_s25 + $0xf1] sm:$0xff]  ;;  %v201_v24 = vld [vmem:[%s2752_s25 + $0xf9] sm:$0xff] }
 0x127   : > { %v739_v45 = vpop.f32.mrf.mxu2 }
 0x128   : > { %v817_v13 = vadd.f32 %v739_v45, %v528_v34  ;;  %v529_v47 = vpop.f32.mrf.mxu1  ;;  %v997_v50 = vpop.f32.mrf.mxu3 }
 0x129   : > { %v530_v39 = vadd.f32 %v529_v47, %v3001_v12 }
 0x12a   : > { %v1237_v15 = vpop.f32.mrf.mxu0  ;;  %v1065_v53 = vadd.f32 %v987_v14, %v817_v13 }
 0x12c   : > { %v3102_v32 = vadd.f32 %v1235_v46, %v1065_v53  ;;  %v3110_v46 = vpack.c.bf16 %v876_v30, %v875_v29  ;;  %v877_v29 = vld [vmem:[%s2752_s25 + $0x123] sm:$0xff]  ;;  %v878_v30 = vld [vmem:[%s2752_s25 + $0x12b] sm:$0xff] }
 0x12f   : > { %v741_v62 = vpop.f32.mrf.mxu2 }
 0x130   : > { %v818_v19 = vadd.f32 %v741_v62, %v530_v39  ;;  %v532_v7 = vpop.f32.mrf.mxu1  ;;  %v999_v14 = vpop.f32.mrf.mxu3  ;;  %v1121_v39 = vld [vmem:[%s2752_s25 + $0x104] sm:$0xff] }
 0x131   : > { %v533_v45 = vadd.f32 %v532_v7, %v2870_v49 }
 0x132   : > { %v1240_v0 = vpop.f32.mrf.mxu0  ;;  %v1066_v34 = vadd.f32 %v989_v52, %v818_v19 }
 0x133   : > { %2540 = vmatmul.msk.bf16.gmra.mxu1 %vm283_vm1, %v221_v17  ;;  %v222_v17 = vpack.c.bf16 %v201_v24, %v200_v22 }
 0x134   : > { %2559 = vmatmul.msk.bf16.gmra.mxu2 %vm283_vm1, %v3050_v31  ;;  %v3115_v12 = vadd.f32 %v1237_v15, %v1066_v34  ;;  %v1122_v15 = vld [vmem:[%s2752_s25 + $0x10c] sm:$0xff] }
 0x135   : > { %2597 = vmatmul.msk.bf16.gmra.mxu0 %vm283_vm1, %v1142_v21  ;;  %2580 = vmatmul.msk.bf16.gmra.mxu3 %vm283_vm1, %v3110_v46  ;;  %v1143_v21 = vpack.c.bf16 %v1122_v15, %v1121_v39  ;;  %v202_v39 = vld [vmem:[%s2752_s25 + $0x101] sm:$0xff]  ;;  %v203_v15 = vld [vmem:[%s2752_s25 + $0x109] sm:$0xff] }
 0x137   : > { %v744_v13 = vpop.f32.mrf.mxu2 }
 0x138   : > { %v819_v52 = vadd.f32 %v744_v13, %v533_v45  ;;  %v534_v47 = vpop.f32.mrf.mxu1  ;;  %v1002_v59 = vpop.f32.mrf.mxu3 }
 0x139   : > { %v535_v62 = vadd.f32 %v534_v47, %v2885_v56 }
 0x13a   : > { %v1242_v53 = vpop.f32.mrf.mxu0  ;;  %v1067_v5 = vadd.f32 %v992_v48, %v819_v52 }
 0x13c   : > { %v3122_v31 = vadd.f32 %v1240_v0, %v1067_v5  ;;  %v3130_v0 = vpack.c.bf16 %v878_v30, %v877_v29  ;;  %v879_v29 = vld [vmem:[%s2752_s25 + $0x133] sm:$0xff]  ;;  %v880_v30 = vld [vmem:[%s2752_s25 + $0x13b] sm:$0xff] }
 0x13f   : > { %v746_v49 = vpop.f32.mrf.mxu2 }
 0x140   : > { %v820_v19 = vadd.f32 %v746_v49, %v535_v62  ;;  %v537_v7 = vpop.f32.mrf.mxu1  ;;  %v1004_v48 = vpop.f32.mrf.mxu3  ;;  %v1123_v62 = vld [vmem:[%s2752_s25 + $0x114] sm:$0xff] }
 0x141   : > { %v538_v13 = vadd.f32 %v537_v7, %v2897_v1 }
 0x142   : > { %v1245_v34 = vpop.f32.mrf.mxu0  ;;  %v1068_v45 = vadd.f32 %v994_v60, %v820_v19 }
 0x143   : > { %2541 = vmatmul.msk.bf16.gmra.mxu1 %vm283_vm1, %v222_v17  ;;  %v223_v17 = vpack.c.bf16 %v203_v15, %v202_v39 }
 0x144   : > { %2560 = vmatmul.msk.bf16.gmra.mxu2 %vm283_vm1, %v3070_v37  ;;  %v3135_v56 = vadd.f32 %v1242_v53, %v1068_v45  ;;  %v1124_v53 = vld [vmem:[%s2752_s25 + $0x11c] sm:$0xff] }
 0x145   : > { %2598 = vmatmul.msk.bf16.gmra.mxu0 %vm283_vm1, %v1143_v21  ;;  %2581 = vmatmul.msk.bf16.gmra.mxu3 %vm283_vm1, %v3130_v0  ;;  %v1144_v21 = vpack.c.bf16 %v1124_v53, %v1123_v62  ;;  %v204_v62 = vld [vmem:[%s2752_s25 + $0x111] sm:$0xff]  ;;  %v205_v53 = vld [vmem:[%s2752_s25 + $0x119] sm:$0xff] }
 0x147   : > { %v749_v52 = vpop.f32.mrf.mxu2 }
 0x148   : > { %v821_v60 = vadd.f32 %v749_v52, %v538_v13  ;;  %v539_v47 = vpop.f32.mrf.mxu1  ;;  %v1007_v24 = vpop.f32.mrf.mxu3 }
 0x149   : > { %v540_v49 = vadd.f32 %v539_v47, %v2914_v9 }
 0x14a   : > { %v1247_v5 = vpop.f32.mrf.mxu0  ;;  %v1069_v22 = vadd.f32 %v997_v50, %v821_v60 }
 0x14c   : > { %v3142_v37 = vadd.f32 %v1245_v34, %v1069_v22  ;;  %v898_v34 = vpack.c.bf16 %v880_v30, %v879_v29  ;;  %v1837_v29 = vld [vmem:[%s2752_s25 + $0x36] sm:$0xff]  ;;  %v1838_v30 = vld [vmem:[%s2752_s25 + $0x3e] sm:$0xff] }
 0x14f   : > { %v751_v1 = vpop.f32.mrf.mxu2 }
 0x150   : > { %v822_v19 = vadd.f32 %v751_v1, %v540_v49  ;;  %v542_v7 = vpop.f32.mrf.mxu1  ;;  %v1009_v50 = vpop.f32.mrf.mxu3  ;;  %v1126_v1 = vld [vmem:[%s2752_s25 + $0x12c] sm:$0xff] }
 0x151   : > { %v543_v52 = vadd.f32 %v542_v7, %v2926_v18  ;;  %v224_v18 = vpack.c.bf16 %v205_v53, %v204_v62  ;;  %v206_v53 = vld [vmem:[%s2752_s25 + $0x121] sm:$0xff] }
 0x152   : > { %v1250_v45 = vpop.f32.mrf.mxu0  ;;  %v1070_v13 = vadd.f32 %v999_v14, %v822_v19 }
 0x153   : > { %2542 = vmatmul.msk.bf16.gmra.mxu1 %vm283_vm1, %v223_v17 }
 0x154   : > { %2561 = vmatmul.msk.bf16.gmra.mxu2 %vm283_vm1, %v3090_v38  ;;  %v3153_v9 = vadd.f32 %v1247_v5, %v1070_v13  ;;  %v1125_v38 = vld [vmem:[%s2752_s25 + $0x124] sm:$0xff] }
 0x155   : > { %2599 = vmatmul.msk.bf16.gmra.mxu0 %vm283_vm1, %v1144_v21  ;;  %2582 = vmatmul.msk.bf16.gmra.mxu3 %vm283_vm1, %v898_v34  ;;  %v1145_v21 = vpack.c.bf16 %v1126_v1, %v1125_v38  ;;  %v207_v38 = vld [vmem:[%s2752_s25 + $0x129] sm:$0xff] }
 0x157   : > { %v754_v60 = vpop.f32.mrf.mxu2 }
 0x158   : > { %v823_v14 = vadd.f32 %v754_v60, %v543_v52  ;;  %v544_v47 = vpop.f32.mrf.mxu1  ;;  %v1012_v15 = vpop.f32.mrf.mxu3 }
 0x159   : > { %v545_v5 = vadd.f32 %v544_v47, %v2943_v26 }
 0x15a   : > { %v1252_v22 = vpop.f32.mrf.mxu0  ;;  %v1071_v39 = vadd.f32 %v1002_v59, %v823_v14 }
 0x15c   : > { %v3159_v49 = vadd.f32 %v1250_v45, %v1071_v39  ;;  %v1873_v45 = vpack.c.bf16 %v1838_v30, %v1837_v29  ;;  %v1840_v29 = vld [vmem:[%s2752_s25 + $0x4e] sm:$0xff] }
 0x15f   : > { %v756_v17 = vpop.f32.mrf.mxu2 }
 0x160   : > { %v824_v19 = vadd.f32 %v756_v17, %v545_v5  ;;  %v547_v7 = vpop.f32.mrf.mxu1  ;;  %v1014_v59 = vpop.f32.mrf.mxu3  ;;  %v1128_v5 = vld [vmem:[%s2752_s25 + $0x13c] sm:$0xff] }
 0x161   : > { %v548_v52 = vadd.f32 %v547_v7, %v2955_v35  ;;  %v225_v35 = vpack.c.bf16 %v207_v38, %v206_v53  ;;  %v1341_v53 = vld [vmem:[%s2752_s25 + $0x25] sm:$0xff]  ;;  %v1589_v38 = vld [vmem:[%s2752_s25 + $0x35] sm:$0xff] }
 0x162   : > { %v1255_v13 = vpop.f32.mrf.mxu0  ;;  %v1072_v34 = vadd.f32 %v1004_v48, %v824_v19 }
 0x163   : > { %2543 = vmatmul.msk.bf16.gmra.mxu1 %vm283_vm1, %v224_v18 }
 0x164   : > { %2562 = vmatmul.msk.bf16.gmra.mxu2 %vm283_vm1, %v3110_v46  ;;  %v3170_v26 = vadd.f32 %v1252_v22, %v1072_v34  ;;  %v1127_v46 = vld [vmem:[%s2752_s25 + $0x134] sm:$0xff] }
 0x165   : > { %2600 = vmatmul.msk.bf16.gmra.mxu0 %vm283_vm1, %v1145_v21  ;;  %2641 = vmatmul.msk.bf16.vlgmr.msra.gmra.mxu3 %vm283_vm1, %v1873_v45  ;;  %v1146_v7 = vpack.c.bf16 %v1128_v5, %v1127_v46  ;;  %v1839_v21 = vld [vmem:[%s2752_s25 + $0x46] sm:$0xff]  ;;  %v1590_v5 = vld [vmem:[%s2752_s25 + $0x3d] sm:$0xff] }
 0x167   : > { %v759_v60 = vpop.f32.mrf.mxu2 }
 0x168   : > { %v825_v48 = vadd.f32 %v759_v60, %v548_v52  ;;  %v549_v14 = vpop.f32.mrf.mxu1  ;;  %v1017_v62 = vpop.f32.mrf.mxu3 }
 0x169   : > { %v550_v22 = vadd.f32 %v549_v14, %v2973_v43 }
 0x16a   : > { %v1257_v47 = vpop.f32.mrf.mxu0  ;;  %v1073_v39 = vadd.f32 %v1007_v24, %v825_v48 }
 0x16c   : > { %v3176_v1 = vadd.f32 %v1255_v13, %v1073_v39  ;;  %v1874_v13 = vpack.c.bf16 %v1840_v29, %v1839_v21  ;;  %v1842_v29 = vld [vmem:[%s2752_s25 + $0x5e] sm:$0xff] }
 0x16f   : > { %v761_v17 = vpop.f32.mrf.mxu2 }
 0x170   : > { %v826_v18 = vadd.f32 %v761_v17, %v550_v22  ;;  %v552_v19 = vpop.f32.mrf.mxu1  ;;  %v1019_v24 = vpop.f32.mrf.mxu3  ;;  %v2086_v22 = vld [vmem:[%s2752_s25 + $0x3f] sm:$0xff] }
 0x171   : > { %v553_v45 = vadd.f32 %v552_v19, %v2983_v54 }
 0x172   : > { %v1260_v30 = vpop.f32.mrf.mxu0  ;;  %v1074_v34 = vadd.f32 %v1009_v50, %v826_v18 }
 0x173   : > { %2544 = vmatmul.msk.bf16.gmra.mxu1 %vm283_vm1, %v225_v35 }
 0x174   : > { %2563 = vmatmul.msk.bf16.gmra.mxu2 %vm283_vm1, %v3130_v0  ;;  %v3187_v43 = vadd.f32 %v1257_v47, %v1074_v34  ;;  %v1342_v0 = vld [vmem:[%s2752_s25 + $0x2d] sm:$0xff]  ;;  %v2085_v47 = vld [vmem:[%s2752_s25 + $0x37] sm:$0xff] }
 0x175   : > { %2601 = vmatmul.msk.bf16.gmra.mxu0 %vm283_vm1, %v1146_v7  ;;  %2642 = vmatmul.msk.bf16.gmra.mxu3 %vm283_vm1, %v1874_v13  ;;  %v1377_v35 = vpack.c.bf16 %v1342_v0, %v1341_v53  ;;  %v1625_v7 = vpack.c.bf16 %v1590_v5, %v1589_v38  ;;  %v2121_v21 = vpack.c.bf16 %v2086_v22, %v2085_v47  ;;  %v1591_v38 = vld [vmem:[%s2752_s25 + $0x45] sm:$0xff]  ;;  %v1592_v47 = vld [vmem:[%s2752_s25 + $0x4d] sm:$0xff] }
 0x176   : > { %v2087_v22 = vld [vmem:[%s2752_s25 + $0x47] sm:$0xff] }
 0x177   : > { %v764_v52 = vpop.f32.mrf.mxu2 }
 0x178   : > { %v827_v50 = vadd.f32 %v764_v52, %v553_v45  ;;  %v554_v60 = vpop.f32.mrf.mxu1  ;;  %v1022_v39 = vpop.f32.mrf.mxu3 }
 0x179   : > { %v555_v54 = vadd.f32 %v554_v60, %v2999_v4 }
 0x17a   : > { %v1262_v48 = vpop.f32.mrf.mxu0  ;;  %v1075_v14 = vadd.f32 %v1012_v15, %v827_v50  ;;  %v1841_v15 = vld [vmem:[%s2752_s25 + $0x56] sm:$0xff] }
 0x17c   : > { %v3194_v46 = vadd.f32 %v1260_v30, %v1075_v14  ;;  %v1875_v30 = vpack.c.bf16 %v1842_v29, %v1841_v15  ;;  %v1844_v15 = vld [vmem:[%s2752_s25 + $0x6e] sm:$0xff] }
 0x17f   : > { %v766_v17 = vpop.f32.mrf.mxu2 }
 0x180   : > { %v828_v18 = vadd.f32 %v766_v17, %v555_v54  ;;  %v557_v19 = vpop.f32.mrf.mxu1  ;;  %v1024_v45 = vpop.f32.mrf.mxu3  ;;  %v2088_v54 = vld [vmem:[%s2752_s25 + $0x4f] sm:$0xff] }
 0x181   : > { %v558_v52 = vadd.f32 %v557_v19, %v2881_v55  ;;  %v2122_v19 = vpack.c.bf16 %v2088_v54, %v2087_v22  ;;  %v2089_v22 = vld [vmem:[%s2752_s25 + $0x57] sm:$0xff]  ;;  %v2090_v54 = vld [vmem:[%s2752_s25 + $0x5f] sm:$0xff] }
 0x182   : > { %v1265_v34 = vpop.f32.mrf.mxu0  ;;  %v1076_v13 = vadd.f32 %v1014_v59, %v828_v18  ;;  %v1626_v18 = vpack.c.bf16 %v1592_v47, %v1591_v38  ;;  %v1594_v47 = vld [vmem:[%s2752_s25 + $0x5d] sm:$0xff] }
 0x183   : > { %2603 = vmatmul.msk.bf16.vlgmr.msra.gmra.mxu1 %vm283_vm1, %v1377_v35 }
 0x184   : > { %2622 = vmatmul.msk.bf16.vlgmr.msra.gmra.mxu2 %vm283_vm1, %v1625_v7  ;;  %v3205_v4 = vadd.f32 %v1262_v48, %v1076_v13 }
 0x185   : > { %2660 = vmatmul.msk.bf16.vlgmr.msra.gmra.mxu0 %vm283_vm1, %v2121_v21  ;;  %2643 = vmatmul.msk.bf16.gmra.mxu3 %vm283_vm1, %v1875_v30  ;;  %v1843_v21 = vld [vmem:[%s2752_s25 + $0x66] sm:$0xff] }
 0x187   : > { %v769_v50 = vpop.f32.mrf.mxu2 }
 0x188   : > { %v829_v60 = vadd.f32 %v769_v50, %v558_v52  ;;  %v559_v59 = vpop.f32.mrf.mxu1  ;;  %v1027_v0 = vpop.f32.mrf.mxu3 }
 0x189   : > { %v560_v48 = vadd.f32 %v559_v59, %v2895_v63 }
 0x18a   : > { %v1267_v14 = vpop.f32.mrf.mxu0  ;;  %v1077_v53 = vadd.f32 %v1017_v62, %v829_v60 }
 0x18c   : > { %v3210_v5 = vadd.f32 %v1265_v34, %v1077_v53  ;;  %v1876_v34 = vpack.c.bf16 %v1844_v15, %v1843_v21  ;;  %v1593_v53 = vld [vmem:[%s2752_s25 + $0x55] sm:$0xff]  ;;  %v1846_v21 = vld [vmem:[%s2752_s25 + $0x7e] sm:$0xff] }
 0x18f   : > { %v771_v17 = vpop.f32.mrf.mxu2 }
 0x190   : > { %v830_v55 = vadd.f32 %v771_v17, %v560_v48  ;;  %v562_v35 = vpop.f32.mrf.mxu1  ;;  %v1029_v62 = vpop.f32.mrf.mxu3 }
 0x191   : > { %v563_v30 = vadd.f32 %v562_v35, %v2910_v8  ;;  %v2123_v35 = vpack.c.bf16 %v2090_v54, %v2089_v22  ;;  %v2091_v22 = vld [vmem:[%s2752_s25 + $0x67] sm:$0xff]  ;;  %v2092_v54 = vld [vmem:[%s2752_s25 + $0x6f] sm:$0xff] }
 0x192   : > { %v1270_v29 = vpop.f32.mrf.mxu0  ;;  %v1078_v13 = vadd.f32 %v1019_v24, %v830_v55  ;;  %v1627_v55 = vpack.c.bf16 %v1594_v47, %v1593_v53  ;;  %v1596_v47 = vld [vmem:[%s2752_s25 + $0x6d] sm:$0xff] }
 0x193   : > { %2604 = vmatmul.msk.bf16.gmra.mxu1 %vm283_vm1, %v1625_v7 }
 0x194   : > { %2623 = vmatmul.msk.bf16.gmra.mxu2 %vm283_vm1, %v1626_v18  ;;  %v3221_v63 = vadd.f32 %v1267_v14, %v1078_v13 }
 0x195   : > { %2661 = vmatmul.msk.bf16.gmra.mxu0 %vm283_vm1, %v2122_v19  ;;  %2644 = vmatmul.msk.bf16.gmra.mxu3 %vm283_vm1, %v1876_v34  ;;  %v1845_v19 = vld [vmem:[%s2752_s25 + $0x76] sm:$0xff] }
 0x197   : > { %v774_v52 = vpop.f32.mrf.mxu2 }
 0x198   : > { %v831_v50 = vadd.f32 %v774_v52, %v563_v30  ;;  %v564_v24 = vpop.f32.mrf.mxu1  ;;  %v1032_v59 = vpop.f32.mrf.mxu3 }
 0x199   : > { %v565_v14 = vadd.f32 %v564_v24, %v2924_v16 }
 0x19a   : > { %v1272_v60 = vpop.f32.mrf.mxu0  ;;  %v1079_v7 = vadd.f32 %v1022_v39, %v831_v50 }
 0x19c   : > { %v3226_v38 = vadd.f32 %v1270_v29, %v1079_v7  ;;  %v1877_v29 = vpack.c.bf16 %v1846_v21, %v1845_v19  ;;  %v1595_v7 = vld [vmem:[%s2752_s25 + $0x65] sm:$0xff]  ;;  %v1848_v19 = vld [vmem:[%s2752_s25 + $0x8e] sm:$0xff] }
 0x19f   : > { %v776_v48 = vpop.f32.mrf.mxu2 }
 0x1a0   : > { %v832_v8 = vadd.f32 %v776_v48, %v565_v14  ;;  %v567_v17 = vpop.f32.mrf.mxu1  ;;  %v1034_v39 = vpop.f32.mrf.mxu3 }
 0x1a1   : > { %v568_v34 = vadd.f32 %v567_v17, %v2939_v25  ;;  %v2124_v17 = vpack.c.bf16 %v2092_v54, %v2091_v22  ;;  %v2093_v22 = vld [vmem:[%s2752_s25 + $0x77] sm:$0xff]  ;;  %v2094_v54 = vld [vmem:[%s2752_s25 + $0x7f] sm:$0xff] }
 0x1a2   : > { %v1275_v15 = vpop.f32.mrf.mxu0  ;;  %v1080_v13 = vadd.f32 %v1024_v45, %v832_v8  ;;  %v1628_v8 = vpack.c.bf16 %v1596_v47, %v1595_v7  ;;  %v1598_v47 = vld [vmem:[%s2752_s25 + $0x7d] sm:$0xff] }
 0x1a3   : > { %2605 = vmatmul.msk.bf16.gmra.mxu1 %vm283_vm1, %v1626_v18 }
 0x1a4   : > { %2624 = vmatmul.msk.bf16.gmra.mxu2 %vm283_vm1, %v1627_v55  ;;  %v3237_v16 = vadd.f32 %v1272_v60, %v1080_v13 }
 0x1a5   : > { %2662 = vmatmul.msk.bf16.gmra.mxu0 %vm283_vm1, %v2123_v35  ;;  %2645 = vmatmul.msk.bf16.gmra.mxu3 %vm283_vm1, %v1877_v29  ;;  %v1847_v35 = vld [vmem:[%s2752_s25 + $0x86] sm:$0xff] }
 0x1a7   : > { %v779_v30 = vpop.f32.mrf.mxu2 }
 0x1a8   : > { %v833_v52 = vadd.f32 %v779_v30, %v568_v34  ;;  %v569_v45 = vpop.f32.mrf.mxu1  ;;  %v1037_v24 = vpop.f32.mrf.mxu3 }
 0x1a9   : > { %v570_v60 = vadd.f32 %v569_v45, %v2953_v33 }
 0x1aa   : > { %v1277_v50 = vpop.f32.mrf.mxu0  ;;  %v1081_v18 = vadd.f32 %v1027_v0, %v833_v52 }
 0x1ac   : > { %v3242_v53 = vadd.f32 %v1275_v15, %v1081_v18  ;;  %v1878_v15 = vpack.c.bf16 %v1848_v19, %v1847_v35  ;;  %v1597_v18 = vld [vmem:[%s2752_s25 + $0x75] sm:$0xff]  ;;  %v1850_v35 = vld [vmem:[%s2752_s25 + $0x9e] sm:$0xff] }
 0x1af   : > { %v781_v14 = vpop.f32.mrf.mxu2 }
 0x1b0   : > { %v834_v25 = vadd.f32 %v781_v14, %v570_v60  ;;  %v572_v48 = vpop.f32.mrf.mxu1  ;;  %v1039_v0 = vpop.f32.mrf.mxu3 }
 0x1b1   : > { %v573_v29 = vadd.f32 %v572_v48, %v2969_v42  ;;  %v2125_v48 = vpack.c.bf16 %v2094_v54, %v2093_v22  ;;  %v2095_v22 = vld [vmem:[%s2752_s25 + $0x87] sm:$0xff]  ;;  %v2096_v54 = vld [vmem:[%s2752_s25 + $0x8f] sm:$0xff] }
 0x1b2   : > { %v1280_v21 = vpop.f32.mrf.mxu0  ;;  %v1082_v13 = vadd.f32 %v1029_v62, %v834_v25  ;;  %v1629_v25 = vpack.c.bf16 %v1598_v47, %v1597_v18  ;;  %v1600_v47 = vld [vmem:[%s2752_s25 + $0x8d] sm:$0xff] }
 0x1b3   : > { %2606 = vmatmul.msk.bf16.gmra.mxu1 %vm283_vm1, %v1627_v55 }
 0x1b4   : > { %2625 = vmatmul.msk.bf16.gmra.mxu2 %vm283_vm1, %v1628_v8  ;;  %v3253_v33 = vadd.f32 %v1277_v50, %v1082_v13 }
 0x1b5   : > { %2663 = vmatmul.msk.bf16.gmra.mxu0 %vm283_vm1, %v2124_v17  ;;  %2646 = vmatmul.msk.bf16.gmra.mxu3 %vm283_vm1, %v1878_v15  ;;  %v1849_v17 = vld [vmem:[%s2752_s25 + $0x96] sm:$0xff] }
 0x1b7   : > { %v784_v34 = vpop.f32.mrf.mxu2 }
 0x1b8   : > { %v835_v30 = vadd.f32 %v784_v34, %v573_v29  ;;  %v574_v62 = vpop.f32.mrf.mxu1  ;;  %v1042_v45 = vpop.f32.mrf.mxu3 }
 0x1b9   : > { %v575_v50 = vadd.f32 %v574_v62, %v2981_v51 }
 0x1ba   : > { %v1282_v52 = vpop.f32.mrf.mxu0  ;;  %v1083_v55 = vadd.f32 %v1032_v59, %v835_v30 }
 0x1bc   : > { %v3258_v7 = vadd.f32 %v1280_v21, %v1083_v55  ;;  %v1879_v21 = vpack.c.bf16 %v1850_v35, %v1849_v17  ;;  %v1599_v55 = vld [vmem:[%s2752_s25 + $0x85] sm:$0xff]  ;;  %v1852_v17 = vld [vmem:[%s2752_s25 + $0xae] sm:$0xff] }
 0x1bf   : > { %v786_v60 = vpop.f32.mrf.mxu2 }
 0x1c0   : > { %v836_v42 = vadd.f32 %v786_v60, %v575_v50  ;;  %v577_v14 = vpop.f32.mrf.mxu1  ;;  %v1044_v59 = vpop.f32.mrf.mxu3 }
 0x1c1   : > { %v578_v15 = vadd.f32 %v577_v14, %v2995_v3  ;;  %v2126_v14 = vpack.c.bf16 %v2096_v54, %v2095_v22  ;;  %v2097_v22 = vld [vmem:[%s2752_s25 + $0x97] sm:$0xff]  ;;  %v2098_v54 = vld [vmem:[%s2752_s25 + $0x9f] sm:$0xff] }
 0x1c2   : > { %v1285_v19 = vpop.f32.mrf.mxu0  ;;  %v1084_v13 = vadd.f32 %v1034_v39, %v836_v42  ;;  %v1630_v42 = vpack.c.bf16 %v1600_v47, %v1599_v55  ;;  %v1602_v47 = vld [vmem:[%s2752_s25 + $0x9d] sm:$0xff] }
 0x1c3   : > { %2607 = vmatmul.msk.bf16.gmra.mxu1 %vm283_vm1, %v1628_v8 }
 0x1c4   : > { %2626 = vmatmul.msk.bf16.gmra.mxu2 %vm283_vm1, %v1629_v25  ;;  %v3269_v51 = vadd.f32 %v1282_v52, %v1084_v13 }
 0x1c5   : > { %2664 = vmatmul.msk.bf16.gmra.mxu0 %vm283_vm1, %v2125_v48  ;;  %2647 = vmatmul.msk.bf16.gmra.mxu3 %vm283_vm1, %v1879_v21  ;;  %v1851_v48 = vld [vmem:[%s2752_s25 + $0xa6] sm:$0xff] }
 0x1c7   : > { %v789_v29 = vpop.f32.mrf.mxu2 }
 0x1c8   : > { %v837_v34 = vadd.f32 %v789_v29, %v578_v15  ;;  %v579_v39 = vpop.f32.mrf.mxu1  ;;  %v1047_v62 = vpop.f32.mrf.mxu3 }
 0x1c9   : > { %v580_v52 = vadd.f32 %v579_v39, %v3007_v20 }
 0x1ca   : > { %v1287_v30 = vpop.f32.mrf.mxu0  ;;  %v1085_v8 = vadd.f32 %v1037_v24, %v837_v34 }
 0x1cc   : > { %v3274_v18 = vadd.f32 %v1285_v19, %v1085_v8  ;;  %v1880_v19 = vpack.c.bf16 %v1852_v17, %v1851_v48  ;;  %v1601_v8 = vld [vmem:[%s2752_s25 + $0x95] sm:$0xff]  ;;  %v1854_v48 = vld [vmem:[%s2752_s25 + $0xbe] sm:$0xff] }
 0x1cf   : > { %v791_v50 = vpop.f32.mrf.mxu2 }
 0x1d0   : > { %v838_v3 = vadd.f32 %v791_v50, %v580_v52  ;;  %v582_v60 = vpop.f32.mrf.mxu1  ;;  %v1049_v24 = vpop.f32.mrf.mxu3 }
 0x1d1   : > { %v583_v21 = vadd.f32 %v582_v60, %v2889_v58  ;;  %v2127_v60 = vpack.c.bf16 %v2098_v54, %v2097_v22  ;;  %v2099_v22 = vld [vmem:[%s2752_s25 + $0xa7] sm:$0xff]  ;;  %v2100_v54 = vld [vmem:[%s2752_s25 + $0xaf] sm:$0xff] }
 0x1d2   : > { %v1290_v35 = vpop.f32.mrf.mxu0  ;;  %v1086_v13 = vadd.f32 %v1039_v0, %v838_v3  ;;  %v1631_v3 = vpack.c.bf16 %v1602_v47, %v1601_v8  ;;  %v1604_v47 = vld [vmem:[%s2752_s25 + $0xad] sm:$0xff] }
 0x1d3   : > { %2608 = vmatmul.msk.bf16.gmra.mxu1 %vm283_vm1, %v1629_v25 }
 0x1d4   : > { %2627 = vmatmul.msk.bf16.gmra.mxu2 %vm283_vm1, %v1630_v42  ;;  %v3285_v20 = vadd.f32 %v1287_v30, %v1086_v13 }
 0x1d5   : > { %2665 = vmatmul.msk.bf16.gmra.mxu0 %vm283_vm1, %v2126_v14  ;;  %2648 = vmatmul.msk.bf16.gmra.mxu3 %vm283_vm1, %v1880_v19  ;;  %v1853_v14 = vld [vmem:[%s2752_s25 + $0xb6] sm:$0xff] }
 0x1d7   : > { %v794_v15 = vpop.f32.mrf.mxu2 }
 0x1d8   : > { %v839_v29 = vadd.f32 %v794_v15, %v583_v21  ;;  %v584_v0 = vpop.f32.mrf.mxu1  ;;  %v1052_v39 = vpop.f32.mrf.mxu3 }
 0x1d9   : > { %v585_v30 = vadd.f32 %v584_v0, %v2903_v6 }
 0x1da   : > { %v1292_v34 = vpop.f32.mrf.mxu0  ;;  %v1087_v25 = vadd.f32 %v1042_v45, %v839_v29 }
 0x1dc   : > { %v3290_v55 = vadd.f32 %v1290_v35, %v1087_v25  ;;  %v1881_v35 = vpack.c.bf16 %v1854_v48, %v1853_v14  ;;  %v1603_v25 = vld [vmem:[%s2752_s25 + $0xa5] sm:$0xff]  ;;  %v1856_v14 = vld [vmem:[%s2752_s25 + $0xce] sm:$0xff] }
 0x1df   : > { %v796_v52 = vpop.f32.mrf.mxu2 }
 0x1e0   : > { %v840_v58 = vadd.f32 %v796_v52, %v585_v30  ;;  %v587_v50 = vpop.f32.mrf.mxu1  ;;  %v1054_v45 = vpop.f32.mrf.mxu3 }
 0x1e1   : > { %v588_v19 = vadd.f32 %v587_v50, %v2918_v11  ;;  %v2128_v50 = vpack.c.bf16 %v2100_v54, %v2099_v22  ;;  %v2101_v22 = vld [vmem:[%s2752_s25 + $0xb7] sm:$0xff] }
 0x1e2   : > { %v1295_v17 = vpop.f32.mrf.mxu0  ;;  %v1088_v13 = vadd.f32 %v1044_v59, %v840_v58  ;;  %v1632_v58 = vpack.c.bf16 %v1604_v47, %v1603_v25  ;;  %v1606_v47 = vld [vmem:[%s2752_s25 + $0xbd] sm:$0xff] }
 0x1e3   : > { %2609 = vmatmul.msk.bf16.gmra.mxu1 %vm283_vm1, %v1630_v42 }
 0x1e4   : > { %2628 = vmatmul.msk.bf16.gmra.mxu2 %vm283_vm1, %v1631_v3  ;;  %v3301_v6 = vadd.f32 %v1292_v34, %v1088_v13 }
 0x1e5   : > { %2666 = vmatmul.msk.bf16.gmra.mxu0 %vm283_vm1, %v2127_v60  ;;  %2649 = vmatmul.msk.bf16.gmra.mxu3 %vm283_vm1, %v1881_v35  ;;  %v1855_v60 = vld [vmem:[%s2752_s25 + $0xc6] sm:$0xff] }
 0x1e7   : > { %v799_v21 = vpop.f32.mrf.mxu2 }
 0x1e8   : > { %v841_v15 = vadd.f32 %v799_v21, %v588_v19  ;;  %v589_v59 = vpop.f32.mrf.mxu1  ;;  %v1959_v0 = vpop.f32.mrf.mxu3 }
 0x1e9   : > { %v590_v34 = vadd.f32 %v589_v59, %v2932_v23 }
 0x1ea   : > { %v1297_v29 = vpop.f32.mrf.mxu0  ;;  %v1089_v42 = vadd.f32 %v1047_v62, %v841_v15 }
 0x1ec   : > { %v3306_v8 = vadd.f32 %v1295_v17, %v1089_v42  ;;  %v1882_v17 = vpack.c.bf16 %v1856_v14, %v1855_v60  ;;  %v1605_v42 = vld [vmem:[%s2752_s25 + $0xb5] sm:$0xff]  ;;  %v1858_v60 = vld [vmem:[%s2752_s25 + $0xde] sm:$0xff] }
 0x1ef   : > { %v801_v30 = vpop.f32.mrf.mxu2 }
 0x1f0   : > { %v842_v11 = vadd.f32 %v801_v30, %v590_v34  ;;  %v592_v52 = vpop.f32.mrf.mxu1  ;;  %v3314_v62 = vpop.f32.mrf.mxu3 }
 0x1f1   : > { %v593_v35 = vadd.f32 %v592_v52, %v2947_v28 }
 0x1f2   : > { %v1300_v48 = vpop.f32.mrf.mxu0  ;;  %v1090_v13 = vadd.f32 %v1049_v24, %v842_v11  ;;  %v1633_v11 = vpack.c.bf16 %v1606_v47, %v1605_v42  ;;  %v1607_v42 = vld [vmem:[%s2752_s25 + $0xc5] sm:$0xff] }
 0x1f3   : > { %2610 = vmatmul.msk.bf16.gmra.mxu1 %vm283_vm1, %v1631_v3  ;;  %v2103_v47 = vld [vmem:[%s2752_s25 + $0xc7] sm:$0xff] }
 0x1f4   : > { %2629 = vmatmul.msk.bf16.gmra.mxu2 %vm283_vm1, %v1632_v58  ;;  %v3319_v23 = vadd.f32 %v1297_v29, %v1090_v13  ;;  %v2102_v29 = vld [vmem:[%s2752_s25 + $0xbf] sm:$0xff] }
 0x1f5   : > { %2667 = vmatmul.msk.bf16.gmra.mxu0 %vm283_vm1, %v2128_v50  ;;  %2650 = vmatmul.msk.bf16.gmra.mxu3 %vm283_vm1, %v1882_v17  ;;  %v2129_v52 = vpack.c.bf16 %v2102_v29, %v2101_v22  ;;  %v1857_v50 = vld [vmem:[%s2752_s25 + $0xd6] sm:$0xff] }
 0x1f6   : > { %v2104_v22 = vld [vmem:[%s2752_s25 + $0xcf] sm:$0xff] }
 0x1f7   : > { %v804_v19 = vpop.f32.mrf.mxu2 }
 0x1f8   : > { %v843_v24 = vadd.f32 %v804_v19, %v593_v35  ;;  %v594_v21 = vpop.f32.mrf.mxu1  ;;  %v3323_v59 = vpop.f32.mrf.mxu3 }
 0x1f9   : > { %v595_v54 = vadd.f32 %v594_v21, %v2961_v40  ;;  %v3346_v21 = vld [vmem:[%s3631_s2] ss:$0 sm:$0xff] }
 0x1fa   : > { %v1302_v15 = vpop.f32.mrf.mxu0  ;;  %v1091_v3 = vadd.f32 %v1052_v39, %v843_v24 }
 0x1fc   : > { %v3326_v25 = vadd.f32 %v1300_v48, %v1091_v3  ;;  %v1883_v48 = vpack.c.bf16 %v1858_v60, %v1857_v50  ;;  %v2130_v50 = vpack.c.bf16 %v2104_v22, %v2103_v47  ;;  %v1859_v60 = vld [vmem:[%s2752_s25 + $0xe6] sm:$0xff]  ;;  %v1609_v22 = vld [vmem:[%s2752_s25 + $0xd5] sm:$0xff] }
 0x1ff   : > { %v806_v28 = vpop.f32.mrf.mxu2 }
 0x200   : > { %v844_v34 = vadd.f32 %v806_v28, %v595_v54  ;;  %v1463_v30 = vpop.f32.mrf.mxu1  ;;  %v3334_v39 = vpop.f32.mrf.mxu3 }
 0x201   : > { %v1553_v17 = vadd.f32 %v1463_v30, %v3022_v61  ;;  %v1608_v61 = vld [vmem:[%s2752_s25 + $0xcd] sm:$0xff] }
 0x202   : > { %v2207_v14 = vpop.f32.mrf.mxu0  ;;  %v1092_v13 = vadd.f32 %v1054_v45, %v844_v34 }
 0x203   : > { %2611 = vmatmul.msk.bf16.gmra.mxu1 %vm283_vm1, %v1632_v58 }
 0x204   : > { %2630 = vmatmul.msk.bf16.gmra.mxu2 %vm283_vm1, %v1633_v11  ;;  %v3339_v40 = vadd.f32 %v1302_v15, %v1092_v13 }
 0x205   : > { %2668 = vmatmul.msk.bf16.gmra.mxu0 %vm283_vm1, %v2129_v52  ;;  %2651 = vmatmul.msk.bf16.gmra.mxu3 %vm283_vm1, %v1883_v48  ;;  %v1634_v52 = vpack.c.bf16 %v1608_v61, %v1607_v42 }
 0x207   : > { %v1711_v35 = vpop.f32.mrf.mxu2 }
 0x208   : > { %v1801_v45 = vadd.f32 %v1711_v35, %v1553_v17  ;;  %v1465_v19 = vpop.f32.mrf.mxu1  ;;  %v3348_v3 = vpop.f32.mrf.mxu3 }
 0x209   : > { %v1554_v54 = vadd.f32 %v1465_v19, %v3035_v57 }
 0x20a   : > { %v2209_v24 = vpop.f32.mrf.mxu0  ;;  %v2049_v58 = vadd.f32 %v1959_v0, %v1801_v45 }
 0x20c   : > { %v2297_v15 = vadd.f32 %v2207_v14, %v2049_v58  ;;  %v1860_v14 = vld [vmem:[%s2752_s25 + $0xee] sm:$0xff] }
 0x20d   : > { %v1884_v17 = vpack.c.bf16 %v1860_v14, %v1859_v60 }
 0x20e   : > { %v2337_v29 = vadd.f32 %v3346_v21, %v2297_v15 }
 0x20f   : > { %v1713_v0 = vpop.f32.mrf.mxu2 }
 0x210   : > { %v2373_v28 = vmax.f32 %v2337_v29, 0.0  ;;  %v1802_v34 = vadd.f32 %v1713_v0, %v1554_v54  ;;  %v1468_v30 = vpop.f32.mrf.mxu1  ;;  %v3367_v48 = vpop.f32.mrf.mxu3  ;;  %v1610_v29 = vld [vmem:[%s2752_s25 + $0xdd] sm:$0xff] }
 0x211   : > { %v1555_v19 = vadd.f32 %v1468_v30, %v3042_v41  ;;  %v2105_v41 = vld [vmem:[%s2752_s25 + $0xd7] sm:$0xff]  ;;  %v2106_v54 = vld [vmem:[%s2752_s25 + $0xdf] sm:$0xff]  ;;  %v1635_v14 = vpack.c.bf16 %v1610_v29, %v1609_v22 }
 0x212   : > { %v2212_v13 = vpop.f32.mrf.mxu0  ;;  %2410 = vst.msk [vmem:[%s3360_s16] sm:$0xff] %vm2409_vm2, %v2373_v28  ;;  %v2050_v57 = vadd.f32 %v3314_v62, %v1802_v34  ;;  %v1611_v29 = vld [vmem:[%s2752_s25 + $0xe5] sm:$0xff] }
 0x213   : > { %2612 = vmatmul.msk.bf16.gmra.mxu1 %vm283_vm1, %v1633_v11 }
 0x214   : > { %v2298_v35 = vadd.f32 %v2209_v24, %v2050_v57  ;;  %2631 = vmatmul.msk.bf16.gmra.mxu2 %vm283_vm1, %v1634_v52  ;;  %v2131_v57 = vpack.c.bf16 %v2106_v54, %v2105_v41  ;;  %v1612_v41 = vld [vmem:[%s2752_s25 + $0xed] sm:$0xff] }
 0x215   : > { %2669 = vmatmul.msk.bf16.gmra.mxu0 %vm283_vm1, %v2130_v50  ;;  %2652 = vmatmul.msk.bf16.gmra.mxu3 %vm283_vm1, %v1884_v17  ;;  %v1862_v17 = vld [vmem:[%s2752_s25 + $0xfe] sm:$0xff]  ;;  %v2108_v54 = vld [vmem:[%s2752_s25 + $0xef] sm:$0xff] }
 0x216   : > { %v2338_v45 = vadd.f32 %v3346_v21, %v2298_v35 }
 0x217   : > { %v1716_v58 = vpop.f32.mrf.mxu2 }
 0x218   : > { %v2374_v62 = vmax.f32 %v2338_v45, 0.0  ;;  %v1803_v15 = vadd.f32 %v1716_v58, %v1555_v19  ;;  %v1470_v11 = vpop.f32.mrf.mxu1  ;;  %v3378_v61 = vpop.f32.mrf.mxu3 }
 0x219   : > { %v1556_v28 = vadd.f32 %v1470_v11, %v3055_v10 }
 0x21a   : > { %v2214_v42 = vpop.f32.mrf.mxu0  ;;  %2411 = vst.msk [vmem:[%s3360_s16 + $0x8] sm:$0xff] %vm2409_vm2, %v2374_v62  ;;  %v2051_v24 = vadd.f32 %v3323_v59, %v1803_v15  ;;  %v1861_v59 = vld [vmem:[%s2752_s25 + $0xf6] sm:$0xff] }
 0x21b   : > { %v1885_v19 = vpack.c.bf16 %v1862_v17, %v1861_v59  ;;  %v1864_v17 = vld [vmem:[%s2752_s25 + $0x10e] sm:$0xff] }
 0x21c   : > { %v2299_v47 = vadd.f32 %v2212_v13, %v2051_v24 }
 0x21e   : > { %v2339_v0 = vadd.f32 %v3346_v21, %v2299_v47 }
 0x21f   : > { %v1718_v34 = vpop.f32.mrf.mxu2 }
 0x220   : > { %v2375_v30 = vmax.f32 %v2339_v0, 0.0  ;;  %v1804_v50 = vadd.f32 %v1718_v34, %v1556_v28  ;;  %v1473_v60 = vpop.f32.mrf.mxu1  ;;  %v3391_v45 = vpop.f32.mrf.mxu3 }
 0x221   : > { %v1557_v62 = vadd.f32 %v1473_v60, %v3062_v2  ;;  %v2107_v2 = vld [vmem:[%s2752_s25 + $0xe7] sm:$0xff] }
 0x222   : > { %v2217_v35 = vpop.f32.mrf.mxu0  ;;  %2412 = vst.msk [vmem:[%s3360_s16 + $0x10] sm:$0xff] %vm2409_vm2, %v2375_v30  ;;  %v2052_v13 = vadd.f32 %v3334_v39, %v1804_v50  ;;  %v2132_v59 = vpack.c.bf16 %v2108_v54, %v2107_v2 }
 0x223   : > { %2613 = vmatmul.msk.bf16.gmra.mxu1 %vm283_vm1, %v1634_v52 }
 0x224   : > { %v2300_v10 = vadd.f32 %v2214_v42, %v2052_v13  ;;  %2632 = vmatmul.msk.bf16.gmra.mxu2 %vm283_vm1, %v1635_v14 }
 0x225   : > { %2670 = vmatmul.msk.bf16.gmra.mxu0 %vm283_vm1, %v2131_v57  ;;  %2653 = vmatmul.msk.bf16.gmra.mxu3 %vm283_vm1, %v1885_v19  ;;  %v1636_v57 = vpack.c.bf16 %v1612_v41, %v1611_v29  ;;  %v1614_v29 = vld [vmem:[%s2752_s25 + $0xfd] sm:$0xff] }
 0x226   : > { %v2340_v58 = vadd.f32 %v3346_v21, %v2300_v10  ;;  %v2110_v41 = vld [vmem:[%s2752_s25 + $0xff] sm:$0xff] }
 0x227   : > { %v1721_v15 = vpop.f32.mrf.mxu2 }
 0x228   : > { %v2376_v39 = vmax.f32 %v2340_v58, 0.0  ;;  %v1805_v11 = vadd.f32 %v1721_v15, %v1557_v62  ;;  %v1475_v52 = vpop.f32.mrf.mxu1  ;;  %v3402_v47 = vpop.f32.mrf.mxu3 }
 0x229   : > { %v1558_v28 = vadd.f32 %v1475_v52, %v3075_v27 }
 0x22a   : > { %v2219_v24 = vpop.f32.mrf.mxu0  ;;  %2413 = vst.msk [vmem:[%s3360_s16 + $0x18] sm:$0xff] %vm2409_vm2, %v2376_v39  ;;  %v2053_v42 = vadd.f32 %v3348_v3, %v1805_v11  ;;  %v1863_v3 = vld [vmem:[%s2752_s25 + $0x106] sm:$0xff] }
 0x22b   : > { %v1886_v10 = vpack.c.bf16 %v1864_v17, %v1863_v3 }
 0x22c   : > { %v2301_v22 = vadd.f32 %v2217_v35, %v2053_v42 }
 0x22e   : > { %v2341_v0 = vadd.f32 %v3346_v21, %v2301_v22  ;;  %v1613_v22 = vld [vmem:[%s2752_s25 + $0xf5] sm:$0xff] }
 0x22f   : > { %v1723_v34 = vpop.f32.mrf.mxu2 }
 0x230   : > { %v2377_v30 = vmax.f32 %v2341_v0, 0.0  ;;  %v1806_v50 = vadd.f32 %v1723_v34, %v1558_v28  ;;  %v1478_v60 = vpop.f32.mrf.mxu1  ;;  %v3415_v19 = vpop.f32.mrf.mxu3 }
 0x231   : > { %v1559_v62 = vadd.f32 %v1478_v60, %v3082_v36  ;;  %v2109_v36 = vld [vmem:[%s2752_s25 + $0xf7] sm:$0xff] }
 0x232   : > { %v2222_v13 = vpop.f32.mrf.mxu0  ;;  %2414 = vst.msk [vmem:[%s3360_s16 + $0x20] sm:$0xff] %vm2409_vm2, %v2377_v30  ;;  %v2054_v35 = vadd.f32 %v3367_v48, %v1806_v50  ;;  %v1637_v50 = vpack.c.bf16 %v1614_v29, %v1613_v22  ;;  %v2133_v60 = vpack.c.bf16 %v2110_v41, %v2109_v36 }
 0x233   : > { %2614 = vmatmul.msk.bf16.gmra.mxu1 %vm283_vm1, %v1635_v14 }
 0x234   : > { %v2302_v27 = vadd.f32 %v2219_v24, %v2054_v35  ;;  %2633 = vmatmul.msk.bf16.gmra.mxu2 %vm283_vm1, %v1636_v57 }
 0x235   : > { %2671 = vmatmul.msk.bf16.gmra.mxu0 %vm283_vm1, %v2132_v59  ;;  %2654 = vmatmul.msk.bf16.gmra.mxu3 %vm283_vm1, %v1886_v10  ;;  %v1866_v59 = vld [vmem:[%s2752_s25 + $0x11e] sm:$0xff] }
 0x236   : > { %v2342_v58 = vadd.f32 %v3346_v21, %v2302_v27 }
 0x237   : > { %v1726_v15 = vpop.f32.mrf.mxu2 }
 0x238   : > { %v2378_v48 = vmax.f32 %v2342_v58, 0.0  ;;  %v1807_v39 = vadd.f32 %v1726_v15, %v1559_v62  ;;  %v1480_v14 = vpop.f32.mrf.mxu1  ;;  %v3426_v24 = vpop.f32.mrf.mxu3 }
 0x239   : > { %v1560_v54 = vadd.f32 %v1480_v14, %v3095_v44 }
 0x23a   : > { %v2224_v11 = vpop.f32.mrf.mxu0  ;;  %2415 = vst.msk [vmem:[%s3360_s16 + $0x28] sm:$0xff] %vm2409_vm2, %v2378_v48  ;;  %v2055_v52 = vadd.f32 %v3378_v61, %v1807_v39  ;;  %v1865_v61 = vld [vmem:[%s2752_s25 + $0x116] sm:$0xff] }
 0x23b   : > { %v1887_v35 = vpack.c.bf16 %v1866_v59, %v1865_v61 }
 0x23c   : > { %v2303_v42 = vadd.f32 %v2222_v13, %v2055_v52  ;;  %v1616_v52 = vld [vmem:[%s2752_s25 + $0x10d] sm:$0xff] }
 0x23e   : > { %v2343_v2 = vadd.f32 %v3346_v21, %v2303_v42  ;;  %v2112_v42 = vld [vmem:[%s2752_s25 + $0x10f] sm:$0xff] }
 0x23f   : > { %v1728_v0 = vpop.f32.mrf.mxu2 }
 0x240   : > { %v2379_v28 = vmax.f32 %v2343_v2, 0.0  ;;  %v1808_v34 = vadd.f32 %v1728_v0, %v1560_v54  ;;  %v1483_v30 = vpop.f32.mrf.mxu1  ;;  %v3439_v13 = vpop.f32.mrf.mxu3 }
 0x241   : > { %v1561_v27 = vadd.f32 %v1483_v30, %v3102_v32  ;;  %v2111_v32 = vld [vmem:[%s2752_s25 + $0x107] sm:$0xff] }
 0x242   : > { %v2227_v3 = vpop.f32.mrf.mxu0  ;;  %2416 = vst.msk [vmem:[%s3360_s16 + $0x30] sm:$0xff] %vm2409_vm2, %v2379_v28  ;;  %v2056_v17 = vadd.f32 %v3391_v45, %v1808_v34  ;;  %v2134_v28 = vpack.c.bf16 %v2112_v42, %v2111_v32  ;;  %v1868_v34 = vld [vmem:[%s2752_s25 + $0x12e] sm:$0xff] }
 0x243   : > { %2615 = vmatmul.msk.bf16.gmra.mxu1 %vm283_vm1, %v1636_v57 }
 0x244   : > { %v2304_v44 = vadd.f32 %v2224_v11, %v2056_v17  ;;  %2634 = vmatmul.msk.bf16.gmra.mxu2 %vm283_vm1, %v1637_v50  ;;  %v1615_v11 = vld [vmem:[%s2752_s25 + $0x105] sm:$0xff] }
 0x245   : > { %2672 = vmatmul.msk.bf16.gmra.mxu0 %vm283_vm1, %v2133_v60  ;;  %2655 = vmatmul.msk.bf16.gmra.mxu3 %vm283_vm1, %v1887_v35  ;;  %v1638_v0 = vpack.c.bf16 %v1616_v52, %v1615_v11 }
 0x246   : > { %v2344_v10 = vadd.f32 %v3346_v21, %v2304_v44 }
 0x247   : > { %v1731_v58 = vpop.f32.mrf.mxu2 }
 0x248   : > { %v2380_v45 = vmax.f32 %v2344_v10, 0.0  ;;  %v1809_v62 = vadd.f32 %v1731_v58, %v1561_v27  ;;  %v1485_v57 = vpop.f32.mrf.mxu1  ;;  %v3450_v39 = vpop.f32.mrf.mxu3 }
 0x249   : > { %v1562_v29 = vadd.f32 %v1485_v57, %v3115_v12  ;;  %v1618_v57 = vld [vmem:[%s2752_s25 + $0x11d] sm:$0xff] }
 0x24a   : > { %v2229_v15 = vpop.f32.mrf.mxu0  ;;  %2417 = vst.msk [vmem:[%s3360_s16 + $0x38] sm:$0xff] %vm2409_vm2, %v2380_v45  ;;  %v2057_v48 = vadd.f32 %v3402_v47, %v1809_v62  ;;  %v1867_v47 = vld [vmem:[%s2752_s25 + $0x126] sm:$0xff]  ;;  %v1617_v62 = vld [vmem:[%s2752_s25 + $0x115] sm:$0xff] }
 0x24b   : > { %v1888_v59 = vpack.c.bf16 %v1868_v34, %v1867_v47 }
 0x24c   : > { %v2305_v14 = vadd.f32 %v2227_v3, %v2057_v48 }
 0x24e   : > { %v2345_v22 = vadd.f32 %v3346_v21, %v2305_v14 }
 0x24f   : > { %v1733_v36 = vpop.f32.mrf.mxu2 }
 0x250   : > { %v2381_v41 = vmax.f32 %v2345_v22, 0.0  ;;  %v1810_v2 = vadd.f32 %v1733_v36, %v1562_v29  ;;  %v1488_v54 = vpop.f32.mrf.mxu1  ;;  %v3463_v61 = vpop.f32.mrf.mxu3  ;;  %v1639_v22 = vpack.c.bf16 %v1618_v57, %v1617_v62  ;;  %v1870_v36 = vld [vmem:[%s2752_s25 + $0x13e] sm:$0xff] }
 0x251   : > { %v1563_v17 = vadd.f32 %v1488_v54, %v3122_v31  ;;  %v2113_v31 = vld [vmem:[%s2752_s25 + $0x117] sm:$0xff] }
 0x252   : > { %v2232_v30 = vpop.f32.mrf.mxu0  ;;  %2418 = vst.msk [vmem:[%s3360_s16 + $0x40] sm:$0xff] %vm2409_vm2, %v2381_v41  ;;  %v2058_v60 = vadd.f32 %v3415_v19, %v1810_v2 }
 0x253   : > { %2616 = vmatmul.msk.bf16.gmra.mxu1 %vm283_vm1, %v1637_v50 }
 0x254   : > { %v2306_v12 = vadd.f32 %v2229_v15, %v2058_v60  ;;  %2635 = vmatmul.msk.bf16.gmra.mxu2 %vm283_vm1, %v1638_v0  ;;  %v2114_v15 = vld [vmem:[%s2752_s25 + $0x11f] sm:$0xff] }
 0x255   : > { %2673 = vmatmul.msk.bf16.gmra.mxu0 %vm283_vm1, %v2134_v28  ;;  %2656 = vmatmul.msk.bf16.gmra.mxu3 %vm283_vm1, %v1888_v59  ;;  %v2135_v29 = vpack.c.bf16 %v2114_v15, %v2113_v31 }
 0x256   : > { %v2346_v3 = vadd.f32 %v3346_v21, %v2306_v12 }
 0x257   : > { %v1736_v35 = vpop.f32.mrf.mxu2 }
 0x258   : > { %v2382_v19 = vmax.f32 %v2346_v3, 0.0  ;;  %v1811_v44 = vadd.f32 %v1736_v35, %v1563_v17  ;;  %v1490_v50 = vpop.f32.mrf.mxu1  ;;  %v3474_v58 = vpop.f32.mrf.mxu3  ;;  %v1619_v35 = vld [vmem:[%s2752_s25 + $0x125] sm:$0xff] }
 0x259   : > { %v1564_v14 = vadd.f32 %v1490_v50, %v3135_v56 }
 0x25a   : > { %v2234_v10 = vpop.f32.mrf.mxu0  ;;  %2419 = vst.msk [vmem:[%s3360_s16 + $0x48] sm:$0xff] %vm2409_vm2, %v2382_v19  ;;  %v2059_v27 = vadd.f32 %v3426_v24, %v1811_v44  ;;  %v1869_v24 = vld [vmem:[%s2752_s25 + $0x136] sm:$0xff]  ;;  %v1620_v19 = vld [vmem:[%s2752_s25 + $0x12d] sm:$0xff] }
 0x25b   : > { %v1889_v28 = vpack.c.bf16 %v1870_v36, %v1869_v24  ;;  %v2116_v44 = vld [vmem:[%s2752_s25 + $0x12f] sm:$0xff]  ;;  %v1640_v31 = vpack.c.bf16 %v1620_v19, %v1619_v35 }
 0x25c   : > { %v2307_v45 = vadd.f32 %v2232_v30, %v2059_v27 }
 0x25e   : > { %v2347_v48 = vadd.f32 %v3346_v21, %v2307_v45 }
 0x25f   : > { %v1738_v11 = vpop.f32.mrf.mxu2 }
 0x260   : > { %v2383_v52 = vmax.f32 %v2347_v48, 0.0  ;;  %v1812_v32 = vadd.f32 %v1738_v11, %v1564_v14  ;;  %v1493_v42 = vpop.f32.mrf.mxu1  ;;  %v3487_v54 = vpop.f32.mrf.mxu3  ;;  %v1872_v48 = vld [vmem:[%s2752_s25 + $0x14e] sm:$0xff] }
 0x261   : > { %v1565_v34 = vadd.f32 %v1493_v42, %v3142_v37  ;;  %v2115_v37 = vld [vmem:[%s2752_s25 + $0x127] sm:$0xff] }
 0x262   : > { %v2237_v41 = vpop.f32.mrf.mxu0  ;;  %2420 = vst.msk [vmem:[%s3360_s16 + $0x50] sm:$0xff] %vm2409_vm2, %v2383_v52  ;;  %v2060_v2 = vadd.f32 %v3439_v13, %v1812_v32  ;;  %v2136_v15 = vpack.c.bf16 %v2116_v44, %v2115_v37 }
 0x263   : > { %2617 = vmatmul.msk.bf16.gmra.mxu1 %vm283_vm1, %v1638_v0 }
 0x264   : > { %v2308_v56 = vadd.f32 %v2234_v10, %v2060_v2  ;;  %2636 = vmatmul.msk.bf16.gmra.mxu2 %vm283_vm1, %v1639_v22 }
 0x265   : > { %2674 = vmatmul.msk.bf16.gmra.mxu0 %vm283_vm1, %v2135_v29  ;;  %2657 = vmatmul.msk.bf16.gmra.mxu3 %vm283_vm1, %v1889_v28 }
 0x266   : > { %v2348_v47 = vadd.f32 %v3346_v21, %v2308_v56 }
 0x267   : > { %v1741_v30 = vpop.f32.mrf.mxu2 }
 0x268   : > { %v2384_v13 = vmax.f32 %v2348_v47, 0.0  ;;  %v1813_v60 = vadd.f32 %v1741_v30, %v1565_v34  ;;  %v1495_v0 = vpop.f32.mrf.mxu1  ;;  %v3498_v3 = vpop.f32.mrf.mxu3  ;;  %v1621_v47 = vld [vmem:[%s2752_s25 + $0x135] sm:$0xff]  ;;  %v1622_v34 = vld [vmem:[%s2752_s25 + $0x13d] sm:$0xff] }
 0x269   : > { %v1566_v10 = vadd.f32 %v1495_v0, %v3153_v9  ;;  %v2117_v30 = vld [vmem:[%s2752_s25 + $0x137] sm:$0xff]  ;;  %v1641_v35 = vpack.c.bf16 %v1622_v34, %v1621_v47 }
 0x26a   : > { %v2239_v59 = vpop.f32.mrf.mxu0  ;;  %2421 = vst.msk [vmem:[%s3360_s16 + $0x58] sm:$0xff] %vm2409_vm2, %v2384_v13  ;;  %v2061_v12 = vadd.f32 %v3450_v39, %v1813_v60  ;;  %v1871_v39 = vld [vmem:[%s2752_s25 + $0x146] sm:$0xff] }
 0x26b   : > { %v1890_v32 = vpack.c.bf16 %v1872_v48, %v1871_v39  ;;  %v2118_v13 = vld [vmem:[%s2752_s25 + $0x13f] sm:$0xff] }
 0x26c   : > { %v2309_v17 = vadd.f32 %v2237_v41, %v2061_v12  ;;  %v2137_v19 = vpack.c.bf16 %v2118_v13, %v2117_v30  ;;  %v1623_v48 = vld [vmem:[%s2752_s25 + $0x145] sm:$0xff] }
 0x26e   : > { %v2349_v50 = vadd.f32 %v3346_v21, %v2309_v17 }
 0x26f   : > { %v1743_v27 = vpop.f32.mrf.mxu2 }
 0x270   : > { %v2385_v45 = vmax.f32 %v2349_v50, 0.0  ;;  %v1814_v62 = vadd.f32 %v1743_v27, %v1566_v10  ;;  %v1498_v57 = vpop.f32.mrf.mxu1  ;;  %v3511_v52 = vpop.f32.mrf.mxu3 }
 0x271   : > { %v1567_v29 = vadd.f32 %v1498_v57, %v3159_v49 }
 0x272   : > { %v2242_v14 = vpop.f32.mrf.mxu0  ;;  %2422 = vst.msk [vmem:[%s3360_s16 + $0x60] sm:$0xff] %vm2409_vm2, %v2385_v45  ;;  %v2062_v11 = vadd.f32 %v3463_v61, %v1814_v62 }
 0x273   : > { %2618 = vmatmul.msk.bf16.gmra.mxu1 %vm283_vm1, %v1639_v22 }
 0x274   : > { %v2310_v9 = vadd.f32 %v2239_v59, %v2062_v11  ;;  %2637 = vmatmul.msk.bf16.gmra.mxu2 %vm283_vm1, %v1640_v31  ;;  %v2119_v11 = vld [vmem:[%s2752_s25 + $0x147] sm:$0xff] }
 0x275   : > { %2675 = vmatmul.msk.bf16.gmra.mxu0 %vm283_vm1, %v2136_v15  ;;  %2658 = vmatmul.msk.bf16.gmra.mxu3 %vm283_vm1, %v1890_v32  ;;  %v2120_v32 = vld [vmem:[%s2752_s25 + $0x14f] sm:$0xff] }
 0x276   : > { %v2350_v42 = vadd.f32 %v3346_v21, %v2310_v9 }
 0x277   : > { %v1746_v24 = vpop.f32.mrf.mxu2 }
 0x278   : > { %v2386_v61 = vmax.f32 %v2350_v42, 0.0  ;;  %v1815_v36 = vadd.f32 %v1746_v24, %v1567_v29  ;;  %v1500_v22 = vpop.f32.mrf.mxu1  ;;  %v2004_v28 = vpop.f32.mrf.mxu3 }
 0x279   : > { %v1568_v60 = vadd.f32 %v1500_v22, %v3170_v26  ;;  %v2138_v22 = vpack.c.bf16 %v2120_v32, %v2119_v11 }
 0x27a   : > { %v2244_v41 = vpop.f32.mrf.mxu0  ;;  %2423 = vst.msk [vmem:[%s3360_s16 + $0x68] sm:$0xff] %vm2409_vm2, %v2386_v61  ;;  %v2063_v2 = vadd.f32 %v3474_v58, %v1815_v36 }
 0x27c   : > { %v2311_v56 = vadd.f32 %v2242_v14, %v2063_v2  ;;  %v1624_v14 = vld [vmem:[%s2752_s25 + $0x14d] sm:$0xff] }
 0x27d   : > { %v1642_v36 = vpack.c.bf16 %v1624_v14, %v1623_v48 }
 0x27e   : > { %v2351_v49 = vadd.f32 %v3346_v21, %v2311_v56 }
 0x27f   : > { %v1748_v0 = vpop.f32.mrf.mxu2 }
 0x280   : > { %v2387_v59 = vmax.f32 %v2351_v49, 0.0  ;;  %v1816_v12 = vadd.f32 %v1748_v0, %v1568_v60  ;;  %v1503_v17 = vpop.f32.mrf.mxu1  ;;  %v2006_v44 = vpop.f32.mrf.mxu3 }
 0x281   : > { %v1569_v10 = vadd.f32 %v1503_v17, %v3176_v1 }
 0x282   : > { %v2247_v37 = vpop.f32.mrf.mxu0  ;;  %2424 = vst.msk [vmem:[%s3360_s16 + $0x70] sm:$0xff] %vm2409_vm2, %v2387_v59  ;;  %v2064_v58 = vadd.f32 %v3487_v54, %v1816_v12 }
 0x283   : > { %2619 = vmatmul.msk.bf16.gmra.mxu1 %vm283_vm1, %v1640_v31 }
 0x284   : > { %v2312_v50 = vadd.f32 %v2244_v41, %v2064_v58  ;;  %2638 = vmatmul.msk.bf16.gmra.mxu2 %vm283_vm1, %v1641_v35 }
 0x285   : > { %2676 = vmatmul.msk.bf16.gmra.mxu0 %vm283_vm1, %v2137_v19 }
 0x286   : > { %v2352_v26 = vadd.f32 %v3346_v21, %v2312_v50 }
 0x287   : > { %v1751_v27 = vpop.f32.mrf.mxu2 }
 0x288   : > { %v2388_v45 = vmax.f32 %v2352_v26, 0.0  ;;  %v1817_v62 = vadd.f32 %v1751_v27, %v1569_v10  ;;  %v1505_v54 = vpop.f32.mrf.mxu1  ;;  %v2009_v15 = vpop.f32.mrf.mxu3 }
 0x289   : > { %v1570_v1 = vadd.f32 %v1505_v54, %v3187_v43 }
 0x28a   : > { %v2249_v57 = vpop.f32.mrf.mxu0  ;;  %2425 = vst.msk [vmem:[%s3360_s16 + $0x78] sm:$0xff] %vm2409_vm2, %v2388_v45  ;;  %v2065_v31 = vadd.f32 %v3498_v3, %v1817_v62 }
 0x28c   : > { %v2313_v39 = vadd.f32 %v2247_v37, %v2065_v31 }
 0x28e   : > { %v2353_v9 = vadd.f32 %v3346_v21, %v2313_v39 }
 0x28f   : > { %v1753_v42 = vpop.f32.mrf.mxu2 }
 0x290   : > { %v2389_v29 = vmax.f32 %v2353_v9, 0.0  ;;  %v1818_v24 = vadd.f32 %v1753_v42, %v1570_v1  ;;  %v1508_v61 = vpop.f32.mrf.mxu1  ;;  %v2011_v43 = vpop.f32.mrf.mxu3 }
 0x291   : > { %v1571_v47 = vadd.f32 %v1508_v61, %v3194_v46 }
 0x292   : > { %v2252_v41 = vpop.f32.mrf.mxu0  ;;  %2426 = vst.msk [vmem:[%s3360_s16 + $0x80] sm:$0xff] %vm2409_vm2, %v2389_v29  ;;  %v2066_v3 = vadd.f32 %v3511_v52, %v1818_v24 }
 0x293   : > { %2620 = vmatmul.msk.bf16.gmra.mxu1 %vm283_vm1, %v1641_v35 }
 0x294   : > { %v2314_v2 = vadd.f32 %v2249_v57, %v2066_v3  ;;  %2639 = vmatmul.msk.bf16.gmra.mxu2 %vm283_vm1, %v1642_v36 }
 0x295   : > { %2677 = vmatmul.msk.bf16.gmra.mxu0 %vm283_vm1, %v2138_v22 }
 0x296   : > { %v2354_v56 = vadd.f32 %v3346_v21, %v2314_v2 }
 0x297   : > { %v1756_v34 = vpop.f32.mrf.mxu2 }
 0x298   : > { %v2390_v30 = vmax.f32 %v2354_v56, 0.0  ;;  %v1819_v13 = vadd.f32 %v1756_v34, %v1571_v47  ;;  %v1510_v49 = vpop.f32.mrf.mxu1  ;;  %v2014_v35 = vpop.f32.mrf.mxu3 }
 0x299   : > { %v1572_v12 = vadd.f32 %v1510_v49, %v3205_v4 }
 0x29a   : > { %v2254_v60 = vpop.f32.mrf.mxu0  ;;  %2427 = vst.msk [vmem:[%s3360_s16 + $0x88] sm:$0xff] %vm2409_vm2, %v2390_v30  ;;  %v2067_v52 = vadd.f32 %v2004_v28, %v1819_v13 }
 0x29c   : > { %v2315_v0 = vadd.f32 %v2252_v41, %v2067_v52 }
 0x29e   : > { %v2355_v59 = vadd.f32 %v3346_v21, %v2315_v0 }
 0x29f   : > { %v1758_v17 = vpop.f32.mrf.mxu2 }
 0x2a0   : > { %v2391_v19 = vmax.f32 %v2355_v59, 0.0  ;;  %v1820_v37 = vadd.f32 %v1758_v17, %v1572_v12  ;;  %v1513_v46 = vpop.f32.mrf.mxu1  ;;  %v2016_v57 = vpop.f32.mrf.mxu3 }
 0x2a1   : > { %v1573_v28 = vadd.f32 %v1513_v46, %v3210_v5 }
 0x2a2   : > { %v2257_v58 = vpop.f32.mrf.mxu0  ;;  %2428 = vst.msk [vmem:[%s3360_s16 + $0x90] sm:$0xff] %vm2409_vm2, %v2391_v19  ;;  %v2068_v50 = vadd.f32 %v2006_v44, %v1820_v37 }
 0x2a4   : > { %v2316_v26 = vadd.f32 %v2254_v60, %v2068_v50 }
 0x2a6   : > { %v2356_v10 = vadd.f32 %v3346_v21, %v2316_v26 }
 0x2a7   : > { %v1761_v27 = vpop.f32.mrf.mxu2 }
 0x2a8   : > { %v2392_v45 = vmax.f32 %v2356_v10, 0.0  ;;  %v1821_v62 = vadd.f32 %v1761_v27, %v1573_v28  ;;  %v1515_v4 = vpop.f32.mrf.mxu1  ;;  %v2019_v42 = vpop.f32.mrf.mxu3 }
 0x2a9   : > { %v1574_v44 = vadd.f32 %v1515_v4, %v3221_v63 }
 0x2aa   : > { %v2259_v54 = vpop.f32.mrf.mxu0  ;;  %2429 = vst.msk [vmem:[%s3360_s16 + $0x98] sm:$0xff] %vm2409_vm2, %v2392_v45  ;;  %v2069_v31 = vadd.f32 %v2009_v15, %v1821_v62 }
 0x2ac   : > { %v2317_v39 = vadd.f32 %v2257_v58, %v2069_v31 }
 0x2ae   : > { %v2357_v48 = vadd.f32 %v3346_v21, %v2317_v39 }
 0x2af   : > { %v1763_v14 = vpop.f32.mrf.mxu2 }
 0x2b0   : > { %v2393_v11 = vmax.f32 %v2357_v48, 0.0  ;;  %v1822_v32 = vadd.f32 %v1763_v14, %v1574_v44  ;;  %v1518_v5 = vpop.f32.mrf.mxu1  ;;  %v2021_v56 = vpop.f32.mrf.mxu3 }
 0x2b1   : > { %v1575_v15 = vadd.f32 %v1518_v5, %v3226_v38 }
 0x2b2   : > { %v2262_v9 = vpop.f32.mrf.mxu0  ;;  %2430 = vst.msk [vmem:[%s3360_s16 + $0xa0] sm:$0xff] %vm2409_vm2, %v2393_v11  ;;  %v2070_v1 = vadd.f32 %v2011_v43, %v1822_v32 }
 0x2b4   : > { %v2318_v29 = vadd.f32 %v2259_v54, %v2070_v1 }
 0x2b6   : > { %v2358_v24 = vadd.f32 %v3346_v21, %v2318_v29 }
 0x2b7   : > { %v1766_v61 = vpop.f32.mrf.mxu2 }
 0x2b8   : > { %v2394_v36 = vmax.f32 %v2358_v24, 0.0  ;;  %v1823_v22 = vadd.f32 %v1766_v61, %v1575_v15  ;;  %v1520_v63 = vpop.f32.mrf.mxu1  ;;  %v2024_v17 = vpop.f32.mrf.mxu3 }
 0x2b9   : > { %v1576_v43 = vadd.f32 %v1520_v63, %v3237_v16 }
 0x2ba   : > { %v2264_v41 = vpop.f32.mrf.mxu0  ;;  %2431 = vst.msk [vmem:[%s3360_s16 + $0xa8] sm:$0xff] %vm2409_vm2, %v2394_v36  ;;  %v2071_v3 = vadd.f32 %v2014_v35, %v1823_v22 }
 0x2bc   : > { %v2319_v2 = vadd.f32 %v2262_v9, %v2071_v3 }
 0x2be   : > { %v2359_v47 = vadd.f32 %v3346_v21, %v2319_v2 }
 0x2bf   : > { %v1768_v34 = vpop.f32.mrf.mxu2 }
 0x2c0   : > { %v2395_v30 = vmax.f32 %v2359_v47, 0.0  ;;  %v1824_v13 = vadd.f32 %v1768_v34, %v1576_v43  ;;  %v1523_v38 = vpop.f32.mrf.mxu1  ;;  %v2026_v62 = vpop.f32.mrf.mxu3 }
 0x2c1   : > { %v1577_v59 = vadd.f32 %v1523_v38, %v3242_v53 }
 0x2c2   : > { %v2267_v49 = vpop.f32.mrf.mxu0  ;;  %2432 = vst.msk [vmem:[%s3360_s16 + $0xb0] sm:$0xff] %vm2409_vm2, %v2395_v30  ;;  %v2072_v60 = vadd.f32 %v2016_v57, %v1824_v13 }
 0x2c4   : > { %v2320_v52 = vadd.f32 %v2264_v41, %v2072_v60 }
 0x2c6   : > { %v2360_v0 = vadd.f32 %v3346_v21, %v2320_v52 }
 0x2c7   : > { %v1771_v12 = vpop.f32.mrf.mxu2 }
 0x2c8   : > { %v2396_v35 = vmax.f32 %v2360_v0, 0.0  ;;  %v1825_v19 = vadd.f32 %v1771_v12, %v1577_v59  ;;  %v1525_v16 = vpop.f32.mrf.mxu1  ;;  %v2029_v32 = vpop.f32.mrf.mxu3 }
 0x2c9   : > { %v1578_v26 = vadd.f32 %v1525_v16, %v3253_v33 }
 0x2ca   : > { %v2269_v37 = vpop.f32.mrf.mxu0  ;;  %2433 = vst.msk [vmem:[%s3360_s16 + $0xb8] sm:$0xff] %vm2409_vm2, %v2396_v35  ;;  %v2073_v46 = vadd.f32 %v2019_v42, %v1825_v19 }
 0x2cc   : > { %v2321_v58 = vadd.f32 %v2267_v49, %v2073_v46 }
 0x2ce   : > { %v2361_v50 = vadd.f32 %v3346_v21, %v2321_v58 }
 0x2cf   : > { %v1773_v10 = vpop.f32.mrf.mxu2 }
 0x2d0   : > { %v2397_v28 = vmax.f32 %v2361_v50, 0.0  ;;  %v1826_v27 = vadd.f32 %v1773_v10, %v1578_v26  ;;  %v1528_v53 = vpop.f32.mrf.mxu1  ;;  %v2031_v22 = vpop.f32.mrf.mxu3 }
 0x2d1   : > { %v1579_v31 = vadd.f32 %v1528_v53, %v3258_v7 }
 0x2d2   : > { %v2272_v45 = vpop.f32.mrf.mxu0  ;;  %2434 = vst.msk [vmem:[%s3360_s16 + $0xc0] sm:$0xff] %vm2409_vm2, %v2397_v28  ;;  %v2074_v4 = vadd.f32 %v2021_v56, %v1826_v27 }
 0x2d4   : > { %v2322_v54 = vadd.f32 %v2269_v37, %v2074_v4 }
 0x2d6   : > { %v2362_v57 = vadd.f32 %v3346_v21, %v2322_v54 }
 0x2d7   : > { %v1776_v39 = vpop.f32.mrf.mxu2 }
 0x2d8   : > { %v2398_v48 = vmax.f32 %v2362_v57, 0.0  ;;  %v1827_v44 = vadd.f32 %v1776_v39, %v1579_v31  ;;  %v1530_v33 = vpop.f32.mrf.mxu1  ;;  %v2034_v49 = vpop.f32.mrf.mxu3 }
 0x2d9   : > { %v1580_v1 = vadd.f32 %v1530_v33, %v3269_v51 }
 0x2da   : > { %v2274_v14 = vpop.f32.mrf.mxu0  ;;  %2435 = vst.msk [vmem:[%s3360_s16 + $0xc8] sm:$0xff] %vm2409_vm2, %v2398_v48  ;;  %v2075_v11 = vadd.f32 %v2024_v17, %v1827_v44 }
 0x2dc   : > { %v2323_v5 = vadd.f32 %v2272_v45, %v2075_v11 }
 0x2de   : > { %v2363_v9 = vadd.f32 %v3346_v21, %v2323_v5 }
 0x2df   : > { %v1778_v42 = vpop.f32.mrf.mxu2 }
 0x2e0   : > { %v2399_v29 = vmax.f32 %v2363_v9, 0.0  ;;  %v1828_v24 = vadd.f32 %v1778_v42, %v1580_v1  ;;  %v1533_v7 = vpop.f32.mrf.mxu1  ;;  %v2036_v46 = vpop.f32.mrf.mxu3 }
 0x2e1   : > { %v1581_v41 = vadd.f32 %v1533_v7, %v3274_v18 }
 0x2e2   : > { %v2277_v15 = vpop.f32.mrf.mxu0  ;;  %2436 = vst.msk [vmem:[%s3360_s16 + $0xd0] sm:$0xff] %vm2409_vm2, %v2399_v29  ;;  %v2076_v61 = vadd.f32 %v2026_v62, %v1828_v24 }
 0x2e4   : > { %v2324_v36 = vadd.f32 %v2274_v14, %v2076_v61 }
 0x2e6   : > { %v2364_v63 = vadd.f32 %v3346_v21, %v2324_v36 }
 0x2e7   : > { %v1781_v3 = vpop.f32.mrf.mxu2 }
 0x2e8   : > { %v2400_v2 = vmax.f32 %v2364_v63, 0.0  ;;  %v1829_v56 = vadd.f32 %v1781_v3, %v1581_v41  ;;  %v1535_v51 = vpop.f32.mrf.mxu1  ;;  %v2039_v4 = vpop.f32.mrf.mxu3 }
 0x2e9   : > { %v1582_v13 = vadd.f32 %v1535_v51, %v3285_v20 }
 0x2ea   : > { %v2279_v47 = vpop.f32.mrf.mxu0  ;;  %2437 = vst.msk [vmem:[%s3360_s16 + $0xd8] sm:$0xff] %vm2409_vm2, %v2400_v2  ;;  %v2077_v43 = vadd.f32 %v2029_v32, %v1829_v56 }
 0x2ec   : > { %v2325_v34 = vadd.f32 %v2277_v15, %v2077_v43 }
 0x2ee   : > { %v2365_v30 = vadd.f32 %v3346_v21, %v2325_v34 }
 0x2ef   : > { %v1783_v38 = vpop.f32.mrf.mxu2 }
 0x2f0   : > { %v2401_v60 = vmax.f32 %v2365_v30, 0.0  ;;  %v1830_v52 = vadd.f32 %v1783_v38, %v1582_v13  ;;  %v1538_v18 = vpop.f32.mrf.mxu1  ;;  %v2041_v32 = vpop.f32.mrf.mxu3 }
 0x2f1   : > { %v1583_v35 = vadd.f32 %v1538_v18, %v3290_v55 }
 0x2f2   : > { %v2282_v0 = vpop.f32.mrf.mxu0  ;;  %2438 = vst.msk [vmem:[%s3360_s16 + $0xe0] sm:$0xff] %vm2409_vm2, %v2401_v60  ;;  %v2078_v59 = vadd.f32 %v2031_v22, %v1830_v52 }
 0x2f4   : > { %v2326_v12 = vadd.f32 %v2279_v47, %v2078_v59 }
 0x2f6   : > { %v2366_v17 = vadd.f32 %v3346_v21, %v2326_v12 }
 0x2f7   : > { %v1786_v19 = vpop.f32.mrf.mxu2 }
 0x2f8   : > { %v2402_v16 = vmax.f32 %v2366_v17, 0.0  ;;  %v1831_v37 = vadd.f32 %v1786_v19, %v1583_v35  ;;  %v1540_v20 = vpop.f32.mrf.mxu1  ;;  %v2044_v22 = vpop.f32.mrf.mxu3 }
 0x2f9   : > { %v1584_v28 = vadd.f32 %v1540_v20, %v3301_v6 }
 0x2fa   : > { %2439 = vst.msk [vmem:[%s3360_s16 + $0xe8] sm:$0xff] %vm2409_vm2, %v2402_v16  ;;  %v2079_v58 = vadd.f32 %v2034_v49, %v1831_v37  ;;  %v2284_v50 = vpop.f32.mrf.mxu0 }
 0x2fc   : > { %v2327_v26 = vadd.f32 %v2282_v0, %v2079_v58 }
 0x2fe   : > { %v2367_v10 = vadd.f32 %v3346_v21, %v2327_v26 }
 0x2ff   : > { %v1788_v27 = vpop.f32.mrf.mxu2 }
 0x300   : > { %v2403_v53 = vmax.f32 %v2367_v10, 0.0  ;;  %v1832_v45 = vadd.f32 %v1788_v27, %v1584_v28  ;;  %v1543_v55 = vpop.f32.mrf.mxu1 }
 0x301   : > { %v1585_v39 = vadd.f32 %v1543_v55, %v3306_v8 }
 0x302   : > { %2440 = vst.msk [vmem:[%s3360_s16 + $0xf0] sm:$0xff] %vm2409_vm2, %v2403_v53  ;;  %v2080_v62 = vadd.f32 %v2036_v46, %v1832_v45  ;;  %v2287_v57 = vpop.f32.mrf.mxu0 }
 0x304   : > { %v2328_v54 = vadd.f32 %v2284_v50, %v2080_v62 }
 0x306   : > { %v2368_v31 = vadd.f32 %v3346_v21, %v2328_v54 }
 0x307   : > { %v1791_v48 = vpop.f32.mrf.mxu2 }
 0x308   : > { %v2404_v44 = vmax.f32 %v2368_v31, 0.0  ;;  %v1833_v33 = vadd.f32 %v1791_v48, %v1585_v39  ;;  %v1545_v6 = vpop.f32.mrf.mxu1 }
 0x309   : > { %v1586_v9 = vadd.f32 %v1545_v6, %v3319_v23 }
 0x30a   : > { %2441 = vst.msk [vmem:[%s3360_s16 + $0xf8] sm:$0xff] %vm2409_vm2, %v2404_v44  ;;  %v2081_v14 = vadd.f32 %v2039_v4, %v1833_v33  ;;  %v2289_v1 = vpop.f32.mrf.mxu0 }
 0x30c   : > { %v2329_v11 = vadd.f32 %v2287_v57, %v2081_v14 }
 0x30e   : > { %v2369_v5 = vadd.f32 %v3346_v21, %v2329_v11 }
 0x30f   : > { %v1793_v42 = vpop.f32.mrf.mxu2 }
 0x310   : > { %v2405_v29 = vmax.f32 %v2369_v5, 0.0  ;;  %v1834_v24 = vadd.f32 %v1793_v42, %v1586_v9  ;;  %v1548_v8 = vpop.f32.mrf.mxu1 }
 0x311   : > { %v1587_v36 = vadd.f32 %v1548_v8, %v3326_v25  ;;  %v2046_v25 = vpop.f32.mrf.mxu3 }
 0x312   : > { %2442 = vst.msk [vmem:[%s3360_s16 + $0x100] sm:$0xff] %vm2409_vm2, %v2405_v29  ;;  %v2082_v7 = vadd.f32 %v2041_v32, %v1834_v24  ;;  %v2292_v23 = vpop.f32.mrf.mxu0 }
 0x314   : > { %v2330_v15 = vadd.f32 %v2289_v1, %v2082_v7 }
 0x316   : > { %v2370_v61 = vadd.f32 %v3346_v21, %v2330_v15 }
 0x317   : > { %v1796_v63 = vpop.f32.mrf.mxu2 }
 0x318   : > { %v2406_v41 = vmax.f32 %v2370_v61, 0.0  ;;  %v1835_v3 = vadd.f32 %v1796_v63, %v1587_v36  ;;  %v1550_v56 = vpop.f32.mrf.mxu1 }
 0x319   : > { %v1588_v43 = vadd.f32 %v1550_v56, %v3339_v40 }
 0x31a   : > { %2443 = vst.msk [vmem:[%s3360_s16 + $0x108] sm:$0xff] %vm2409_vm2, %v2406_v41  ;;  %v2083_v2 = vadd.f32 %v2044_v22, %v1835_v3  ;;  %v2294_v49 = vpop.f32.mrf.mxu0 }
 0x31c   : > { %v2331_v51 = vadd.f32 %v2292_v23, %v2083_v2 }
 0x31e   : > { %v2371_v47 = vadd.f32 %v3346_v21, %v2331_v51 }
 0x31f   : > { %v1798_v34 = vpop.f32.mrf.mxu2 }
 0x320   : > { %v2407_v30 = vmax.f32 %v2371_v47, 0.0  ;;  %v1836_v13 = vadd.f32 %v1798_v34, %v1588_v43 }
 0x322   : > { %2444 = vst.msk [vmem:[%s3360_s16 + $0x110] sm:$0xff] %vm2409_vm2, %v2407_v30  ;;  %v2084_v38 = vadd.f32 %v2046_v25, %v1836_v13 }
 0x324   : > { %v2332_v60 = vadd.f32 %v2294_v49, %v2084_v38 }
 0x326   : > { %v2372_v52 = vadd.f32 %v3346_v21, %v2332_v60 }
 0x328   : > { %v2408_v18 = vmax.f32 %v2372_v52, 0.0 }
 0x32a   : > { %2445 = vst.msk [vmem:[%s3360_s16 + $0x118] sm:$0xff] %vm2409_vm2, %v2408_v18 }
 0x32b PF: > { %s13_s12 = sadd.s32 1, %s2700_s12  }
 0x32c   : > { %p10_p4 = scmp.ge.s32.totalorder %s13_s12, 4  }
 0x32e   :  { %12 = sbr.rel (!%p10_p4) target bundleno = 1 (0x1), region = 70 }

// kernel: hierarchical_omr_forward.11
= control target key start
LH: loop header
LB: loop body
LE: loop exit
PB: predicated region body
PF: predicated region fallthrough
CT: control target
= control target key end

     0   :  { %s611_s18 = smov 0   ;;  %s686_s0 = inlined_call_operand.vmem [shape: f32[2,24,8], index: 0, kind: input, shape index: {}]   ;;  %s687_s1 = inlined_call_operand.vmem [shape: bf16[9,8,16], index: 1, kind: input, shape index: {}]   ;;  %s688_s2 = inlined_call_operand.vmem [shape: f32[1,16], index: 2, kind: input, shape index: {}]   ;;  %s689_s3 = inlined_call_operand.vmem [shape: bf16[16,29], index: 3, kind: input, shape index: {}]   ;;  %s690_s4 = inlined_call_operand.vmem [shape: f32[1,29], index: 4, kind: input, shape index: {}]   ;;  %s691_s5 = inlined_call_operand.vmem [shape: f32[2,8,29], index: 5, kind: output, shape index: {}]  }
   0x1 LB: > { %s530_s19 = sadd.s32 4294967295, %s579_s18   ;;  %p534_p0 = scmp.ge.s32.totalorder %s579_s18, 1  ;;  %s579_s18 = sphi %s611_s18, %s15_s18  }
   0x2   : > { %p187_p1 = scmp.lt.s32.totalorder %s579_s18, 3 }
   0x4   : > { %p188_p2 = pnand %p534_p0, %p187_p1 }
   0x5   : > { %p214_p3 = scmp.lt.s32.totalorder (!%p188_p2), %s530_s19, 1 }
   0x6   : > { %191 = sbr.rel (%p188_p2) target bundleno = 320 (0x140), region = 40 }
   0xb   : > { %v537_v0 = vld [vmem:[%s687_s1 + $0x4] sm:$0xf]  ;;  %vm235_vm0 = vcmask 1043456   ;;  %v226_v1 = vld [vmem:[%s687_s1] sm:$0xf]  ;;  %s693_s19 = smov (!%p214_p3, %s530_s19), 1 }
   0xc   : > { %v237_v2 = vsel %vm235_vm0, %v537_v0, 0  ;;  %v256_v3 = vsel %vm235_vm0, %v226_v1, 0  ;;  %v540_v4 = vld [vmem:[%s687_s1 + $0x8] sm:$0xf]  ;;  %v542_v5 = vld [vmem:[%s687_s1 + $0xc] sm:$0xf] }
   0xd   : > { %246 = vmatpush.bf16.msra.mxu0 %v237_v2  ;;  %265 = vmatpush.bf16.msra.mxu1 %v256_v3  ;;  %v279_v6 = vsel %vm235_vm0, %v540_v4, 0  ;;  %v303_v7 = vsel %vm235_vm0, %v542_v5, 0  ;;  %v544_v8 = vld [vmem:[%s687_s1 + $0x10] sm:$0xf]  ;;  %v548_v10 = vld [vmem:[%s687_s1 + $0x18] sm:$0xf] }
   0xe   : > { %288 = vmatpush.bf16.msra.mxu2 %v279_v6  ;;  %312 = vmatpush.bf16.msra.mxu3 %v303_v7  ;;  %v327_v9 = vsel %vm235_vm0, %v544_v8, 0  ;;  %v550_v11 = vld [vmem:[%s687_s1 + $0x1c] sm:$0xf]  ;;  %s562_s9 = smul.u32 24, %s693_s19  ;;  %v375_v12 = vsel %vm235_vm0, %v548_v10, 0  ;;  %vm231_vm1 = vcmask 64512  }
   0xf   : > { %v399_v13 = vsel %vm235_vm0, %v550_v11, 0  ;;  %v546_v14 = vld [vmem:[%s687_s1 + $0x14] sm:$0xf]  ;;  %v552_v16 = vld [vmem:[%s687_s1 + $0x20] sm:$0xf]  ;;  %vm458_vm2 = vcmask 130048  }
  0x10   : > { %v351_v15 = vsel %vm235_vm0, %v546_v14, 0  ;;  %s218_s14 = scalar_lea.vmem %s686_s0, %s562_s9  ;;  %v423_v25 = vsel %vm235_vm0, %v552_v16, 0  ;;  %v561_v36 = vld [vmem:[%s689_s3] sm:$0xff]  ;;  %s536_s23 = sshll.u32 %s693_s19, 3  ;;  %vm475_vm3 = vcmask 236544  }
  0x11   : > { %336 = vmatpush.bf16.msrb.mxu0 %v327_v9  ;;  %360 = vmatpush.bf16.msrb.mxu1 %v351_v15  ;;  %v227_v17 = vld [vmem:[%s218_s14 + $0x4] sm:$0xff]  ;;  %v391_v29 = vld [vmem:[%s218_s14 + $0xc] sm:$0xff]  ;;  %v571_v60 = vld [vmem:[%s688_s2] ss:$0 sm:$0xff]  ;;  %s222_s28 = scalar_lea.vmem %s691_s5, %s536_s23 }
  0x12   : > { %384 = vmatpush.bf16.msrb.mxu2 %v375_v12  ;;  %408 = vmatpush.bf16.msrb.mxu3 %v399_v13  ;;  %v224_v18 = vld [vmem:[%s218_s14 + $0x3] sm:$0xff]  ;;  %v228_v20 = vpack.c.bf16 %v227_v17, %v227_v17  ;;  %v367_v28 = vld [vmem:[%s218_s14 + $0xb] sm:$0xff]  ;;  %v392_v33 = vpack.c.bf16 %v391_v29, %v391_v29  ;;  %v572_v3 = vld [vmem:[%s690_s4] ss:$0 sm:$0xff] }
  0x13   : > { %v271_v19 = vld [vmem:[%s218_s14 + $0x5] sm:$0xff]  ;;  %v225_v21 = vpack.c.bf16 %v224_v18, %v224_v18  ;;  %v368_v32 = vpack.c.bf16 %v367_v28, %v367_v28  ;;  %v415_v34 = vld [vmem:[%s218_s14 + $0xd] sm:$0xff] }
  0x14   : > { %v272_v22 = vpack.c.bf16 %v271_v19, %v271_v19  ;;  %v295_v23 = vld [vmem:[%s218_s14 + $0x7] sm:$0xff]  ;;  %538 = vmatmul.msk.bf16.vlgmr.msra.gmra.mxu0 %vm231_vm1, %v228_v20  ;;  %v416_v35 = vpack.c.bf16 %v415_v34, %v415_v34 }
  0x15   : > { %v296_v24 = vpack.c.bf16 %v295_v23, %v295_v23  ;;  %539 = vmatmul.msk.bf16.vlgmr.msra.gmra.mxu1 %vm231_vm1, %v225_v21  ;;  %432 = vmatpush.bf16.msra.mxu0 %v423_v25  ;;  %v319_v26 = vld [vmem:[%s218_s14 + $0x8] sm:$0xff] }
  0x16   : > { %541 = vmatmul.msk.bf16.vlgmr.msra.gmra.mxu2 %vm231_vm1, %v272_v22  ;;  %v343_v27 = vld [vmem:[%s218_s14 + $0x9] sm:$0xff]  ;;  %v320_v30 = vpack.c.bf16 %v319_v26, %v319_v26  ;;  %469 = vmatpush.bf16.msra.mxu1 %v561_v36 }
  0x17   : > { %543 = vmatmul.msk.bf16.vlgmr.msra.gmra.mxu3 %vm231_vm1, %v296_v24  ;;  %v344_v31 = vpack.c.bf16 %v343_v27, %v343_v27 }
  0x24   : > { %545 = vmatmul.msk.bf16.vlgmr.msrb.gmra.mxu0 %vm231_vm1, %v320_v30 }
  0x25   : > { %547 = vmatmul.msk.bf16.vlgmr.msrb.gmra.mxu1 %vm231_vm1, %v344_v31 }
  0x26   : > { %549 = vmatmul.msk.bf16.vlgmr.msrb.gmra.mxu2 %vm231_vm1, %v368_v32 }
  0x27   : > { %551 = vmatmul.msk.bf16.vlgmr.msrb.gmra.mxu3 %vm231_vm1, %v392_v33 }
  0x34   : > { %553 = vmatmul.msk.bf16.vlgmr.msra.gmra.mxu0 %vm231_vm1, %v416_v35 }
  0x91   : > { %v248_v37 = vpop.f32.mrf.mxu0 }
  0x92   : > { %v267_v38 = vpop.f32.mrf.mxu1 }
  0x93   : > { %v268_v43 = vadd.f32 %v267_v38, %v248_v37 }
  0x99   : > { %v290_v39 = vpop.f32.mrf.mxu2  ;;  %v250_v41 = vpop.f32.mrf.mxu0 }
  0x9a   : > { %v314_v40 = vpop.f32.mrf.mxu3  ;;  %v269_v42 = vpop.f32.mrf.mxu1  ;;  %v294_v44 = vadd.f32 %v290_v39, %v268_v43 }
  0x9c   : > { %v318_v49 = vadd.f32 %v314_v40, %v294_v44 }
  0xa1   : > { %v292_v45 = vpop.f32.mrf.mxu2  ;;  %v338_v47 = vpop.f32.mrf.mxu0 }
  0xa2   : > { %v316_v46 = vpop.f32.mrf.mxu3  ;;  %v362_v48 = vpop.f32.mrf.mxu1  ;;  %v342_v50 = vadd.f32 %v338_v47, %v318_v49 }
  0xa4   : > { %v366_v55 = vadd.f32 %v362_v48, %v342_v50 }
  0xa9   : > { %v386_v51 = vpop.f32.mrf.mxu2  ;;  %v340_v53 = vpop.f32.mrf.mxu0 }
  0xaa   : > { %v410_v52 = vpop.f32.mrf.mxu3  ;;  %v364_v54 = vpop.f32.mrf.mxu1  ;;  %v390_v56 = vadd.f32 %v386_v51, %v366_v55 }
  0xac   : > { %v414_v57 = vadd.f32 %v410_v52, %v390_v56 }
  0xb1   : > { %v388_v58 = vpop.f32.mrf.mxu2  ;;  %v434_v61 = vpop.f32.mrf.mxu0 }
  0xb2   : > { %v412_v59 = vpop.f32.mrf.mxu3  ;;  %v438_v62 = vadd.f32 %v434_v61, %v414_v57 }
  0xb4   : > { %v443_v63 = vadd.f32 %v571_v60, %v438_v62 }
  0xb6   : > { %v444_v0 = vmax.f32 %v443_v63, 0.0 }
  0xb8   : > { %v445_v1 = vpack.c.bf16 %v444_v0, %v444_v0 }
  0xb9   : > { %v436_v2 = vpop.f32.mrf.mxu0 }
  0xba   : > { %558 = vmatmul.msk.bf16.vlgmr.msra.gmra.mxu1 %vm458_vm2, %v445_v1 }
 0x137   : > { %v471_v4 = vpop.f32.mrf.mxu1 }
 0x138   : > { %v472_v5 = vadd.f32 %v572_v3, %v471_v4 }
 0x13a   : > { %476 = vst.msk [vmem:[%s222_s28] sm:$0xff] %vm475_vm3, %v472_v5 }
 0x13f   : > { %v473_v6 = vpop.f32.mrf.mxu1 }
 0x140 PF: > { %s15_s18 = sadd.s32 1, %s579_s18  }
 0x141   : > { %p12_p4 = scmp.ge.s32.totalorder %s15_s18, 4  }
 0x143   :  { %14 = sbr.rel (!%p12_p4) target bundleno = 1 (0x1), region = 78 }

// kernel: hierarchical_omr_forward.12
= control target key start
LH: loop header
LB: loop body
LE: loop exit
PB: predicated region body
PF: predicated region fallthrough
CT: control target
= control target key end

     0   :  { %s756_s18 = smov 0   ;;  %s865_s0 = inlined_call_operand.vmem [shape: f32[2,48,8], index: 0, kind: input, shape index: {}]   ;;  %s866_s1 = inlined_call_operand.vmem [shape: bf16[9,8,16], index: 1, kind: input, shape index: {}]   ;;  %s867_s2 = inlined_call_operand.vmem [shape: f32[1,16], index: 2, kind: input, shape index: {}]   ;;  %s868_s3 = inlined_call_operand.vmem [shape: bf16[16,34], index: 3, kind: input, shape index: {}]   ;;  %s869_s4 = inlined_call_operand.vmem [shape: f32[1,34], index: 4, kind: input, shape index: {}]   ;;  %s870_s5 = inlined_call_operand.vmem [shape: f32[2,24,34], index: 5, kind: output, shape index: {}]  }
   0x1 LB: > { %s662_s19 = sadd.s32 4294967295, %s724_s18   ;;  %p666_p0 = scmp.ge.s32.totalorder %s724_s18, 1  ;;  %s724_s18 = sphi %s756_s18, %s15_s18  }
   0x2   : > { %p187_p1 = scmp.lt.s32.totalorder %s724_s18, 3 }
   0x4   : > { %p188_p2 = pnand %p666_p0, %p187_p1 }
   0x5   : > { %p215_p3 = scmp.lt.s32.totalorder (!%p188_p2), %s662_s19, 1 }
   0x6   : > { %191 = sbr.rel (%p188_p2) target bundleno = 369 (0x171), region = 40 }
   0xb   : > { %v669_v0 = vld [vmem:[%s866_s1 + $0x4] sm:$0xf]  ;;  %vm246_vm0 = vcmask 1043456   ;;  %v231_v1 = vld [vmem:[%s866_s1] sm:$0xf]  ;;  %s872_s19 = smov (!%p215_p3, %s662_s19), 1 }
   0xc   : > { %v248_v2 = vsel %vm246_vm0, %v669_v0, 0  ;;  %v275_v3 = vsel %vm246_vm0, %v231_v1, 0  ;;  %v674_v4 = vld [vmem:[%s866_s1 + $0x8] sm:$0xf]  ;;  %v677_v6 = vld [vmem:[%s866_s1 + $0xc] sm:$0xf] }
   0xd   : > { %704 = vmatpush.bf16.msra.mxu2 %v248_v2  ;;  %705 = vmatpush.bf16.msra.mxu3 %v275_v3  ;;  %v309_v5 = vsel %vm246_vm0, %v674_v4, 0  ;;  %v680_v7 = vld [vmem:[%s866_s1 + $0x10] sm:$0xf]  ;;  %v346_v8 = vsel %vm246_vm0, %v677_v6, 0  ;;  %s706_s30 = smul.u32 48, %s872_s19  ;;  %vm239_vm1 = vcmask 64512  }
   0xe   : > { %257 = vmatpush.bf16.msra.mxu0 %v248_v2  ;;  %284 = vmatpush.bf16.msra.mxu1 %v275_v3  ;;  %v383_v9 = vsel %vm246_vm0, %v680_v7, 0  ;;  %v683_v10 = vld [vmem:[%s866_s1 + $0x14] sm:$0xf]  ;;  %v686_v11 = vld [vmem:[%s866_s1 + $0x18] sm:$0xf]  ;;  %v703_v1 = vld [vmem:[%s868_s3] sm:$0xff] }
   0xf   : > { %v420_v12 = vsel %vm246_vm0, %v683_v10, 0  ;;  %s797_s12 = scalar_lea.vmem %s865_s0, %s706_s30  ;;  %v689_v13 = vld [vmem:[%s866_s1 + $0x1c] sm:$0xf]  ;;  %v692_v14 = vld [vmem:[%s866_s1 + $0x20] sm:$0xf]  ;;  %v457_v25 = vsel %vm246_vm0, %v686_v11, 0 }
  0x10   : > { %v234_v15 = vld [vmem:[%s797_s12 + $0x16] sm:$0xff]  ;;  %v232_v17 = vld [vmem:[%s797_s12 + $0x6] sm:$0xff]  ;;  %v233_v20 = vld [vmem:[%s797_s12 + $0xe] sm:$0xff]  ;;  %v494_v26 = vsel %vm246_vm0, %v689_v13, 0  ;;  %v531_v27 = vsel %vm246_vm0, %v692_v14, 0  ;;  %vm578_vm2 = vcmask 130048  }
  0x11   : > { %318 = vmatpush.bf16.msrb.mxu2 %v309_v5  ;;  %355 = vmatpush.bf16.msrb.mxu3 %v346_v8  ;;  %v228_v16 = vld [vmem:[%s797_s12 + $0x15] sm:$0xff]  ;;  %v236_v18 = vpack.c.bf16 %v234_v15, %v234_v15  ;;  %v226_v21 = vld [vmem:[%s797_s12 + $0x5] sm:$0xff]  ;;  %v227_v22 = vld [vmem:[%s797_s12 + $0xd] sm:$0xff]  ;;  %v235_v23 = vpack.c.bf16 %v233_v20, %v232_v17  ;;  %s707_s23 = smul.u32 24, %s872_s19  ;;  %vm603_vm3 = vcmask 277504  }
  0x12   : > { %392 = vmatpush.bf16.msrb.mxu0 %v383_v9  ;;  %429 = vmatpush.bf16.msrb.mxu1 %v420_v12  ;;  %v230_v19 = vpack.c.bf16 %v228_v16, %v228_v16  ;;  %v229_v24 = vpack.c.bf16 %v227_v22, %v226_v21  ;;  %v295_v28 = vld [vmem:[%s797_s12 + $0x7] sm:$0xff]  ;;  %v296_v29 = vld [vmem:[%s797_s12 + $0xf] sm:$0xff]  ;;  %v409_v37 = vpack.c.bf16 %v228_v16, %v227_v22  ;;  %v297_v38 = vld [vmem:[%s797_s12 + $0x17] sm:$0xff] }
  0x13   : > { %671 = vmatmul.msk.bf16.vlgmr.msra.gmra.mxu2 %vm239_vm1, %v236_v18  ;;  %670 = vmatmul.msk.bf16.vlgmr.msra.gmra.mxu0 %vm239_vm1, %v235_v23  ;;  %v332_v30 = vld [vmem:[%s797_s12 + $0xb] sm:$0xff]  ;;  %v333_v31 = vld [vmem:[%s797_s12 + $0x13] sm:$0xff]  ;;  %v298_v34 = vpack.c.bf16 %v296_v29, %v295_v28  ;;  %v334_v39 = vld [vmem:[%s797_s12 + $0x1b] sm:$0xff]  ;;  %v299_v42 = vpack.c.bf16 %v297_v38, %v297_v38  ;;  %s224_s28 = scalar_lea.vmem %s870_s5, %s707_s23 }
  0x14   : > { %673 = vmatmul.msk.bf16.vlgmr.msra.gmra.mxu3 %vm239_vm1, %v230_v19  ;;  %672 = vmatmul.msk.bf16.vlgmr.msra.gmra.mxu1 %vm239_vm1, %v229_v24  ;;  %v369_v32 = vld [vmem:[%s797_s12 + $0xc] sm:$0xff]  ;;  %v370_v33 = vld [vmem:[%s797_s12 + $0x14] sm:$0xff]  ;;  %v335_v35 = vpack.c.bf16 %v333_v31, %v332_v30  ;;  %v371_v40 = vld [vmem:[%s797_s12 + $0x1c] sm:$0xff]  ;;  %v336_v43 = vpack.c.bf16 %v334_v39, %v334_v39  ;;  %v520_v52 = vpack.c.bf16 %v334_v39, %v333_v31 }
  0x15   : > { %466 = vmatpush.bf16.msra.mxu2 %v457_v25  ;;  %503 = vmatpush.bf16.msra.mxu3 %v494_v26  ;;  %v372_v36 = vpack.c.bf16 %v370_v33, %v369_v32  ;;  %v408_v41 = vld [vmem:[%s797_s12 + $0x1d] sm:$0xff]  ;;  %v373_v44 = vpack.c.bf16 %v371_v40, %v371_v40  ;;  %v443_v46 = vld [vmem:[%s797_s12 + $0x11] sm:$0xff] }
  0x16   : > { %540 = vmatpush.bf16.msra.mxu0 %v531_v27  ;;  %v410_v45 = vpack.c.bf16 %v408_v41, %v408_v41  ;;  %v444_v47 = vld [vmem:[%s797_s12 + $0x19] sm:$0xff]  ;;  %v445_v53 = vld [vmem:[%s797_s12 + $0x21] sm:$0xff]  ;;  %592 = vmatpush.bf16.msra.mxu1 %v703_v1 }
  0x17   : > { %v480_v48 = vld [vmem:[%s797_s12 + $0x12] sm:$0xff]  ;;  %v481_v49 = vld [vmem:[%s797_s12 + $0x1a] sm:$0xff]  ;;  %v446_v50 = vpack.c.bf16 %v444_v47, %v443_v46  ;;  %v482_v54 = vld [vmem:[%s797_s12 + $0x22] sm:$0xff]  ;;  %v447_v56 = vpack.c.bf16 %v445_v53, %v445_v53 }
  0x18   : > { %v483_v51 = vpack.c.bf16 %v481_v49, %v480_v48  ;;  %v519_v55 = vld [vmem:[%s797_s12 + $0x23] sm:$0xff]  ;;  %v484_v57 = vpack.c.bf16 %v482_v54, %v482_v54  ;;  %v717_v1 = vld [vmem:[%s869_s4] ss:$0 sm:$0xff] }
  0x19   : > { %v521_v58 = vpack.c.bf16 %v519_v55, %v519_v55 }
  0x23   : > { %675 = vmatmul.msk.bf16.vlgmr.msrb.gmra.mxu2 %vm239_vm1, %v298_v34  ;;  %681 = vmatmul.msk.bf16.vlgmr.msrb.gmra.mxu0 %vm239_vm1, %v372_v36 }
  0x24   : > { %678 = vmatmul.msk.bf16.vlgmr.msrb.gmra.mxu3 %vm239_vm1, %v335_v35  ;;  %684 = vmatmul.msk.bf16.vlgmr.msrb.gmra.mxu1 %vm239_vm1, %v409_v37 }
  0x33   : > { %676 = vmatmul.msk.bf16.gmra.mxu2 %vm239_vm1, %v299_v42  ;;  %682 = vmatmul.msk.bf16.gmra.mxu0 %vm239_vm1, %v373_v44  ;;  %v716_v42 = vld [vmem:[%s867_s2] ss:$0 sm:$0xff] }
  0x34   : > { %679 = vmatmul.msk.bf16.gmra.mxu3 %vm239_vm1, %v336_v43  ;;  %685 = vmatmul.msk.bf16.gmra.mxu1 %vm239_vm1, %v410_v45 }
  0x43   : > { %687 = vmatmul.msk.bf16.vlgmr.msra.gmra.mxu2 %vm239_vm1, %v446_v50  ;;  %693 = vmatmul.msk.bf16.vlgmr.msra.gmra.mxu0 %vm239_vm1, %v520_v52 }
  0x44   : > { %690 = vmatmul.msk.bf16.vlgmr.msra.gmra.mxu3 %vm239_vm1, %v483_v51 }
  0x53   : > { %688 = vmatmul.msk.bf16.gmra.mxu2 %vm239_vm1, %v447_v56  ;;  %694 = vmatmul.msk.bf16.gmra.mxu0 %vm239_vm1, %v521_v58 }
  0x54   : > { %691 = vmatmul.msk.bf16.gmra.mxu3 %vm239_vm1, %v484_v57 }
  0x90   : > { %v259_v59 = vpop.f32.mrf.mxu0 }
  0x91   : > { %v286_v60 = vpop.f32.mrf.mxu1 }
  0x92   : > { %v287_v16 = vadd.f32 %v286_v60, %v259_v59 }
  0x96   : > { %v264_v61 = vpop.f32.mrf.mxu2 }
  0x97   : > { %v291_v62 = vpop.f32.mrf.mxu3 }
  0x98   : > { %v261_v63 = vpop.f32.mrf.mxu0  ;;  %v292_v31 = vadd.f32 %v291_v62, %v264_v61 }
  0x99   : > { %v288_v0 = vpop.f32.mrf.mxu1 }
  0x9a   : > { %v289_v23 = vadd.f32 %v288_v0, %v261_v63 }
  0x9e   : > { %v266_v2 = vpop.f32.mrf.mxu2 }
  0x9f   : > { %v293_v3 = vpop.f32.mrf.mxu3 }
  0xa0   : > { %v394_v4 = vpop.f32.mrf.mxu0 }
  0xa1   : > { %v431_v5 = vpop.f32.mrf.mxu1 }
  0xa6   : > { %v320_v6 = vpop.f32.mrf.mxu2 }
  0xa7   : > { %v357_v7 = vpop.f32.mrf.mxu3  ;;  %v329_v17 = vadd.f32 %v320_v6, %v287_v16 }
  0xa8   : > { %v396_v8 = vpop.f32.mrf.mxu0 }
  0xa9   : > { %v433_v9 = vpop.f32.mrf.mxu1  ;;  %v366_v20 = vadd.f32 %v357_v7, %v329_v17 }
  0xab   : > { %v403_v24 = vadd.f32 %v394_v4, %v366_v20 }
  0xad   : > { %v440_v27 = vadd.f32 %v431_v5, %v403_v24 }
  0xae   : > { %v322_v10 = vpop.f32.mrf.mxu2 }
  0xaf   : > { %v359_v11 = vpop.f32.mrf.mxu3  ;;  %v330_v25 = vadd.f32 %v322_v10, %v289_v23 }
  0xb0   : > { %v399_v12 = vpop.f32.mrf.mxu0 }
  0xb1   : > { %v436_v13 = vpop.f32.mrf.mxu1  ;;  %v367_v28 = vadd.f32 %v359_v11, %v330_v25 }
  0xb3   : > { %v404_v33 = vadd.f32 %v396_v8, %v367_v28 }
  0xb5   : > { %v441_v37 = vadd.f32 %v433_v9, %v404_v33 }
  0xb6   : > { %v325_v14 = vpop.f32.mrf.mxu2 }
  0xb7   : > { %v362_v15 = vpop.f32.mrf.mxu3  ;;  %v331_v34 = vadd.f32 %v325_v14, %v292_v31 }
  0xb8   : > { %v401_v18 = vpop.f32.mrf.mxu0 }
  0xb9   : > { %v438_v19 = vpop.f32.mrf.mxu1  ;;  %v368_v38 = vadd.f32 %v362_v15, %v331_v34 }
  0xbb   : > { %v405_v44 = vadd.f32 %v399_v12, %v368_v38 }
  0xbd   : > { %v442_v49 = vadd.f32 %v436_v13, %v405_v44 }
  0xbe   : > { %v327_v21 = vpop.f32.mrf.mxu2 }
  0xbf   : > { %v364_v22 = vpop.f32.mrf.mxu3 }
  0xc0   : > { %v542_v26 = vpop.f32.mrf.mxu0 }
  0xc6   : > { %v468_v29 = vpop.f32.mrf.mxu2 }
  0xc7   : > { %v505_v30 = vpop.f32.mrf.mxu3  ;;  %v477_v32 = vadd.f32 %v468_v29, %v440_v27 }
  0xc8   : > { %v544_v35 = vpop.f32.mrf.mxu0 }
  0xc9   : > { %v514_v36 = vadd.f32 %v505_v30, %v477_v32 }
  0xcb   : > { %v551_v41 = vadd.f32 %v542_v26, %v514_v36 }
  0xcd   : > { %v558_v47 = vadd.f32 %v716_v42, %v551_v41 }
  0xce   : > { %v470_v39 = vpop.f32.mrf.mxu2 }
  0xcf   : > { %v507_v40 = vpop.f32.mrf.mxu3  ;;  %v478_v43 = vadd.f32 %v470_v39, %v441_v37  ;;  %v561_v53 = vmax.f32 %v558_v47, 0.0 }
  0xd0   : > { %v547_v46 = vpop.f32.mrf.mxu0 }
  0xd1   : > { %v515_v45 = vadd.f32 %v507_v40, %v478_v43 }
  0xd3   : > { %v552_v48 = vadd.f32 %v544_v35, %v515_v45 }
  0xd5   : > { %v559_v50 = vadd.f32 %v716_v42, %v552_v48 }
  0xd6   : > { %v473_v51 = vpop.f32.mrf.mxu2 }
  0xd7   : > { %v510_v52 = vpop.f32.mrf.mxu3  ;;  %v562_v54 = vmax.f32 %v559_v50, 0.0  ;;  %v479_v55 = vadd.f32 %v473_v51, %v442_v49 }
  0xd8   : > { %v549_v58 = vpop.f32.mrf.mxu0 }
  0xd9   : > { %v564_v56 = vpack.c.bf16 %v562_v54, %v561_v53  ;;  %v516_v57 = vadd.f32 %v510_v52, %v479_v55 }
  0xdb   : > { %699 = vmatmul.msk.bf16.vlgmr.msra.gmra.mxu1 %vm578_vm2, %v564_v56  ;;  %v553_v59 = vadd.f32 %v547_v46, %v516_v57 }
  0xdd   : > { %v560_v62 = vadd.f32 %v716_v42, %v553_v59 }
  0xde   : > { %v475_v60 = vpop.f32.mrf.mxu2 }
  0xdf   : > { %v512_v61 = vpop.f32.mrf.mxu3  ;;  %v563_v63 = vmax.f32 %v560_v62, 0.0 }
  0xe1   : > { %v565_v0 = vpack.c.bf16 %v563_v63, %v563_v63 }
  0xeb   : > { %700 = vmatmul.msk.bf16.gmra.mxu1 %vm578_vm2, %v565_v0 }
 0x158   : > { %v594_v2 = vpop.f32.mrf.mxu1 }
 0x159   : > { %v595_v3 = vadd.f32 %v717_v1, %v594_v2 }
 0x15b   : > { %604 = vst.msk [vmem:[%s224_s28] sm:$0xff] %vm603_vm3, %v595_v3 }
 0x160   : > { %v596_v4 = vpop.f32.mrf.mxu1 }
 0x161   : > { %v597_v5 = vadd.f32 %v717_v1, %v596_v4 }
 0x163   : > { %605 = vst.msk [vmem:[%s224_s28 + $0x8] sm:$0xff] %vm603_vm3, %v597_v5 }
 0x168   : > { %v599_v6 = vpop.f32.mrf.mxu1 }
 0x169   : > { %v600_v7 = vadd.f32 %v717_v1, %v599_v6 }
 0x16b   : > { %606 = vst.msk [vmem:[%s224_s28 + $0x10] sm:$0xff] %vm603_vm3, %v600_v7 }
 0x170   : > { %v601_v8 = vpop.f32.mrf.mxu1 }
 0x171 PF: > { %s15_s18 = sadd.s32 1, %s724_s18  }
 0x172   : > { %p12_p4 = scmp.ge.s32.totalorder %s15_s18, 4  }
 0x174   :  { %14 = sbr.rel (!%p12_p4) target bundleno = 1 (0x1), region = 78 }

// kernel: hierarchical_omr_forward.13
= control target key start
LH: loop header
LB: loop body
LE: loop exit
PB: predicated region body
PF: predicated region fallthrough
CT: control target
= control target key end

     0   :  { %s1199_s18 = smov 0   ;;  %s1481_s0 = inlined_call_operand.vmem [shape: f32[2,120,8], index: 0, kind: input, shape index: {}]   ;;  %s1482_s1 = inlined_call_operand.vmem [shape: bf16[9,8,16], index: 1, kind: input, shape index: {}]   ;;  %s1483_s2 = inlined_call_operand.vmem [shape: f32[1,16], index: 2, kind: input, shape index: {}]   ;;  %s1484_s3 = inlined_call_operand.vmem [shape: bf16[16,22], index: 3, kind: input, shape index: {}]   ;;  %s1485_s4 = inlined_call_operand.vmem [shape: f32[1,22], index: 4, kind: input, shape index: {}]   ;;  %s1486_s5 = inlined_call_operand.vmem [shape: f32[2,80,22], index: 5, kind: output, shape index: {}]  }
   0x1 LB: > { %s1075_s19 = sadd.s32 4294967295, %s1167_s18   ;;  %p1079_p0 = scmp.ge.s32.totalorder %s1167_s18, 1  ;;  %s1167_s18 = sphi %s1199_s18, %s15_s18  }
   0x2   : > { %p187_p1 = scmp.lt.s32.totalorder %s1167_s18, 3 }
   0x4   : > { %p188_p2 = pnand %p1079_p0, %p187_p1 }
   0x5   : > { %p215_p3 = scmp.lt.s32.totalorder (!%p188_p2), %s1075_s19, 1 }
   0x6   : > { %191 = sbr.rel (%p188_p2) target bundleno = 490 (0x1ea), region = 40 }
   0xb   : > { %v1082_v0 = vld [vmem:[%s1482_s1 + $0x4] sm:$0xf]  ;;  %vm275_vm0 = vcmask 1043456   ;;  %v241_v1 = vld [vmem:[%s1482_s1] sm:$0xf]  ;;  %s1488_s19 = smov (!%p215_p3, %s1075_s19), 1 }
   0xc   : > { %v277_v2 = vsel %vm275_vm0, %v1082_v0, 0  ;;  %v329_v3 = vsel %vm275_vm0, %v241_v1, 0  ;;  %v1105_v4 = vld [vmem:[%s1482_s1 + $0x10] sm:$0xf]  ;;  %v1093_v6 = vld [vmem:[%s1482_s1 + $0x8] sm:$0xf] }
   0xd   : > { %286 = vmatpush.bf16.msra.mxu0 %v277_v2  ;;  %1147 = vmatpush.bf16.msra.mxu2 %v277_v2  ;;  %v556_v5 = vsel %vm275_vm0, %v1105_v4, 0  ;;  %v1099_v7 = vld [vmem:[%s1482_s1 + $0xc] sm:$0xf]  ;;  %v398_v8 = vsel %vm275_vm0, %v1093_v6, 0  ;;  %s1149_s30 = smul.u32 120, %s1488_s19  ;;  %vm259_vm1 = vcmask 64512  }
   0xe   : > { %338 = vmatpush.bf16.msra.mxu1 %v329_v3  ;;  %1148 = vmatpush.bf16.msra.mxu3 %v329_v3  ;;  %v477_v9 = vsel %vm275_vm0, %v1099_v7, 0  ;;  %v1117_v22 = vld [vmem:[%s1482_s1 + $0x18] sm:$0xf]  ;;  %v1123_v24 = vld [vmem:[%s1482_s1 + $0x1c] sm:$0xf]  ;;  %vm959_vm2 = vcmask 130048  }
   0xf   : > { %s1233_s8 = scalar_lea.vmem %s1481_s0, %s1149_s30  ;;  %v714_v23 = vsel %vm275_vm0, %v1117_v22, 0  ;;  %v1111_v25 = vld [vmem:[%s1482_s1 + $0x14] sm:$0xf]  ;;  %v793_v26 = vsel %vm275_vm0, %v1123_v24, 0  ;;  %v1129_v40 = vld [vmem:[%s1482_s1 + $0x20] sm:$0xf] }
  0x10   : > { %v242_v10 = vld [vmem:[%s1233_s8 + $0xa] sm:$0xff]  ;;  %v243_v11 = vld [vmem:[%s1233_s8 + $0x12] sm:$0xff]  ;;  %v248_v12 = vld [vmem:[%s1233_s8 + $0x3a] sm:$0xff]  ;;  %v635_v27 = vsel %vm275_vm0, %v1111_v25, 0  ;;  %v872_v41 = vsel %vm275_vm0, %v1129_v40, 0  ;;  %s1150_s23 = smul.u32 80, %s1488_s19 }
  0x11   : > { %565 = vmatpush.bf16.msrb.mxu0 %v556_v5  ;;  %407 = vmatpush.bf16.msrb.mxu2 %v398_v8  ;;  %v252_v13 = vpack.c.bf16 %v243_v11, %v242_v10  ;;  %v249_v14 = vld [vmem:[%s1233_s8 + $0x42] sm:$0xff]  ;;  %v227_v16 = vld [vmem:[%s1233_s8 + $0x11] sm:$0xff]  ;;  %v232_v19 = vld [vmem:[%s1233_s8 + $0x39] sm:$0xff]  ;;  %vm1009_vm3 = vcmask 179200  }
  0x12   : > { %486 = vmatpush.bf16.msrb.mxu3 %v477_v9  ;;  %v226_v15 = vld [vmem:[%s1233_s8 + $0x9] sm:$0xff]  ;;  %v255_v17 = vpack.c.bf16 %v249_v14, %v248_v12  ;;  %v233_v20 = vld [vmem:[%s1233_s8 + $0x41] sm:$0xff]  ;;  %644 = vmatpush.bf16.msrb.mxu1 %v635_v27  ;;  %v251_v31 = vld [vmem:[%s1233_s8 + $0x52] sm:$0xff]  ;;  %s1456_s28 = scalar_lea.vmem %s1486_s5, %s1150_s23 }
  0x13   : > { %v236_v18 = vpack.c.bf16 %v227_v16, %v226_v15  ;;  %1083 = vmatmul.msk.bf16.vlgmr.msra.gmra.mxu0 %vm259_vm1, %v252_v13  ;;  %v239_v21 = vpack.c.bf16 %v233_v20, %v232_v19  ;;  %v244_v28 = vld [vmem:[%s1233_s8 + $0x1a] sm:$0xff]  ;;  %v245_v29 = vld [vmem:[%s1233_s8 + $0x22] sm:$0xff]  ;;  %v250_v30 = vld [vmem:[%s1233_s8 + $0x4a] sm:$0xff] }
  0x14   : > { %1086 = vmatmul.msk.bf16.vlgmr.msra.gmra.mxu2 %vm259_vm1, %v255_v17  ;;  %v228_v32 = vld [vmem:[%s1233_s8 + $0x19] sm:$0xff]  ;;  %v229_v33 = vld [vmem:[%s1233_s8 + $0x21] sm:$0xff]  ;;  %v234_v34 = vld [vmem:[%s1233_s8 + $0x49] sm:$0xff]  ;;  %v253_v36 = vpack.c.bf16 %v245_v29, %v244_v28  ;;  %v256_v37 = vpack.c.bf16 %v251_v31, %v250_v30 }
  0x15   : > { %1088 = vmatmul.msk.bf16.vlgmr.msra.gmra.mxu1 %vm259_vm1, %v236_v18  ;;  %1091 = vmatmul.msk.bf16.vlgmr.msra.gmra.mxu3 %vm259_vm1, %v239_v21  ;;  %v235_v35 = vld [vmem:[%s1233_s8 + $0x51] sm:$0xff]  ;;  %v237_v38 = vpack.c.bf16 %v229_v33, %v228_v32  ;;  %v230_v44 = vld [vmem:[%s1233_s8 + $0x29] sm:$0xff]  ;;  %v445_v48 = vld [vmem:[%s1233_s8 + $0x1b] sm:$0xff] }
  0x16   : > { %723 = vmatpush.bf16.msra.mxu2 %v714_v23  ;;  %802 = vmatpush.bf16.msra.mxu3 %v793_v26  ;;  %v240_v39 = vpack.c.bf16 %v235_v35, %v234_v34  ;;  %v246_v42 = vld [vmem:[%s1233_s8 + $0x2a] sm:$0xff]  ;;  %v247_v43 = vld [vmem:[%s1233_s8 + $0x32] sm:$0xff]  ;;  %v524_v54 = vld [vmem:[%s1233_s8 + $0x1c] sm:$0xff] }
  0x17   : > { %881 = vmatpush.bf16.msra.mxu0 %v872_v41  ;;  %v231_v45 = vld [vmem:[%s1233_s8 + $0x31] sm:$0xff]  ;;  %v254_v49 = vpack.c.bf16 %v247_v43, %v246_v42  ;;  %v368_v55 = vld [vmem:[%s1233_s8 + $0x23] sm:$0xff]  ;;  %v449_v4 = vld [vmem:[%s1233_s8 + $0x3b] sm:$0xff] }
  0x18   : > { %v365_v46 = vld [vmem:[%s1233_s8 + $0xb] sm:$0xff]  ;;  %v366_v47 = vld [vmem:[%s1233_s8 + $0x13] sm:$0xff]  ;;  %v238_v50 = vpack.c.bf16 %v231_v45, %v230_v44  ;;  %v1291_v57 = vld [vmem:[%s1233_s8 + $0x1d] sm:$0xff]  ;;  %v376_v60 = vpack.c.bf16 %v368_v55, %v445_v48 }
  0x19   : > { %v375_v51 = vpack.c.bf16 %v366_v47, %v365_v46  ;;  %v454_v52 = vpack.c.bf16 %v445_v48, %v366_v47  ;;  %v523_v53 = vld [vmem:[%s1233_s8 + $0x14] sm:$0xff]  ;;  %v447_v58 = vld [vmem:[%s1233_s8 + $0x2b] sm:$0xff]  ;;  %v528_v10 = vld [vmem:[%s1233_s8 + $0x3c] sm:$0xff] }
  0x1a   : > { %v602_v56 = vld [vmem:[%s1233_s8 + $0x15] sm:$0xff]  ;;  %v533_v59 = vpack.c.bf16 %v524_v54, %v523_v53  ;;  %v455_v62 = vpack.c.bf16 %v447_v58, %v368_v55  ;;  %v525_v63 = vld [vmem:[%s1233_s8 + $0x24] sm:$0xff]  ;;  %v526_v0 = vld [vmem:[%s1233_s8 + $0x2c] sm:$0xff] }
  0x1b   : > { %v612_v61 = vpack.c.bf16 %v1291_v57, %v602_v56  ;;  %v370_v1 = vld [vmem:[%s1233_s8 + $0x33] sm:$0xff]  ;;  %v604_v2 = vld [vmem:[%s1233_s8 + $0x25] sm:$0xff]  ;;  %v534_v5 = vpack.c.bf16 %v526_v0, %v525_v63  ;;  %v1314_v13 = vld [vmem:[%s1233_s8 + $0x3d] sm:$0xff] }
  0x1c   : > { %v605_v3 = vld [vmem:[%s1233_s8 + $0x2d] sm:$0xff]  ;;  %v377_v6 = vpack.c.bf16 %v370_v1, %v447_v58  ;;  %v456_v8 = vpack.c.bf16 %v449_v4, %v370_v1  ;;  %v372_v11 = vld [vmem:[%s1233_s8 + $0x43] sm:$0xff]  ;;  %v606_v12 = vld [vmem:[%s1233_s8 + $0x35] sm:$0xff] }
  0x1d   : > { %v613_v7 = vpack.c.bf16 %v605_v3, %v604_v2  ;;  %v527_v9 = vld [vmem:[%s1233_s8 + $0x34] sm:$0xff]  ;;  %v451_v14 = vld [vmem:[%s1233_s8 + $0x4b] sm:$0xff]  ;;  %v378_v16 = vpack.c.bf16 %v372_v11, %v449_v4  ;;  %v614_v17 = vpack.c.bf16 %v1314_v13, %v606_v12  ;;  %v532_v30 = vld [vmem:[%s1233_s8 + $0x5c] sm:$0xff]  ;;  %v692_v45 = vpack.c.bf16 %v606_v12, %v605_v3 }
  0x1e   : > { %v535_v15 = vpack.c.bf16 %v528_v10, %v527_v9  ;;  %v457_v18 = vpack.c.bf16 %v451_v14, %v372_v11  ;;  %v529_v19 = vld [vmem:[%s1233_s8 + $0x44] sm:$0xff]  ;;  %v530_v20 = vld [vmem:[%s1233_s8 + $0x4c] sm:$0xff]  ;;  %v453_v24 = vld [vmem:[%s1233_s8 + $0x5b] sm:$0xff] }
  0x1f   : > { %v374_v21 = vld [vmem:[%s1233_s8 + $0x53] sm:$0xff]  ;;  %v608_v22 = vld [vmem:[%s1233_s8 + $0x45] sm:$0xff]  ;;  %v536_v25 = vpack.c.bf16 %v530_v20, %v529_v19  ;;  %v1339_v32 = vld [vmem:[%s1233_s8 + $0x5d] sm:$0xff] }
  0x20   : > { %v1327_v23 = vld [vmem:[%s1233_s8 + $0x4d] sm:$0xff]  ;;  %v379_v26 = vpack.c.bf16 %v374_v21, %v451_v14  ;;  %v458_v28 = vpack.c.bf16 %v453_v24, %v374_v21  ;;  %v610_v31 = vld [vmem:[%s1233_s8 + $0x55] sm:$0xff]  ;;  %v760_v33 = vld [vmem:[%s1233_s8 + $0x1e] sm:$0xff] }
  0x21   : > { %v615_v27 = vpack.c.bf16 %v1327_v23, %v608_v22  ;;  %v531_v29 = vld [vmem:[%s1233_s8 + $0x54] sm:$0xff]  ;;  %v761_v34 = vld [vmem:[%s1233_s8 + $0x26] sm:$0xff]  ;;  %v764_v53 = vld [vmem:[%s1233_s8 + $0x3e] sm:$0xff]  ;;  %v694_v11 = vpack.c.bf16 %v610_v31, %v1327_v23 }
  0x22   : > { %v537_v35 = vpack.c.bf16 %v532_v30, %v531_v29  ;;  %v840_v40 = vld [vmem:[%s1233_s8 + $0x27] sm:$0xff]  ;;  %v763_v42 = vld [vmem:[%s1233_s8 + $0x36] sm:$0xff]  ;;  %v843_v3 = vld [vmem:[%s1233_s8 + $0x3f] sm:$0xff] }
  0x23   : > { %1084 = vmatmul.msk.bf16.gmra.mxu0 %vm259_vm1, %v253_v36  ;;  %v691_v36 = vpack.c.bf16 %v604_v2, %v1291_v57  ;;  %v762_v41 = vld [vmem:[%s1233_s8 + $0x2e] sm:$0xff]  ;;  %v765_v54 = vld [vmem:[%s1233_s8 + $0x46] sm:$0xff]  ;;  %v846_v23 = vld [vmem:[%s1233_s8 + $0x57] sm:$0xff] }
  0x24   : > { %1087 = vmatmul.msk.bf16.gmra.mxu2 %vm259_vm1, %v256_v37  ;;  %v616_v37 = vpack.c.bf16 %v1339_v32, %v610_v31  ;;  %v771_v46 = vpack.c.bf16 %v763_v42, %v762_v41  ;;  %v844_v4 = vld [vmem:[%s1233_s8 + $0x47] sm:$0xff] }
  0x25   : > { %1089 = vmatmul.msk.bf16.gmra.mxu1 %vm259_vm1, %v237_v38  ;;  %1092 = vmatmul.msk.bf16.gmra.mxu3 %vm259_vm1, %v240_v39  ;;  %v770_v38 = vpack.c.bf16 %v761_v34, %v760_v33  ;;  %v839_v39 = vld [vmem:[%s1233_s8 + $0x1f] sm:$0xff] }
  0x26   : > { %v849_v43 = vpack.c.bf16 %v840_v40, %v839_v39  ;;  %v1146_v14 = vld [vmem:[%s1484_s3] sm:$0xff] }
  0x27   : > { %982 = vmatpush.bf16.msra.mxu1 %v1146_v14 }
  0x33   : > { %1085 = vmatmul.msk.bf16.gmra.mxu0 %vm259_vm1, %v254_v49 }
  0x34   : > { %1094 = vmatmul.msk.bf16.vlgmr.msrb.gmra.mxu2 %vm259_vm1, %v375_v51  ;;  %v841_v51 = vld [vmem:[%s1233_s8 + $0x2f] sm:$0xff] }
  0x35   : > { %1090 = vmatmul.msk.bf16.gmra.mxu1 %vm259_vm1, %v238_v50  ;;  %1100 = vmatmul.msk.bf16.vlgmr.msrb.gmra.mxu3 %vm259_vm1, %v454_v52  ;;  %v842_v52 = vld [vmem:[%s1233_s8 + $0x37] sm:$0xff] }
  0x36   : > { %v850_v56 = vpack.c.bf16 %v842_v52, %v841_v51 }
  0x43   : > { %1106 = vmatmul.msk.bf16.vlgmr.msrb.gmra.mxu0 %vm259_vm1, %v533_v59  ;;  %v693_v59 = vpack.c.bf16 %v608_v22, %v1314_v13  ;;  %v845_v22 = vld [vmem:[%s1233_s8 + $0x4f] sm:$0xff] }
  0x44   : > { %1095 = vmatmul.msk.bf16.gmra.mxu2 %vm259_vm1, %v376_v60  ;;  %v852_v30 = vpack.c.bf16 %v846_v23, %v845_v22 }
  0x45   : > { %1112 = vmatmul.msk.bf16.vlgmr.msrb.gmra.mxu1 %vm259_vm1, %v612_v61  ;;  %1101 = vmatmul.msk.bf16.gmra.mxu3 %vm259_vm1, %v455_v62  ;;  %v772_v61 = vpack.c.bf16 %v765_v54, %v764_v53 }
  0x53   : > { %1107 = vmatmul.msk.bf16.gmra.mxu0 %vm259_vm1, %v534_v5  ;;  %v766_v5 = vld [vmem:[%s1233_s8 + $0x4e] sm:$0xff] }
  0x54   : > { %1096 = vmatmul.msk.bf16.gmra.mxu2 %vm259_vm1, %v377_v6  ;;  %v767_v6 = vld [vmem:[%s1233_s8 + $0x56] sm:$0xff] }
  0x55   : > { %1113 = vmatmul.msk.bf16.gmra.mxu1 %vm259_vm1, %v613_v7  ;;  %1102 = vmatmul.msk.bf16.gmra.mxu3 %vm259_vm1, %v456_v8  ;;  %v851_v8 = vpack.c.bf16 %v844_v4, %v843_v3  ;;  %v773_v13 = vpack.c.bf16 %v767_v6, %v766_v5 }
  0x63   : > { %1108 = vmatmul.msk.bf16.gmra.mxu0 %vm259_vm1, %v535_v15 }
  0x64   : > { %1097 = vmatmul.msk.bf16.gmra.mxu2 %vm259_vm1, %v378_v16 }
  0x65   : > { %1114 = vmatmul.msk.bf16.gmra.mxu1 %vm259_vm1, %v614_v17  ;;  %1103 = vmatmul.msk.bf16.gmra.mxu3 %vm259_vm1, %v457_v18 }
  0x73   : > { %1109 = vmatmul.msk.bf16.gmra.mxu0 %vm259_vm1, %v536_v25  ;;  %v690_v25 = vld [vmem:[%s1233_s8 + $0x65] sm:$0xff] }
  0x74   : > { %1098 = vmatmul.msk.bf16.gmra.mxu2 %vm259_vm1, %v379_v26 }
  0x75   : > { %1115 = vmatmul.msk.bf16.gmra.mxu1 %vm259_vm1, %v615_v27  ;;  %1104 = vmatmul.msk.bf16.gmra.mxu3 %vm259_vm1, %v458_v28  ;;  %v768_v27 = vld [vmem:[%s1233_s8 + $0x5e] sm:$0xff]  ;;  %v769_v28 = vld [vmem:[%s1233_s8 + $0x66] sm:$0xff] }
  0x83   : > { %1110 = vmatmul.msk.bf16.gmra.mxu0 %vm259_vm1, %v537_v35  ;;  %v695_v35 = vpack.c.bf16 %v690_v25, %v1339_v32 }
  0x84   : > { %1118 = vmatmul.msk.bf16.vlgmr.msra.gmra.mxu2 %vm259_vm1, %v691_v36 }
  0x85   : > { %1116 = vmatmul.msk.bf16.gmra.mxu1 %vm259_vm1, %v616_v37  ;;  %1124 = vmatmul.msk.bf16.vlgmr.msra.gmra.mxu3 %vm259_vm1, %v770_v38  ;;  %v774_v37 = vpack.c.bf16 %v769_v28, %v768_v27 }
  0x90   : > { %v288_v44 = vpop.f32.mrf.mxu0 }
  0x92   : > { %v340_v1 = vpop.f32.mrf.mxu1 }
  0x93   : > { %1130 = vmatmul.msk.bf16.vlgmr.msra.gmra.mxu0 %vm259_vm1, %v849_v43  ;;  %v341_v16 = vadd.f32 %v340_v1, %v288_v44 }
  0x94   : > { %1119 = vmatmul.msk.bf16.gmra.mxu2 %vm259_vm1, %v692_v45 }
  0x95   : > { %1125 = vmatmul.msk.bf16.gmra.mxu3 %vm259_vm1, %v771_v46  ;;  %v847_v46 = vld [vmem:[%s1233_s8 + $0x5f] sm:$0xff] }
  0x97   : > { %v303_v47 = vpop.f32.mrf.mxu2 }
  0x98   : > { %v355_v48 = vpop.f32.mrf.mxu3  ;;  %v290_v49 = vpop.f32.mrf.mxu0 }
  0x99   : > { %v1356_v50 = vadd.f32 %v355_v48, %v303_v47  ;;  %v848_v47 = vld [vmem:[%s1233_s8 + $0x67] sm:$0xff] }
  0x9a   : > { %v342_v15 = vpop.f32.mrf.mxu1  ;;  %v853_v51 = vpack.c.bf16 %v848_v47, %v847_v46 }
  0x9b   : > { %v343_v26 = vadd.f32 %v342_v15, %v290_v49 }
  0x9f   : > { %v305_v55 = vpop.f32.mrf.mxu2 }
  0xa0   : > { %v357_v57 = vpop.f32.mrf.mxu3  ;;  %v293_v58 = vpop.f32.mrf.mxu0 }
  0xa1   : > { %v1363_v60 = vadd.f32 %v357_v57, %v305_v55 }
  0xa2   : > { %v345_v24 = vpop.f32.mrf.mxu1 }
  0xa3   : > { %1131 = vmatmul.msk.bf16.gmra.mxu0 %vm259_vm1, %v850_v56  ;;  %v346_v39 = vadd.f32 %v345_v24, %v293_v58 }
  0xa4   : > { %1120 = vmatmul.msk.bf16.gmra.mxu2 %vm259_vm1, %v693_v59 }
  0xa5   : > { %1126 = vmatmul.msk.bf16.gmra.mxu3 %vm259_vm1, %v772_v61 }
  0xa7   : > { %v308_v62 = vpop.f32.mrf.mxu2 }
  0xa8   : > { %v360_v63 = vpop.f32.mrf.mxu3  ;;  %v295_v0 = vpop.f32.mrf.mxu0 }
  0xa9   : > { %v1368_v2 = vadd.f32 %v360_v63, %v308_v62 }
  0xaa   : > { %v347_v40 = vpop.f32.mrf.mxu1 }
  0xab   : > { %v348_v48 = vadd.f32 %v347_v40, %v295_v0 }
  0xaf   : > { %v310_v7 = vpop.f32.mrf.mxu2 }
  0xb0   : > { %v362_v9 = vpop.f32.mrf.mxu3  ;;  %v298_v10 = vpop.f32.mrf.mxu0 }
  0xb1   : > { %v1375_v12 = vadd.f32 %v362_v9, %v310_v7 }
  0xb2   : > { %v350_v55 = vpop.f32.mrf.mxu1 }
  0xb3   : > { %1132 = vmatmul.msk.bf16.gmra.mxu0 %vm259_vm1, %v851_v8  ;;  %v351_v58 = vadd.f32 %v350_v55, %v298_v10 }
  0xb4   : > { %1121 = vmatmul.msk.bf16.gmra.mxu2 %vm259_vm1, %v694_v11 }
  0xb5   : > { %1127 = vmatmul.msk.bf16.gmra.mxu3 %vm259_vm1, %v773_v13 }
  0xb7   : > { %v409_v17 = vpop.f32.mrf.mxu2 }
  0xb8   : > { %v434_v18 = vadd.f32 %v409_v17, %v341_v16  ;;  %v488_v19 = vpop.f32.mrf.mxu3  ;;  %v300_v20 = vpop.f32.mrf.mxu0 }
  0xba   : > { %v513_v21 = vadd.f32 %v488_v19, %v434_v18  ;;  %v352_v0 = vpop.f32.mrf.mxu1 }
  0xbb   : > { %v353_v4 = vadd.f32 %v352_v0, %v300_v20 }
  0xbf   : > { %v411_v29 = vpop.f32.mrf.mxu2 }
  0xc0   : > { %v435_v31 = vadd.f32 %v411_v29, %v343_v26  ;;  %v490_v33 = vpop.f32.mrf.mxu3  ;;  %v567_v34 = vpop.f32.mrf.mxu0 }
  0xc1   : > { %v1389_v36 = vadd.f32 %v567_v34, %v513_v21 }
  0xc2   : > { %v514_v38 = vadd.f32 %v490_v33, %v435_v31  ;;  %v646_v24 = vpop.f32.mrf.mxu1 }
  0xc3   : > { %1133 = vmatmul.msk.bf16.gmra.mxu0 %vm259_vm1, %v852_v30 }
  0xc4   : > { %1122 = vmatmul.msk.bf16.gmra.mxu2 %vm259_vm1, %v695_v35 }
  0xc5   : > { %1128 = vmatmul.msk.bf16.gmra.mxu3 %vm259_vm1, %v774_v37 }
  0xc7   : > { %v414_v41 = vpop.f32.mrf.mxu2 }
  0xc8   : > { %v436_v42 = vadd.f32 %v414_v41, %v346_v39  ;;  %v493_v43 = vpop.f32.mrf.mxu3  ;;  %v569_v44 = vpop.f32.mrf.mxu0 }
  0xc9   : > { %v1394_v45 = vadd.f32 %v569_v44, %v514_v38 }
  0xca   : > { %v515_v32 = vadd.f32 %v493_v43, %v436_v42  ;;  %v648_v30 = vpop.f32.mrf.mxu1 }
  0xcb   : > { %v672_v47 = vadd.f32 %v648_v30, %v1394_v45 }
  0xcf   : > { %v416_v49 = vpop.f32.mrf.mxu2 }
  0xd0   : > { %v437_v52 = vadd.f32 %v416_v49, %v348_v48  ;;  %v495_v53 = vpop.f32.mrf.mxu3  ;;  %v572_v54 = vpop.f32.mrf.mxu0 }
  0xd1   : > { %v1398_v56 = vadd.f32 %v572_v54, %v515_v32 }
  0xd2   : > { %v516_v57 = vadd.f32 %v495_v53, %v437_v52  ;;  %v651_v38 = vpop.f32.mrf.mxu1  ;;  %v1424_v52 = vld [vmem:[%s1483_s2] ss:$0 sm:$0xff] }
  0xd3   : > { %1134 = vmatmul.msk.bf16.gmra.mxu0 %vm259_vm1, %v853_v51  ;;  %v673_v45 = vadd.f32 %v651_v38, %v1398_v56 }
  0xd7   : > { %v419_v59 = vpop.f32.mrf.mxu2 }
  0xd8   : > { %v438_v61 = vadd.f32 %v419_v59, %v351_v58  ;;  %v498_v62 = vpop.f32.mrf.mxu3  ;;  %v574_v63 = vpop.f32.mrf.mxu0 }
  0xd9   : > { %v1401_v1 = vadd.f32 %v574_v63, %v516_v57 }
  0xda   : > { %v517_v3 = vadd.f32 %v498_v62, %v438_v61 }
  0xdf   : > { %v421_v5 = vpop.f32.mrf.mxu2 }
  0xe0   : > { %v439_v6 = vadd.f32 %v421_v5, %v353_v4  ;;  %v500_v7 = vpop.f32.mrf.mxu3  ;;  %v577_v8 = vpop.f32.mrf.mxu0 }
  0xe1   : > { %v1403_v9 = vadd.f32 %v577_v8, %v517_v3 }
  0xe2   : > { %v518_v11 = vadd.f32 %v500_v7, %v439_v6 }
  0xe7   : > { %v424_v13 = vpop.f32.mrf.mxu2 }
  0xe8   : > { %v440_v14 = vadd.f32 %v424_v13, %v1356_v50  ;;  %v503_v10 = vpop.f32.mrf.mxu3  ;;  %v579_v15 = vpop.f32.mrf.mxu0 }
  0xe9   : > { %v1406_v16 = vadd.f32 %v579_v15, %v518_v11 }
  0xea   : > { %v519_v17 = vadd.f32 %v503_v10, %v440_v14 }
  0xef   : > { %v426_v18 = vpop.f32.mrf.mxu2 }
  0xf0   : > { %v441_v19 = vadd.f32 %v426_v18, %v1363_v60  ;;  %v505_v21 = vpop.f32.mrf.mxu3  ;;  %v582_v20 = vpop.f32.mrf.mxu0 }
  0xf1   : > { %v1409_v22 = vadd.f32 %v582_v20, %v519_v17 }
  0xf2   : > { %v520_v23 = vadd.f32 %v505_v21, %v441_v19 }
  0xf7   : > { %v429_v25 = vpop.f32.mrf.mxu2 }
  0xf8   : > { %v442_v26 = vadd.f32 %v429_v25, %v1368_v2  ;;  %v508_v27 = vpop.f32.mrf.mxu3  ;;  %v584_v28 = vpop.f32.mrf.mxu0  ;;  %v671_v2 = vadd.f32 %v646_v24, %v1389_v36 }
  0xf9   : > { %v1412_v50 = vadd.f32 %v584_v28, %v520_v23 }
  0xfa   : > { %v521_v29 = vadd.f32 %v508_v27, %v442_v26 }
  0xff   : > { %v431_v31 = vpop.f32.mrf.mxu2 }
 0x100   : > { %v443_v33 = vadd.f32 %v431_v31, %v1375_v12  ;;  %v510_v34 = vpop.f32.mrf.mxu3  ;;  %v587_v60 = vpop.f32.mrf.mxu0 }
 0x101   : > { %v1415_v35 = vadd.f32 %v587_v60, %v521_v29  ;;  %v653_v12 = vpop.f32.mrf.mxu1 }
 0x102   : > { %v522_v37 = vadd.f32 %v510_v34, %v443_v33  ;;  %v674_v7 = vadd.f32 %v653_v12, %v1401_v1 }
 0x107   : > { %v725_v39 = vpop.f32.mrf.mxu2 }
 0x108   : > { %v804_v40 = vpop.f32.mrf.mxu3  ;;  %v589_v41 = vpop.f32.mrf.mxu0  ;;  %v750_v43 = vadd.f32 %v725_v39, %v671_v2 }
 0x109   : > { %v1417_v42 = vadd.f32 %v589_v41, %v522_v37  ;;  %v656_v59 = vpop.f32.mrf.mxu1 }
 0x10a   : > { %v829_v48 = vadd.f32 %v804_v40, %v750_v43  ;;  %v675_v20 = vadd.f32 %v656_v59, %v1403_v9 }
 0x10f   : > { %v727_v44 = vpop.f32.mrf.mxu2 }
 0x110   : > { %v806_v32 = vpop.f32.mrf.mxu3  ;;  %v883_v46 = vpop.f32.mrf.mxu0  ;;  %v751_v49 = vadd.f32 %v727_v44, %v672_v47 }
 0x111   : > { %v908_v51 = vadd.f32 %v883_v46, %v829_v48  ;;  %v658_v13 = vpop.f32.mrf.mxu1 }
 0x112   : > { %v830_v53 = vadd.f32 %v806_v32, %v751_v49  ;;  %v676_v30 = vadd.f32 %v658_v13, %v1406_v16 }
 0x113   : > { %v922_v36 = vadd.f32 %v1424_v52, %v908_v51 }
 0x115   : > { %v932_v62 = vmax.f32 %v922_v36, 0.0 }
 0x117   : > { %v730_v54 = vpop.f32.mrf.mxu2 }
 0x118   : > { %v809_v55 = vpop.f32.mrf.mxu3  ;;  %v885_v57 = vpop.f32.mrf.mxu0  ;;  %v752_v3 = vadd.f32 %v730_v54, %v673_v45 }
 0x119   : > { %v909_v58 = vadd.f32 %v885_v57, %v830_v53  ;;  %v661_v1 = vpop.f32.mrf.mxu1 }
 0x11a   : > { %v831_v8 = vadd.f32 %v809_v55, %v752_v3  ;;  %v677_v43 = vadd.f32 %v661_v1, %v1409_v22 }
 0x11b   : > { %v923_v61 = vadd.f32 %v1424_v52, %v909_v58 }
 0x11d   : > { %v933_v63 = vmax.f32 %v923_v61, 0.0 }
 0x11f   : > { %v942_v0 = vpack.c.bf16 %v933_v63, %v932_v62  ;;  %v732_v4 = vpop.f32.mrf.mxu2 }
 0x120   : > { %v811_v5 = vpop.f32.mrf.mxu3  ;;  %v888_v6 = vpop.f32.mrf.mxu0  ;;  %v753_v11 = vadd.f32 %v732_v4, %v674_v7 }
 0x121   : > { %1139 = vmatmul.msk.bf16.vlgmr.msra.gmra.mxu1 %vm959_vm2, %v942_v0  ;;  %v910_v14 = vadd.f32 %v888_v6, %v831_v8  ;;  %v663_v41 = vpop.f32.mrf.mxu1 }
 0x122   : > { %v832_v10 = vadd.f32 %v811_v5, %v753_v11  ;;  %v678_v48 = vadd.f32 %v663_v41, %v1412_v50 }
 0x123   : > { %v924_v18 = vadd.f32 %v1424_v52, %v910_v14 }
 0x125   : > { %v934_v23 = vmax.f32 %v924_v18, 0.0 }
 0x127   : > { %v735_v15 = vpop.f32.mrf.mxu2 }
 0x128   : > { %v814_v17 = vpop.f32.mrf.mxu3  ;;  %v890_v56 = vpop.f32.mrf.mxu0  ;;  %v754_v25 = vadd.f32 %v735_v15, %v675_v20 }
 0x129   : > { %v911_v19 = vadd.f32 %v890_v56, %v832_v10  ;;  %v666_v54 = vpop.f32.mrf.mxu1 }
 0x12a   : > { %v833_v31 = vadd.f32 %v814_v17, %v754_v25  ;;  %v679_v22 = vadd.f32 %v666_v54, %v1415_v35 }
 0x12b   : > { %v925_v21 = vadd.f32 %v1424_v52, %v911_v19 }
 0x12d   : > { %v935_v24 = vmax.f32 %v925_v21, 0.0 }
 0x12f   : > { %v737_v26 = vpop.f32.mrf.mxu2  ;;  %v943_v27 = vpack.c.bf16 %v935_v24, %v934_v23 }
 0x130   : > { %v816_v28 = vpop.f32.mrf.mxu3  ;;  %v893_v29 = vpop.f32.mrf.mxu0  ;;  %v755_v33 = vadd.f32 %v737_v26, %v676_v30 }
 0x131   : > { %1140 = vmatmul.msk.bf16.gmra.mxu1 %vm959_vm2, %v943_v27  ;;  %v912_v34 = vadd.f32 %v893_v29, %v833_v31  ;;  %v668_v0 = vpop.f32.mrf.mxu1 }
 0x132   : > { %v834_v60 = vadd.f32 %v816_v28, %v755_v33  ;;  %v680_v8 = vadd.f32 %v668_v0, %v1417_v42  ;;  %v1160_v42 = vld [vmem:[%s1485_s4] ss:$0 sm:$0xff] }
 0x133   : > { %v926_v9 = vadd.f32 %v1424_v52, %v912_v34 }
 0x135   : > { %v936_v44 = vmax.f32 %v926_v9, 0.0 }
 0x137   : > { %v740_v37 = vpop.f32.mrf.mxu2 }
 0x138   : > { %v819_v38 = vpop.f32.mrf.mxu3  ;;  %v895_v39 = vpop.f32.mrf.mxu0  ;;  %v756_v16 = vadd.f32 %v740_v37, %v677_v43 }
 0x139   : > { %v913_v40 = vadd.f32 %v895_v39, %v834_v60 }
 0x13a   : > { %v835_v51 = vadd.f32 %v819_v38, %v756_v16 }
 0x13b   : > { %v927_v2 = vadd.f32 %v1424_v52, %v913_v40 }
 0x13d   : > { %v937_v32 = vmax.f32 %v927_v2, 0.0 }
 0x13f   : > { %v742_v46 = vpop.f32.mrf.mxu2  ;;  %v944_v47 = vpack.c.bf16 %v937_v32, %v936_v44 }
 0x140   : > { %v898_v12 = vpop.f32.mrf.mxu0  ;;  %v821_v49 = vpop.f32.mrf.mxu3  ;;  %v757_v53 = vadd.f32 %v742_v46, %v678_v48 }
 0x141   : > { %1141 = vmatmul.msk.bf16.gmra.mxu1 %vm959_vm2, %v944_v47  ;;  %v914_v55 = vadd.f32 %v898_v12, %v835_v51 }
 0x142   : > { %v836_v57 = vadd.f32 %v821_v49, %v757_v53 }
 0x143   : > { %v928_v59 = vadd.f32 %v1424_v52, %v914_v55 }
 0x145   : > { %v938_v50 = vmax.f32 %v928_v59, 0.0 }
 0x147   : > { %v745_v36 = vpop.f32.mrf.mxu2 }
 0x148   : > { %v900_v58 = vpop.f32.mrf.mxu0  ;;  %v758_v45 = vadd.f32 %v745_v36, %v679_v22  ;;  %v824_v63 = vpop.f32.mrf.mxu3 }
 0x149   : > { %v915_v61 = vadd.f32 %v900_v58, %v836_v57 }
 0x14a   : > { %v837_v4 = vadd.f32 %v824_v63, %v758_v45 }
 0x14b   : > { %v929_v62 = vadd.f32 %v1424_v52, %v915_v61 }
 0x14d   : > { %v939_v3 = vmax.f32 %v929_v62, 0.0 }
 0x14f   : > { %v945_v5 = vpack.c.bf16 %v939_v3, %v938_v50  ;;  %v747_v6 = vpop.f32.mrf.mxu2 }
 0x150   : > { %v903_v7 = vpop.f32.mrf.mxu0  ;;  %v759_v35 = vadd.f32 %v747_v6, %v680_v8  ;;  %v826_v14 = vpop.f32.mrf.mxu3 }
 0x151   : > { %v916_v11 = vadd.f32 %v903_v7, %v837_v4  ;;  %1142 = vmatmul.msk.bf16.gmra.mxu1 %vm959_vm2, %v945_v5 }
 0x152   : > { %v838_v10 = vadd.f32 %v826_v14, %v759_v35 }
 0x153   : > { %v930_v13 = vadd.f32 %v1424_v52, %v916_v11 }
 0x155   : > { %v940_v18 = vmax.f32 %v930_v13, 0.0 }
 0x158   : > { %v905_v15 = vpop.f32.mrf.mxu0 }
 0x159   : > { %v917_v17 = vadd.f32 %v905_v15, %v838_v10 }
 0x15b   : > { %v931_v56 = vadd.f32 %v1424_v52, %v917_v17 }
 0x15d   : > { %v941_v19 = vmax.f32 %v931_v56, 0.0 }
 0x15f   : > { %v946_v21 = vpack.c.bf16 %v941_v19, %v940_v18 }
 0x161   : > { %1143 = vmatmul.msk.bf16.gmra.mxu1 %vm959_vm2, %v946_v21 }
 0x19e   : > { %v984_v52 = vpop.f32.mrf.mxu1 }
 0x19f   : > { %v985_v20 = vadd.f32 %v1160_v42, %v984_v52 }
 0x1a1   : > { %1010 = vst.msk [vmem:[%s1456_s28] sm:$0xff] %vm1009_vm3, %v985_v20 }
 0x1a6   : > { %v986_v23 = vpop.f32.mrf.mxu1 }
 0x1a7   : > { %v987_v24 = vadd.f32 %v1160_v42, %v986_v23 }
 0x1a9   : > { %1011 = vst.msk [vmem:[%s1456_s28 + $0x8] sm:$0xff] %vm1009_vm3, %v987_v24 }
 0x1ae   : > { %v989_v1 = vpop.f32.mrf.mxu1 }
 0x1af   : > { %v990_v25 = vadd.f32 %v1160_v42, %v989_v1 }
 0x1b1   : > { %1012 = vst.msk [vmem:[%s1456_s28 + $0x10] sm:$0xff] %vm1009_vm3, %v990_v25 }
 0x1b6   : > { %v991_v26 = vpop.f32.mrf.mxu1 }
 0x1b7   : > { %v992_v27 = vadd.f32 %v1160_v42, %v991_v26 }
 0x1b9   : > { %1013 = vst.msk [vmem:[%s1456_s28 + $0x18] sm:$0xff] %vm1009_vm3, %v992_v27 }
 0x1be   : > { %v994_v28 = vpop.f32.mrf.mxu1 }
 0x1bf   : > { %v995_v29 = vadd.f32 %v1160_v42, %v994_v28 }
 0x1c1   : > { %1014 = vst.msk [vmem:[%s1456_s28 + $0x20] sm:$0xff] %vm1009_vm3, %v995_v29 }
 0x1c6   : > { %v996_v30 = vpop.f32.mrf.mxu1 }
 0x1c7   : > { %v997_v31 = vadd.f32 %v1160_v42, %v996_v30 }
 0x1c9   : > { %1015 = vst.msk [vmem:[%s1456_s28 + $0x28] sm:$0xff] %vm1009_vm3, %v997_v31 }
 0x1ce   : > { %v999_v33 = vpop.f32.mrf.mxu1 }
 0x1cf   : > { %v1000_v34 = vadd.f32 %v1160_v42, %v999_v33 }
 0x1d1   : > { %1016 = vst.msk [vmem:[%s1456_s28 + $0x30] sm:$0xff] %vm1009_vm3, %v1000_v34 }
 0x1d6   : > { %v1001_v60 = vpop.f32.mrf.mxu1 }
 0x1d7   : > { %v1002_v37 = vadd.f32 %v1160_v42, %v1001_v60 }
 0x1d9   : > { %1017 = vst.msk [vmem:[%s1456_s28 + $0x38] sm:$0xff] %vm1009_vm3, %v1002_v37 }
 0x1de   : > { %v1004_v38 = vpop.f32.mrf.mxu1 }
 0x1df   : > { %v1005_v39 = vadd.f32 %v1160_v42, %v1004_v38 }
 0x1e1   : > { %1018 = vst.msk [vmem:[%s1456_s28 + $0x40] sm:$0xff] %vm1009_vm3, %v1005_v39 }
 0x1e6   : > { %v1006_v9 = vpop.f32.mrf.mxu1 }
 0x1e7   : > { %v1007_v40 = vadd.f32 %v1160_v42, %v1006_v9 }
 0x1e9   : > { %1019 = vst.msk [vmem:[%s1456_s28 + $0x48] sm:$0xff] %vm1009_vm3, %v1007_v40 }
 0x1ea PF: > { %s15_s18 = sadd.s32 1, %s1167_s18  }
 0x1eb   : > { %p12_p4 = scmp.ge.s32.totalorder %s15_s18, 4  }
 0x1ed   :  { %14 = sbr.rel (!%p12_p4) target bundleno = 1 (0x1), region = 78 }

</bundles_post_ra>
